<compile_context>
chip_gen: v5e
topology: v5e:2x2
jax: 0.10.0
libtpu: 0.0.40
codegen_flags: <defaults>
</compile_context>

<pallas_src>
import functools
import math

import jax
import jax.numpy as jnp
from jax.experimental import pallas as pl
from jax.experimental.pallas import tpu as pltpu

# ----------------------------- hyper-parameters (small, synthetic) -----------------------------
N_SYMBOLS      = 64      # len(symbols)
NUM_TONES      = 12
NUM_LANGUAGES  = 4
OUT            = 16      # out_channels  (proj -> 2*OUT)
HIDDEN         = 32      # hidden_channels
FILTER         = 64      # filter_channels
N_HEADS        = 4
N_LAYERS       = 3
KS             = 3       # kernel_size of FFN convs
WINDOW         = 4       # Encoder default window_size
GIN            = 16      # gin_channels
BERT_DIM       = 1024
COND_LAYER_IDX = 2       # Bert_VITS2 Encoder default when gin_channels != 0
LN_EPS         = 1e-5


# ===================================== in-kernel helpers =====================================

def _layer_norm(x, gamma, beta, eps):
    """Channel LayerNorm over the last (lane) axis.  x: [T, C]; gamma/beta: [1, C]."""
    mu = jnp.mean(x, axis=-1, keepdims=True)
    var = jnp.mean(jnp.square(x - mu), axis=-1, keepdims=True)
    return (x - mu) * jax.lax.rsqrt(var + eps) * gamma + beta


def _conv1d_same(x, w, b, ks, shift_masks):
    """'same'-padded 1-D conv over rows (time). x: [T, Cin]; w: [K*Cin, Cout] (rows k*Cin+c).
    shift_masks[off]: precomputed [T,1] 0/1 masks that zero the roll wrap-around rows."""
    T, Cin = x.shape
    pad_l = (ks - 1) // 2
    acc = None
    for k in range(ks):                       # static unroll; masks hoisted by the caller
        off = k - pad_l
        if off == 0:
            xk = x
        else:
            xk = pltpu.roll(x, (-off) % T, 0) * shift_masks[off]   # XLU shift + cheap mask mul
        term = jnp.dot(xk, w[k * Cin:(k + 1) * Cin, :], preferred_element_type=jnp.float32)
        acc = term if acc is None else acc + term
    return acc + b


# ======================================= fused kernel =======================================

def _text_encoder_kernel(
        lens_ref,                                            # scalar prefetch (SMEM): [B] int32
        emb_ref, bert_ref, bw_ref, bb_ref,                   # embeddings sum, concat bert (bf16), fused W(bf16)/b
        g_ref, sw_ref, sb_ref,                               # speaker embedding + linear
        band_ref,                                            # [2W+1, T, T] one-hot diagonal masks (constant)
        wqkv_ref, bqkv_ref, wo_ref, bo_ref,                  # attention projections (stacked [L,...], scale folded)
        relk_ref, relv_ref,                                  # raw relative-position tables [L, 2W+1, dk]
        ln1g_ref, ln1b_ref,
        w1_ref, b1_ref, w2_ref, b2_ref,                      # FFN convs (stacked)
        ln2g_ref, ln2b_ref,
        pw_ref, pb_ref,                                      # final proj
        out_ref,                                             # packed output: [1, T, H + 2*OUT]
        *, n_layers, n_heads, window, ks, cond_layer, eps):
    f32 = jnp.float32
    T, H = emb_ref.shape[1], emb_ref.shape[2]
    dk = H // n_heads
    nband = 2 * window + 1

    b = pl.program_id(0)
    length = lens_ref[b]

    # ------------- constants hoisted out of all layer / head loops (once per step) -------------
    t_col = jax.lax.broadcasted_iota(jnp.int32, (T, 1), 0)
    mask_col = (t_col < length).astype(f32)                                  # [T, 1]
    mask_row = (jax.lax.broadcasted_iota(jnp.int32, (1, T), 1) < length).astype(f32)
    # additive attention bias: 0 on valid (i,j), -1e4 on masked (same effect as masked_fill(-1e4)
    # for valid query rows; padded rows are garbage in the reference too and get zeroed later).
    score_bias = (mask_col * mask_row - 1.0) * 1e4                           # [T, T]
    band = band_ref[...]                                                     # [2W+1, T, T]
    band_list = [band[c] for c in range(nband)]                              # hoisted slices
    pad_l = (ks - 1) // 2
    shift_masks = {}
    for off in range(-pad_l, ks - pad_l):
        if off > 0:
            shift_masks[off] = (t_col < T - off).astype(f32)
        elif off < 0:
            shift_masks[off] = (t_col >= -off).astype(f32)

    # fused bert/ja_bert/en_bert 1x1 convs: one bf16 [T, 3*1024] @ [3*1024, H] MXU matmul (f32 acc)
    x = jnp.dot(bert_ref[0], bw_ref[...], preferred_element_type=f32) + bb_ref[...]
    x = (x + emb_ref[0]) * math.sqrt(H)
    x = x * mask_col

    for l in range(n_layers):                                     # static unroll over layers
        if l == cond_layer:
            gh = jnp.dot(g_ref[0], sw_ref[...], preferred_element_type=f32) + sb_ref[...]  # [1, H]
            x = (x + gh) * mask_col

        # ------------- multi-head attention with windowed relative positions -------------
        qkv = jnp.dot(x, wqkv_ref[l], preferred_element_type=f32) + bqkv_ref[l]       # [T, 3H]
        relk = relk_ref[l]                                                             # [2W+1, dk]
        relv = relv_ref[l]
        # per-head 2-D MXU matmuls, stacked so all VPU-heavy work below is done once for all heads
        scores = jnp.stack(
            [jax.lax.dot_general(qkv[:, h * dk:(h + 1) * dk],
                                 qkv[:, H + h * dk:H + (h + 1) * dk],
                                 (((1,), (1,)), ((), ())), preferred_element_type=f32)
             for h in range(n_heads)], axis=0)                                         # [nh, T, T]
        srel = jnp.stack(
            [jax.lax.dot_general(qkv[:, h * dk:(h + 1) * dk], relk,
                                 (((1,), (1,)), ((), ())), preferred_element_type=f32)
             for h in range(n_heads)], axis=0)                                         # [nh, T, 2W+1]
        # rel->abs placement on precomputed diagonal one-hots (2W+1 madds/layer, head-batched)
        for c in range(nband):
            scores = scores + srel[:, :, c:c + 1] * band_list[c]
        scores = scores + score_bias                                                   # masking
        smax = jnp.max(scores, axis=-1, keepdims=True)
        p = jnp.exp(scores - smax)
        p = p * pl.reciprocal(jnp.sum(p, axis=-1, keepdims=True), approx=True)         # softmax
        # abs->rel band collapse (head-batched), value term hits the MXU per head below
        wband = jnp.concatenate(
            [jnp.sum(p * band_list[c], axis=-1, keepdims=True) for c in range(nband)],
            axis=-1)                                                                   # [nh, T, 2W+1]
        outs = []
        for h in range(n_heads):                                                       # tiny 2-D matmuls
            o_h = jnp.dot(p[h], qkv[:, 2 * H + h * dk:2 * H + (h + 1) * dk],
                          preferred_element_type=f32)                                  # [T, dk]
            o_h = o_h + jnp.dot(wband[h], relv, preferred_element_type=f32)            # rel-value term
            outs.append(o_h)
        attn = jnp.concatenate(outs, axis=-1)                                          # [T, H]
        y = jnp.dot(attn, wo_ref[l], preferred_element_type=f32) + bo_ref[l]           # one out-proj
        # TODO(synk): dropout (p_dropout) is identity in inference mode.
        x = _layer_norm(x + y, ln1g_ref[l], ln1b_ref[l], eps)

        # ------------- FFN: conv(k=3, same) -> relu -> conv(k=3, same) -------------
        h1 = _conv1d_same(x * mask_col, w1_ref[l], b1_ref[l], ks, shift_masks)
        h1 = jnp.maximum(h1, 0.0)
        h2 = _conv1d_same(h1 * mask_col, w2_ref[l], b2_ref[l], ks, shift_masks)
        x = _layer_norm(x + h2 * mask_col, ln2g_ref[l], ln2b_ref[l], eps)

    x = x * mask_col                                                                   # encoder output
    stats = (jnp.dot(x, pw_ref[...], preferred_element_type=f32) + pb_ref[...]) * mask_col
    # single lane-dense packed store: [T, H + 2*OUT]
    out_ref[0] = jnp.concatenate([x, stats], axis=-1).astype(out_ref.dtype)


# ========================================== wrapper ==========================================

def text_encoder_forward(params, x_tokens, x_lengths, tone, language, bert, ja_bert, en_bert, g):
    B, T = x_tokens.shape
    H = HIDDEN
    dk = H // N_HEADS
    dtype = jnp.float32

    # glue: embedding-table gathers, channels-last transposes, weight stacking (done once)
    emb_sum = (jnp.take(params["emb"], x_tokens, axis=0)
               + jnp.take(params["tone_emb"], tone, axis=0)
               + jnp.take(params["lang_emb"], language, axis=0))            # [B, T, H]
    # bf16 inputs for the dominant [T,3072]@[3072,H] projection (native MXU dtype, half the DMA)
    bert_cat = jnp.concatenate([jnp.transpose(bert, (0, 2, 1)),
                                jnp.transpose(ja_bert, (0, 2, 1)),
                                jnp.transpose(en_bert, (0, 2, 1))],
                               axis=-1).astype(jnp.bfloat16)                # [B, T, 3*1024]
    bert_w = jnp.concatenate([params["bert_w"], params["ja_bert_w"], params["en_bert_w"]],
                             axis=0).astype(jnp.bfloat16)                   # [3*1024, H]
    bert_b = params["bert_b"] + params["ja_bert_b"] + params["en_bert_b"]   # [1, H]

    Ls = params["layers"]
    stk = lambda name: jnp.stack([L[name] for L in Ls])
    scale = dk ** -0.5                      # fold the 1/sqrt(dk) query scaling into W_q / b_q
    wqkv = jnp.concatenate([stk("w_q") * scale, stk("w_k"), stk("w_v")], axis=-1)   # [L, H, 3H]
    bqkv = jnp.concatenate([stk("b_q") * scale, stk("b_k"), stk("b_v")], axis=-1)   # [L, 1, 3H]
    wo, bo = stk("w_o"), stk("b_o")
    relk, relv = stk("emb_rel_k"), stk("emb_rel_v")
    ln1g, ln1b, ln2g, ln2b = stk("ln1_g"), stk("ln1_b"), stk("ln2_g"), stk("ln2_b")
    w1, b1, w2, b2 = stk("ffn_w1"), stk("ffn_b1"), stk("ffn_w2"), stk("ffn_b2")

    # one-hot diagonal "band" masks for the windowed relative terms, built once at trace time
    ii = jnp.arange(T)[:, None]
    jj = jnp.arange(T)[None, :]
    band = ((jj - ii) == (jnp.arange(2 * WINDOW + 1)[:, None, None] - WINDOW)).astype(dtype)

    has_g = g is not None
    g_in = jnp.transpose(g, (0, 2, 1)) if has_g else jnp.zeros((B, 1, GIN), dtype)  # [B, 1, GIN]
    cond_layer = COND_LAYER_IDX if has_g else -1

    kern = functools.partial(_text_encoder_kernel, n_layers=N_LAYERS, n_heads=N_HEADS,
                             window=WINDOW, ks=KS, cond_layer=cond_layer, eps=LN_EPS)

    perb3 = lambda b, lens: (b, 0, 0)       # per-batch blocks
    full2 = lambda b, lens: (0, 0)          # resident 2-D weights
    full3 = lambda b, lens: (0, 0, 0)       # resident stacked per-layer weights

    in_specs = [
        pl.BlockSpec((1, T, H), perb3),                               # emb_sum
        pl.BlockSpec((1, T, 3 * BERT_DIM), perb3),                    # bert_cat (bf16)
        pl.BlockSpec((3 * BERT_DIM, H), full2),                       # bert_w   (bf16)
        pl.BlockSpec((1, H), full2),                                  # bert_b
        pl.BlockSpec((1, 1, GIN), perb3),                             # g
        pl.BlockSpec((GIN, H), full2),                                # spk_w
        pl.BlockSpec((1, H), full2),                                  # spk_b
        pl.BlockSpec((2 * WINDOW + 1, T, T), full3),                  # band masks
        pl.BlockSpec((N_LAYERS, H, 3 * H), full3),                    # wqkv
        pl.BlockSpec((N_LAYERS, 1, 3 * H), full3),                    # bqkv
        pl.BlockSpec((N_LAYERS, H, H), full3),                        # wo
        pl.BlockSpec((N_LAYERS, 1, H), full3),                        # bo
        pl.BlockSpec((N_LAYERS, 2 * WINDOW + 1, dk), full3),          # emb_rel_k
        pl.BlockSpec((N_LAYERS, 2 * WINDOW + 1, dk), full3),          # emb_rel_v
        pl.BlockSpec((N_LAYERS, 1, H), full3),                        # ln1_g
        pl.BlockSpec((N_LAYERS, 1, H), full3),                        # ln1_b
        pl.BlockSpec((N_LAYERS, KS * H, FILTER), full3),              # ffn_w1
        pl.BlockSpec((N_LAYERS, 1, FILTER), full3),                   # ffn_b1
        pl.BlockSpec((N_LAYERS, KS * FILTER, H), full3),              # ffn_w2
        pl.BlockSpec((N_LAYERS, 1, H), full3),                        # ffn_b2
        pl.BlockSpec((N_LAYERS, 1, H), full3),                        # ln2_g
        pl.BlockSpec((N_LAYERS, 1, H), full3),                        # ln2_b
        pl.BlockSpec((H, 2 * OUT), full2),                            # proj_w
        pl.BlockSpec((1, 2 * OUT), full2),                            # proj_b
    ]

    packed = pl.pallas_call(
        kern,
        out_shape=jax.ShapeDtypeStruct((B, T, H + 2 * OUT), dtype),
        grid_spec=pltpu.PrefetchScalarGridSpec(
            num_scalar_prefetch=1,
            grid=(B,),
            in_specs=in_specs,
            out_specs=pl.BlockSpec((1, T, H + 2 * OUT), perb3),
        ),
        compiler_params=pltpu.CompilerParams(dimension_semantics=("parallel",)),
    )(x_lengths.astype(jnp.int32), emb_sum, bert_cat, bert_w, bert_b, g_in,
      params["spk_w"], params["spk_b"], band,
      wqkv, bqkv, wo, bo, relk, relv, ln1g, ln1b, w1, b1, w2, b2, ln2g, ln2b,
      params["proj_w"], params["proj_b"])

    x_enc = packed[..., :H]
    m = packed[..., H:H + OUT]
    logs = packed[..., H + OUT:]
    x_mask = (jnp.arange(T)[None, :] < x_lengths[:, None]).astype(dtype)

    # back to PyTorch NCW layout
    return (jnp.transpose(x_enc, (0, 2, 1)),
            jnp.transpose(m, (0, 2, 1)),
            jnp.transpose(logs, (0, 2, 1)),
            x_mask[:, None, :])


# ===================================== deterministic params =====================================

def init_params(key):
    ks = iter(jax.random.split(key, 256))

    def nrm(shape, scale):
        return jax.random.normal(next(ks), shape, jnp.float32) * scale

    p = {}
    p["emb"] = nrm((N_SYMBOLS, HIDDEN), HIDDEN ** -0.5)
    p["tone_emb"] = nrm((NUM_TONES, HIDDEN), HIDDEN ** -0.5)
    p["lang_emb"] = nrm((NUM_LANGUAGES, HIDDEN), HIDDEN ** -0.5)
    for name in ("bert", "ja_bert", "en_bert"):
        p[f"{name}_w"] = nrm((BERT_DIM, HIDDEN), BERT_DIM ** -0.5)   # [Cin, Cout] (1x1 conv)
        p[f"{name}_b"] = nrm((1, HIDDEN), 0.01)
    p["spk_w"] = nrm((GIN, HIDDEN), GIN ** -0.5)
    p["spk_b"] = jnp.zeros((1, HIDDEN), jnp.float32)

    dk = HIDDEN // N_HEADS
    layers = []
    for _ in range(N_LAYERS):
        L = {}
        for nm in ("q", "k", "v", "o"):
            L[f"w_{nm}"] = nrm((HIDDEN, HIDDEN), HIDDEN ** -0.5)
            L[f"b_{nm}"] = jnp.zeros((1, HIDDEN), jnp.float32)
        L["emb_rel_k"] = nrm((2 * WINDOW + 1, dk), dk ** -0.5)
        L["emb_rel_v"] = nrm((2 * WINDOW + 1, dk), dk ** -0.5)
        L["ln1_g"] = jnp.ones((1, HIDDEN), jnp.float32)
        L["ln1_b"] = jnp.zeros((1, HIDDEN), jnp.float32)
        L["ffn_w1"] = nrm((KS * HIDDEN, FILTER), (KS * HIDDEN) ** -0.5)   # rows ordered k*Cin + c
        L["ffn_b1"] = jnp.zeros((1, FILTER), jnp.float32)
        L["ffn_w2"] = nrm((KS * FILTER, HIDDEN), (KS * FILTER) ** -0.5)
        L["ffn_b2"] = jnp.zeros((1, HIDDEN), jnp.float32)
        L["ln2_g"] = jnp.ones((1, HIDDEN), jnp.float32)
        L["ln2_b"] = jnp.zeros((1, HIDDEN), jnp.float32)
        layers.append(L)
    p["layers"] = layers
    p["proj_w"] = nrm((HIDDEN, 2 * OUT), HIDDEN ** -0.5)
    p["proj_b"] = jnp.zeros((1, 2 * OUT), jnp.float32)
    return p


# ============================================ main ============================================

if __name__ == "__main__":
    B, T = 2, 8
    key = jax.random.PRNGKey(0)
    kp, k1, k2, k3, k4, k5, k6, k7 = jax.random.split(key, 8)

    params = init_params(kp)
    x_tokens = jax.random.randint(k1, (B, T), 0, N_SYMBOLS, dtype=jnp.int32)
    tone = jax.random.randint(k2, (B, T), 0, NUM_TONES, dtype=jnp.int32)
    language = jax.random.randint(k3, (B, T), 0, NUM_LANGUAGES, dtype=jnp.int32)
    x_lengths = jnp.array([8, 6], dtype=jnp.int32)
    bert = jax.random.normal(k4, (B, BERT_DIM, T), jnp.float32)
    ja_bert = jax.random.normal(k5, (B, BERT_DIM, T), jnp.float32)
    en_bert = jax.random.normal(k6, (B, BERT_DIM, T), jnp.float32)
    g = jax.random.normal(k7, (B, GIN, 1), jnp.float32)

    fwd = jax.jit(text_encoder_forward)
    x_out, m, logs, x_mask = fwd(params, x_tokens, x_lengths, tone, language,
                                 bert, ja_bert, en_bert, g)
    jax.block_until_ready((x_out, m, logs, x_mask))

    assert x_out.shape == (B, HIDDEN, T)
    assert m.shape == (B, OUT, T)
    assert logs.shape == (B, OUT, T)
    assert x_mask.shape == (B, 1, T)
    print("KERNEL_OK")
</pallas_src>

<mosaic_0001>
module attributes {stable_mosaic.version = 11 : i64} {
  func.func @_text_encoder_kernel(%arg0: i32, %arg1: memref<2xi32, #tpu.memory_space<smem>>, %arg2: memref<1x8x32xf32, #tpu.memory_space<vmem>>, %arg3: memref<1x8x3072xbf16, #tpu.memory_space<vmem>>, %arg4: memref<3072x32xbf16, #tpu.memory_space<vmem>>, %arg5: memref<1x32xf32, #tpu.memory_space<vmem>>, %arg6: memref<1x1x16xf32, #tpu.memory_space<vmem>>, %arg7: memref<16x32xf32, #tpu.memory_space<vmem>>, %arg8: memref<1x32xf32, #tpu.memory_space<vmem>>, %arg9: memref<9x8x8xf32, #tpu.memory_space<vmem>>, %arg10: memref<3x32x96xf32, #tpu.memory_space<vmem>>, %arg11: memref<3x1x96xf32, #tpu.memory_space<vmem>>, %arg12: memref<3x32x32xf32, #tpu.memory_space<vmem>>, %arg13: memref<3x1x32xf32, #tpu.memory_space<vmem>>, %arg14: memref<3x9x8xf32, #tpu.memory_space<vmem>>, %arg15: memref<3x9x8xf32, #tpu.memory_space<vmem>>, %arg16: memref<3x1x32xf32, #tpu.memory_space<vmem>>, %arg17: memref<3x1x32xf32, #tpu.memory_space<vmem>>, %arg18: memref<3x96x64xf32, #tpu.memory_space<vmem>>, %arg19: memref<3x1x64xf32, #tpu.memory_space<vmem>>, %arg20: memref<3x192x32xf32, #tpu.memory_space<vmem>>, %arg21: memref<3x1x32xf32, #tpu.memory_space<vmem>>, %arg22: memref<3x1x32xf32, #tpu.memory_space<vmem>>, %arg23: memref<3x1x32xf32, #tpu.memory_space<vmem>>, %arg24: memref<32x32xf32, #tpu.memory_space<vmem>>, %arg25: memref<1x32xf32, #tpu.memory_space<vmem>>, %arg26: memref<1x8x64xf32, #tpu.memory_space<vmem>>) attributes {dimension_semantics = [#tpu.dimension_semantics<parallel>], iteration_bounds = array<i64: 2>, scalar_prefetch = 1 : i64, scratch_operands = 0 : i64, tpu.core_type = #tpu.core_type<tc>, window_params = [{transform_indices = @transform_0, window_bounds = array<i64: 1, 8, 32>}, {transform_indices = @transform_1, window_bounds = array<i64: 1, 8, 3072>}, {pipeline_mode = #tpu.pipeline_mode<synchronous>, transform_indices = @transform_2, window_bounds = array<i64: 3072, 32>}, {pipeline_mode = #tpu.pipeline_mode<synchronous>, transform_indices = @transform_3, window_bounds = array<i64: 1, 32>}, {transform_indices = @transform_4, window_bounds = array<i64: 1, 1, 16>}, {pipeline_mode = #tpu.pipeline_mode<synchronous>, transform_indices = @transform_5, window_bounds = array<i64: 16, 32>}, {pipeline_mode = #tpu.pipeline_mode<synchronous>, transform_indices = @transform_6, window_bounds = array<i64: 1, 32>}, {pipeline_mode = #tpu.pipeline_mode<synchronous>, transform_indices = @transform_7, window_bounds = array<i64: 9, 8, 8>}, {pipeline_mode = #tpu.pipeline_mode<synchronous>, transform_indices = @transform_8, window_bounds = array<i64: 3, 32, 96>}, {pipeline_mode = #tpu.pipeline_mode<synchronous>, transform_indices = @transform_9, window_bounds = array<i64: 3, 1, 96>}, {pipeline_mode = #tpu.pipeline_mode<synchronous>, transform_indices = @transform_10, window_bounds = array<i64: 3, 32, 32>}, {pipeline_mode = #tpu.pipeline_mode<synchronous>, transform_indices = @transform_11, window_bounds = array<i64: 3, 1, 32>}, {pipeline_mode = #tpu.pipeline_mode<synchronous>, transform_indices = @transform_12, window_bounds = array<i64: 3, 9, 8>}, {pipeline_mode = #tpu.pipeline_mode<synchronous>, transform_indices = @transform_13, window_bounds = array<i64: 3, 9, 8>}, {pipeline_mode = #tpu.pipeline_mode<synchronous>, transform_indices = @transform_14, window_bounds = array<i64: 3, 1, 32>}, {pipeline_mode = #tpu.pipeline_mode<synchronous>, transform_indices = @transform_15, window_bounds = array<i64: 3, 1, 32>}, {pipeline_mode = #tpu.pipeline_mode<synchronous>, transform_indices = @transform_16, window_bounds = array<i64: 3, 96, 64>}, {pipeline_mode = #tpu.pipeline_mode<synchronous>, transform_indices = @transform_17, window_bounds = array<i64: 3, 1, 64>}, {pipeline_mode = #tpu.pipeline_mode<synchronous>, transform_indices = @transform_18, window_bounds = array<i64: 3, 192, 32>}, {pipeline_mode = #tpu.pipeline_mode<synchronous>, transform_indices = @transform_19, window_bounds = array<i64: 3, 1, 32>}, {pipeline_mode = #tpu.pipeline_mode<synchronous>, transform_indices = @transform_20, window_bounds = array<i64: 3, 1, 32>}, {pipeline_mode = #tpu.pipeline_mode<synchronous>, transform_indices = @transform_21, window_bounds = array<i64: 3, 1, 32>}, {pipeline_mode = #tpu.pipeline_mode<synchronous>, transform_indices = @transform_22, window_bounds = array<i64: 32, 32>}, {pipeline_mode = #tpu.pipeline_mode<synchronous>, transform_indices = @transform_23, window_bounds = array<i64: 1, 32>}, {transform_indices = @transform_24, window_bounds = array<i64: 1, 8, 64>}]} {
    %0 = arith.index_cast %arg0 : i32 to index
    %1 = memref.load %arg1[%0] : memref<2xi32, #tpu.memory_space<smem>>
    %2 = tpu.iota {dimensions = array<i32: 0>} : vector<8x1xi32>
    %3 = vector.broadcast %1 : i32 to vector<8x1xi32>
    %4 = arith.cmpi slt, %2, %3 : vector<8x1xi32>
    %5 = arith.extui %4 : vector<8x1xi1> to vector<8x1xi32>
    %6 = arith.sitofp %5 : vector<8x1xi32> to vector<8x1xf32>
    %7 = tpu.iota {dimensions = array<i32: 1>} : vector<1x8xi32>
    %8 = vector.broadcast %1 : i32 to vector<1x8xi32>
    %9 = arith.cmpi slt, %7, %8 : vector<1x8xi32>
    %10 = arith.extui %9 : vector<1x8xi1> to vector<1x8xi32>
    %11 = arith.sitofp %10 : vector<1x8xi32> to vector<1x8xf32>
    %12 = vector.broadcast %6 : vector<8x1xf32> to vector<8x8xf32>
    %13 = vector.broadcast %11 : vector<1x8xf32> to vector<8x8xf32>
    %14 = arith.mulf %12, %13 : vector<8x8xf32>
    %cst = arith.constant 1.000000e+00 : f32
    %15 = vector.broadcast %cst : f32 to vector<8x8xf32>
    %16 = arith.subf %14, %15 : vector<8x8xf32>
    %cst_0 = arith.constant 1.000000e+04 : f32
    %17 = vector.broadcast %cst_0 : f32 to vector<8x8xf32>
    %18 = arith.mulf %16, %17 : vector<8x8xf32>
    %c0 = arith.constant 0 : index
    %c0_1 = arith.constant 0 : index
    %c0_2 = arith.constant 0 : index
    %19 = vector.load %arg9[%c0, %c0_1, %c0_2] : memref<9x8x8xf32, #tpu.memory_space<vmem>>, vector<9x8x8xf32>
    %20 = vector.extract_strided_slice %19 {offsets = [0, 0, 0], sizes = [1, 8, 8], strides = [1, 1, 1]} : vector<9x8x8xf32> to vector<1x8x8xf32>
    %21 = vector.shape_cast %20 : vector<1x8x8xf32> to vector<8x8xf32>
    %22 = vector.extract_strided_slice %19 {offsets = [1, 0, 0], sizes = [1, 8, 8], strides = [1, 1, 1]} : vector<9x8x8xf32> to vector<1x8x8xf32>
    %23 = vector.shape_cast %22 : vector<1x8x8xf32> to vector<8x8xf32>
    %24 = vector.extract_strided_slice %19 {offsets = [2, 0, 0], sizes = [1, 8, 8], strides = [1, 1, 1]} : vector<9x8x8xf32> to vector<1x8x8xf32>
    %25 = vector.shape_cast %24 : vector<1x8x8xf32> to vector<8x8xf32>
    %26 = vector.extract_strided_slice %19 {offsets = [3, 0, 0], sizes = [1, 8, 8], strides = [1, 1, 1]} : vector<9x8x8xf32> to vector<1x8x8xf32>
    %27 = vector.shape_cast %26 : vector<1x8x8xf32> to vector<8x8xf32>
    %28 = vector.extract_strided_slice %19 {offsets = [4, 0, 0], sizes = [1, 8, 8], strides = [1, 1, 1]} : vector<9x8x8xf32> to vector<1x8x8xf32>
    %29 = vector.shape_cast %28 : vector<1x8x8xf32> to vector<8x8xf32>
    %30 = vector.extract_strided_slice %19 {offsets = [5, 0, 0], sizes = [1, 8, 8], strides = [1, 1, 1]} : vector<9x8x8xf32> to vector<1x8x8xf32>
    %31 = vector.shape_cast %30 : vector<1x8x8xf32> to vector<8x8xf32>
    %32 = vector.extract_strided_slice %19 {offsets = [6, 0, 0], sizes = [1, 8, 8], strides = [1, 1, 1]} : vector<9x8x8xf32> to vector<1x8x8xf32>
    %33 = vector.shape_cast %32 : vector<1x8x8xf32> to vector<8x8xf32>
    %34 = vector.extract_strided_slice %19 {offsets = [7, 0, 0], sizes = [1, 8, 8], strides = [1, 1, 1]} : vector<9x8x8xf32> to vector<1x8x8xf32>
    %35 = vector.shape_cast %34 : vector<1x8x8xf32> to vector<8x8xf32>
    %36 = vector.extract_strided_slice %19 {offsets = [8, 0, 0], sizes = [1, 8, 8], strides = [1, 1, 1]} : vector<9x8x8xf32> to vector<1x8x8xf32>
    %37 = vector.shape_cast %36 : vector<1x8x8xf32> to vector<8x8xf32>
    %c1_i32 = arith.constant 1 : i32
    %38 = vector.broadcast %c1_i32 : i32 to vector<8x1xi32>
    %39 = arith.cmpi sge, %2, %38 : vector<8x1xi32>
    %40 = arith.extui %39 : vector<8x1xi1> to vector<8x1xi32>
    %41 = arith.sitofp %40 : vector<8x1xi32> to vector<8x1xf32>
    %c7_i32 = arith.constant 7 : i32
    %42 = vector.broadcast %c7_i32 : i32 to vector<8x1xi32>
    %43 = arith.cmpi slt, %2, %42 : vector<8x1xi32>
    %44 = arith.extui %43 : vector<8x1xi1> to vector<8x1xi32>
    %45 = arith.sitofp %44 : vector<8x1xi32> to vector<8x1xf32>
    %c0_3 = arith.constant 0 : index
    %c0_4 = arith.constant 0 : index
    %c0_5 = arith.constant 0 : index
    %46 = vector.load %arg3[%c0_3, %c0_4, %c0_5] : memref<1x8x3072xbf16, #tpu.memory_space<vmem>>, vector<1x8x3072xbf16>
    %47 = vector.shape_cast %46 : vector<1x8x3072xbf16> to vector<8x3072xbf16>
    %c0_6 = arith.constant 0 : index
    %c0_7 = arith.constant 0 : index
    %48 = vector.load %arg4[%c0_6, %c0_7] : memref<3072x32xbf16, #tpu.memory_space<vmem>>, vector<3072x32xbf16>
    %cst_8 = arith.constant dense<0.000000e+00> : vector<8x32xf32>
    %49 = tpu.matmul %47, %48, %cst_8 {dimension_numbers = #tpu.dot_dimension_numbers<[1], [0], [0], [1], [0, 0, 1, 1], [], []>} : vector<8x3072xbf16>, vector<3072x32xbf16>, vector<8x32xf32> -> vector<8x32xf32>
    %c0_9 = arith.constant 0 : index
    %c0_10 = arith.constant 0 : index
    %50 = vector.load %arg5[%c0_9, %c0_10] : memref<1x32xf32, #tpu.memory_space<vmem>>, vector<1x32xf32>
    %51 = vector.broadcast %50 : vector<1x32xf32> to vector<8x32xf32>
    %52 = arith.addf %49, %51 : vector<8x32xf32>
    %c0_11 = arith.constant 0 : index
    %c0_12 = arith.constant 0 : index
    %c0_13 = arith.constant 0 : index
    %53 = vector.load %arg2[%c0_11, %c0_12, %c0_13] : memref<1x8x32xf32, #tpu.memory_space<vmem>>, vector<1x8x32xf32>
    %54 = vector.shape_cast %53 : vector<1x8x32xf32> to vector<8x32xf32>
    %55 = arith.addf %52, %54 : vector<8x32xf32>
    %cst_14 = arith.constant 5.65685415 : f32
    %56 = vector.broadcast %cst_14 : f32 to vector<8x32xf32>
    %57 = arith.mulf %55, %56 : vector<8x32xf32>
    %58 = vector.broadcast %6 : vector<8x1xf32> to vector<8x32xf32>
    %59 = arith.mulf %57, %58 : vector<8x32xf32>
    %c0_15 = arith.constant 0 : index
    %c0_16 = arith.constant 0 : index
    %c0_17 = arith.constant 0 : index
    %60 = vector.load %arg10[%c0_15, %c0_16, %c0_17] : memref<3x32x96xf32, #tpu.memory_space<vmem>>, vector<1x32x96xf32>
    %61 = vector.shape_cast %60 : vector<1x32x96xf32> to vector<32x96xf32>
    %cst_18 = arith.constant dense<0.000000e+00> : vector<8x96xf32>
    %62 = tpu.matmul %59, %61, %cst_18 {dimension_numbers = #tpu.dot_dimension_numbers<[1], [0], [0], [1], [0, 0, 1, 1], [], []>} : vector<8x32xf32>, vector<32x96xf32>, vector<8x96xf32> -> vector<8x96xf32>
    %c0_19 = arith.constant 0 : index
    %c0_20 = arith.constant 0 : index
    %c0_21 = arith.constant 0 : index
    %63 = vector.load %arg11[%c0_19, %c0_20, %c0_21] : memref<3x1x96xf32, #tpu.memory_space<vmem>>, vector<1x1x96xf32>
    %64 = vector.shape_cast %63 : vector<1x1x96xf32> to vector<1x96xf32>
    %65 = vector.broadcast %64 : vector<1x96xf32> to vector<8x96xf32>
    %66 = arith.addf %62, %65 : vector<8x96xf32>
    %c0_22 = arith.constant 0 : index
    %c0_23 = arith.constant 0 : index
    %c0_24 = arith.constant 0 : index
    %67 = vector.load %arg14[%c0_22, %c0_23, %c0_24] : memref<3x9x8xf32, #tpu.memory_space<vmem>>, vector<1x9x8xf32>
    %68 = vector.shape_cast %67 : vector<1x9x8xf32> to vector<9x8xf32>
    %c0_25 = arith.constant 0 : index
    %c0_26 = arith.constant 0 : index
    %c0_27 = arith.constant 0 : index
    %69 = vector.load %arg15[%c0_25, %c0_26, %c0_27] : memref<3x9x8xf32, #tpu.memory_space<vmem>>, vector<1x9x8xf32>
    %70 = vector.shape_cast %69 : vector<1x9x8xf32> to vector<9x8xf32>
    %71 = vector.extract_strided_slice %66 {offsets = [0, 0], sizes = [8, 8], strides = [1, 1]} : vector<8x96xf32> to vector<8x8xf32>
    %72 = vector.extract_strided_slice %66 {offsets = [0, 32], sizes = [8, 8], strides = [1, 1]} : vector<8x96xf32> to vector<8x8xf32>
    %cst_28 = arith.constant dense<0.000000e+00> : vector<8x8xf32>
    %73 = tpu.matmul %71, %72, %cst_28 {dimension_numbers = #tpu.dot_dimension_numbers<[1], [1], [0], [0], [0, 0, 1, 0], [], []>} : vector<8x8xf32>, vector<8x8xf32>, vector<8x8xf32> -> vector<8x8xf32>
    %74 = vector.extract_strided_slice %66 {offsets = [0, 8], sizes = [8, 8], strides = [1, 1]} : vector<8x96xf32> to vector<8x8xf32>
    %75 = vector.extract_strided_slice %66 {offsets = [0, 40], sizes = [8, 8], strides = [1, 1]} : vector<8x96xf32> to vector<8x8xf32>
    %cst_29 = arith.constant dense<0.000000e+00> : vector<8x8xf32>
    %76 = tpu.matmul %74, %75, %cst_29 {dimension_numbers = #tpu.dot_dimension_numbers<[1], [1], [0], [0], [0, 0, 1, 0], [], []>} : vector<8x8xf32>, vector<8x8xf32>, vector<8x8xf32> -> vector<8x8xf32>
    %77 = vector.extract_strided_slice %66 {offsets = [0, 16], sizes = [8, 8], strides = [1, 1]} : vector<8x96xf32> to vector<8x8xf32>
    %78 = vector.extract_strided_slice %66 {offsets = [0, 48], sizes = [8, 8], strides = [1, 1]} : vector<8x96xf32> to vector<8x8xf32>
    %cst_30 = arith.constant dense<0.000000e+00> : vector<8x8xf32>
    %79 = tpu.matmul %77, %78, %cst_30 {dimension_numbers = #tpu.dot_dimension_numbers<[1], [1], [0], [0], [0, 0, 1, 0], [], []>} : vector<8x8xf32>, vector<8x8xf32>, vector<8x8xf32> -> vector<8x8xf32>
    %80 = vector.extract_strided_slice %66 {offsets = [0, 24], sizes = [8, 8], strides = [1, 1]} : vector<8x96xf32> to vector<8x8xf32>
    %81 = vector.extract_strided_slice %66 {offsets = [0, 56], sizes = [8, 8], strides = [1, 1]} : vector<8x96xf32> to vector<8x8xf32>
    %cst_31 = arith.constant dense<0.000000e+00> : vector<8x8xf32>
    %82 = tpu.matmul %80, %81, %cst_31 {dimension_numbers = #tpu.dot_dimension_numbers<[1], [1], [0], [0], [0, 0, 1, 0], [], []>} : vector<8x8xf32>, vector<8x8xf32>, vector<8x8xf32> -> vector<8x8xf32>
    %83 = vector.shape_cast %73 : vector<8x8xf32> to vector<1x8x8xf32>
    %84 = vector.shape_cast %76 : vector<8x8xf32> to vector<1x8x8xf32>
    %85 = vector.shape_cast %79 : vector<8x8xf32> to vector<1x8x8xf32>
    %86 = vector.shape_cast %82 : vector<8x8xf32> to vector<1x8x8xf32>
    %87 = tpu.concatenate %83, %84, %85, %86 in 0 : vector<1x8x8xf32>, vector<1x8x8xf32>, vector<1x8x8xf32>, vector<1x8x8xf32> -> vector<4x8x8xf32>
    %88 = vector.extract_strided_slice %66 {offsets = [0, 0], sizes = [8, 8], strides = [1, 1]} : vector<8x96xf32> to vector<8x8xf32>
    %cst_32 = arith.constant dense<0.000000e+00> : vector<8x9xf32>
    %89 = tpu.matmul %88, %68, %cst_32 {dimension_numbers = #tpu.dot_dimension_numbers<[1], [1], [0], [0], [0, 0, 1, 0], [], []>} : vector<8x8xf32>, vector<9x8xf32>, vector<8x9xf32> -> vector<8x9xf32>
    %90 = vector.extract_strided_slice %66 {offsets = [0, 8], sizes = [8, 8], strides = [1, 1]} : vector<8x96xf32> to vector<8x8xf32>
    %cst_33 = arith.constant dense<0.000000e+00> : vector<8x9xf32>
    %91 = tpu.matmul %90, %68, %cst_33 {dimension_numbers = #tpu.dot_dimension_numbers<[1], [1], [0], [0], [0, 0, 1, 0], [], []>} : vector<8x8xf32>, vector<9x8xf32>, vector<8x9xf32> -> vector<8x9xf32>
    %92 = vector.extract_strided_slice %66 {offsets = [0, 16], sizes = [8, 8], strides = [1, 1]} : vector<8x96xf32> to vector<8x8xf32>
    %cst_34 = arith.constant dense<0.000000e+00> : vector<8x9xf32>
    %93 = tpu.matmul %92, %68, %cst_34 {dimension_numbers = #tpu.dot_dimension_numbers<[1], [1], [0], [0], [0, 0, 1, 0], [], []>} : vector<8x8xf32>, vector<9x8xf32>, vector<8x9xf32> -> vector<8x9xf32>
    %94 = vector.extract_strided_slice %66 {offsets = [0, 24], sizes = [8, 8], strides = [1, 1]} : vector<8x96xf32> to vector<8x8xf32>
    %cst_35 = arith.constant dense<0.000000e+00> : vector<8x9xf32>
    %95 = tpu.matmul %94, %68, %cst_35 {dimension_numbers = #tpu.dot_dimension_numbers<[1], [1], [0], [0], [0, 0, 1, 0], [], []>} : vector<8x8xf32>, vector<9x8xf32>, vector<8x9xf32> -> vector<8x9xf32>
    %96 = vector.shape_cast %89 : vector<8x9xf32> to vector<1x8x9xf32>
    %97 = vector.shape_cast %91 : vector<8x9xf32> to vector<1x8x9xf32>
    %98 = vector.shape_cast %93 : vector<8x9xf32> to vector<1x8x9xf32>
    %99 = vector.shape_cast %95 : vector<8x9xf32> to vector<1x8x9xf32>
    %100 = tpu.concatenate %96, %97, %98, %99 in 0 : vector<1x8x9xf32>, vector<1x8x9xf32>, vector<1x8x9xf32>, vector<1x8x9xf32> -> vector<4x8x9xf32>
    %101 = vector.extract_strided_slice %100 {offsets = [0, 0, 0], sizes = [4, 8, 1], strides = [1, 1, 1]} : vector<4x8x9xf32> to vector<4x8x1xf32>
    %102 = vector.shape_cast %21 : vector<8x8xf32> to vector<1x8x8xf32>
    %103 = vector.broadcast %101 : vector<4x8x1xf32> to vector<4x8x8xf32>
    %104 = vector.broadcast %102 : vector<1x8x8xf32> to vector<4x8x8xf32>
    %105 = arith.mulf %103, %104 : vector<4x8x8xf32>
    %106 = arith.addf %87, %105 : vector<4x8x8xf32>
    %107 = vector.extract_strided_slice %100 {offsets = [0, 0, 1], sizes = [4, 8, 1], strides = [1, 1, 1]} : vector<4x8x9xf32> to vector<4x8x1xf32>
    %108 = vector.shape_cast %23 : vector<8x8xf32> to vector<1x8x8xf32>
    %109 = vector.broadcast %107 : vector<4x8x1xf32> to vector<4x8x8xf32>
    %110 = vector.broadcast %108 : vector<1x8x8xf32> to vector<4x8x8xf32>
    %111 = arith.mulf %109, %110 : vector<4x8x8xf32>
    %112 = arith.addf %106, %111 : vector<4x8x8xf32>
    %113 = vector.extract_strided_slice %100 {offsets = [0, 0, 2], sizes = [4, 8, 1], strides = [1, 1, 1]} : vector<4x8x9xf32> to vector<4x8x1xf32>
    %114 = vector.shape_cast %25 : vector<8x8xf32> to vector<1x8x8xf32>
    %115 = vector.broadcast %113 : vector<4x8x1xf32> to vector<4x8x8xf32>
    %116 = vector.broadcast %114 : vector<1x8x8xf32> to vector<4x8x8xf32>
    %117 = arith.mulf %115, %116 : vector<4x8x8xf32>
    %118 = arith.addf %112, %117 : vector<4x8x8xf32>
    %119 = vector.extract_strided_slice %100 {offsets = [0, 0, 3], sizes = [4, 8, 1], strides = [1, 1, 1]} : vector<4x8x9xf32> to vector<4x8x1xf32>
    %120 = vector.shape_cast %27 : vector<8x8xf32> to vector<1x8x8xf32>
    %121 = vector.broadcast %119 : vector<4x8x1xf32> to vector<4x8x8xf32>
    %122 = vector.broadcast %120 : vector<1x8x8xf32> to vector<4x8x8xf32>
    %123 = arith.mulf %121, %122 : vector<4x8x8xf32>
    %124 = arith.addf %118, %123 : vector<4x8x8xf32>
    %125 = vector.extract_strided_slice %100 {offsets = [0, 0, 4], sizes = [4, 8, 1], strides = [1, 1, 1]} : vector<4x8x9xf32> to vector<4x8x1xf32>
    %126 = vector.shape_cast %29 : vector<8x8xf32> to vector<1x8x8xf32>
    %127 = vector.broadcast %125 : vector<4x8x1xf32> to vector<4x8x8xf32>
    %128 = vector.broadcast %126 : vector<1x8x8xf32> to vector<4x8x8xf32>
    %129 = arith.mulf %127, %128 : vector<4x8x8xf32>
    %130 = arith.addf %124, %129 : vector<4x8x8xf32>
    %131 = vector.extract_strided_slice %100 {offsets = [0, 0, 5], sizes = [4, 8, 1], strides = [1, 1, 1]} : vector<4x8x9xf32> to vector<4x8x1xf32>
    %132 = vector.shape_cast %31 : vector<8x8xf32> to vector<1x8x8xf32>
    %133 = vector.broadcast %131 : vector<4x8x1xf32> to vector<4x8x8xf32>
    %134 = vector.broadcast %132 : vector<1x8x8xf32> to vector<4x8x8xf32>
    %135 = arith.mulf %133, %134 : vector<4x8x8xf32>
    %136 = arith.addf %130, %135 : vector<4x8x8xf32>
    %137 = vector.extract_strided_slice %100 {offsets = [0, 0, 6], sizes = [4, 8, 1], strides = [1, 1, 1]} : vector<4x8x9xf32> to vector<4x8x1xf32>
    %138 = vector.shape_cast %33 : vector<8x8xf32> to vector<1x8x8xf32>
    %139 = vector.broadcast %137 : vector<4x8x1xf32> to vector<4x8x8xf32>
    %140 = vector.broadcast %138 : vector<1x8x8xf32> to vector<4x8x8xf32>
    %141 = arith.mulf %139, %140 : vector<4x8x8xf32>
    %142 = arith.addf %136, %141 : vector<4x8x8xf32>
    %143 = vector.extract_strided_slice %100 {offsets = [0, 0, 7], sizes = [4, 8, 1], strides = [1, 1, 1]} : vector<4x8x9xf32> to vector<4x8x1xf32>
    %144 = vector.shape_cast %35 : vector<8x8xf32> to vector<1x8x8xf32>
    %145 = vector.broadcast %143 : vector<4x8x1xf32> to vector<4x8x8xf32>
    %146 = vector.broadcast %144 : vector<1x8x8xf32> to vector<4x8x8xf32>
    %147 = arith.mulf %145, %146 : vector<4x8x8xf32>
    %148 = arith.addf %142, %147 : vector<4x8x8xf32>
    %149 = vector.extract_strided_slice %100 {offsets = [0, 0, 8], sizes = [4, 8, 1], strides = [1, 1, 1]} : vector<4x8x9xf32> to vector<4x8x1xf32>
    %150 = vector.shape_cast %37 : vector<8x8xf32> to vector<1x8x8xf32>
    %151 = vector.broadcast %149 : vector<4x8x1xf32> to vector<4x8x8xf32>
    %152 = vector.broadcast %150 : vector<1x8x8xf32> to vector<4x8x8xf32>
    %153 = arith.mulf %151, %152 : vector<4x8x8xf32>
    %154 = arith.addf %148, %153 : vector<4x8x8xf32>
    %155 = vector.shape_cast %18 : vector<8x8xf32> to vector<1x8x8xf32>
    %156 = vector.broadcast %155 : vector<1x8x8xf32> to vector<4x8x8xf32>
    %157 = arith.addf %154, %156 : vector<4x8x8xf32>
    %cst_36 = arith.constant dense<0xFF800000> : vector<4x8xf32>
    %158 = vector.multi_reduction <maximumf>, %157, %cst_36 [2] : vector<4x8x8xf32> to vector<4x8xf32>
    %159 = vector.shape_cast %158 : vector<4x8xf32> to vector<4x8x1xf32>
    %160 = vector.broadcast %159 : vector<4x8x1xf32> to vector<4x8x8xf32>
    %161 = arith.subf %157, %160 : vector<4x8x8xf32>
    %162 = math.exp %161 : vector<4x8x8xf32>
    %cst_37 = arith.constant dense<0.000000e+00> : vector<4x8xf32>
    %163 = vector.multi_reduction <add>, %162, %cst_37 [2] : vector<4x8x8xf32> to vector<4x8xf32>
    %164 = vector.shape_cast %163 : vector<4x8xf32> to vector<4x8x1xf32>
    %165 = tpu.reciprocal %164 {approx = true} : vector<4x8x1xf32> -> vector<4x8x1xf32>
    %166 = vector.broadcast %165 : vector<4x8x1xf32> to vector<4x8x8xf32>
    %167 = arith.mulf %162, %166 : vector<4x8x8xf32>
    %168 = vector.shape_cast %21 : vector<8x8xf32> to vector<1x8x8xf32>
    %169 = vector.broadcast %168 : vector<1x8x8xf32> to vector<4x8x8xf32>
    %170 = arith.mulf %167, %169 : vector<4x8x8xf32>
    %cst_38 = arith.constant dense<0.000000e+00> : vector<4x8xf32>
    %171 = vector.multi_reduction <add>, %170, %cst_38 [2] : vector<4x8x8xf32> to vector<4x8xf32>
    %172 = vector.shape_cast %171 : vector<4x8xf32> to vector<4x8x1xf32>
    %173 = vector.shape_cast %23 : vector<8x8xf32> to vector<1x8x8xf32>
    %174 = vector.broadcast %173 : vector<1x8x8xf32> to vector<4x8x8xf32>
    %175 = arith.mulf %167, %174 : vector<4x8x8xf32>
    %cst_39 = arith.constant dense<0.000000e+00> : vector<4x8xf32>
    %176 = vector.multi_reduction <add>, %175, %cst_39 [2] : vector<4x8x8xf32> to vector<4x8xf32>
    %177 = vector.shape_cast %176 : vector<4x8xf32> to vector<4x8x1xf32>
    %178 = vector.shape_cast %25 : vector<8x8xf32> to vector<1x8x8xf32>
    %179 = vector.broadcast %178 : vector<1x8x8xf32> to vector<4x8x8xf32>
    %180 = arith.mulf %167, %179 : vector<4x8x8xf32>
    %cst_40 = arith.constant dense<0.000000e+00> : vector<4x8xf32>
    %181 = vector.multi_reduction <add>, %180, %cst_40 [2] : vector<4x8x8xf32> to vector<4x8xf32>
    %182 = vector.shape_cast %181 : vector<4x8xf32> to vector<4x8x1xf32>
    %183 = vector.shape_cast %27 : vector<8x8xf32> to vector<1x8x8xf32>
    %184 = vector.broadcast %183 : vector<1x8x8xf32> to vector<4x8x8xf32>
    %185 = arith.mulf %167, %184 : vector<4x8x8xf32>
    %cst_41 = arith.constant dense<0.000000e+00> : vector<4x8xf32>
    %186 = vector.multi_reduction <add>, %185, %cst_41 [2] : vector<4x8x8xf32> to vector<4x8xf32>
    %187 = vector.shape_cast %186 : vector<4x8xf32> to vector<4x8x1xf32>
    %188 = vector.shape_cast %29 : vector<8x8xf32> to vector<1x8x8xf32>
    %189 = vector.broadcast %188 : vector<1x8x8xf32> to vector<4x8x8xf32>
    %190 = arith.mulf %167, %189 : vector<4x8x8xf32>
    %cst_42 = arith.constant dense<0.000000e+00> : vector<4x8xf32>
    %191 = vector.multi_reduction <add>, %190, %cst_42 [2] : vector<4x8x8xf32> to vector<4x8xf32>
    %192 = vector.shape_cast %191 : vector<4x8xf32> to vector<4x8x1xf32>
    %193 = vector.shape_cast %31 : vector<8x8xf32> to vector<1x8x8xf32>
    %194 = vector.broadcast %193 : vector<1x8x8xf32> to vector<4x8x8xf32>
    %195 = arith.mulf %167, %194 : vector<4x8x8xf32>
    %cst_43 = arith.constant dense<0.000000e+00> : vector<4x8xf32>
    %196 = vector.multi_reduction <add>, %195, %cst_43 [2] : vector<4x8x8xf32> to vector<4x8xf32>
    %197 = vector.shape_cast %196 : vector<4x8xf32> to vector<4x8x1xf32>
    %198 = vector.shape_cast %33 : vector<8x8xf32> to vector<1x8x8xf32>
    %199 = vector.broadcast %198 : vector<1x8x8xf32> to vector<4x8x8xf32>
    %200 = arith.mulf %167, %199 : vector<4x8x8xf32>
    %cst_44 = arith.constant dense<0.000000e+00> : vector<4x8xf32>
    %201 = vector.multi_reduction <add>, %200, %cst_44 [2] : vector<4x8x8xf32> to vector<4x8xf32>
    %202 = vector.shape_cast %201 : vector<4x8xf32> to vector<4x8x1xf32>
    %203 = vector.shape_cast %35 : vector<8x8xf32> to vector<1x8x8xf32>
    %204 = vector.broadcast %203 : vector<1x8x8xf32> to vector<4x8x8xf32>
    %205 = arith.mulf %167, %204 : vector<4x8x8xf32>
    %cst_45 = arith.constant dense<0.000000e+00> : vector<4x8xf32>
    %206 = vector.multi_reduction <add>, %205, %cst_45 [2] : vector<4x8x8xf32> to vector<4x8xf32>
    %207 = vector.shape_cast %206 : vector<4x8xf32> to vector<4x8x1xf32>
    %208 = vector.shape_cast %37 : vector<8x8xf32> to vector<1x8x8xf32>
    %209 = vector.broadcast %208 : vector<1x8x8xf32> to vector<4x8x8xf32>
    %210 = arith.mulf %167, %209 : vector<4x8x8xf32>
    %cst_46 = arith.constant dense<0.000000e+00> : vector<4x8xf32>
    %211 = vector.multi_reduction <add>, %210, %cst_46 [2] : vector<4x8x8xf32> to vector<4x8xf32>
    %212 = vector.shape_cast %211 : vector<4x8xf32> to vector<4x8x1xf32>
    %213 = tpu.concatenate %172, %177, %182, %187, %192, %197, %202, %207, %212 in 2 : vector<4x8x1xf32>, vector<4x8x1xf32>, vector<4x8x1xf32>, vector<4x8x1xf32>, vector<4x8x1xf32>, vector<4x8x1xf32>, vector<4x8x1xf32>, vector<4x8x1xf32>, vector<4x8x1xf32> -> vector<4x8x9xf32>
    %214 = vector.extract_strided_slice %167 {offsets = [0, 0, 0], sizes = [1, 8, 8], strides = [1, 1, 1]} : vector<4x8x8xf32> to vector<1x8x8xf32>
    %215 = vector.shape_cast %214 : vector<1x8x8xf32> to vector<8x8xf32>
    %216 = vector.extract_strided_slice %66 {offsets = [0, 64], sizes = [8, 8], strides = [1, 1]} : vector<8x96xf32> to vector<8x8xf32>
    %cst_47 = arith.constant dense<0.000000e+00> : vector<8x8xf32>
    %217 = tpu.matmul %215, %216, %cst_47 {dimension_numbers = #tpu.dot_dimension_numbers<[1], [0], [0], [1], [0, 0, 1, 1], [], []>} : vector<8x8xf32>, vector<8x8xf32>, vector<8x8xf32> -> vector<8x8xf32>
    %218 = vector.extract_strided_slice %213 {offsets = [0, 0, 0], sizes = [1, 8, 9], strides = [1, 1, 1]} : vector<4x8x9xf32> to vector<1x8x9xf32>
    %219 = vector.shape_cast %218 : vector<1x8x9xf32> to vector<8x9xf32>
    %cst_48 = arith.constant dense<0.000000e+00> : vector<8x8xf32>
    %220 = tpu.matmul %219, %70, %cst_48 {dimension_numbers = #tpu.dot_dimension_numbers<[1], [0], [0], [1], [0, 0, 1, 1], [], []>} : vector<8x9xf32>, vector<9x8xf32>, vector<8x8xf32> -> vector<8x8xf32>
    %221 = arith.addf %217, %220 : vector<8x8xf32>
    %222 = vector.extract_strided_slice %167 {offsets = [1, 0, 0], sizes = [1, 8, 8], strides = [1, 1, 1]} : vector<4x8x8xf32> to vector<1x8x8xf32>
    %223 = vector.shape_cast %222 : vector<1x8x8xf32> to vector<8x8xf32>
    %224 = vector.extract_strided_slice %66 {offsets = [0, 72], sizes = [8, 8], strides = [1, 1]} : vector<8x96xf32> to vector<8x8xf32>
    %cst_49 = arith.constant dense<0.000000e+00> : vector<8x8xf32>
    %225 = tpu.matmul %223, %224, %cst_49 {dimension_numbers = #tpu.dot_dimension_numbers<[1], [0], [0], [1], [0, 0, 1, 1], [], []>} : vector<8x8xf32>, vector<8x8xf32>, vector<8x8xf32> -> vector<8x8xf32>
    %226 = vector.extract_strided_slice %213 {offsets = [1, 0, 0], sizes = [1, 8, 9], strides = [1, 1, 1]} : vector<4x8x9xf32> to vector<1x8x9xf32>
    %227 = vector.shape_cast %226 : vector<1x8x9xf32> to vector<8x9xf32>
    %cst_50 = arith.constant dense<0.000000e+00> : vector<8x8xf32>
    %228 = tpu.matmul %227, %70, %cst_50 {dimension_numbers = #tpu.dot_dimension_numbers<[1], [0], [0], [1], [0, 0, 1, 1], [], []>} : vector<8x9xf32>, vector<9x8xf32>, vector<8x8xf32> -> vector<8x8xf32>
    %229 = arith.addf %225, %228 : vector<8x8xf32>
    %230 = vector.extract_strided_slice %167 {offsets = [2, 0, 0], sizes = [1, 8, 8], strides = [1, 1, 1]} : vector<4x8x8xf32> to vector<1x8x8xf32>
    %231 = vector.shape_cast %230 : vector<1x8x8xf32> to vector<8x8xf32>
    %232 = vector.extract_strided_slice %66 {offsets = [0, 80], sizes = [8, 8], strides = [1, 1]} : vector<8x96xf32> to vector<8x8xf32>
    %cst_51 = arith.constant dense<0.000000e+00> : vector<8x8xf32>
    %233 = tpu.matmul %231, %232, %cst_51 {dimension_numbers = #tpu.dot_dimension_numbers<[1], [0], [0], [1], [0, 0, 1, 1], [], []>} : vector<8x8xf32>, vector<8x8xf32>, vector<8x8xf32> -> vector<8x8xf32>
    %234 = vector.extract_strided_slice %213 {offsets = [2, 0, 0], sizes = [1, 8, 9], strides = [1, 1, 1]} : vector<4x8x9xf32> to vector<1x8x9xf32>
    %235 = vector.shape_cast %234 : vector<1x8x9xf32> to vector<8x9xf32>
    %cst_52 = arith.constant dense<0.000000e+00> : vector<8x8xf32>
    %236 = tpu.matmul %235, %70, %cst_52 {dimension_numbers = #tpu.dot_dimension_numbers<[1], [0], [0], [1], [0, 0, 1, 1], [], []>} : vector<8x9xf32>, vector<9x8xf32>, vector<8x8xf32> -> vector<8x8xf32>
    %237 = arith.addf %233, %236 : vector<8x8xf32>
    %238 = vector.extract_strided_slice %167 {offsets = [3, 0, 0], sizes = [1, 8, 8], strides = [1, 1, 1]} : vector<4x8x8xf32> to vector<1x8x8xf32>
    %239 = vector.shape_cast %238 : vector<1x8x8xf32> to vector<8x8xf32>
    %240 = vector.extract_strided_slice %66 {offsets = [0, 88], sizes = [8, 8], strides = [1, 1]} : vector<8x96xf32> to vector<8x8xf32>
    %cst_53 = arith.constant dense<0.000000e+00> : vector<8x8xf32>
    %241 = tpu.matmul %239, %240, %cst_53 {dimension_numbers = #tpu.dot_dimension_numbers<[1], [0], [0], [1], [0, 0, 1, 1], [], []>} : vector<8x8xf32>, vector<8x8xf32>, vector<8x8xf32> -> vector<8x8xf32>
    %242 = vector.extract_strided_slice %213 {offsets = [3, 0, 0], sizes = [1, 8, 9], strides = [1, 1, 1]} : vector<4x8x9xf32> to vector<1x8x9xf32>
    %243 = vector.shape_cast %242 : vector<1x8x9xf32> to vector<8x9xf32>
    %cst_54 = arith.constant dense<0.000000e+00> : vector<8x8xf32>
    %244 = tpu.matmul %243, %70, %cst_54 {dimension_numbers = #tpu.dot_dimension_numbers<[1], [0], [0], [1], [0, 0, 1, 1], [], []>} : vector<8x9xf32>, vector<9x8xf32>, vector<8x8xf32> -> vector<8x8xf32>
    %245 = arith.addf %241, %244 : vector<8x8xf32>
    %246 = tpu.concatenate %221, %229, %237, %245 in 1 : vector<8x8xf32>, vector<8x8xf32>, vector<8x8xf32>, vector<8x8xf32> -> vector<8x32xf32>
    %c0_55 = arith.constant 0 : index
    %c0_56 = arith.constant 0 : index
    %c0_57 = arith.constant 0 : index
    %247 = vector.load %arg12[%c0_55, %c0_56, %c0_57] : memref<3x32x32xf32, #tpu.memory_space<vmem>>, vector<1x32x32xf32>
    %248 = vector.shape_cast %247 : vector<1x32x32xf32> to vector<32x32xf32>
    %cst_58 = arith.constant dense<0.000000e+00> : vector<8x32xf32>
    %249 = tpu.matmul %246, %248, %cst_58 {dimension_numbers = #tpu.dot_dimension_numbers<[1], [0], [0], [1], [0, 0, 1, 1], [], []>} : vector<8x32xf32>, vector<32x32xf32>, vector<8x32xf32> -> vector<8x32xf32>
    %c0_59 = arith.constant 0 : index
    %c0_60 = arith.constant 0 : index
    %c0_61 = arith.constant 0 : index
    %250 = vector.load %arg13[%c0_59, %c0_60, %c0_61] : memref<3x1x32xf32, #tpu.memory_space<vmem>>, vector<1x1x32xf32>
    %251 = vector.shape_cast %250 : vector<1x1x32xf32> to vector<1x32xf32>
    %252 = vector.broadcast %251 : vector<1x32xf32> to vector<8x32xf32>
    %253 = arith.addf %249, %252 : vector<8x32xf32>
    %254 = arith.addf %59, %253 : vector<8x32xf32>
    %c0_62 = arith.constant 0 : index
    %c0_63 = arith.constant 0 : index
    %c0_64 = arith.constant 0 : index
    %255 = vector.load %arg16[%c0_62, %c0_63, %c0_64] : memref<3x1x32xf32, #tpu.memory_space<vmem>>, vector<1x1x32xf32>
    %256 = vector.shape_cast %255 : vector<1x1x32xf32> to vector<1x32xf32>
    %c0_65 = arith.constant 0 : index
    %c0_66 = arith.constant 0 : index
    %c0_67 = arith.constant 0 : index
    %257 = vector.load %arg17[%c0_65, %c0_66, %c0_67] : memref<3x1x32xf32, #tpu.memory_space<vmem>>, vector<1x1x32xf32>
    %258 = vector.shape_cast %257 : vector<1x1x32xf32> to vector<1x32xf32>
    %cst_68 = arith.constant dense<0.000000e+00> : vector<8xf32>
    %259 = vector.multi_reduction <add>, %254, %cst_68 [1] : vector<8x32xf32> to vector<8xf32>
    %260 = vector.shape_cast %259 : vector<8xf32> to vector<8x1xf32>
    %cst_69 = arith.constant 3.200000e+01 : f32
    %261 = vector.broadcast %cst_69 : f32 to vector<8x1xf32>
    %262 = arith.divf %260, %261 : vector<8x1xf32>
    %263 = vector.broadcast %262 : vector<8x1xf32> to vector<8x32xf32>
    %264 = arith.subf %254, %263 : vector<8x32xf32>
    %265 = arith.mulf %264, %264 : vector<8x32xf32>
    %cst_70 = arith.constant dense<0.000000e+00> : vector<8xf32>
    %266 = vector.multi_reduction <add>, %265, %cst_70 [1] : vector<8x32xf32> to vector<8xf32>
    %267 = vector.shape_cast %266 : vector<8xf32> to vector<8x1xf32>
    %cst_71 = arith.constant 3.200000e+01 : f32
    %268 = vector.broadcast %cst_71 : f32 to vector<8x1xf32>
    %269 = arith.divf %267, %268 : vector<8x1xf32>
    %270 = vector.broadcast %262 : vector<8x1xf32> to vector<8x32xf32>
    %271 = arith.subf %254, %270 : vector<8x32xf32>
    %cst_72 = arith.constant 9.99999974E-6 : f32
    %272 = vector.broadcast %cst_72 : f32 to vector<8x1xf32>
    %273 = arith.addf %269, %272 : vector<8x1xf32>
    %274 = math.rsqrt %273 : vector<8x1xf32>
    %275 = vector.broadcast %274 : vector<8x1xf32> to vector<8x32xf32>
    %276 = arith.mulf %271, %275 : vector<8x32xf32>
    %277 = vector.broadcast %256 : vector<1x32xf32> to vector<8x32xf32>
    %278 = arith.mulf %276, %277 : vector<8x32xf32>
    %279 = vector.broadcast %258 : vector<1x32xf32> to vector<8x32xf32>
    %280 = arith.addf %278, %279 : vector<8x32xf32>
    %281 = vector.broadcast %6 : vector<8x1xf32> to vector<8x32xf32>
    %282 = arith.mulf %280, %281 : vector<8x32xf32>
    %c0_73 = arith.constant 0 : index
    %c0_74 = arith.constant 0 : index
    %c0_75 = arith.constant 0 : index
    %283 = vector.load %arg18[%c0_73, %c0_74, %c0_75] : memref<3x96x64xf32, #tpu.memory_space<vmem>>, vector<1x96x64xf32>
    %284 = vector.shape_cast %283 : vector<1x96x64xf32> to vector<96x64xf32>
    %c0_76 = arith.constant 0 : index
    %c0_77 = arith.constant 0 : index
    %c0_78 = arith.constant 0 : index
    %285 = vector.load %arg19[%c0_76, %c0_77, %c0_78] : memref<3x1x64xf32, #tpu.memory_space<vmem>>, vector<1x1x64xf32>
    %286 = vector.shape_cast %285 : vector<1x1x64xf32> to vector<1x64xf32>
    %c1_i32_79 = arith.constant 1 : i32
    %287 = tpu.dynamic_rotate %282 by %c1_i32_79 dim 0 : vector<8x32xf32>, i32 -> vector<8x32xf32>
    %288 = vector.broadcast %41 : vector<8x1xf32> to vector<8x32xf32>
    %289 = arith.mulf %287, %288 : vector<8x32xf32>
    %290 = vector.extract_strided_slice %284 {offsets = [0, 0], sizes = [32, 64], strides = [1, 1]} : vector<96x64xf32> to vector<32x64xf32>
    %cst_80 = arith.constant dense<0.000000e+00> : vector<8x64xf32>
    %291 = tpu.matmul %289, %290, %cst_80 {dimension_numbers = #tpu.dot_dimension_numbers<[1], [0], [0], [1], [0, 0, 1, 1], [], []>} : vector<8x32xf32>, vector<32x64xf32>, vector<8x64xf32> -> vector<8x64xf32>
    %292 = vector.extract_strided_slice %284 {offsets = [32, 0], sizes = [32, 64], strides = [1, 1]} : vector<96x64xf32> to vector<32x64xf32>
    %cst_81 = arith.constant dense<0.000000e+00> : vector<8x64xf32>
    %293 = tpu.matmul %282, %292, %cst_81 {dimension_numbers = #tpu.dot_dimension_numbers<[1], [0], [0], [1], [0, 0, 1, 1], [], []>} : vector<8x32xf32>, vector<32x64xf32>, vector<8x64xf32> -> vector<8x64xf32>
    %294 = arith.addf %291, %293 : vector<8x64xf32>
    %c7_i32_82 = arith.constant 7 : i32
    %295 = tpu.dynamic_rotate %282 by %c7_i32_82 dim 0 : vector<8x32xf32>, i32 -> vector<8x32xf32>
    %296 = vector.broadcast %45 : vector<8x1xf32> to vector<8x32xf32>
    %297 = arith.mulf %295, %296 : vector<8x32xf32>
    %298 = vector.extract_strided_slice %284 {offsets = [64, 0], sizes = [32, 64], strides = [1, 1]} : vector<96x64xf32> to vector<32x64xf32>
    %cst_83 = arith.constant dense<0.000000e+00> : vector<8x64xf32>
    %299 = tpu.matmul %297, %298, %cst_83 {dimension_numbers = #tpu.dot_dimension_numbers<[1], [0], [0], [1], [0, 0, 1, 1], [], []>} : vector<8x32xf32>, vector<32x64xf32>, vector<8x64xf32> -> vector<8x64xf32>
    %300 = arith.addf %294, %299 : vector<8x64xf32>
    %301 = vector.broadcast %286 : vector<1x64xf32> to vector<8x64xf32>
    %302 = arith.addf %300, %301 : vector<8x64xf32>
    %cst_84 = arith.constant 0.000000e+00 : f32
    %303 = vector.broadcast %cst_84 : f32 to vector<8x64xf32>
    %304 = arith.maximumf %302, %303 : vector<8x64xf32>
    %305 = vector.broadcast %6 : vector<8x1xf32> to vector<8x64xf32>
    %306 = arith.mulf %304, %305 : vector<8x64xf32>
    %c0_85 = arith.constant 0 : index
    %c0_86 = arith.constant 0 : index
    %c0_87 = arith.constant 0 : index
    %307 = vector.load %arg20[%c0_85, %c0_86, %c0_87] : memref<3x192x32xf32, #tpu.memory_space<vmem>>, vector<1x192x32xf32>
    %308 = vector.shape_cast %307 : vector<1x192x32xf32> to vector<192x32xf32>
    %c0_88 = arith.constant 0 : index
    %c0_89 = arith.constant 0 : index
    %c0_90 = arith.constant 0 : index
    %309 = vector.load %arg21[%c0_88, %c0_89, %c0_90] : memref<3x1x32xf32, #tpu.memory_space<vmem>>, vector<1x1x32xf32>
    %310 = vector.shape_cast %309 : vector<1x1x32xf32> to vector<1x32xf32>
    %c1_i32_91 = arith.constant 1 : i32
    %311 = tpu.dynamic_rotate %306 by %c1_i32_91 dim 0 : vector<8x64xf32>, i32 -> vector<8x64xf32>
    %312 = vector.broadcast %41 : vector<8x1xf32> to vector<8x64xf32>
    %313 = arith.mulf %311, %312 : vector<8x64xf32>
    %314 = vector.extract_strided_slice %308 {offsets = [0, 0], sizes = [64, 32], strides = [1, 1]} : vector<192x32xf32> to vector<64x32xf32>
    %cst_92 = arith.constant dense<0.000000e+00> : vector<8x32xf32>
    %315 = tpu.matmul %313, %314, %cst_92 {dimension_numbers = #tpu.dot_dimension_numbers<[1], [0], [0], [1], [0, 0, 1, 1], [], []>} : vector<8x64xf32>, vector<64x32xf32>, vector<8x32xf32> -> vector<8x32xf32>
    %316 = vector.extract_strided_slice %308 {offsets = [64, 0], sizes = [64, 32], strides = [1, 1]} : vector<192x32xf32> to vector<64x32xf32>
    %cst_93 = arith.constant dense<0.000000e+00> : vector<8x32xf32>
    %317 = tpu.matmul %306, %316, %cst_93 {dimension_numbers = #tpu.dot_dimension_numbers<[1], [0], [0], [1], [0, 0, 1, 1], [], []>} : vector<8x64xf32>, vector<64x32xf32>, vector<8x32xf32> -> vector<8x32xf32>
    %318 = arith.addf %315, %317 : vector<8x32xf32>
    %c7_i32_94 = arith.constant 7 : i32
    %319 = tpu.dynamic_rotate %306 by %c7_i32_94 dim 0 : vector<8x64xf32>, i32 -> vector<8x64xf32>
    %320 = vector.broadcast %45 : vector<8x1xf32> to vector<8x64xf32>
    %321 = arith.mulf %319, %320 : vector<8x64xf32>
    %322 = vector.extract_strided_slice %308 {offsets = [128, 0], sizes = [64, 32], strides = [1, 1]} : vector<192x32xf32> to vector<64x32xf32>
    %cst_95 = arith.constant dense<0.000000e+00> : vector<8x32xf32>
    %323 = tpu.matmul %321, %322, %cst_95 {dimension_numbers = #tpu.dot_dimension_numbers<[1], [0], [0], [1], [0, 0, 1, 1], [], []>} : vector<8x64xf32>, vector<64x32xf32>, vector<8x32xf32> -> vector<8x32xf32>
    %324 = arith.addf %318, %323 : vector<8x32xf32>
    %325 = vector.broadcast %310 : vector<1x32xf32> to vector<8x32xf32>
    %326 = arith.addf %324, %325 : vector<8x32xf32>
    %327 = vector.broadcast %6 : vector<8x1xf32> to vector<8x32xf32>
    %328 = arith.mulf %326, %327 : vector<8x32xf32>
    %329 = arith.addf %280, %328 : vector<8x32xf32>
    %c0_96 = arith.constant 0 : index
    %c0_97 = arith.constant 0 : index
    %c0_98 = arith.constant 0 : index
    %330 = vector.load %arg22[%c0_96, %c0_97, %c0_98] : memref<3x1x32xf32, #tpu.memory_space<vmem>>, vector<1x1x32xf32>
    %331 = vector.shape_cast %330 : vector<1x1x32xf32> to vector<1x32xf32>
    %c0_99 = arith.constant 0 : index
    %c0_100 = arith.constant 0 : index
    %c0_101 = arith.constant 0 : index
    %332 = vector.load %arg23[%c0_99, %c0_100, %c0_101] : memref<3x1x32xf32, #tpu.memory_space<vmem>>, vector<1x1x32xf32>
    %333 = vector.shape_cast %332 : vector<1x1x32xf32> to vector<1x32xf32>
    %cst_102 = arith.constant dense<0.000000e+00> : vector<8xf32>
    %334 = vector.multi_reduction <add>, %329, %cst_102 [1] : vector<8x32xf32> to vector<8xf32>
    %335 = vector.shape_cast %334 : vector<8xf32> to vector<8x1xf32>
    %cst_103 = arith.constant 3.200000e+01 : f32
    %336 = vector.broadcast %cst_103 : f32 to vector<8x1xf32>
    %337 = arith.divf %335, %336 : vector<8x1xf32>
    %338 = vector.broadcast %337 : vector<8x1xf32> to vector<8x32xf32>
    %339 = arith.subf %329, %338 : vector<8x32xf32>
    %340 = arith.mulf %339, %339 : vector<8x32xf32>
    %cst_104 = arith.constant dense<0.000000e+00> : vector<8xf32>
    %341 = vector.multi_reduction <add>, %340, %cst_104 [1] : vector<8x32xf32> to vector<8xf32>
    %342 = vector.shape_cast %341 : vector<8xf32> to vector<8x1xf32>
    %cst_105 = arith.constant 3.200000e+01 : f32
    %343 = vector.broadcast %cst_105 : f32 to vector<8x1xf32>
    %344 = arith.divf %342, %343 : vector<8x1xf32>
    %345 = vector.broadcast %337 : vector<8x1xf32> to vector<8x32xf32>
    %346 = arith.subf %329, %345 : vector<8x32xf32>
    %cst_106 = arith.constant 9.99999974E-6 : f32
    %347 = vector.broadcast %cst_106 : f32 to vector<8x1xf32>
    %348 = arith.addf %344, %347 : vector<8x1xf32>
    %349 = math.rsqrt %348 : vector<8x1xf32>
    %350 = vector.broadcast %349 : vector<8x1xf32> to vector<8x32xf32>
    %351 = arith.mulf %346, %350 : vector<8x32xf32>
    %352 = vector.broadcast %331 : vector<1x32xf32> to vector<8x32xf32>
    %353 = arith.mulf %351, %352 : vector<8x32xf32>
    %354 = vector.broadcast %333 : vector<1x32xf32> to vector<8x32xf32>
    %355 = arith.addf %353, %354 : vector<8x32xf32>
    %c1 = arith.constant 1 : index
    %c0_107 = arith.constant 0 : index
    %c0_108 = arith.constant 0 : index
    %356 = vector.load %arg10[%c1, %c0_107, %c0_108] : memref<3x32x96xf32, #tpu.memory_space<vmem>>, vector<1x32x96xf32>
    %357 = vector.shape_cast %356 : vector<1x32x96xf32> to vector<32x96xf32>
    %cst_109 = arith.constant dense<0.000000e+00> : vector<8x96xf32>
    %358 = tpu.matmul %355, %357, %cst_109 {dimension_numbers = #tpu.dot_dimension_numbers<[1], [0], [0], [1], [0, 0, 1, 1], [], []>} : vector<8x32xf32>, vector<32x96xf32>, vector<8x96xf32> -> vector<8x96xf32>
    %c1_110 = arith.constant 1 : index
    %c0_111 = arith.constant 0 : index
    %c0_112 = arith.constant 0 : index
    %359 = vector.load %arg11[%c1_110, %c0_111, %c0_112] : memref<3x1x96xf32, #tpu.memory_space<vmem>>, vector<1x1x96xf32>
    %360 = vector.shape_cast %359 : vector<1x1x96xf32> to vector<1x96xf32>
    %361 = vector.broadcast %360 : vector<1x96xf32> to vector<8x96xf32>
    %362 = arith.addf %358, %361 : vector<8x96xf32>
    %c1_113 = arith.constant 1 : index
    %c0_114 = arith.constant 0 : index
    %c0_115 = arith.constant 0 : index
    %363 = vector.load %arg14[%c1_113, %c0_114, %c0_115] : memref<3x9x8xf32, #tpu.memory_space<vmem>>, vector<1x9x8xf32>
    %364 = vector.shape_cast %363 : vector<1x9x8xf32> to vector<9x8xf32>
    %c1_116 = arith.constant 1 : index
    %c0_117 = arith.constant 0 : index
    %c0_118 = arith.constant 0 : index
    %365 = vector.load %arg15[%c1_116, %c0_117, %c0_118] : memref<3x9x8xf32, #tpu.memory_space<vmem>>, vector<1x9x8xf32>
    %366 = vector.shape_cast %365 : vector<1x9x8xf32> to vector<9x8xf32>
    %367 = vector.extract_strided_slice %362 {offsets = [0, 0], sizes = [8, 8], strides = [1, 1]} : vector<8x96xf32> to vector<8x8xf32>
    %368 = vector.extract_strided_slice %362 {offsets = [0, 32], sizes = [8, 8], strides = [1, 1]} : vector<8x96xf32> to vector<8x8xf32>
    %cst_119 = arith.constant dense<0.000000e+00> : vector<8x8xf32>
    %369 = tpu.matmul %367, %368, %cst_119 {dimension_numbers = #tpu.dot_dimension_numbers<[1], [1], [0], [0], [0, 0, 1, 0], [], []>} : vector<8x8xf32>, vector<8x8xf32>, vector<8x8xf32> -> vector<8x8xf32>
    %370 = vector.extract_strided_slice %362 {offsets = [0, 8], sizes = [8, 8], strides = [1, 1]} : vector<8x96xf32> to vector<8x8xf32>
    %371 = vector.extract_strided_slice %362 {offsets = [0, 40], sizes = [8, 8], strides = [1, 1]} : vector<8x96xf32> to vector<8x8xf32>
    %cst_120 = arith.constant dense<0.000000e+00> : vector<8x8xf32>
    %372 = tpu.matmul %370, %371, %cst_120 {dimension_numbers = #tpu.dot_dimension_numbers<[1], [1], [0], [0], [0, 0, 1, 0], [], []>} : vector<8x8xf32>, vector<8x8xf32>, vector<8x8xf32> -> vector<8x8xf32>
    %373 = vector.extract_strided_slice %362 {offsets = [0, 16], sizes = [8, 8], strides = [1, 1]} : vector<8x96xf32> to vector<8x8xf32>
    %374 = vector.extract_strided_slice %362 {offsets = [0, 48], sizes = [8, 8], strides = [1, 1]} : vector<8x96xf32> to vector<8x8xf32>
    %cst_121 = arith.constant dense<0.000000e+00> : vector<8x8xf32>
    %375 = tpu.matmul %373, %374, %cst_121 {dimension_numbers = #tpu.dot_dimension_numbers<[1], [1], [0], [0], [0, 0, 1, 0], [], []>} : vector<8x8xf32>, vector<8x8xf32>, vector<8x8xf32> -> vector<8x8xf32>
    %376 = vector.extract_strided_slice %362 {offsets = [0, 24], sizes = [8, 8], strides = [1, 1]} : vector<8x96xf32> to vector<8x8xf32>
    %377 = vector.extract_strided_slice %362 {offsets = [0, 56], sizes = [8, 8], strides = [1, 1]} : vector<8x96xf32> to vector<8x8xf32>
    %cst_122 = arith.constant dense<0.000000e+00> : vector<8x8xf32>
    %378 = tpu.matmul %376, %377, %cst_122 {dimension_numbers = #tpu.dot_dimension_numbers<[1], [1], [0], [0], [0, 0, 1, 0], [], []>} : vector<8x8xf32>, vector<8x8xf32>, vector<8x8xf32> -> vector<8x8xf32>
    %379 = vector.shape_cast %369 : vector<8x8xf32> to vector<1x8x8xf32>
    %380 = vector.shape_cast %372 : vector<8x8xf32> to vector<1x8x8xf32>
    %381 = vector.shape_cast %375 : vector<8x8xf32> to vector<1x8x8xf32>
    %382 = vector.shape_cast %378 : vector<8x8xf32> to vector<1x8x8xf32>
    %383 = tpu.concatenate %379, %380, %381, %382 in 0 : vector<1x8x8xf32>, vector<1x8x8xf32>, vector<1x8x8xf32>, vector<1x8x8xf32> -> vector<4x8x8xf32>
    %384 = vector.extract_strided_slice %362 {offsets = [0, 0], sizes = [8, 8], strides = [1, 1]} : vector<8x96xf32> to vector<8x8xf32>
    %cst_123 = arith.constant dense<0.000000e+00> : vector<8x9xf32>
    %385 = tpu.matmul %384, %364, %cst_123 {dimension_numbers = #tpu.dot_dimension_numbers<[1], [1], [0], [0], [0, 0, 1, 0], [], []>} : vector<8x8xf32>, vector<9x8xf32>, vector<8x9xf32> -> vector<8x9xf32>
    %386 = vector.extract_strided_slice %362 {offsets = [0, 8], sizes = [8, 8], strides = [1, 1]} : vector<8x96xf32> to vector<8x8xf32>
    %cst_124 = arith.constant dense<0.000000e+00> : vector<8x9xf32>
    %387 = tpu.matmul %386, %364, %cst_124 {dimension_numbers = #tpu.dot_dimension_numbers<[1], [1], [0], [0], [0, 0, 1, 0], [], []>} : vector<8x8xf32>, vector<9x8xf32>, vector<8x9xf32> -> vector<8x9xf32>
    %388 = vector.extract_strided_slice %362 {offsets = [0, 16], sizes = [8, 8], strides = [1, 1]} : vector<8x96xf32> to vector<8x8xf32>
    %cst_125 = arith.constant dense<0.000000e+00> : vector<8x9xf32>
    %389 = tpu.matmul %388, %364, %cst_125 {dimension_numbers = #tpu.dot_dimension_numbers<[1], [1], [0], [0], [0, 0, 1, 0], [], []>} : vector<8x8xf32>, vector<9x8xf32>, vector<8x9xf32> -> vector<8x9xf32>
    %390 = vector.extract_strided_slice %362 {offsets = [0, 24], sizes = [8, 8], strides = [1, 1]} : vector<8x96xf32> to vector<8x8xf32>
    %cst_126 = arith.constant dense<0.000000e+00> : vector<8x9xf32>
    %391 = tpu.matmul %390, %364, %cst_126 {dimension_numbers = #tpu.dot_dimension_numbers<[1], [1], [0], [0], [0, 0, 1, 0], [], []>} : vector<8x8xf32>, vector<9x8xf32>, vector<8x9xf32> -> vector<8x9xf32>
    %392 = vector.shape_cast %385 : vector<8x9xf32> to vector<1x8x9xf32>
    %393 = vector.shape_cast %387 : vector<8x9xf32> to vector<1x8x9xf32>
    %394 = vector.shape_cast %389 : vector<8x9xf32> to vector<1x8x9xf32>
    %395 = vector.shape_cast %391 : vector<8x9xf32> to vector<1x8x9xf32>
    %396 = tpu.concatenate %392, %393, %394, %395 in 0 : vector<1x8x9xf32>, vector<1x8x9xf32>, vector<1x8x9xf32>, vector<1x8x9xf32> -> vector<4x8x9xf32>
    %397 = vector.extract_strided_slice %396 {offsets = [0, 0, 0], sizes = [4, 8, 1], strides = [1, 1, 1]} : vector<4x8x9xf32> to vector<4x8x1xf32>
    %398 = vector.shape_cast %21 : vector<8x8xf32> to vector<1x8x8xf32>
    %399 = vector.broadcast %397 : vector<4x8x1xf32> to vector<4x8x8xf32>
    %400 = vector.broadcast %398 : vector<1x8x8xf32> to vector<4x8x8xf32>
    %401 = arith.mulf %399, %400 : vector<4x8x8xf32>
    %402 = arith.addf %383, %401 : vector<4x8x8xf32>
    %403 = vector.extract_strided_slice %396 {offsets = [0, 0, 1], sizes = [4, 8, 1], strides = [1, 1, 1]} : vector<4x8x9xf32> to vector<4x8x1xf32>
    %404 = vector.shape_cast %23 : vector<8x8xf32> to vector<1x8x8xf32>
    %405 = vector.broadcast %403 : vector<4x8x1xf32> to vector<4x8x8xf32>
    %406 = vector.broadcast %404 : vector<1x8x8xf32> to vector<4x8x8xf32>
    %407 = arith.mulf %405, %406 : vector<4x8x8xf32>
    %408 = arith.addf %402, %407 : vector<4x8x8xf32>
    %409 = vector.extract_strided_slice %396 {offsets = [0, 0, 2], sizes = [4, 8, 1], strides = [1, 1, 1]} : vector<4x8x9xf32> to vector<4x8x1xf32>
    %410 = vector.shape_cast %25 : vector<8x8xf32> to vector<1x8x8xf32>
    %411 = vector.broadcast %409 : vector<4x8x1xf32> to vector<4x8x8xf32>
    %412 = vector.broadcast %410 : vector<1x8x8xf32> to vector<4x8x8xf32>
    %413 = arith.mulf %411, %412 : vector<4x8x8xf32>
    %414 = arith.addf %408, %413 : vector<4x8x8xf32>
    %415 = vector.extract_strided_slice %396 {offsets = [0, 0, 3], sizes = [4, 8, 1], strides = [1, 1, 1]} : vector<4x8x9xf32> to vector<4x8x1xf32>
    %416 = vector.shape_cast %27 : vector<8x8xf32> to vector<1x8x8xf32>
    %417 = vector.broadcast %415 : vector<4x8x1xf32> to vector<4x8x8xf32>
    %418 = vector.broadcast %416 : vector<1x8x8xf32> to vector<4x8x8xf32>
    %419 = arith.mulf %417, %418 : vector<4x8x8xf32>
    %420 = arith.addf %414, %419 : vector<4x8x8xf32>
    %421 = vector.extract_strided_slice %396 {offsets = [0, 0, 4], sizes = [4, 8, 1], strides = [1, 1, 1]} : vector<4x8x9xf32> to vector<4x8x1xf32>
    %422 = vector.shape_cast %29 : vector<8x8xf32> to vector<1x8x8xf32>
    %423 = vector.broadcast %421 : vector<4x8x1xf32> to vector<4x8x8xf32>
    %424 = vector.broadcast %422 : vector<1x8x8xf32> to vector<4x8x8xf32>
    %425 = arith.mulf %423, %424 : vector<4x8x8xf32>
    %426 = arith.addf %420, %425 : vector<4x8x8xf32>
    %427 = vector.extract_strided_slice %396 {offsets = [0, 0, 5], sizes = [4, 8, 1], strides = [1, 1, 1]} : vector<4x8x9xf32> to vector<4x8x1xf32>
    %428 = vector.shape_cast %31 : vector<8x8xf32> to vector<1x8x8xf32>
    %429 = vector.broadcast %427 : vector<4x8x1xf32> to vector<4x8x8xf32>
    %430 = vector.broadcast %428 : vector<1x8x8xf32> to vector<4x8x8xf32>
    %431 = arith.mulf %429, %430 : vector<4x8x8xf32>
    %432 = arith.addf %426, %431 : vector<4x8x8xf32>
    %433 = vector.extract_strided_slice %396 {offsets = [0, 0, 6], sizes = [4, 8, 1], strides = [1, 1, 1]} : vector<4x8x9xf32> to vector<4x8x1xf32>
    %434 = vector.shape_cast %33 : vector<8x8xf32> to vector<1x8x8xf32>
    %435 = vector.broadcast %433 : vector<4x8x1xf32> to vector<4x8x8xf32>
    %436 = vector.broadcast %434 : vector<1x8x8xf32> to vector<4x8x8xf32>
    %437 = arith.mulf %435, %436 : vector<4x8x8xf32>
    %438 = arith.addf %432, %437 : vector<4x8x8xf32>
    %439 = vector.extract_strided_slice %396 {offsets = [0, 0, 7], sizes = [4, 8, 1], strides = [1, 1, 1]} : vector<4x8x9xf32> to vector<4x8x1xf32>
    %440 = vector.shape_cast %35 : vector<8x8xf32> to vector<1x8x8xf32>
    %441 = vector.broadcast %439 : vector<4x8x1xf32> to vector<4x8x8xf32>
    %442 = vector.broadcast %440 : vector<1x8x8xf32> to vector<4x8x8xf32>
    %443 = arith.mulf %441, %442 : vector<4x8x8xf32>
    %444 = arith.addf %438, %443 : vector<4x8x8xf32>
    %445 = vector.extract_strided_slice %396 {offsets = [0, 0, 8], sizes = [4, 8, 1], strides = [1, 1, 1]} : vector<4x8x9xf32> to vector<4x8x1xf32>
    %446 = vector.shape_cast %37 : vector<8x8xf32> to vector<1x8x8xf32>
    %447 = vector.broadcast %445 : vector<4x8x1xf32> to vector<4x8x8xf32>
    %448 = vector.broadcast %446 : vector<1x8x8xf32> to vector<4x8x8xf32>
    %449 = arith.mulf %447, %448 : vector<4x8x8xf32>
    %450 = arith.addf %444, %449 : vector<4x8x8xf32>
    %451 = vector.shape_cast %18 : vector<8x8xf32> to vector<1x8x8xf32>
    %452 = vector.broadcast %451 : vector<1x8x8xf32> to vector<4x8x8xf32>
    %453 = arith.addf %450, %452 : vector<4x8x8xf32>
    %cst_127 = arith.constant dense<0xFF800000> : vector<4x8xf32>
    %454 = vector.multi_reduction <maximumf>, %453, %cst_127 [2] : vector<4x8x8xf32> to vector<4x8xf32>
    %455 = vector.shape_cast %454 : vector<4x8xf32> to vector<4x8x1xf32>
    %456 = vector.broadcast %455 : vector<4x8x1xf32> to vector<4x8x8xf32>
    %457 = arith.subf %453, %456 : vector<4x8x8xf32>
    %458 = math.exp %457 : vector<4x8x8xf32>
    %cst_128 = arith.constant dense<0.000000e+00> : vector<4x8xf32>
    %459 = vector.multi_reduction <add>, %458, %cst_128 [2] : vector<4x8x8xf32> to vector<4x8xf32>
    %460 = vector.shape_cast %459 : vector<4x8xf32> to vector<4x8x1xf32>
    %461 = tpu.reciprocal %460 {approx = true} : vector<4x8x1xf32> -> vector<4x8x1xf32>
    %462 = vector.broadcast %461 : vector<4x8x1xf32> to vector<4x8x8xf32>
    %463 = arith.mulf %458, %462 : vector<4x8x8xf32>
    %464 = vector.shape_cast %21 : vector<8x8xf32> to vector<1x8x8xf32>
    %465 = vector.broadcast %464 : vector<1x8x8xf32> to vector<4x8x8xf32>
    %466 = arith.mulf %463, %465 : vector<4x8x8xf32>
    %cst_129 = arith.constant dense<0.000000e+00> : vector<4x8xf32>
    %467 = vector.multi_reduction <add>, %466, %cst_129 [2] : vector<4x8x8xf32> to vector<4x8xf32>
    %468 = vector.shape_cast %467 : vector<4x8xf32> to vector<4x8x1xf32>
    %469 = vector.shape_cast %23 : vector<8x8xf32> to vector<1x8x8xf32>
    %470 = vector.broadcast %469 : vector<1x8x8xf32> to vector<4x8x8xf32>
    %471 = arith.mulf %463, %470 : vector<4x8x8xf32>
    %cst_130 = arith.constant dense<0.000000e+00> : vector<4x8xf32>
    %472 = vector.multi_reduction <add>, %471, %cst_130 [2] : vector<4x8x8xf32> to vector<4x8xf32>
    %473 = vector.shape_cast %472 : vector<4x8xf32> to vector<4x8x1xf32>
    %474 = vector.shape_cast %25 : vector<8x8xf32> to vector<1x8x8xf32>
    %475 = vector.broadcast %474 : vector<1x8x8xf32> to vector<4x8x8xf32>
    %476 = arith.mulf %463, %475 : vector<4x8x8xf32>
    %cst_131 = arith.constant dense<0.000000e+00> : vector<4x8xf32>
    %477 = vector.multi_reduction <add>, %476, %cst_131 [2] : vector<4x8x8xf32> to vector<4x8xf32>
    %478 = vector.shape_cast %477 : vector<4x8xf32> to vector<4x8x1xf32>
    %479 = vector.shape_cast %27 : vector<8x8xf32> to vector<1x8x8xf32>
    %480 = vector.broadcast %479 : vector<1x8x8xf32> to vector<4x8x8xf32>
    %481 = arith.mulf %463, %480 : vector<4x8x8xf32>
    %cst_132 = arith.constant dense<0.000000e+00> : vector<4x8xf32>
    %482 = vector.multi_reduction <add>, %481, %cst_132 [2] : vector<4x8x8xf32> to vector<4x8xf32>
    %483 = vector.shape_cast %482 : vector<4x8xf32> to vector<4x8x1xf32>
    %484 = vector.shape_cast %29 : vector<8x8xf32> to vector<1x8x8xf32>
    %485 = vector.broadcast %484 : vector<1x8x8xf32> to vector<4x8x8xf32>
    %486 = arith.mulf %463, %485 : vector<4x8x8xf32>
    %cst_133 = arith.constant dense<0.000000e+00> : vector<4x8xf32>
    %487 = vector.multi_reduction <add>, %486, %cst_133 [2] : vector<4x8x8xf32> to vector<4x8xf32>
    %488 = vector.shape_cast %487 : vector<4x8xf32> to vector<4x8x1xf32>
    %489 = vector.shape_cast %31 : vector<8x8xf32> to vector<1x8x8xf32>
    %490 = vector.broadcast %489 : vector<1x8x8xf32> to vector<4x8x8xf32>
    %491 = arith.mulf %463, %490 : vector<4x8x8xf32>
    %cst_134 = arith.constant dense<0.000000e+00> : vector<4x8xf32>
    %492 = vector.multi_reduction <add>, %491, %cst_134 [2] : vector<4x8x8xf32> to vector<4x8xf32>
    %493 = vector.shape_cast %492 : vector<4x8xf32> to vector<4x8x1xf32>
    %494 = vector.shape_cast %33 : vector<8x8xf32> to vector<1x8x8xf32>
    %495 = vector.broadcast %494 : vector<1x8x8xf32> to vector<4x8x8xf32>
    %496 = arith.mulf %463, %495 : vector<4x8x8xf32>
    %cst_135 = arith.constant dense<0.000000e+00> : vector<4x8xf32>
    %497 = vector.multi_reduction <add>, %496, %cst_135 [2] : vector<4x8x8xf32> to vector<4x8xf32>
    %498 = vector.shape_cast %497 : vector<4x8xf32> to vector<4x8x1xf32>
    %499 = vector.shape_cast %35 : vector<8x8xf32> to vector<1x8x8xf32>
    %500 = vector.broadcast %499 : vector<1x8x8xf32> to vector<4x8x8xf32>
    %501 = arith.mulf %463, %500 : vector<4x8x8xf32>
    %cst_136 = arith.constant dense<0.000000e+00> : vector<4x8xf32>
    %502 = vector.multi_reduction <add>, %501, %cst_136 [2] : vector<4x8x8xf32> to vector<4x8xf32>
    %503 = vector.shape_cast %502 : vector<4x8xf32> to vector<4x8x1xf32>
    %504 = vector.shape_cast %37 : vector<8x8xf32> to vector<1x8x8xf32>
    %505 = vector.broadcast %504 : vector<1x8x8xf32> to vector<4x8x8xf32>
    %506 = arith.mulf %463, %505 : vector<4x8x8xf32>
    %cst_137 = arith.constant dense<0.000000e+00> : vector<4x8xf32>
    %507 = vector.multi_reduction <add>, %506, %cst_137 [2] : vector<4x8x8xf32> to vector<4x8xf32>
    %508 = vector.shape_cast %507 : vector<4x8xf32> to vector<4x8x1xf32>
    %509 = tpu.concatenate %468, %473, %478, %483, %488, %493, %498, %503, %508 in 2 : vector<4x8x1xf32>, vector<4x8x1xf32>, vector<4x8x1xf32>, vector<4x8x1xf32>, vector<4x8x1xf32>, vector<4x8x1xf32>, vector<4x8x1xf32>, vector<4x8x1xf32>, vector<4x8x1xf32> -> vector<4x8x9xf32>
    %510 = vector.extract_strided_slice %463 {offsets = [0, 0, 0], sizes = [1, 8, 8], strides = [1, 1, 1]} : vector<4x8x8xf32> to vector<1x8x8xf32>
    %511 = vector.shape_cast %510 : vector<1x8x8xf32> to vector<8x8xf32>
    %512 = vector.extract_strided_slice %362 {offsets = [0, 64], sizes = [8, 8], strides = [1, 1]} : vector<8x96xf32> to vector<8x8xf32>
    %cst_138 = arith.constant dense<0.000000e+00> : vector<8x8xf32>
    %513 = tpu.matmul %511, %512, %cst_138 {dimension_numbers = #tpu.dot_dimension_numbers<[1], [0], [0], [1], [0, 0, 1, 1], [], []>} : vector<8x8xf32>, vector<8x8xf32>, vector<8x8xf32> -> vector<8x8xf32>
    %514 = vector.extract_strided_slice %509 {offsets = [0, 0, 0], sizes = [1, 8, 9], strides = [1, 1, 1]} : vector<4x8x9xf32> to vector<1x8x9xf32>
    %515 = vector.shape_cast %514 : vector<1x8x9xf32> to vector<8x9xf32>
    %cst_139 = arith.constant dense<0.000000e+00> : vector<8x8xf32>
    %516 = tpu.matmul %515, %366, %cst_139 {dimension_numbers = #tpu.dot_dimension_numbers<[1], [0], [0], [1], [0, 0, 1, 1], [], []>} : vector<8x9xf32>, vector<9x8xf32>, vector<8x8xf32> -> vector<8x8xf32>
    %517 = arith.addf %513, %516 : vector<8x8xf32>
    %518 = vector.extract_strided_slice %463 {offsets = [1, 0, 0], sizes = [1, 8, 8], strides = [1, 1, 1]} : vector<4x8x8xf32> to vector<1x8x8xf32>
    %519 = vector.shape_cast %518 : vector<1x8x8xf32> to vector<8x8xf32>
    %520 = vector.extract_strided_slice %362 {offsets = [0, 72], sizes = [8, 8], strides = [1, 1]} : vector<8x96xf32> to vector<8x8xf32>
    %cst_140 = arith.constant dense<0.000000e+00> : vector<8x8xf32>
    %521 = tpu.matmul %519, %520, %cst_140 {dimension_numbers = #tpu.dot_dimension_numbers<[1], [0], [0], [1], [0, 0, 1, 1], [], []>} : vector<8x8xf32>, vector<8x8xf32>, vector<8x8xf32> -> vector<8x8xf32>
    %522 = vector.extract_strided_slice %509 {offsets = [1, 0, 0], sizes = [1, 8, 9], strides = [1, 1, 1]} : vector<4x8x9xf32> to vector<1x8x9xf32>
    %523 = vector.shape_cast %522 : vector<1x8x9xf32> to vector<8x9xf32>
    %cst_141 = arith.constant dense<0.000000e+00> : vector<8x8xf32>
    %524 = tpu.matmul %523, %366, %cst_141 {dimension_numbers = #tpu.dot_dimension_numbers<[1], [0], [0], [1], [0, 0, 1, 1], [], []>} : vector<8x9xf32>, vector<9x8xf32>, vector<8x8xf32> -> vector<8x8xf32>
    %525 = arith.addf %521, %524 : vector<8x8xf32>
    %526 = vector.extract_strided_slice %463 {offsets = [2, 0, 0], sizes = [1, 8, 8], strides = [1, 1, 1]} : vector<4x8x8xf32> to vector<1x8x8xf32>
    %527 = vector.shape_cast %526 : vector<1x8x8xf32> to vector<8x8xf32>
    %528 = vector.extract_strided_slice %362 {offsets = [0, 80], sizes = [8, 8], strides = [1, 1]} : vector<8x96xf32> to vector<8x8xf32>
    %cst_142 = arith.constant dense<0.000000e+00> : vector<8x8xf32>
    %529 = tpu.matmul %527, %528, %cst_142 {dimension_numbers = #tpu.dot_dimension_numbers<[1], [0], [0], [1], [0, 0, 1, 1], [], []>} : vector<8x8xf32>, vector<8x8xf32>, vector<8x8xf32> -> vector<8x8xf32>
    %530 = vector.extract_strided_slice %509 {offsets = [2, 0, 0], sizes = [1, 8, 9], strides = [1, 1, 1]} : vector<4x8x9xf32> to vector<1x8x9xf32>
    %531 = vector.shape_cast %530 : vector<1x8x9xf32> to vector<8x9xf32>
    %cst_143 = arith.constant dense<0.000000e+00> : vector<8x8xf32>
    %532 = tpu.matmul %531, %366, %cst_143 {dimension_numbers = #tpu.dot_dimension_numbers<[1], [0], [0], [1], [0, 0, 1, 1], [], []>} : vector<8x9xf32>, vector<9x8xf32>, vector<8x8xf32> -> vector<8x8xf32>
    %533 = arith.addf %529, %532 : vector<8x8xf32>
    %534 = vector.extract_strided_slice %463 {offsets = [3, 0, 0], sizes = [1, 8, 8], strides = [1, 1, 1]} : vector<4x8x8xf32> to vector<1x8x8xf32>
    %535 = vector.shape_cast %534 : vector<1x8x8xf32> to vector<8x8xf32>
    %536 = vector.extract_strided_slice %362 {offsets = [0, 88], sizes = [8, 8], strides = [1, 1]} : vector<8x96xf32> to vector<8x8xf32>
    %cst_144 = arith.constant dense<0.000000e+00> : vector<8x8xf32>
    %537 = tpu.matmul %535, %536, %cst_144 {dimension_numbers = #tpu.dot_dimension_numbers<[1], [0], [0], [1], [0, 0, 1, 1], [], []>} : vector<8x8xf32>, vector<8x8xf32>, vector<8x8xf32> -> vector<8x8xf32>
    %538 = vector.extract_strided_slice %509 {offsets = [3, 0, 0], sizes = [1, 8, 9], strides = [1, 1, 1]} : vector<4x8x9xf32> to vector<1x8x9xf32>
    %539 = vector.shape_cast %538 : vector<1x8x9xf32> to vector<8x9xf32>
    %cst_145 = arith.constant dense<0.000000e+00> : vector<8x8xf32>
    %540 = tpu.matmul %539, %366, %cst_145 {dimension_numbers = #tpu.dot_dimension_numbers<[1], [0], [0], [1], [0, 0, 1, 1], [], []>} : vector<8x9xf32>, vector<9x8xf32>, vector<8x8xf32> -> vector<8x8xf32>
    %541 = arith.addf %537, %540 : vector<8x8xf32>
    %542 = tpu.concatenate %517, %525, %533, %541 in 1 : vector<8x8xf32>, vector<8x8xf32>, vector<8x8xf32>, vector<8x8xf32> -> vector<8x32xf32>
    %c1_146 = arith.constant 1 : index
    %c0_147 = arith.constant 0 : index
    %c0_148 = arith.constant 0 : index
    %543 = vector.load %arg12[%c1_146, %c0_147, %c0_148] : memref<3x32x32xf32, #tpu.memory_space<vmem>>, vector<1x32x32xf32>
    %544 = vector.shape_cast %543 : vector<1x32x32xf32> to vector<32x32xf32>
    %cst_149 = arith.constant dense<0.000000e+00> : vector<8x32xf32>
    %545 = tpu.matmul %542, %544, %cst_149 {dimension_numbers = #tpu.dot_dimension_numbers<[1], [0], [0], [1], [0, 0, 1, 1], [], []>} : vector<8x32xf32>, vector<32x32xf32>, vector<8x32xf32> -> vector<8x32xf32>
    %c1_150 = arith.constant 1 : index
    %c0_151 = arith.constant 0 : index
    %c0_152 = arith.constant 0 : index
    %546 = vector.load %arg13[%c1_150, %c0_151, %c0_152] : memref<3x1x32xf32, #tpu.memory_space<vmem>>, vector<1x1x32xf32>
    %547 = vector.shape_cast %546 : vector<1x1x32xf32> to vector<1x32xf32>
    %548 = vector.broadcast %547 : vector<1x32xf32> to vector<8x32xf32>
    %549 = arith.addf %545, %548 : vector<8x32xf32>
    %550 = arith.addf %355, %549 : vector<8x32xf32>
    %c1_153 = arith.constant 1 : index
    %c0_154 = arith.constant 0 : index
    %c0_155 = arith.constant 0 : index
    %551 = vector.load %arg16[%c1_153, %c0_154, %c0_155] : memref<3x1x32xf32, #tpu.memory_space<vmem>>, vector<1x1x32xf32>
    %552 = vector.shape_cast %551 : vector<1x1x32xf32> to vector<1x32xf32>
    %c1_156 = arith.constant 1 : index
    %c0_157 = arith.constant 0 : index
    %c0_158 = arith.constant 0 : index
    %553 = vector.load %arg17[%c1_156, %c0_157, %c0_158] : memref<3x1x32xf32, #tpu.memory_space<vmem>>, vector<1x1x32xf32>
    %554 = vector.shape_cast %553 : vector<1x1x32xf32> to vector<1x32xf32>
    %cst_159 = arith.constant dense<0.000000e+00> : vector<8xf32>
    %555 = vector.multi_reduction <add>, %550, %cst_159 [1] : vector<8x32xf32> to vector<8xf32>
    %556 = vector.shape_cast %555 : vector<8xf32> to vector<8x1xf32>
    %cst_160 = arith.constant 3.200000e+01 : f32
    %557 = vector.broadcast %cst_160 : f32 to vector<8x1xf32>
    %558 = arith.divf %556, %557 : vector<8x1xf32>
    %559 = vector.broadcast %558 : vector<8x1xf32> to vector<8x32xf32>
    %560 = arith.subf %550, %559 : vector<8x32xf32>
    %561 = arith.mulf %560, %560 : vector<8x32xf32>
    %cst_161 = arith.constant dense<0.000000e+00> : vector<8xf32>
    %562 = vector.multi_reduction <add>, %561, %cst_161 [1] : vector<8x32xf32> to vector<8xf32>
    %563 = vector.shape_cast %562 : vector<8xf32> to vector<8x1xf32>
    %cst_162 = arith.constant 3.200000e+01 : f32
    %564 = vector.broadcast %cst_162 : f32 to vector<8x1xf32>
    %565 = arith.divf %563, %564 : vector<8x1xf32>
    %566 = vector.broadcast %558 : vector<8x1xf32> to vector<8x32xf32>
    %567 = arith.subf %550, %566 : vector<8x32xf32>
    %cst_163 = arith.constant 9.99999974E-6 : f32
    %568 = vector.broadcast %cst_163 : f32 to vector<8x1xf32>
    %569 = arith.addf %565, %568 : vector<8x1xf32>
    %570 = math.rsqrt %569 : vector<8x1xf32>
    %571 = vector.broadcast %570 : vector<8x1xf32> to vector<8x32xf32>
    %572 = arith.mulf %567, %571 : vector<8x32xf32>
    %573 = vector.broadcast %552 : vector<1x32xf32> to vector<8x32xf32>
    %574 = arith.mulf %572, %573 : vector<8x32xf32>
    %575 = vector.broadcast %554 : vector<1x32xf32> to vector<8x32xf32>
    %576 = arith.addf %574, %575 : vector<8x32xf32>
    %577 = vector.broadcast %6 : vector<8x1xf32> to vector<8x32xf32>
    %578 = arith.mulf %576, %577 : vector<8x32xf32>
    %c1_164 = arith.constant 1 : index
    %c0_165 = arith.constant 0 : index
    %c0_166 = arith.constant 0 : index
    %579 = vector.load %arg18[%c1_164, %c0_165, %c0_166] : memref<3x96x64xf32, #tpu.memory_space<vmem>>, vector<1x96x64xf32>
    %580 = vector.shape_cast %579 : vector<1x96x64xf32> to vector<96x64xf32>
    %c1_167 = arith.constant 1 : index
    %c0_168 = arith.constant 0 : index
    %c0_169 = arith.constant 0 : index
    %581 = vector.load %arg19[%c1_167, %c0_168, %c0_169] : memref<3x1x64xf32, #tpu.memory_space<vmem>>, vector<1x1x64xf32>
    %582 = vector.shape_cast %581 : vector<1x1x64xf32> to vector<1x64xf32>
    %c1_i32_170 = arith.constant 1 : i32
    %583 = tpu.dynamic_rotate %578 by %c1_i32_170 dim 0 : vector<8x32xf32>, i32 -> vector<8x32xf32>
    %584 = vector.broadcast %41 : vector<8x1xf32> to vector<8x32xf32>
    %585 = arith.mulf %583, %584 : vector<8x32xf32>
    %586 = vector.extract_strided_slice %580 {offsets = [0, 0], sizes = [32, 64], strides = [1, 1]} : vector<96x64xf32> to vector<32x64xf32>
    %cst_171 = arith.constant dense<0.000000e+00> : vector<8x64xf32>
    %587 = tpu.matmul %585, %586, %cst_171 {dimension_numbers = #tpu.dot_dimension_numbers<[1], [0], [0], [1], [0, 0, 1, 1], [], []>} : vector<8x32xf32>, vector<32x64xf32>, vector<8x64xf32> -> vector<8x64xf32>
    %588 = vector.extract_strided_slice %580 {offsets = [32, 0], sizes = [32, 64], strides = [1, 1]} : vector<96x64xf32> to vector<32x64xf32>
    %cst_172 = arith.constant dense<0.000000e+00> : vector<8x64xf32>
    %589 = tpu.matmul %578, %588, %cst_172 {dimension_numbers = #tpu.dot_dimension_numbers<[1], [0], [0], [1], [0, 0, 1, 1], [], []>} : vector<8x32xf32>, vector<32x64xf32>, vector<8x64xf32> -> vector<8x64xf32>
    %590 = arith.addf %587, %589 : vector<8x64xf32>
    %c7_i32_173 = arith.constant 7 : i32
    %591 = tpu.dynamic_rotate %578 by %c7_i32_173 dim 0 : vector<8x32xf32>, i32 -> vector<8x32xf32>
    %592 = vector.broadcast %45 : vector<8x1xf32> to vector<8x32xf32>
    %593 = arith.mulf %591, %592 : vector<8x32xf32>
    %594 = vector.extract_strided_slice %580 {offsets = [64, 0], sizes = [32, 64], strides = [1, 1]} : vector<96x64xf32> to vector<32x64xf32>
    %cst_174 = arith.constant dense<0.000000e+00> : vector<8x64xf32>
    %595 = tpu.matmul %593, %594, %cst_174 {dimension_numbers = #tpu.dot_dimension_numbers<[1], [0], [0], [1], [0, 0, 1, 1], [], []>} : vector<8x32xf32>, vector<32x64xf32>, vector<8x64xf32> -> vector<8x64xf32>
    %596 = arith.addf %590, %595 : vector<8x64xf32>
    %597 = vector.broadcast %582 : vector<1x64xf32> to vector<8x64xf32>
    %598 = arith.addf %596, %597 : vector<8x64xf32>
    %cst_175 = arith.constant 0.000000e+00 : f32
    %599 = vector.broadcast %cst_175 : f32 to vector<8x64xf32>
    %600 = arith.maximumf %598, %599 : vector<8x64xf32>
    %601 = vector.broadcast %6 : vector<8x1xf32> to vector<8x64xf32>
    %602 = arith.mulf %600, %601 : vector<8x64xf32>
    %c1_176 = arith.constant 1 : index
    %c0_177 = arith.constant 0 : index
    %c0_178 = arith.constant 0 : index
    %603 = vector.load %arg20[%c1_176, %c0_177, %c0_178] : memref<3x192x32xf32, #tpu.memory_space<vmem>>, vector<1x192x32xf32>
    %604 = vector.shape_cast %603 : vector<1x192x32xf32> to vector<192x32xf32>
    %c1_179 = arith.constant 1 : index
    %c0_180 = arith.constant 0 : index
    %c0_181 = arith.constant 0 : index
    %605 = vector.load %arg21[%c1_179, %c0_180, %c0_181] : memref<3x1x32xf32, #tpu.memory_space<vmem>>, vector<1x1x32xf32>
    %606 = vector.shape_cast %605 : vector<1x1x32xf32> to vector<1x32xf32>
    %c1_i32_182 = arith.constant 1 : i32
    %607 = tpu.dynamic_rotate %602 by %c1_i32_182 dim 0 : vector<8x64xf32>, i32 -> vector<8x64xf32>
    %608 = vector.broadcast %41 : vector<8x1xf32> to vector<8x64xf32>
    %609 = arith.mulf %607, %608 : vector<8x64xf32>
    %610 = vector.extract_strided_slice %604 {offsets = [0, 0], sizes = [64, 32], strides = [1, 1]} : vector<192x32xf32> to vector<64x32xf32>
    %cst_183 = arith.constant dense<0.000000e+00> : vector<8x32xf32>
    %611 = tpu.matmul %609, %610, %cst_183 {dimension_numbers = #tpu.dot_dimension_numbers<[1], [0], [0], [1], [0, 0, 1, 1], [], []>} : vector<8x64xf32>, vector<64x32xf32>, vector<8x32xf32> -> vector<8x32xf32>
    %612 = vector.extract_strided_slice %604 {offsets = [64, 0], sizes = [64, 32], strides = [1, 1]} : vector<192x32xf32> to vector<64x32xf32>
    %cst_184 = arith.constant dense<0.000000e+00> : vector<8x32xf32>
    %613 = tpu.matmul %602, %612, %cst_184 {dimension_numbers = #tpu.dot_dimension_numbers<[1], [0], [0], [1], [0, 0, 1, 1], [], []>} : vector<8x64xf32>, vector<64x32xf32>, vector<8x32xf32> -> vector<8x32xf32>
    %614 = arith.addf %611, %613 : vector<8x32xf32>
    %c7_i32_185 = arith.constant 7 : i32
    %615 = tpu.dynamic_rotate %602 by %c7_i32_185 dim 0 : vector<8x64xf32>, i32 -> vector<8x64xf32>
    %616 = vector.broadcast %45 : vector<8x1xf32> to vector<8x64xf32>
    %617 = arith.mulf %615, %616 : vector<8x64xf32>
    %618 = vector.extract_strided_slice %604 {offsets = [128, 0], sizes = [64, 32], strides = [1, 1]} : vector<192x32xf32> to vector<64x32xf32>
    %cst_186 = arith.constant dense<0.000000e+00> : vector<8x32xf32>
    %619 = tpu.matmul %617, %618, %cst_186 {dimension_numbers = #tpu.dot_dimension_numbers<[1], [0], [0], [1], [0, 0, 1, 1], [], []>} : vector<8x64xf32>, vector<64x32xf32>, vector<8x32xf32> -> vector<8x32xf32>
    %620 = arith.addf %614, %619 : vector<8x32xf32>
    %621 = vector.broadcast %606 : vector<1x32xf32> to vector<8x32xf32>
    %622 = arith.addf %620, %621 : vector<8x32xf32>
    %623 = vector.broadcast %6 : vector<8x1xf32> to vector<8x32xf32>
    %624 = arith.mulf %622, %623 : vector<8x32xf32>
    %625 = arith.addf %576, %624 : vector<8x32xf32>
    %c1_187 = arith.constant 1 : index
    %c0_188 = arith.constant 0 : index
    %c0_189 = arith.constant 0 : index
    %626 = vector.load %arg22[%c1_187, %c0_188, %c0_189] : memref<3x1x32xf32, #tpu.memory_space<vmem>>, vector<1x1x32xf32>
    %627 = vector.shape_cast %626 : vector<1x1x32xf32> to vector<1x32xf32>
    %c1_190 = arith.constant 1 : index
    %c0_191 = arith.constant 0 : index
    %c0_192 = arith.constant 0 : index
    %628 = vector.load %arg23[%c1_190, %c0_191, %c0_192] : memref<3x1x32xf32, #tpu.memory_space<vmem>>, vector<1x1x32xf32>
    %629 = vector.shape_cast %628 : vector<1x1x32xf32> to vector<1x32xf32>
    %cst_193 = arith.constant dense<0.000000e+00> : vector<8xf32>
    %630 = vector.multi_reduction <add>, %625, %cst_193 [1] : vector<8x32xf32> to vector<8xf32>
    %631 = vector.shape_cast %630 : vector<8xf32> to vector<8x1xf32>
    %cst_194 = arith.constant 3.200000e+01 : f32
    %632 = vector.broadcast %cst_194 : f32 to vector<8x1xf32>
    %633 = arith.divf %631, %632 : vector<8x1xf32>
    %634 = vector.broadcast %633 : vector<8x1xf32> to vector<8x32xf32>
    %635 = arith.subf %625, %634 : vector<8x32xf32>
    %636 = arith.mulf %635, %635 : vector<8x32xf32>
    %cst_195 = arith.constant dense<0.000000e+00> : vector<8xf32>
    %637 = vector.multi_reduction <add>, %636, %cst_195 [1] : vector<8x32xf32> to vector<8xf32>
    %638 = vector.shape_cast %637 : vector<8xf32> to vector<8x1xf32>
    %cst_196 = arith.constant 3.200000e+01 : f32
    %639 = vector.broadcast %cst_196 : f32 to vector<8x1xf32>
    %640 = arith.divf %638, %639 : vector<8x1xf32>
    %641 = vector.broadcast %633 : vector<8x1xf32> to vector<8x32xf32>
    %642 = arith.subf %625, %641 : vector<8x32xf32>
    %cst_197 = arith.constant 9.99999974E-6 : f32
    %643 = vector.broadcast %cst_197 : f32 to vector<8x1xf32>
    %644 = arith.addf %640, %643 : vector<8x1xf32>
    %645 = math.rsqrt %644 : vector<8x1xf32>
    %646 = vector.broadcast %645 : vector<8x1xf32> to vector<8x32xf32>
    %647 = arith.mulf %642, %646 : vector<8x32xf32>
    %648 = vector.broadcast %627 : vector<1x32xf32> to vector<8x32xf32>
    %649 = arith.mulf %647, %648 : vector<8x32xf32>
    %650 = vector.broadcast %629 : vector<1x32xf32> to vector<8x32xf32>
    %651 = arith.addf %649, %650 : vector<8x32xf32>
    %c0_198 = arith.constant 0 : index
    %c0_199 = arith.constant 0 : index
    %c0_200 = arith.constant 0 : index
    %652 = vector.load %arg6[%c0_198, %c0_199, %c0_200] : memref<1x1x16xf32, #tpu.memory_space<vmem>>, vector<1x1x16xf32>
    %653 = vector.shape_cast %652 : vector<1x1x16xf32> to vector<1x16xf32>
    %c0_201 = arith.constant 0 : index
    %c0_202 = arith.constant 0 : index
    %654 = vector.load %arg7[%c0_201, %c0_202] : memref<16x32xf32, #tpu.memory_space<vmem>>, vector<16x32xf32>
    %cst_203 = arith.constant dense<0.000000e+00> : vector<1x32xf32>
    %655 = tpu.matmul %653, %654, %cst_203 {dimension_numbers = #tpu.dot_dimension_numbers<[1], [0], [0], [1], [0, 0, 1, 1], [], []>} : vector<1x16xf32>, vector<16x32xf32>, vector<1x32xf32> -> vector<1x32xf32>
    %c0_204 = arith.constant 0 : index
    %c0_205 = arith.constant 0 : index
    %656 = vector.load %arg8[%c0_204, %c0_205] : memref<1x32xf32, #tpu.memory_space<vmem>>, vector<1x32xf32>
    %657 = arith.addf %655, %656 : vector<1x32xf32>
    %658 = vector.broadcast %657 : vector<1x32xf32> to vector<8x32xf32>
    %659 = arith.addf %651, %658 : vector<8x32xf32>
    %660 = vector.broadcast %6 : vector<8x1xf32> to vector<8x32xf32>
    %661 = arith.mulf %659, %660 : vector<8x32xf32>
    %c2 = arith.constant 2 : index
    %c0_206 = arith.constant 0 : index
    %c0_207 = arith.constant 0 : index
    %662 = vector.load %arg10[%c2, %c0_206, %c0_207] : memref<3x32x96xf32, #tpu.memory_space<vmem>>, vector<1x32x96xf32>
    %663 = vector.shape_cast %662 : vector<1x32x96xf32> to vector<32x96xf32>
    %cst_208 = arith.constant dense<0.000000e+00> : vector<8x96xf32>
    %664 = tpu.matmul %661, %663, %cst_208 {dimension_numbers = #tpu.dot_dimension_numbers<[1], [0], [0], [1], [0, 0, 1, 1], [], []>} : vector<8x32xf32>, vector<32x96xf32>, vector<8x96xf32> -> vector<8x96xf32>
    %c2_209 = arith.constant 2 : index
    %c0_210 = arith.constant 0 : index
    %c0_211 = arith.constant 0 : index
    %665 = vector.load %arg11[%c2_209, %c0_210, %c0_211] : memref<3x1x96xf32, #tpu.memory_space<vmem>>, vector<1x1x96xf32>
    %666 = vector.shape_cast %665 : vector<1x1x96xf32> to vector<1x96xf32>
    %667 = vector.broadcast %666 : vector<1x96xf32> to vector<8x96xf32>
    %668 = arith.addf %664, %667 : vector<8x96xf32>
    %c2_212 = arith.constant 2 : index
    %c0_213 = arith.constant 0 : index
    %c0_214 = arith.constant 0 : index
    %669 = vector.load %arg14[%c2_212, %c0_213, %c0_214] : memref<3x9x8xf32, #tpu.memory_space<vmem>>, vector<1x9x8xf32>
    %670 = vector.shape_cast %669 : vector<1x9x8xf32> to vector<9x8xf32>
    %c2_215 = arith.constant 2 : index
    %c0_216 = arith.constant 0 : index
    %c0_217 = arith.constant 0 : index
    %671 = vector.load %arg15[%c2_215, %c0_216, %c0_217] : memref<3x9x8xf32, #tpu.memory_space<vmem>>, vector<1x9x8xf32>
    %672 = vector.shape_cast %671 : vector<1x9x8xf32> to vector<9x8xf32>
    %673 = vector.extract_strided_slice %668 {offsets = [0, 0], sizes = [8, 8], strides = [1, 1]} : vector<8x96xf32> to vector<8x8xf32>
    %674 = vector.extract_strided_slice %668 {offsets = [0, 32], sizes = [8, 8], strides = [1, 1]} : vector<8x96xf32> to vector<8x8xf32>
    %cst_218 = arith.constant dense<0.000000e+00> : vector<8x8xf32>
    %675 = tpu.matmul %673, %674, %cst_218 {dimension_numbers = #tpu.dot_dimension_numbers<[1], [1], [0], [0], [0, 0, 1, 0], [], []>} : vector<8x8xf32>, vector<8x8xf32>, vector<8x8xf32> -> vector<8x8xf32>
    %676 = vector.extract_strided_slice %668 {offsets = [0, 8], sizes = [8, 8], strides = [1, 1]} : vector<8x96xf32> to vector<8x8xf32>
    %677 = vector.extract_strided_slice %668 {offsets = [0, 40], sizes = [8, 8], strides = [1, 1]} : vector<8x96xf32> to vector<8x8xf32>
    %cst_219 = arith.constant dense<0.000000e+00> : vector<8x8xf32>
    %678 = tpu.matmul %676, %677, %cst_219 {dimension_numbers = #tpu.dot_dimension_numbers<[1], [1], [0], [0], [0, 0, 1, 0], [], []>} : vector<8x8xf32>, vector<8x8xf32>, vector<8x8xf32> -> vector<8x8xf32>
    %679 = vector.extract_strided_slice %668 {offsets = [0, 16], sizes = [8, 8], strides = [1, 1]} : vector<8x96xf32> to vector<8x8xf32>
    %680 = vector.extract_strided_slice %668 {offsets = [0, 48], sizes = [8, 8], strides = [1, 1]} : vector<8x96xf32> to vector<8x8xf32>
    %cst_220 = arith.constant dense<0.000000e+00> : vector<8x8xf32>
    %681 = tpu.matmul %679, %680, %cst_220 {dimension_numbers = #tpu.dot_dimension_numbers<[1], [1], [0], [0], [0, 0, 1, 0], [], []>} : vector<8x8xf32>, vector<8x8xf32>, vector<8x8xf32> -> vector<8x8xf32>
    %682 = vector.extract_strided_slice %668 {offsets = [0, 24], sizes = [8, 8], strides = [1, 1]} : vector<8x96xf32> to vector<8x8xf32>
    %683 = vector.extract_strided_slice %668 {offsets = [0, 56], sizes = [8, 8], strides = [1, 1]} : vector<8x96xf32> to vector<8x8xf32>
    %cst_221 = arith.constant dense<0.000000e+00> : vector<8x8xf32>
    %684 = tpu.matmul %682, %683, %cst_221 {dimension_numbers = #tpu.dot_dimension_numbers<[1], [1], [0], [0], [0, 0, 1, 0], [], []>} : vector<8x8xf32>, vector<8x8xf32>, vector<8x8xf32> -> vector<8x8xf32>
    %685 = vector.shape_cast %675 : vector<8x8xf32> to vector<1x8x8xf32>
    %686 = vector.shape_cast %678 : vector<8x8xf32> to vector<1x8x8xf32>
    %687 = vector.shape_cast %681 : vector<8x8xf32> to vector<1x8x8xf32>
    %688 = vector.shape_cast %684 : vector<8x8xf32> to vector<1x8x8xf32>
    %689 = tpu.concatenate %685, %686, %687, %688 in 0 : vector<1x8x8xf32>, vector<1x8x8xf32>, vector<1x8x8xf32>, vector<1x8x8xf32> -> vector<4x8x8xf32>
    %690 = vector.extract_strided_slice %668 {offsets = [0, 0], sizes = [8, 8], strides = [1, 1]} : vector<8x96xf32> to vector<8x8xf32>
    %cst_222 = arith.constant dense<0.000000e+00> : vector<8x9xf32>
    %691 = tpu.matmul %690, %670, %cst_222 {dimension_numbers = #tpu.dot_dimension_numbers<[1], [1], [0], [0], [0, 0, 1, 0], [], []>} : vector<8x8xf32>, vector<9x8xf32>, vector<8x9xf32> -> vector<8x9xf32>
    %692 = vector.extract_strided_slice %668 {offsets = [0, 8], sizes = [8, 8], strides = [1, 1]} : vector<8x96xf32> to vector<8x8xf32>
    %cst_223 = arith.constant dense<0.000000e+00> : vector<8x9xf32>
    %693 = tpu.matmul %692, %670, %cst_223 {dimension_numbers = #tpu.dot_dimension_numbers<[1], [1], [0], [0], [0, 0, 1, 0], [], []>} : vector<8x8xf32>, vector<9x8xf32>, vector<8x9xf32> -> vector<8x9xf32>
    %694 = vector.extract_strided_slice %668 {offsets = [0, 16], sizes = [8, 8], strides = [1, 1]} : vector<8x96xf32> to vector<8x8xf32>
    %cst_224 = arith.constant dense<0.000000e+00> : vector<8x9xf32>
    %695 = tpu.matmul %694, %670, %cst_224 {dimension_numbers = #tpu.dot_dimension_numbers<[1], [1], [0], [0], [0, 0, 1, 0], [], []>} : vector<8x8xf32>, vector<9x8xf32>, vector<8x9xf32> -> vector<8x9xf32>
    %696 = vector.extract_strided_slice %668 {offsets = [0, 24], sizes = [8, 8], strides = [1, 1]} : vector<8x96xf32> to vector<8x8xf32>
    %cst_225 = arith.constant dense<0.000000e+00> : vector<8x9xf32>
    %697 = tpu.matmul %696, %670, %cst_225 {dimension_numbers = #tpu.dot_dimension_numbers<[1], [1], [0], [0], [0, 0, 1, 0], [], []>} : vector<8x8xf32>, vector<9x8xf32>, vector<8x9xf32> -> vector<8x9xf32>
    %698 = vector.shape_cast %691 : vector<8x9xf32> to vector<1x8x9xf32>
    %699 = vector.shape_cast %693 : vector<8x9xf32> to vector<1x8x9xf32>
    %700 = vector.shape_cast %695 : vector<8x9xf32> to vector<1x8x9xf32>
    %701 = vector.shape_cast %697 : vector<8x9xf32> to vector<1x8x9xf32>
    %702 = tpu.concatenate %698, %699, %700, %701 in 0 : vector<1x8x9xf32>, vector<1x8x9xf32>, vector<1x8x9xf32>, vector<1x8x9xf32> -> vector<4x8x9xf32>
    %703 = vector.extract_strided_slice %702 {offsets = [0, 0, 0], sizes = [4, 8, 1], strides = [1, 1, 1]} : vector<4x8x9xf32> to vector<4x8x1xf32>
    %704 = vector.shape_cast %21 : vector<8x8xf32> to vector<1x8x8xf32>
    %705 = vector.broadcast %703 : vector<4x8x1xf32> to vector<4x8x8xf32>
    %706 = vector.broadcast %704 : vector<1x8x8xf32> to vector<4x8x8xf32>
    %707 = arith.mulf %705, %706 : vector<4x8x8xf32>
    %708 = arith.addf %689, %707 : vector<4x8x8xf32>
    %709 = vector.extract_strided_slice %702 {offsets = [0, 0, 1], sizes = [4, 8, 1], strides = [1, 1, 1]} : vector<4x8x9xf32> to vector<4x8x1xf32>
    %710 = vector.shape_cast %23 : vector<8x8xf32> to vector<1x8x8xf32>
    %711 = vector.broadcast %709 : vector<4x8x1xf32> to vector<4x8x8xf32>
    %712 = vector.broadcast %710 : vector<1x8x8xf32> to vector<4x8x8xf32>
    %713 = arith.mulf %711, %712 : vector<4x8x8xf32>
    %714 = arith.addf %708, %713 : vector<4x8x8xf32>
    %715 = vector.extract_strided_slice %702 {offsets = [0, 0, 2], sizes = [4, 8, 1], strides = [1, 1, 1]} : vector<4x8x9xf32> to vector<4x8x1xf32>
    %716 = vector.shape_cast %25 : vector<8x8xf32> to vector<1x8x8xf32>
    %717 = vector.broadcast %715 : vector<4x8x1xf32> to vector<4x8x8xf32>
    %718 = vector.broadcast %716 : vector<1x8x8xf32> to vector<4x8x8xf32>
    %719 = arith.mulf %717, %718 : vector<4x8x8xf32>
    %720 = arith.addf %714, %719 : vector<4x8x8xf32>
    %721 = vector.extract_strided_slice %702 {offsets = [0, 0, 3], sizes = [4, 8, 1], strides = [1, 1, 1]} : vector<4x8x9xf32> to vector<4x8x1xf32>
    %722 = vector.shape_cast %27 : vector<8x8xf32> to vector<1x8x8xf32>
    %723 = vector.broadcast %721 : vector<4x8x1xf32> to vector<4x8x8xf32>
    %724 = vector.broadcast %722 : vector<1x8x8xf32> to vector<4x8x8xf32>
    %725 = arith.mulf %723, %724 : vector<4x8x8xf32>
    %726 = arith.addf %720, %725 : vector<4x8x8xf32>
    %727 = vector.extract_strided_slice %702 {offsets = [0, 0, 4], sizes = [4, 8, 1], strides = [1, 1, 1]} : vector<4x8x9xf32> to vector<4x8x1xf32>
    %728 = vector.shape_cast %29 : vector<8x8xf32> to vector<1x8x8xf32>
    %729 = vector.broadcast %727 : vector<4x8x1xf32> to vector<4x8x8xf32>
    %730 = vector.broadcast %728 : vector<1x8x8xf32> to vector<4x8x8xf32>
    %731 = arith.mulf %729, %730 : vector<4x8x8xf32>
    %732 = arith.addf %726, %731 : vector<4x8x8xf32>
    %733 = vector.extract_strided_slice %702 {offsets = [0, 0, 5], sizes = [4, 8, 1], strides = [1, 1, 1]} : vector<4x8x9xf32> to vector<4x8x1xf32>
    %734 = vector.shape_cast %31 : vector<8x8xf32> to vector<1x8x8xf32>
    %735 = vector.broadcast %733 : vector<4x8x1xf32> to vector<4x8x8xf32>
    %736 = vector.broadcast %734 : vector<1x8x8xf32> to vector<4x8x8xf32>
    %737 = arith.mulf %735, %736 : vector<4x8x8xf32>
    %738 = arith.addf %732, %737 : vector<4x8x8xf32>
    %739 = vector.extract_strided_slice %702 {offsets = [0, 0, 6], sizes = [4, 8, 1], strides = [1, 1, 1]} : vector<4x8x9xf32> to vector<4x8x1xf32>
    %740 = vector.shape_cast %33 : vector<8x8xf32> to vector<1x8x8xf32>
    %741 = vector.broadcast %739 : vector<4x8x1xf32> to vector<4x8x8xf32>
    %742 = vector.broadcast %740 : vector<1x8x8xf32> to vector<4x8x8xf32>
    %743 = arith.mulf %741, %742 : vector<4x8x8xf32>
    %744 = arith.addf %738, %743 : vector<4x8x8xf32>
    %745 = vector.extract_strided_slice %702 {offsets = [0, 0, 7], sizes = [4, 8, 1], strides = [1, 1, 1]} : vector<4x8x9xf32> to vector<4x8x1xf32>
    %746 = vector.shape_cast %35 : vector<8x8xf32> to vector<1x8x8xf32>
    %747 = vector.broadcast %745 : vector<4x8x1xf32> to vector<4x8x8xf32>
    %748 = vector.broadcast %746 : vector<1x8x8xf32> to vector<4x8x8xf32>
    %749 = arith.mulf %747, %748 : vector<4x8x8xf32>
    %750 = arith.addf %744, %749 : vector<4x8x8xf32>
    %751 = vector.extract_strided_slice %702 {offsets = [0, 0, 8], sizes = [4, 8, 1], strides = [1, 1, 1]} : vector<4x8x9xf32> to vector<4x8x1xf32>
    %752 = vector.shape_cast %37 : vector<8x8xf32> to vector<1x8x8xf32>
    %753 = vector.broadcast %751 : vector<4x8x1xf32> to vector<4x8x8xf32>
    %754 = vector.broadcast %752 : vector<1x8x8xf32> to vector<4x8x8xf32>
    %755 = arith.mulf %753, %754 : vector<4x8x8xf32>
    %756 = arith.addf %750, %755 : vector<4x8x8xf32>
    %757 = vector.shape_cast %18 : vector<8x8xf32> to vector<1x8x8xf32>
    %758 = vector.broadcast %757 : vector<1x8x8xf32> to vector<4x8x8xf32>
    %759 = arith.addf %756, %758 : vector<4x8x8xf32>
    %cst_226 = arith.constant dense<0xFF800000> : vector<4x8xf32>
    %760 = vector.multi_reduction <maximumf>, %759, %cst_226 [2] : vector<4x8x8xf32> to vector<4x8xf32>
    %761 = vector.shape_cast %760 : vector<4x8xf32> to vector<4x8x1xf32>
    %762 = vector.broadcast %761 : vector<4x8x1xf32> to vector<4x8x8xf32>
    %763 = arith.subf %759, %762 : vector<4x8x8xf32>
    %764 = math.exp %763 : vector<4x8x8xf32>
    %cst_227 = arith.constant dense<0.000000e+00> : vector<4x8xf32>
    %765 = vector.multi_reduction <add>, %764, %cst_227 [2] : vector<4x8x8xf32> to vector<4x8xf32>
    %766 = vector.shape_cast %765 : vector<4x8xf32> to vector<4x8x1xf32>
    %767 = tpu.reciprocal %766 {approx = true} : vector<4x8x1xf32> -> vector<4x8x1xf32>
    %768 = vector.broadcast %767 : vector<4x8x1xf32> to vector<4x8x8xf32>
    %769 = arith.mulf %764, %768 : vector<4x8x8xf32>
    %770 = vector.shape_cast %21 : vector<8x8xf32> to vector<1x8x8xf32>
    %771 = vector.broadcast %770 : vector<1x8x8xf32> to vector<4x8x8xf32>
    %772 = arith.mulf %769, %771 : vector<4x8x8xf32>
    %cst_228 = arith.constant dense<0.000000e+00> : vector<4x8xf32>
    %773 = vector.multi_reduction <add>, %772, %cst_228 [2] : vector<4x8x8xf32> to vector<4x8xf32>
    %774 = vector.shape_cast %773 : vector<4x8xf32> to vector<4x8x1xf32>
    %775 = vector.shape_cast %23 : vector<8x8xf32> to vector<1x8x8xf32>
    %776 = vector.broadcast %775 : vector<1x8x8xf32> to vector<4x8x8xf32>
    %777 = arith.mulf %769, %776 : vector<4x8x8xf32>
    %cst_229 = arith.constant dense<0.000000e+00> : vector<4x8xf32>
    %778 = vector.multi_reduction <add>, %777, %cst_229 [2] : vector<4x8x8xf32> to vector<4x8xf32>
    %779 = vector.shape_cast %778 : vector<4x8xf32> to vector<4x8x1xf32>
    %780 = vector.shape_cast %25 : vector<8x8xf32> to vector<1x8x8xf32>
    %781 = vector.broadcast %780 : vector<1x8x8xf32> to vector<4x8x8xf32>
    %782 = arith.mulf %769, %781 : vector<4x8x8xf32>
    %cst_230 = arith.constant dense<0.000000e+00> : vector<4x8xf32>
    %783 = vector.multi_reduction <add>, %782, %cst_230 [2] : vector<4x8x8xf32> to vector<4x8xf32>
    %784 = vector.shape_cast %783 : vector<4x8xf32> to vector<4x8x1xf32>
    %785 = vector.shape_cast %27 : vector<8x8xf32> to vector<1x8x8xf32>
    %786 = vector.broadcast %785 : vector<1x8x8xf32> to vector<4x8x8xf32>
    %787 = arith.mulf %769, %786 : vector<4x8x8xf32>
    %cst_231 = arith.constant dense<0.000000e+00> : vector<4x8xf32>
    %788 = vector.multi_reduction <add>, %787, %cst_231 [2] : vector<4x8x8xf32> to vector<4x8xf32>
    %789 = vector.shape_cast %788 : vector<4x8xf32> to vector<4x8x1xf32>
    %790 = vector.shape_cast %29 : vector<8x8xf32> to vector<1x8x8xf32>
    %791 = vector.broadcast %790 : vector<1x8x8xf32> to vector<4x8x8xf32>
    %792 = arith.mulf %769, %791 : vector<4x8x8xf32>
    %cst_232 = arith.constant dense<0.000000e+00> : vector<4x8xf32>
    %793 = vector.multi_reduction <add>, %792, %cst_232 [2] : vector<4x8x8xf32> to vector<4x8xf32>
    %794 = vector.shape_cast %793 : vector<4x8xf32> to vector<4x8x1xf32>
    %795 = vector.shape_cast %31 : vector<8x8xf32> to vector<1x8x8xf32>
    %796 = vector.broadcast %795 : vector<1x8x8xf32> to vector<4x8x8xf32>
    %797 = arith.mulf %769, %796 : vector<4x8x8xf32>
    %cst_233 = arith.constant dense<0.000000e+00> : vector<4x8xf32>
    %798 = vector.multi_reduction <add>, %797, %cst_233 [2] : vector<4x8x8xf32> to vector<4x8xf32>
    %799 = vector.shape_cast %798 : vector<4x8xf32> to vector<4x8x1xf32>
    %800 = vector.shape_cast %33 : vector<8x8xf32> to vector<1x8x8xf32>
    %801 = vector.broadcast %800 : vector<1x8x8xf32> to vector<4x8x8xf32>
    %802 = arith.mulf %769, %801 : vector<4x8x8xf32>
    %cst_234 = arith.constant dense<0.000000e+00> : vector<4x8xf32>
    %803 = vector.multi_reduction <add>, %802, %cst_234 [2] : vector<4x8x8xf32> to vector<4x8xf32>
    %804 = vector.shape_cast %803 : vector<4x8xf32> to vector<4x8x1xf32>
    %805 = vector.shape_cast %35 : vector<8x8xf32> to vector<1x8x8xf32>
    %806 = vector.broadcast %805 : vector<1x8x8xf32> to vector<4x8x8xf32>
    %807 = arith.mulf %769, %806 : vector<4x8x8xf32>
    %cst_235 = arith.constant dense<0.000000e+00> : vector<4x8xf32>
    %808 = vector.multi_reduction <add>, %807, %cst_235 [2] : vector<4x8x8xf32> to vector<4x8xf32>
    %809 = vector.shape_cast %808 : vector<4x8xf32> to vector<4x8x1xf32>
    %810 = vector.shape_cast %37 : vector<8x8xf32> to vector<1x8x8xf32>
    %811 = vector.broadcast %810 : vector<1x8x8xf32> to vector<4x8x8xf32>
    %812 = arith.mulf %769, %811 : vector<4x8x8xf32>
    %cst_236 = arith.constant dense<0.000000e+00> : vector<4x8xf32>
    %813 = vector.multi_reduction <add>, %812, %cst_236 [2] : vector<4x8x8xf32> to vector<4x8xf32>
    %814 = vector.shape_cast %813 : vector<4x8xf32> to vector<4x8x1xf32>
    %815 = tpu.concatenate %774, %779, %784, %789, %794, %799, %804, %809, %814 in 2 : vector<4x8x1xf32>, vector<4x8x1xf32>, vector<4x8x1xf32>, vector<4x8x1xf32>, vector<4x8x1xf32>, vector<4x8x1xf32>, vector<4x8x1xf32>, vector<4x8x1xf32>, vector<4x8x1xf32> -> vector<4x8x9xf32>
    %816 = vector.extract_strided_slice %769 {offsets = [0, 0, 0], sizes = [1, 8, 8], strides = [1, 1, 1]} : vector<4x8x8xf32> to vector<1x8x8xf32>
    %817 = vector.shape_cast %816 : vector<1x8x8xf32> to vector<8x8xf32>
    %818 = vector.extract_strided_slice %668 {offsets = [0, 64], sizes = [8, 8], strides = [1, 1]} : vector<8x96xf32> to vector<8x8xf32>
    %cst_237 = arith.constant dense<0.000000e+00> : vector<8x8xf32>
    %819 = tpu.matmul %817, %818, %cst_237 {dimension_numbers = #tpu.dot_dimension_numbers<[1], [0], [0], [1], [0, 0, 1, 1], [], []>} : vector<8x8xf32>, vector<8x8xf32>, vector<8x8xf32> -> vector<8x8xf32>
    %820 = vector.extract_strided_slice %815 {offsets = [0, 0, 0], sizes = [1, 8, 9], strides = [1, 1, 1]} : vector<4x8x9xf32> to vector<1x8x9xf32>
    %821 = vector.shape_cast %820 : vector<1x8x9xf32> to vector<8x9xf32>
    %cst_238 = arith.constant dense<0.000000e+00> : vector<8x8xf32>
    %822 = tpu.matmul %821, %672, %cst_238 {dimension_numbers = #tpu.dot_dimension_numbers<[1], [0], [0], [1], [0, 0, 1, 1], [], []>} : vector<8x9xf32>, vector<9x8xf32>, vector<8x8xf32> -> vector<8x8xf32>
    %823 = arith.addf %819, %822 : vector<8x8xf32>
    %824 = vector.extract_strided_slice %769 {offsets = [1, 0, 0], sizes = [1, 8, 8], strides = [1, 1, 1]} : vector<4x8x8xf32> to vector<1x8x8xf32>
    %825 = vector.shape_cast %824 : vector<1x8x8xf32> to vector<8x8xf32>
    %826 = vector.extract_strided_slice %668 {offsets = [0, 72], sizes = [8, 8], strides = [1, 1]} : vector<8x96xf32> to vector<8x8xf32>
    %cst_239 = arith.constant dense<0.000000e+00> : vector<8x8xf32>
    %827 = tpu.matmul %825, %826, %cst_239 {dimension_numbers = #tpu.dot_dimension_numbers<[1], [0], [0], [1], [0, 0, 1, 1], [], []>} : vector<8x8xf32>, vector<8x8xf32>, vector<8x8xf32> -> vector<8x8xf32>
    %828 = vector.extract_strided_slice %815 {offsets = [1, 0, 0], sizes = [1, 8, 9], strides = [1, 1, 1]} : vector<4x8x9xf32> to vector<1x8x9xf32>
    %829 = vector.shape_cast %828 : vector<1x8x9xf32> to vector<8x9xf32>
    %cst_240 = arith.constant dense<0.000000e+00> : vector<8x8xf32>
    %830 = tpu.matmul %829, %672, %cst_240 {dimension_numbers = #tpu.dot_dimension_numbers<[1], [0], [0], [1], [0, 0, 1, 1], [], []>} : vector<8x9xf32>, vector<9x8xf32>, vector<8x8xf32> -> vector<8x8xf32>
    %831 = arith.addf %827, %830 : vector<8x8xf32>
    %832 = vector.extract_strided_slice %769 {offsets = [2, 0, 0], sizes = [1, 8, 8], strides = [1, 1, 1]} : vector<4x8x8xf32> to vector<1x8x8xf32>
    %833 = vector.shape_cast %832 : vector<1x8x8xf32> to vector<8x8xf32>
    %834 = vector.extract_strided_slice %668 {offsets = [0, 80], sizes = [8, 8], strides = [1, 1]} : vector<8x96xf32> to vector<8x8xf32>
    %cst_241 = arith.constant dense<0.000000e+00> : vector<8x8xf32>
    %835 = tpu.matmul %833, %834, %cst_241 {dimension_numbers = #tpu.dot_dimension_numbers<[1], [0], [0], [1], [0, 0, 1, 1], [], []>} : vector<8x8xf32>, vector<8x8xf32>, vector<8x8xf32> -> vector<8x8xf32>
    %836 = vector.extract_strided_slice %815 {offsets = [2, 0, 0], sizes = [1, 8, 9], strides = [1, 1, 1]} : vector<4x8x9xf32> to vector<1x8x9xf32>
    %837 = vector.shape_cast %836 : vector<1x8x9xf32> to vector<8x9xf32>
    %cst_242 = arith.constant dense<0.000000e+00> : vector<8x8xf32>
    %838 = tpu.matmul %837, %672, %cst_242 {dimension_numbers = #tpu.dot_dimension_numbers<[1], [0], [0], [1], [0, 0, 1, 1], [], []>} : vector<8x9xf32>, vector<9x8xf32>, vector<8x8xf32> -> vector<8x8xf32>
    %839 = arith.addf %835, %838 : vector<8x8xf32>
    %840 = vector.extract_strided_slice %769 {offsets = [3, 0, 0], sizes = [1, 8, 8], strides = [1, 1, 1]} : vector<4x8x8xf32> to vector<1x8x8xf32>
    %841 = vector.shape_cast %840 : vector<1x8x8xf32> to vector<8x8xf32>
    %842 = vector.extract_strided_slice %668 {offsets = [0, 88], sizes = [8, 8], strides = [1, 1]} : vector<8x96xf32> to vector<8x8xf32>
    %cst_243 = arith.constant dense<0.000000e+00> : vector<8x8xf32>
    %843 = tpu.matmul %841, %842, %cst_243 {dimension_numbers = #tpu.dot_dimension_numbers<[1], [0], [0], [1], [0, 0, 1, 1], [], []>} : vector<8x8xf32>, vector<8x8xf32>, vector<8x8xf32> -> vector<8x8xf32>
    %844 = vector.extract_strided_slice %815 {offsets = [3, 0, 0], sizes = [1, 8, 9], strides = [1, 1, 1]} : vector<4x8x9xf32> to vector<1x8x9xf32>
    %845 = vector.shape_cast %844 : vector<1x8x9xf32> to vector<8x9xf32>
    %cst_244 = arith.constant dense<0.000000e+00> : vector<8x8xf32>
    %846 = tpu.matmul %845, %672, %cst_244 {dimension_numbers = #tpu.dot_dimension_numbers<[1], [0], [0], [1], [0, 0, 1, 1], [], []>} : vector<8x9xf32>, vector<9x8xf32>, vector<8x8xf32> -> vector<8x8xf32>
    %847 = arith.addf %843, %846 : vector<8x8xf32>
    %848 = tpu.concatenate %823, %831, %839, %847 in 1 : vector<8x8xf32>, vector<8x8xf32>, vector<8x8xf32>, vector<8x8xf32> -> vector<8x32xf32>
    %c2_245 = arith.constant 2 : index
    %c0_246 = arith.constant 0 : index
    %c0_247 = arith.constant 0 : index
    %849 = vector.load %arg12[%c2_245, %c0_246, %c0_247] : memref<3x32x32xf32, #tpu.memory_space<vmem>>, vector<1x32x32xf32>
    %850 = vector.shape_cast %849 : vector<1x32x32xf32> to vector<32x32xf32>
    %cst_248 = arith.constant dense<0.000000e+00> : vector<8x32xf32>
    %851 = tpu.matmul %848, %850, %cst_248 {dimension_numbers = #tpu.dot_dimension_numbers<[1], [0], [0], [1], [0, 0, 1, 1], [], []>} : vector<8x32xf32>, vector<32x32xf32>, vector<8x32xf32> -> vector<8x32xf32>
    %c2_249 = arith.constant 2 : index
    %c0_250 = arith.constant 0 : index
    %c0_251 = arith.constant 0 : index
    %852 = vector.load %arg13[%c2_249, %c0_250, %c0_251] : memref<3x1x32xf32, #tpu.memory_space<vmem>>, vector<1x1x32xf32>
    %853 = vector.shape_cast %852 : vector<1x1x32xf32> to vector<1x32xf32>
    %854 = vector.broadcast %853 : vector<1x32xf32> to vector<8x32xf32>
    %855 = arith.addf %851, %854 : vector<8x32xf32>
    %856 = arith.addf %661, %855 : vector<8x32xf32>
    %c2_252 = arith.constant 2 : index
    %c0_253 = arith.constant 0 : index
    %c0_254 = arith.constant 0 : index
    %857 = vector.load %arg16[%c2_252, %c0_253, %c0_254] : memref<3x1x32xf32, #tpu.memory_space<vmem>>, vector<1x1x32xf32>
    %858 = vector.shape_cast %857 : vector<1x1x32xf32> to vector<1x32xf32>
    %c2_255 = arith.constant 2 : index
    %c0_256 = arith.constant 0 : index
    %c0_257 = arith.constant 0 : index
    %859 = vector.load %arg17[%c2_255, %c0_256, %c0_257] : memref<3x1x32xf32, #tpu.memory_space<vmem>>, vector<1x1x32xf32>
    %860 = vector.shape_cast %859 : vector<1x1x32xf32> to vector<1x32xf32>
    %cst_258 = arith.constant dense<0.000000e+00> : vector<8xf32>
    %861 = vector.multi_reduction <add>, %856, %cst_258 [1] : vector<8x32xf32> to vector<8xf32>
    %862 = vector.shape_cast %861 : vector<8xf32> to vector<8x1xf32>
    %cst_259 = arith.constant 3.200000e+01 : f32
    %863 = vector.broadcast %cst_259 : f32 to vector<8x1xf32>
    %864 = arith.divf %862, %863 : vector<8x1xf32>
    %865 = vector.broadcast %864 : vector<8x1xf32> to vector<8x32xf32>
    %866 = arith.subf %856, %865 : vector<8x32xf32>
    %867 = arith.mulf %866, %866 : vector<8x32xf32>
    %cst_260 = arith.constant dense<0.000000e+00> : vector<8xf32>
    %868 = vector.multi_reduction <add>, %867, %cst_260 [1] : vector<8x32xf32> to vector<8xf32>
    %869 = vector.shape_cast %868 : vector<8xf32> to vector<8x1xf32>
    %cst_261 = arith.constant 3.200000e+01 : f32
    %870 = vector.broadcast %cst_261 : f32 to vector<8x1xf32>
    %871 = arith.divf %869, %870 : vector<8x1xf32>
    %872 = vector.broadcast %864 : vector<8x1xf32> to vector<8x32xf32>
    %873 = arith.subf %856, %872 : vector<8x32xf32>
    %cst_262 = arith.constant 9.99999974E-6 : f32
    %874 = vector.broadcast %cst_262 : f32 to vector<8x1xf32>
    %875 = arith.addf %871, %874 : vector<8x1xf32>
    %876 = math.rsqrt %875 : vector<8x1xf32>
    %877 = vector.broadcast %876 : vector<8x1xf32> to vector<8x32xf32>
    %878 = arith.mulf %873, %877 : vector<8x32xf32>
    %879 = vector.broadcast %858 : vector<1x32xf32> to vector<8x32xf32>
    %880 = arith.mulf %878, %879 : vector<8x32xf32>
    %881 = vector.broadcast %860 : vector<1x32xf32> to vector<8x32xf32>
    %882 = arith.addf %880, %881 : vector<8x32xf32>
    %883 = vector.broadcast %6 : vector<8x1xf32> to vector<8x32xf32>
    %884 = arith.mulf %882, %883 : vector<8x32xf32>
    %c2_263 = arith.constant 2 : index
    %c0_264 = arith.constant 0 : index
    %c0_265 = arith.constant 0 : index
    %885 = vector.load %arg18[%c2_263, %c0_264, %c0_265] : memref<3x96x64xf32, #tpu.memory_space<vmem>>, vector<1x96x64xf32>
    %886 = vector.shape_cast %885 : vector<1x96x64xf32> to vector<96x64xf32>
    %c2_266 = arith.constant 2 : index
    %c0_267 = arith.constant 0 : index
    %c0_268 = arith.constant 0 : index
    %887 = vector.load %arg19[%c2_266, %c0_267, %c0_268] : memref<3x1x64xf32, #tpu.memory_space<vmem>>, vector<1x1x64xf32>
    %888 = vector.shape_cast %887 : vector<1x1x64xf32> to vector<1x64xf32>
    %c1_i32_269 = arith.constant 1 : i32
    %889 = tpu.dynamic_rotate %884 by %c1_i32_269 dim 0 : vector<8x32xf32>, i32 -> vector<8x32xf32>
    %890 = vector.broadcast %41 : vector<8x1xf32> to vector<8x32xf32>
    %891 = arith.mulf %889, %890 : vector<8x32xf32>
    %892 = vector.extract_strided_slice %886 {offsets = [0, 0], sizes = [32, 64], strides = [1, 1]} : vector<96x64xf32> to vector<32x64xf32>
    %cst_270 = arith.constant dense<0.000000e+00> : vector<8x64xf32>
    %893 = tpu.matmul %891, %892, %cst_270 {dimension_numbers = #tpu.dot_dimension_numbers<[1], [0], [0], [1], [0, 0, 1, 1], [], []>} : vector<8x32xf32>, vector<32x64xf32>, vector<8x64xf32> -> vector<8x64xf32>
    %894 = vector.extract_strided_slice %886 {offsets = [32, 0], sizes = [32, 64], strides = [1, 1]} : vector<96x64xf32> to vector<32x64xf32>
    %cst_271 = arith.constant dense<0.000000e+00> : vector<8x64xf32>
    %895 = tpu.matmul %884, %894, %cst_271 {dimension_numbers = #tpu.dot_dimension_numbers<[1], [0], [0], [1], [0, 0, 1, 1], [], []>} : vector<8x32xf32>, vector<32x64xf32>, vector<8x64xf32> -> vector<8x64xf32>
    %896 = arith.addf %893, %895 : vector<8x64xf32>
    %c7_i32_272 = arith.constant 7 : i32
    %897 = tpu.dynamic_rotate %884 by %c7_i32_272 dim 0 : vector<8x32xf32>, i32 -> vector<8x32xf32>
    %898 = vector.broadcast %45 : vector<8x1xf32> to vector<8x32xf32>
    %899 = arith.mulf %897, %898 : vector<8x32xf32>
    %900 = vector.extract_strided_slice %886 {offsets = [64, 0], sizes = [32, 64], strides = [1, 1]} : vector<96x64xf32> to vector<32x64xf32>
    %cst_273 = arith.constant dense<0.000000e+00> : vector<8x64xf32>
    %901 = tpu.matmul %899, %900, %cst_273 {dimension_numbers = #tpu.dot_dimension_numbers<[1], [0], [0], [1], [0, 0, 1, 1], [], []>} : vector<8x32xf32>, vector<32x64xf32>, vector<8x64xf32> -> vector<8x64xf32>
    %902 = arith.addf %896, %901 : vector<8x64xf32>
    %903 = vector.broadcast %888 : vector<1x64xf32> to vector<8x64xf32>
    %904 = arith.addf %902, %903 : vector<8x64xf32>
    %cst_274 = arith.constant 0.000000e+00 : f32
    %905 = vector.broadcast %cst_274 : f32 to vector<8x64xf32>
    %906 = arith.maximumf %904, %905 : vector<8x64xf32>
    %907 = vector.broadcast %6 : vector<8x1xf32> to vector<8x64xf32>
    %908 = arith.mulf %906, %907 : vector<8x64xf32>
    %c2_275 = arith.constant 2 : index
    %c0_276 = arith.constant 0 : index
    %c0_277 = arith.constant 0 : index
    %909 = vector.load %arg20[%c2_275, %c0_276, %c0_277] : memref<3x192x32xf32, #tpu.memory_space<vmem>>, vector<1x192x32xf32>
    %910 = vector.shape_cast %909 : vector<1x192x32xf32> to vector<192x32xf32>
    %c2_278 = arith.constant 2 : index
    %c0_279 = arith.constant 0 : index
    %c0_280 = arith.constant 0 : index
    %911 = vector.load %arg21[%c2_278, %c0_279, %c0_280] : memref<3x1x32xf32, #tpu.memory_space<vmem>>, vector<1x1x32xf32>
    %912 = vector.shape_cast %911 : vector<1x1x32xf32> to vector<1x32xf32>
    %c1_i32_281 = arith.constant 1 : i32
    %913 = tpu.dynamic_rotate %908 by %c1_i32_281 dim 0 : vector<8x64xf32>, i32 -> vector<8x64xf32>
    %914 = vector.broadcast %41 : vector<8x1xf32> to vector<8x64xf32>
    %915 = arith.mulf %913, %914 : vector<8x64xf32>
    %916 = vector.extract_strided_slice %910 {offsets = [0, 0], sizes = [64, 32], strides = [1, 1]} : vector<192x32xf32> to vector<64x32xf32>
    %cst_282 = arith.constant dense<0.000000e+00> : vector<8x32xf32>
    %917 = tpu.matmul %915, %916, %cst_282 {dimension_numbers = #tpu.dot_dimension_numbers<[1], [0], [0], [1], [0, 0, 1, 1], [], []>} : vector<8x64xf32>, vector<64x32xf32>, vector<8x32xf32> -> vector<8x32xf32>
    %918 = vector.extract_strided_slice %910 {offsets = [64, 0], sizes = [64, 32], strides = [1, 1]} : vector<192x32xf32> to vector<64x32xf32>
    %cst_283 = arith.constant dense<0.000000e+00> : vector<8x32xf32>
    %919 = tpu.matmul %908, %918, %cst_283 {dimension_numbers = #tpu.dot_dimension_numbers<[1], [0], [0], [1], [0, 0, 1, 1], [], []>} : vector<8x64xf32>, vector<64x32xf32>, vector<8x32xf32> -> vector<8x32xf32>
    %920 = arith.addf %917, %919 : vector<8x32xf32>
    %c7_i32_284 = arith.constant 7 : i32
    %921 = tpu.dynamic_rotate %908 by %c7_i32_284 dim 0 : vector<8x64xf32>, i32 -> vector<8x64xf32>
    %922 = vector.broadcast %45 : vector<8x1xf32> to vector<8x64xf32>
    %923 = arith.mulf %921, %922 : vector<8x64xf32>
    %924 = vector.extract_strided_slice %910 {offsets = [128, 0], sizes = [64, 32], strides = [1, 1]} : vector<192x32xf32> to vector<64x32xf32>
    %cst_285 = arith.constant dense<0.000000e+00> : vector<8x32xf32>
    %925 = tpu.matmul %923, %924, %cst_285 {dimension_numbers = #tpu.dot_dimension_numbers<[1], [0], [0], [1], [0, 0, 1, 1], [], []>} : vector<8x64xf32>, vector<64x32xf32>, vector<8x32xf32> -> vector<8x32xf32>
    %926 = arith.addf %920, %925 : vector<8x32xf32>
    %927 = vector.broadcast %912 : vector<1x32xf32> to vector<8x32xf32>
    %928 = arith.addf %926, %927 : vector<8x32xf32>
    %929 = vector.broadcast %6 : vector<8x1xf32> to vector<8x32xf32>
    %930 = arith.mulf %928, %929 : vector<8x32xf32>
    %931 = arith.addf %882, %930 : vector<8x32xf32>
    %c2_286 = arith.constant 2 : index
    %c0_287 = arith.constant 0 : index
    %c0_288 = arith.constant 0 : index
    %932 = vector.load %arg22[%c2_286, %c0_287, %c0_288] : memref<3x1x32xf32, #tpu.memory_space<vmem>>, vector<1x1x32xf32>
    %933 = vector.shape_cast %932 : vector<1x1x32xf32> to vector<1x32xf32>
    %c2_289 = arith.constant 2 : index
    %c0_290 = arith.constant 0 : index
    %c0_291 = arith.constant 0 : index
    %934 = vector.load %arg23[%c2_289, %c0_290, %c0_291] : memref<3x1x32xf32, #tpu.memory_space<vmem>>, vector<1x1x32xf32>
    %935 = vector.shape_cast %934 : vector<1x1x32xf32> to vector<1x32xf32>
    %cst_292 = arith.constant dense<0.000000e+00> : vector<8xf32>
    %936 = vector.multi_reduction <add>, %931, %cst_292 [1] : vector<8x32xf32> to vector<8xf32>
    %937 = vector.shape_cast %936 : vector<8xf32> to vector<8x1xf32>
    %cst_293 = arith.constant 3.200000e+01 : f32
    %938 = vector.broadcast %cst_293 : f32 to vector<8x1xf32>
    %939 = arith.divf %937, %938 : vector<8x1xf32>
    %940 = vector.broadcast %939 : vector<8x1xf32> to vector<8x32xf32>
    %941 = arith.subf %931, %940 : vector<8x32xf32>
    %942 = arith.mulf %941, %941 : vector<8x32xf32>
    %cst_294 = arith.constant dense<0.000000e+00> : vector<8xf32>
    %943 = vector.multi_reduction <add>, %942, %cst_294 [1] : vector<8x32xf32> to vector<8xf32>
    %944 = vector.shape_cast %943 : vector<8xf32> to vector<8x1xf32>
    %cst_295 = arith.constant 3.200000e+01 : f32
    %945 = vector.broadcast %cst_295 : f32 to vector<8x1xf32>
    %946 = arith.divf %944, %945 : vector<8x1xf32>
    %947 = vector.broadcast %939 : vector<8x1xf32> to vector<8x32xf32>
    %948 = arith.subf %931, %947 : vector<8x32xf32>
    %cst_296 = arith.constant 9.99999974E-6 : f32
    %949 = vector.broadcast %cst_296 : f32 to vector<8x1xf32>
    %950 = arith.addf %946, %949 : vector<8x1xf32>
    %951 = math.rsqrt %950 : vector<8x1xf32>
    %952 = vector.broadcast %951 : vector<8x1xf32> to vector<8x32xf32>
    %953 = arith.mulf %948, %952 : vector<8x32xf32>
    %954 = vector.broadcast %933 : vector<1x32xf32> to vector<8x32xf32>
    %955 = arith.mulf %953, %954 : vector<8x32xf32>
    %956 = vector.broadcast %935 : vector<1x32xf32> to vector<8x32xf32>
    %957 = arith.addf %955, %956 : vector<8x32xf32>
    %958 = vector.broadcast %6 : vector<8x1xf32> to vector<8x32xf32>
    %959 = arith.mulf %957, %958 : vector<8x32xf32>
    %c0_297 = arith.constant 0 : index
    %c0_298 = arith.constant 0 : index
    %960 = vector.load %arg24[%c0_297, %c0_298] : memref<32x32xf32, #tpu.memory_space<vmem>>, vector<32x32xf32>
    %cst_299 = arith.constant dense<0.000000e+00> : vector<8x32xf32>
    %961 = tpu.matmul %959, %960, %cst_299 {dimension_numbers = #tpu.dot_dimension_numbers<[1], [0], [0], [1], [0, 0, 1, 1], [], []>} : vector<8x32xf32>, vector<32x32xf32>, vector<8x32xf32> -> vector<8x32xf32>
    %c0_300 = arith.constant 0 : index
    %c0_301 = arith.constant 0 : index
    %962 = vector.load %arg25[%c0_300, %c0_301] : memref<1x32xf32, #tpu.memory_space<vmem>>, vector<1x32xf32>
    %963 = vector.broadcast %962 : vector<1x32xf32> to vector<8x32xf32>
    %964 = arith.addf %961, %963 : vector<8x32xf32>
    %965 = vector.broadcast %6 : vector<8x1xf32> to vector<8x32xf32>
    %966 = arith.mulf %964, %965 : vector<8x32xf32>
    %967 = tpu.concatenate %959, %966 in 1 : vector<8x32xf32>, vector<8x32xf32> -> vector<8x64xf32>
    %c0_302 = arith.constant 0 : index
    %c0_303 = arith.constant 0 : index
    %c0_304 = arith.constant 0 : index
    %968 = vector.load %arg26[%c0_302, %c0_303, %c0_304] : memref<1x8x64xf32, #tpu.memory_space<vmem>>, vector<1x8x64xf32>
    %969 = vector.shape_cast %968 : vector<1x8x64xf32> to vector<8x64xf32>
    %970 = vector.shape_cast %967 : vector<8x64xf32> to vector<1x8x64xf32>
    tpu.vector_store %arg26[%c0_302, %c0_303, %c0_304], %970 {strides = array<i32>} : memref<1x8x64xf32, #tpu.memory_space<vmem>>, vector<1x8x64xf32>,
    return
  }
  func.func @transform_0(%arg0: i32, %arg1: memref<2xi32, #tpu.memory_space<smem>>) -> (i32, i32, i32) {
    %c0_i32 = arith.constant 0 : i32
    %c0_i32_0 = arith.constant 0 : i32
    %c0_i32_1 = arith.constant 0 : i32
    return %arg0, %c0_i32, %c0_i32_0 : i32, i32, i32
  }
  func.func @transform_1(%arg0: i32, %arg1: memref<2xi32, #tpu.memory_space<smem>>) -> (i32, i32, i32) {
    %c0_i32 = arith.constant 0 : i32
    %c0_i32_0 = arith.constant 0 : i32
    %c0_i32_1 = arith.constant 0 : i32
    return %arg0, %c0_i32, %c0_i32_0 : i32, i32, i32
  }
  func.func @transform_2(%arg0: i32, %arg1: memref<2xi32, #tpu.memory_space<smem>>) -> (i32, i32) {
    %c0_i32 = arith.constant 0 : i32
    %c0_i32_0 = arith.constant 0 : i32
    %c0_i32_1 = arith.constant 0 : i32
    return %c0_i32, %c0_i32_0 : i32, i32
  }
  func.func @transform_3(%arg0: i32, %arg1: memref<2xi32, #tpu.memory_space<smem>>) -> (i32, i32) {
    %c0_i32 = arith.constant 0 : i32
    %c0_i32_0 = arith.constant 0 : i32
    %c0_i32_1 = arith.constant 0 : i32
    return %c0_i32, %c0_i32_0 : i32, i32
  }
  func.func @transform_4(%arg0: i32, %arg1: memref<2xi32, #tpu.memory_space<smem>>) -> (i32, i32, i32) {
    %c0_i32 = arith.constant 0 : i32
    %c0_i32_0 = arith.constant 0 : i32
    %c0_i32_1 = arith.constant 0 : i32
    return %arg0, %c0_i32, %c0_i32_0 : i32, i32, i32
  }
  func.func @transform_5(%arg0: i32, %arg1: memref<2xi32, #tpu.memory_space<smem>>) -> (i32, i32) {
    %c0_i32 = arith.constant 0 : i32
    %c0_i32_0 = arith.constant 0 : i32
    %c0_i32_1 = arith.constant 0 : i32
    return %c0_i32, %c0_i32_0 : i32, i32
  }
  func.func @transform_6(%arg0: i32, %arg1: memref<2xi32, #tpu.memory_space<smem>>) -> (i32, i32) {
    %c0_i32 = arith.constant 0 : i32
    %c0_i32_0 = arith.constant 0 : i32
    %c0_i32_1 = arith.constant 0 : i32
    return %c0_i32, %c0_i32_0 : i32, i32
  }
  func.func @transform_7(%arg0: i32, %arg1: memref<2xi32, #tpu.memory_space<smem>>) -> (i32, i32, i32) {
    %c0_i32 = arith.constant 0 : i32
    %c0_i32_0 = arith.constant 0 : i32
    %c0_i32_1 = arith.constant 0 : i32
    %c0_i32_2 = arith.constant 0 : i32
    return %c0_i32, %c0_i32_0, %c0_i32_1 : i32, i32, i32
  }
  func.func @transform_8(%arg0: i32, %arg1: memref<2xi32, #tpu.memory_space<smem>>) -> (i32, i32, i32) {
    %c0_i32 = arith.constant 0 : i32
    %c0_i32_0 = arith.constant 0 : i32
    %c0_i32_1 = arith.constant 0 : i32
    %c0_i32_2 = arith.constant 0 : i32
    return %c0_i32, %c0_i32_0, %c0_i32_1 : i32, i32, i32
  }
  func.func @transform_9(%arg0: i32, %arg1: memref<2xi32, #tpu.memory_space<smem>>) -> (i32, i32, i32) {
    %c0_i32 = arith.constant 0 : i32
    %c0_i32_0 = arith.constant 0 : i32
    %c0_i32_1 = arith.constant 0 : i32
    %c0_i32_2 = arith.constant 0 : i32
    return %c0_i32, %c0_i32_0, %c0_i32_1 : i32, i32, i32
  }
  func.func @transform_10(%arg0: i32, %arg1: memref<2xi32, #tpu.memory_space<smem>>) -> (i32, i32, i32) {
    %c0_i32 = arith.constant 0 : i32
    %c0_i32_0 = arith.constant 0 : i32
    %c0_i32_1 = arith.constant 0 : i32
    %c0_i32_2 = arith.constant 0 : i32
    return %c0_i32, %c0_i32_0, %c0_i32_1 : i32, i32, i32
  }
  func.func @transform_11(%arg0: i32, %arg1: memref<2xi32, #tpu.memory_space<smem>>) -> (i32, i32, i32) {
    %c0_i32 = arith.constant 0 : i32
    %c0_i32_0 = arith.constant 0 : i32
    %c0_i32_1 = arith.constant 0 : i32
    %c0_i32_2 = arith.constant 0 : i32
    return %c0_i32, %c0_i32_0, %c0_i32_1 : i32, i32, i32
  }
  func.func @transform_12(%arg0: i32, %arg1: memref<2xi32, #tpu.memory_space<smem>>) -> (i32, i32, i32) {
    %c0_i32 = arith.constant 0 : i32
    %c0_i32_0 = arith.constant 0 : i32
    %c0_i32_1 = arith.constant 0 : i32
    %c0_i32_2 = arith.constant 0 : i32
    return %c0_i32, %c0_i32_0, %c0_i32_1 : i32, i32, i32
  }
  func.func @transform_13(%arg0: i32, %arg1: memref<2xi32, #tpu.memory_space<smem>>) -> (i32, i32, i32) {
    %c0_i32 = arith.constant 0 : i32
    %c0_i32_0 = arith.constant 0 : i32
    %c0_i32_1 = arith.constant 0 : i32
    %c0_i32_2 = arith.constant 0 : i32
    return %c0_i32, %c0_i32_0, %c0_i32_1 : i32, i32, i32
  }
  func.func @transform_14(%arg0: i32, %arg1: memref<2xi32, #tpu.memory_space<smem>>) -> (i32, i32, i32) {
    %c0_i32 = arith.constant 0 : i32
    %c0_i32_0 = arith.constant 0 : i32
    %c0_i32_1 = arith.constant 0 : i32
    %c0_i32_2 = arith.constant 0 : i32
    return %c0_i32, %c0_i32_0, %c0_i32_1 : i32, i32, i32
  }
  func.func @transform_15(%arg0: i32, %arg1: memref<2xi32, #tpu.memory_space<smem>>) -> (i32, i32, i32) {
    %c0_i32 = arith.constant 0 : i32
    %c0_i32_0 = arith.constant 0 : i32
    %c0_i32_1 = arith.constant 0 : i32
    %c0_i32_2 = arith.constant 0 : i32
    return %c0_i32, %c0_i32_0, %c0_i32_1 : i32, i32, i32
  }
  func.func @transform_16(%arg0: i32, %arg1: memref<2xi32, #tpu.memory_space<smem>>) -> (i32, i32, i32) {
    %c0_i32 = arith.constant 0 : i32
    %c0_i32_0 = arith.constant 0 : i32
    %c0_i32_1 = arith.constant 0 : i32
    %c0_i32_2 = arith.constant 0 : i32
    return %c0_i32, %c0_i32_0, %c0_i32_1 : i32, i32, i32
  }
  func.func @transform_17(%arg0: i32, %arg1: memref<2xi32, #tpu.memory_space<smem>>) -> (i32, i32, i32) {
    %c0_i32 = arith.constant 0 : i32
    %c0_i32_0 = arith.constant 0 : i32
    %c0_i32_1 = arith.constant 0 : i32
    %c0_i32_2 = arith.constant 0 : i32
    return %c0_i32, %c0_i32_0, %c0_i32_1 : i32, i32, i32
  }
  func.func @transform_18(%arg0: i32, %arg1: memref<2xi32, #tpu.memory_space<smem>>) -> (i32, i32, i32) {
    %c0_i32 = arith.constant 0 : i32
    %c0_i32_0 = arith.constant 0 : i32
    %c0_i32_1 = arith.constant 0 : i32
    %c0_i32_2 = arith.constant 0 : i32
    return %c0_i32, %c0_i32_0, %c0_i32_1 : i32, i32, i32
  }
  func.func @transform_19(%arg0: i32, %arg1: memref<2xi32, #tpu.memory_space<smem>>) -> (i32, i32, i32) {
    %c0_i32 = arith.constant 0 : i32
    %c0_i32_0 = arith.constant 0 : i32
    %c0_i32_1 = arith.constant 0 : i32
    %c0_i32_2 = arith.constant 0 : i32
    return %c0_i32, %c0_i32_0, %c0_i32_1 : i32, i32, i32
  }
  func.func @transform_20(%arg0: i32, %arg1: memref<2xi32, #tpu.memory_space<smem>>) -> (i32, i32, i32) {
    %c0_i32 = arith.constant 0 : i32
    %c0_i32_0 = arith.constant 0 : i32
    %c0_i32_1 = arith.constant 0 : i32
    %c0_i32_2 = arith.constant 0 : i32
    return %c0_i32, %c0_i32_0, %c0_i32_1 : i32, i32, i32
  }
  func.func @transform_21(%arg0: i32, %arg1: memref<2xi32, #tpu.memory_space<smem>>) -> (i32, i32, i32) {
    %c0_i32 = arith.constant 0 : i32
    %c0_i32_0 = arith.constant 0 : i32
    %c0_i32_1 = arith.constant 0 : i32
    %c0_i32_2 = arith.constant 0 : i32
    return %c0_i32, %c0_i32_0, %c0_i32_1 : i32, i32, i32
  }
  func.func @transform_22(%arg0: i32, %arg1: memref<2xi32, #tpu.memory_space<smem>>) -> (i32, i32) {
    %c0_i32 = arith.constant 0 : i32
    %c0_i32_0 = arith.constant 0 : i32
    %c0_i32_1 = arith.constant 0 : i32
    return %c0_i32, %c0_i32_0 : i32, i32
  }
  func.func @transform_23(%arg0: i32, %arg1: memref<2xi32, #tpu.memory_space<smem>>) -> (i32, i32) {
    %c0_i32 = arith.constant 0 : i32
    %c0_i32_0 = arith.constant 0 : i32
    %c0_i32_1 = arith.constant 0 : i32
    return %c0_i32, %c0_i32_0 : i32, i32
  }
  func.func @transform_24(%arg0: i32, %arg1: memref<2xi32, #tpu.memory_space<smem>>) -> (i32, i32, i32) {
    %c0_i32 = arith.constant 0 : i32
    %c0_i32_0 = arith.constant 0 : i32
    %c0_i32_1 = arith.constant 0 : i32
    return %arg0, %c0_i32, %c0_i32_0 : i32, i32, i32
  }
}

</mosaic_0001>

<bundles_post_ra>
// kernel: text_encoder_forward.1
= control target key start
LH: loop header
LB: loop body
LE: loop exit
PB: predicated region body
PF: predicated region fallthrough
CT: control target
= control target key end

     0   :  { %s7978_s30 = smov [#allocation3]   ;;  %s10461_s0 = inlined_call_operand.vmem [shape: s32[2], index: 0, kind: input, shape index: {}]   ;;  %s10462_s1 = inlined_call_operand.vmem [shape: f32[2,8,32], index: 1, kind: input, shape index: {}]   ;;  %s10463_s2 = inlined_call_operand.vmem [shape: bf16[2,8,3072], index: 2, kind: input, shape index: {}]   ;;  %s10464_s3 = inlined_call_operand.vmem [shape: bf16[3072,32], index: 3, kind: input, shape index: {}]   ;;  %s10465_s4 = inlined_call_operand.vmem [shape: f32[1,32], index: 4, kind: input, shape index: {}]   ;;  %s10466_s5 = inlined_call_operand.vmem [shape: f32[2,1,16], index: 5, kind: input, shape index: {}]   ;;  %s10467_s6 = inlined_call_operand.vmem [shape: f32[16,32], index: 6, kind: input, shape index: {}]   ;;  %s10468_s7 = inlined_call_operand.vmem [shape: f32[1,32], index: 7, kind: input, shape index: {}]   ;;  %s10469_s8 = inlined_call_operand.vmem [shape: f32[9,8,8], index: 8, kind: input, shape index: {}]   ;;  %s10470_s9 = inlined_call_operand.vmem [shape: f32[3,32,96], index: 9, kind: input, shape index: {}]   ;;  %s10471_s10 = inlined_call_operand.vmem [shape: f32[3,1,96], index: 10, kind: input, shape index: {}]   ;;  %s10472_s11 = inlined_call_operand.vmem [shape: f32[3,32,32], index: 11, kind: input, shape index: {}]   ;;  %s10473_s12 = inlined_call_operand.vmem [shape: f32[3,1,32], index: 12, kind: input, shape index: {}]   ;;  %s10474_s13 = inlined_call_operand.vmem [shape: f32[3,9,8], index: 13, kind: input, shape index: {}]   ;;  %s10475_s14 = inlined_call_operand.vmem [shape: f32[3,9,8], index: 14, kind: input, shape index: {}]   ;;  %s10476_s15 = inlined_call_operand.vmem [shape: f32[3,1,32], index: 15, kind: input, shape index: {}]   ;;  %s10477_s16 = inlined_call_operand.vmem [shape: f32[3,1,32], index: 16, kind: input, shape index: {}]   ;;  %s10478_s17 = inlined_call_operand.vmem [shape: f32[3,96,64], index: 17, kind: input, shape index: {}]   ;;  %s10479_s18 = inlined_call_operand.vmem [shape: f32[3,1,64], index: 18, kind: input, shape index: {}]   ;;  %s10480_s19 = inlined_call_operand.vmem [shape: f32[3,192,32], index: 19, kind: input, shape index: {}]   ;;  %s10481_s20 = inlined_call_operand.vmem [shape: f32[3,1,32], index: 20, kind: input, shape index: {}]   ;;  %s10482_s21 = inlined_call_operand.vmem [shape: f32[3,1,32], index: 21, kind: input, shape index: {}]   ;;  %s10483_s22 = inlined_call_operand.vmem [shape: f32[3,1,32], index: 22, kind: input, shape index: {}]   ;;  %s10484_s23 = inlined_call_operand.vmem [shape: f32[32,32], index: 23, kind: input, shape index: {}]   ;;  %s10485_s24 = inlined_call_operand.vmem [shape: f32[1,32], index: 24, kind: input, shape index: {}]   ;;  %s10486_s25 = inlined_call_operand.vmem [shape: f32[2,8,64], index: 25, kind: output, shape index: {}]  }
   0x1   :  { %10525 = sst [smem:[#allocation6_spill]] %s10461_s0 }
   0x2   :  { %10526 = sst [smem:[#allocation7_spill]] %s10462_s1 }
   0x3   :  { %10527 = sst [smem:[#allocation8_spill]] %s10463_s2 }
   0x4   :  { %10528 = sst [smem:[#allocation9_spill]] %s10464_s3 }
   0x5   :  { %10529 = sst [smem:[#allocation10_spill]] %s10465_s4 }
   0x6   :  { %10530 = sst [smem:[#allocation11_spill]] %s10466_s5 }
   0x7   :  { %10531 = sst [smem:[#allocation12_spill]] %s10467_s6 }
   0x8   :  { %10532 = sst [smem:[#allocation13_spill]] %s10468_s7 }
   0x9   :  { %10533 = sst [smem:[#allocation14_spill]] %s10469_s8 }
   0xa   :  { %10534 = sst [smem:[#allocation15_spill]] %s10470_s9 }
   0xb   :  { %10535 = sst [smem:[#allocation16_spill]] %s10472_s11 }
   0xc   :  { %10536 = sst [smem:[#allocation17_spill]] %s10473_s12 }
   0xd   :  { %10537 = sst [smem:[#allocation18_spill]] %s10475_s14 }
   0xe   :  { %10538 = sst [smem:[#allocation19_spill]] %s10479_s18 }
   0xf   :  { %10539 = sst [smem:[#allocation20_spill]] %s10484_s23 }
  0x10   :  { %10540 = sst [smem:[#allocation21_spill]] %s10485_s24 }
  0x11   :  { %10541 = sst [smem:[#allocation22_spill]] %s10486_s25 }
  0x12   :  { %s10542_s6 = sld [smem:[#allocation6_spill]] }
  0x18   :  { %s31_s18 = sshll.u32 %s10542_s6, 4  ;;  %s32_s18 = int_to_ptr.vmem [resolvable:$true] %s31_s18 }
  0x19   :  { %34 = dma.vmem_to_smem %s32_s18, 16, %s7978_s30, [#allocation2] }
  0x1a   :  { %7972 = dma.done.wait [#allocation2], 16 }
  0x1b   :  { %7973 = vsyncadd [#allocation2], 4294967280 }
  0x1c   :  { %37 = sfence }
  0x1d   :  { %s8138_s7 = smov 0  }
  0x1e LB: > { %10543 = sst [smem:[#allocation5_spill]] %s7976_s7  ;;  %s8144_s3 = sadd.s32 4294967295, %s7976_s7   ;;  %s7976_s7 = sphi %s8138_s7, %s43_s7  }
  0x1f   : > { %p6509_p0 = scmp.ge.s32.totalorder %s7976_s7, 1  ;;  %p688_p1 = scmp.lt.s32.totalorder %s7976_s7, 3 }
  0x21   : > { %p689_p2 = pnand %p6509_p0, %p688_p1 }
  0x22   : > { %s10544_s1 = sld [smem:[#allocation9_spill]] (!%p689_p2)  ;;  %p760_p3 = scmp.lt.s32.totalorder (!%p689_p2), %s8144_s3, 1 }
  0x23   : > { %692 = sbr.rel (%p689_p2) target bundleno = 7343 (0x1caf), region = 116  ;;  %s10545_s5 = sld [smem:[#allocation8_spill]] (!%p689_p2) }
  0x24   : > { %s10546_s25 = sld [smem:[#allocation10_spill]] (!%p689_p2)  ;;  %s10514_s4 = smov (!%p689_p2), 72  }
  0x25   : > { %s8762_s26 = sld [smem:[#allocation3 + %s8144_s3]] (!%p689_p2)  ;;  %s10504_s0 = smov (!%p689_p2), 112  }
  0x26   : > { %s10547_s28 = sld [smem:[#allocation15_spill]] (!%p689_p2)  ;;  %s10506_s29 = smov (!%p689_p2), 80  }
  0x27   : > { %s10550_s18 = sld [smem:[#allocation7_spill]] (!%p689_p2)  ;;  %s10520_s2 = smov (!%p689_p2), 120  }
  0x28   : > { %v7529_v0 = vld [vmem:[%s10544_s1 + $0x38] sm:$0xff]  ;;  %v7528_v4 = vld [vmem:[%s10544_s1 + $0x30] sm:$0xff]  ;;  %v7527_v8 = vld [vmem:[%s10544_s1 + $0x28] sm:$0xff]  ;;  %s8198_s9 = scalar_select %p760_p3, %s8144_s3, 1  ;;  %vm2766_vm2 = vcmask 261120   ;;  %vm2797_vm3 = vcmask 64512  }
  0x29   : > { %v7537_v1 = vld [vmem:[%s10544_s1 + $0x78] sm:$0xff]  ;;  %2442 = vmatpush.bf16.msra.mxu0 %v7529_v0  ;;  %v7536_v5 = vld [vmem:[%s10544_s1 + $0x70] sm:$0xff]  ;;  %v7535_v9 = vld [vmem:[%s10544_s1 + $0x68] sm:$0xff]  ;;  %s10518_s3 = smov 96   ;;  %s10498_s27 = smov 56   ;;  %vm3447_vm4 = vcmask 1040384  }
  0x2a   : > { %v7545_v2 = vld [vmem:[%s10544_s1 + $0xb8] sm:$0xff]  ;;  %2455 = vmatpush.bf16.msra.mxu1 %v7537_v1  ;;  %v7544_v6 = vld [vmem:[%s10544_s1 + $0xb0] sm:$0xff]  ;;  %v7543_v10 = vld [vmem:[%s10544_s1 + $0xa8] sm:$0xff]  ;;  %s7714_s8 = smul.u32 96, %s8198_s9  ;;  %s10493_s6 = sshll.u32 %s8198_s9, 3  ;;  %vm3404_vm5 = vcmask 7168  }
  0x2b   : > { %v7553_v3 = vld [vmem:[%s10544_s1 + $0xf8] sm:$0xff]  ;;  %2468 = vmatpush.bf16.msra.mxu2 %v7545_v2  ;;  %v7552_v7 = vld [vmem:[%s10544_s1 + $0xf0] sm:$0xff]  ;;  %v7551_v11 = vld [vmem:[%s10544_s1 + $0xe8] sm:$0xff]  ;;  %s10496_s30 = smov 48   ;;  %s10552_s14 = sld [smem:[#allocation18_spill]]  ;;  %vm3409_vm6 = vcmask 15360  }
  0x2c   : > { %2481 = vmatpush.bf16.msra.mxu3 %v7553_v3  ;;  %v7526_v12 = vld [vmem:[%s10544_s1 + $0x20] sm:$0xff]  ;;  %v7525_v16 = vld [vmem:[%s10544_s1 + $0x18] sm:$0xff]  ;;  %v7524_v20 = vld [vmem:[%s10544_s1 + $0x10] sm:$0xff]  ;;  %s8234_s7 = scalar_lea.vmem %s10545_s5, %s7714_s8  ;;  %s10519_s5 = smov 88   ;;  %vm3414_vm7 = vcmask 23552   ;;  %vm3419_vm8 = vcmask 31744  }
  0x2d   : > { %2443 = vmatpush.bf16.msra.mxu0 %v7528_v4  ;;  %v7534_v13 = vld [vmem:[%s10544_s1 + $0x60] sm:$0xff]  ;;  %v7533_v17 = vld [vmem:[%s10544_s1 + $0x58] sm:$0xff]  ;;  %v7532_v21 = vld [vmem:[%s10544_s1 + $0x50] sm:$0xff]  ;;  %s10551_s8 = sld [smem:[#allocation14_spill]]  ;;  %vm3424_vm9 = vcmask 39936   ;;  %vm3429_vm10 = vcmask 48128  }
  0x2e   : > { %2456 = vmatpush.bf16.msra.mxu1 %v7536_v5  ;;  %v7542_v14 = vld [vmem:[%s10544_s1 + $0xa0] sm:$0xff]  ;;  %v7541_v18 = vld [vmem:[%s10544_s1 + $0x98] sm:$0xff]  ;;  %v7540_v22 = vld [vmem:[%s10544_s1 + $0x90] sm:$0xff]  ;;  %vm3434_vm11 = vcmask 56320   ;;  %vm3443_vm12 = vcmask 72704   ;;  %s10553_s11 = sld [smem:[#allocation16_spill]] }
  0x2f   : > { %2469 = vmatpush.bf16.msra.mxu2 %v7544_v6  ;;  %v7550_v15 = vld [vmem:[%s10544_s1 + $0xe0] sm:$0xff]  ;;  %v7549_v19 = vld [vmem:[%s10544_s1 + $0xd8] sm:$0xff]  ;;  %v7548_v23 = vld [vmem:[%s10544_s1 + $0xd0] sm:$0xff]  ;;  %vm10517_vm13 = vcmask 130048   ;;  %vm10516_vm14 = vcmask 195584   ;;  %s10554_s12 = sld [smem:[#allocation17_spill]] }
  0x30   : > { %2482 = vmatpush.bf16.msra.mxu3 %v7552_v7  ;;  %v7523_v24 = vld [vmem:[%s10544_s1 + $0x8] sm:$0xff]  ;;  %v806_v29 = vld [vmem:[%s8234_s7] sm:$0xff]  ;;  %v7561_v38 = vld [vmem:[%s10544_s1 + $0x138] sm:$0xff]  ;;  %s10570_s23 = sld [smem:[#allocation12_spill]]  ;;  %s10574_s24 = smov 88  }
  0x31   : > { %2444 = vmatpush.bf16.msra.mxu0 %v7527_v8  ;;  %v7531_v25 = vld [vmem:[%s10544_s1 + $0x48] sm:$0xff]  ;;  %v7522_v30 = vld [vmem:[%s10544_s1] sm:$0xff]  ;;  %v1218_v33 = vunpack.c.l.b16 %v806_v29  ;;  %v1219_v37 = vunpack.c.h.b16 %v806_v29  ;;  %v7569_v39 = vld [vmem:[%s10544_s1 + $0x178] sm:$0xff] }
  0x32   : > { %2457 = vmatpush.bf16.msra.mxu1 %v7535_v9  ;;  %v7539_v26 = vld [vmem:[%s10544_s1 + $0x88] sm:$0xff]  ;;  %v7530_v31 = vld [vmem:[%s10544_s1 + $0x40] sm:$0xff]  ;;  %v7577_v40 = vld [vmem:[%s10544_s1 + $0x1b8] sm:$0xff] }
  0x33   : > { %2470 = vmatpush.bf16.msra.mxu2 %v7543_v10  ;;  %v7547_v27 = vld [vmem:[%s10544_s1 + $0xc8] sm:$0xff]  ;;  %v7538_v34 = vld [vmem:[%s10544_s1 + $0x80] sm:$0xff]  ;;  %v7585_v41 = vld [vmem:[%s10544_s1 + $0x1f8] sm:$0xff]  ;;  %v1242_v43 = vpack.c.b16 %v1218_v33, %v1218_v33  ;;  %v1243_v45 = vpack.c.b16 %v1219_v37, %v1219_v37 }
  0x34   : > { %2483 = vmatpush.bf16.msra.mxu3 %v7551_v11  ;;  %v807_v28 = vld [vmem:[%s8234_s7 + $0x8] sm:$0xff]  ;;  %v7546_v35 = vld [vmem:[%s10544_s1 + $0xc0] sm:$0xff]  ;;  %v7560_v46 = vld [vmem:[%s10544_s1 + $0x130] sm:$0xff] }
  0x35   : > { %2445 = vmatpush.bf16.msra.mxu0 %v7526_v12  ;;  %v1220_v32 = vunpack.c.l.b16 %v807_v28  ;;  %v1221_v36 = vunpack.c.h.b16 %v807_v28  ;;  %v7568_v47 = vld [vmem:[%s10544_s1 + $0x170] sm:$0xff]  ;;  %v7559_v50 = vld [vmem:[%s10544_s1 + $0x128] sm:$0xff]  ;;  %v7558_v54 = vld [vmem:[%s10544_s1 + $0x120] sm:$0xff] }
  0x36   : > { %2458 = vmatpush.bf16.msra.mxu1 %v7534_v13  ;;  %v7576_v48 = vld [vmem:[%s10544_s1 + $0x1b0] sm:$0xff]  ;;  %v7567_v51 = vld [vmem:[%s10544_s1 + $0x168] sm:$0xff]  ;;  %v7566_v55 = vld [vmem:[%s10544_s1 + $0x160] sm:$0xff] }
  0x37   : > { %2471 = vmatpush.bf16.msra.mxu2 %v7542_v14  ;;  %v1244_v42 = vpack.c.b16 %v1220_v32, %v1220_v32  ;;  %v1245_v44 = vpack.c.b16 %v1221_v36, %v1221_v36  ;;  %v7584_v49 = vld [vmem:[%s10544_s1 + $0x1f0] sm:$0xff]  ;;  %v7575_v52 = vld [vmem:[%s10544_s1 + $0x1a8] sm:$0xff]  ;;  %v7574_v56 = vld [vmem:[%s10544_s1 + $0x1a0] sm:$0xff] }
  0x38   : > { %2484 = vmatpush.bf16.msra.mxu3 %v7550_v15  ;;  %v7583_v53 = vld [vmem:[%s10544_s1 + $0x1e8] sm:$0xff]  ;;  %v7582_v57 = vld [vmem:[%s10544_s1 + $0x1e0] sm:$0xff]  ;;  %v7557_v58 = vld [vmem:[%s10544_s1 + $0x118] sm:$0xff] }
  0x39   : > { %2446 = vmatpush.bf16.msra.mxu0 %v7525_v16  ;;  %v7565_v59 = vld [vmem:[%s10544_s1 + $0x158] sm:$0xff]  ;;  %v7556_v62 = vld [vmem:[%s10544_s1 + $0x110] sm:$0xff]  ;;  %v7555_v2 = vld [vmem:[%s10544_s1 + $0x108] sm:$0xff] }
  0x3a   : > { %2459 = vmatpush.bf16.msra.mxu1 %v7533_v17  ;;  %v7573_v60 = vld [vmem:[%s10544_s1 + $0x198] sm:$0xff]  ;;  %v7564_v63 = vld [vmem:[%s10544_s1 + $0x150] sm:$0xff]  ;;  %v7563_v3 = vld [vmem:[%s10544_s1 + $0x148] sm:$0xff] }
  0x3b   : > { %2472 = vmatpush.bf16.msra.mxu2 %v7541_v18  ;;  %v7581_v61 = vld [vmem:[%s10544_s1 + $0x1d8] sm:$0xff]  ;;  %v7572_v0 = vld [vmem:[%s10544_s1 + $0x190] sm:$0xff]  ;;  %v7571_v4 = vld [vmem:[%s10544_s1 + $0x188] sm:$0xff] }
  0x3c   : > { %2485 = vmatpush.bf16.msra.mxu3 %v7549_v19  ;;  %v7580_v1 = vld [vmem:[%s10544_s1 + $0x1d0] sm:$0xff]  ;;  %v7579_v5 = vld [vmem:[%s10544_s1 + $0x1c8] sm:$0xff]  ;;  %v809_v6 = vld [vmem:[%s8234_s7 + $0x18] sm:$0xff] }
  0x3d   : > { %2447 = vmatpush.bf16.msra.mxu0 %v7524_v20  ;;  %v808_v7 = vld [vmem:[%s8234_s7 + $0x10] sm:$0xff]  ;;  %v7554_v8 = vld [vmem:[%s10544_s1 + $0x100] sm:$0xff]  ;;  %v1224_v10 = vunpack.c.l.b16 %v809_v6  ;;  %v1225_v14 = vunpack.c.h.b16 %v809_v6  ;;  %v7593_v16 = vld [vmem:[%s10544_s1 + $0x238] sm:$0xff] }
  0x3e   : > { %2460 = vmatpush.bf16.msra.mxu1 %v7532_v21  ;;  %v7562_v9 = vld [vmem:[%s10544_s1 + $0x140] sm:$0xff]  ;;  %v1222_v11 = vunpack.c.l.b16 %v808_v7  ;;  %v1223_v15 = vunpack.c.h.b16 %v808_v7  ;;  %v7601_v17 = vld [vmem:[%s10544_s1 + $0x278] sm:$0xff]  ;;  %v7591_v28 = vld [vmem:[%s10544_s1 + $0x228] sm:$0xff] }
  0x3f   : > { %2473 = vmatpush.bf16.msra.mxu2 %v7540_v22  ;;  %v7570_v12 = vld [vmem:[%s10544_s1 + $0x180] sm:$0xff]  ;;  %v7609_v18 = vld [vmem:[%s10544_s1 + $0x2b8] sm:$0xff]  ;;  %v1248_v20 = vpack.c.b16 %v1224_v10, %v1224_v10  ;;  %v1249_v22 = vpack.c.b16 %v1225_v14, %v1225_v14  ;;  %v7599_v29 = vld [vmem:[%s10544_s1 + $0x268] sm:$0xff] }
  0x40   : > { %2486 = vmatpush.bf16.msra.mxu3 %v7548_v23  ;;  %v7578_v13 = vld [vmem:[%s10544_s1 + $0x1c0] sm:$0xff]  ;;  %v7617_v19 = vld [vmem:[%s10544_s1 + $0x2f8] sm:$0xff]  ;;  %v1246_v21 = vpack.c.b16 %v1222_v11, %v1222_v11  ;;  %v1247_v23 = vpack.c.b16 %v1223_v15, %v1223_v15  ;;  %v7623_v6 = vld [vmem:[%s10544_s1 + $0x328] sm:$0xff] }
  0x41   : > { %2448 = vmatpush.bf16.msra.mxu0 %v7523_v24  ;;  %v7592_v24 = vld [vmem:[%s10544_s1 + $0x230] sm:$0xff]  ;;  %v7590_v32 = vld [vmem:[%s10544_s1 + $0x220] sm:$0xff]  ;;  %v7589_v36 = vld [vmem:[%s10544_s1 + $0x218] sm:$0xff] }
  0x42   : > { %2461 = vmatpush.bf16.msra.mxu1 %v7531_v25  ;;  %v7600_v25 = vld [vmem:[%s10544_s1 + $0x270] sm:$0xff]  ;;  %v7598_v33 = vld [vmem:[%s10544_s1 + $0x260] sm:$0xff]  ;;  %v7597_v37 = vld [vmem:[%s10544_s1 + $0x258] sm:$0xff] }
  0x43   : > { %2474 = vmatpush.bf16.msra.mxu2 %v7539_v26  ;;  %v7608_v26 = vld [vmem:[%s10544_s1 + $0x2b0] sm:$0xff]  ;;  %v7631_v7 = vld [vmem:[%s10544_s1 + $0x368] sm:$0xff]  ;;  %v7622_v10 = vld [vmem:[%s10544_s1 + $0x320] sm:$0xff] }
  0x44   : > { %2487 = vmatpush.bf16.msra.mxu3 %v7547_v27  ;;  %v7616_v27 = vld [vmem:[%s10544_s1 + $0x2f0] sm:$0xff]  ;;  %v7630_v11 = vld [vmem:[%s10544_s1 + $0x360] sm:$0xff]  ;;  %v7621_v14 = vld [vmem:[%s10544_s1 + $0x318] sm:$0xff] }
  0x45   : > { %2449 = vmatpush.bf16.msra.mxu0 %v7522_v30  ;;  %v7607_v30 = vld [vmem:[%s10544_s1 + $0x2a8] sm:$0xff]  ;;  %v7629_v15 = vld [vmem:[%s10544_s1 + $0x358] sm:$0xff] }
  0x46   : > { %2462 = vmatpush.bf16.msra.mxu1 %v7530_v31  ;;  %v7615_v31 = vld [vmem:[%s10544_s1 + $0x2e8] sm:$0xff] }
  0x47   : > { %2475 = vmatpush.bf16.msra.mxu2 %v7538_v34  ;;  %v7606_v34 = vld [vmem:[%s10544_s1 + $0x2a0] sm:$0xff] }
  0x48   : > { %2488 = vmatpush.bf16.msra.mxu3 %v7546_v35  ;;  %2450 = vmatmul.bf16.vlgmr.msra.gmra.mxu0 %v1242_v43  ;;  %v7614_v35 = vld [vmem:[%s10544_s1 + $0x2e0] sm:$0xff]  ;;  %v7612_v43 = vld [vmem:[%s10544_s1 + $0x2d0] sm:$0xff] }
  0x49   : > { %2494 = vmatpush.bf16.msrb.mxu0 %v7561_v38  ;;  %2463 = vmatmul.bf16.vlgmr.msra.gmra.mxu1 %v1243_v45  ;;  %v7605_v38 = vld [vmem:[%s10544_s1 + $0x298] sm:$0xff]  ;;  %v7595_v45 = vld [vmem:[%s10544_s1 + $0x248] sm:$0xff] }
  0x4a   : > { %2507 = vmatpush.bf16.msrb.mxu1 %v7569_v39  ;;  %2476 = vmatmul.bf16.vlgmr.msra.gmra.mxu2 %v1244_v42  ;;  %v7613_v39 = vld [vmem:[%s10544_s1 + $0x2d8] sm:$0xff]  ;;  %v7604_v42 = vld [vmem:[%s10544_s1 + $0x290] sm:$0xff] }
  0x4b   : > { %2520 = vmatpush.bf16.msrb.mxu2 %v7577_v40  ;;  %2489 = vmatmul.bf16.vlgmr.msra.gmra.mxu3 %v1245_v44  ;;  %v7588_v40 = vld [vmem:[%s10544_s1 + $0x210] sm:$0xff]  ;;  %v7587_v44 = vld [vmem:[%s10544_s1 + $0x208] sm:$0xff] }
  0x4c   : > { %2533 = vmatpush.bf16.msrb.mxu3 %v7585_v41  ;;  %v7596_v41 = vld [vmem:[%s10544_s1 + $0x250] sm:$0xff] }
  0x4d   : > { %2495 = vmatpush.bf16.msrb.mxu0 %v7560_v46  ;;  %v7603_v46 = vld [vmem:[%s10544_s1 + $0x288] sm:$0xff] }
  0x4e   : > { %2508 = vmatpush.bf16.msrb.mxu1 %v7568_v47  ;;  %v7611_v47 = vld [vmem:[%s10544_s1 + $0x2c8] sm:$0xff] }
  0x4f   : > { %2521 = vmatpush.bf16.msrb.mxu2 %v7576_v48  ;;  %v810_v48 = vld [vmem:[%s8234_s7 + $0x20] sm:$0xff] }
  0x50   : > { %2534 = vmatpush.bf16.msrb.mxu3 %v7584_v49  ;;  %v811_v49 = vld [vmem:[%s8234_s7 + $0x28] sm:$0xff] }
  0x51   : > { %2496 = vmatpush.bf16.msrb.mxu0 %v7559_v50  ;;  %v7586_v50 = vld [vmem:[%s10544_s1 + $0x200] sm:$0xff] }
  0x52   : > { %2509 = vmatpush.bf16.msrb.mxu1 %v7567_v51  ;;  %v7594_v51 = vld [vmem:[%s10544_s1 + $0x240] sm:$0xff] }
  0x53   : > { %2522 = vmatpush.bf16.msrb.mxu2 %v7575_v52  ;;  %v1226_v52 = vunpack.c.l.b16 %v810_v48 }
  0x54   : > { %2535 = vmatpush.bf16.msrb.mxu3 %v7583_v53  ;;  %v1228_v53 = vunpack.c.l.b16 %v811_v49 }
  0x55   : > { %2497 = vmatpush.bf16.msrb.mxu0 %v7558_v54  ;;  %v7602_v54 = vld [vmem:[%s10544_s1 + $0x280] sm:$0xff] }
  0x56   : > { %2510 = vmatpush.bf16.msrb.mxu1 %v7566_v55  ;;  %v7610_v55 = vld [vmem:[%s10544_s1 + $0x2c0] sm:$0xff] }
  0x57   : > { %2523 = vmatpush.bf16.msrb.mxu2 %v7574_v56  ;;  %v1227_v56 = vunpack.c.h.b16 %v810_v48  ;;  %v7655_v48 = vld [vmem:[%s10544_s1 + $0x428] sm:$0xff] }
  0x58   : > { %2536 = vmatpush.bf16.msrb.mxu3 %v7582_v57  ;;  %v1229_v57 = vunpack.c.h.b16 %v811_v49  ;;  %v7663_v49 = vld [vmem:[%s10544_s1 + $0x468] sm:$0xff] }
  0x59   : > { %2498 = vmatpush.bf16.msrb.mxu0 %v7557_v58  ;;  %v7625_v58 = vld [vmem:[%s10544_s1 + $0x338] sm:$0xff] }
  0x5a   : > { %2511 = vmatpush.bf16.msrb.mxu1 %v7565_v59  ;;  %v7633_v59 = vld [vmem:[%s10544_s1 + $0x378] sm:$0xff] }
  0x5b   : > { %2524 = vmatpush.bf16.msrb.mxu2 %v7573_v60  ;;  %v7641_v60 = vld [vmem:[%s10544_s1 + $0x3b8] sm:$0xff] }
  0x5c   : > { %2537 = vmatpush.bf16.msrb.mxu3 %v7581_v61  ;;  %v7649_v61 = vld [vmem:[%s10544_s1 + $0x3f8] sm:$0xff] }
  0x5d   : > { %2499 = vmatpush.bf16.msrb.mxu0 %v7556_v62  ;;  %v1250_v62 = vpack.c.b16 %v1226_v52, %v1226_v52  ;;  %v7654_v52 = vld [vmem:[%s10544_s1 + $0x420] sm:$0xff] }
  0x5e   : > { %2512 = vmatpush.bf16.msrb.mxu1 %v7564_v63  ;;  %v1252_v63 = vpack.c.b16 %v1228_v53, %v1228_v53  ;;  %v7662_v53 = vld [vmem:[%s10544_s1 + $0x460] sm:$0xff] }
  0x5f   : > { %2525 = vmatpush.bf16.msrb.mxu2 %v7572_v0  ;;  %v1251_v0 = vpack.c.b16 %v1227_v56, %v1227_v56  ;;  %v7653_v56 = vld [vmem:[%s10544_s1 + $0x418] sm:$0xff] }
  0x60   : > { %2538 = vmatpush.bf16.msrb.mxu3 %v7580_v1  ;;  %v1253_v1 = vpack.c.b16 %v1229_v57, %v1229_v57  ;;  %v7661_v57 = vld [vmem:[%s10544_s1 + $0x458] sm:$0xff] }
  0x61   : > { %2500 = vmatpush.bf16.msrb.mxu0 %v7555_v2  ;;  %v7624_v2 = vld [vmem:[%s10544_s1 + $0x330] sm:$0xff] }
  0x62   : > { %2513 = vmatpush.bf16.msrb.mxu1 %v7563_v3  ;;  %v7632_v3 = vld [vmem:[%s10544_s1 + $0x370] sm:$0xff] }
  0x63   : > { %2526 = vmatpush.bf16.msrb.mxu2 %v7571_v4  ;;  %v7640_v4 = vld [vmem:[%s10544_s1 + $0x3b0] sm:$0xff] }
  0x64   : > { %2539 = vmatpush.bf16.msrb.mxu3 %v7579_v5  ;;  %v7648_v5 = vld [vmem:[%s10544_s1 + $0x3f0] sm:$0xff] }
  0x65   : > { %2501 = vmatpush.bf16.msrb.mxu0 %v7554_v8  ;;  %v7639_v8 = vld [vmem:[%s10544_s1 + $0x3a8] sm:$0xff] }
  0x66   : > { %2514 = vmatpush.bf16.msrb.mxu1 %v7562_v9  ;;  %v7647_v9 = vld [vmem:[%s10544_s1 + $0x3e8] sm:$0xff] }
  0x67   : > { %2527 = vmatpush.bf16.msrb.mxu2 %v7570_v12  ;;  %v7638_v12 = vld [vmem:[%s10544_s1 + $0x3a0] sm:$0xff] }
  0x68   : > { %2540 = vmatpush.bf16.msrb.mxu3 %v7578_v13  ;;  %2502 = vmatmul.bf16.vlgmr.msrb.gmra.mxu0 %v1246_v21  ;;  %v7646_v13 = vld [vmem:[%s10544_s1 + $0x3e0] sm:$0xff]  ;;  %v7644_v21 = vld [vmem:[%s10544_s1 + $0x3d0] sm:$0xff] }
  0x69   : > { %2546 = vmatpush.bf16.msra.mxu0 %v7593_v16  ;;  %2515 = vmatmul.bf16.vlgmr.msrb.gmra.mxu1 %v1247_v23  ;;  %v7637_v16 = vld [vmem:[%s10544_s1 + $0x398] sm:$0xff]  ;;  %v7627_v23 = vld [vmem:[%s10544_s1 + $0x348] sm:$0xff] }
  0x6a   : > { %2559 = vmatpush.bf16.msra.mxu1 %v7601_v17  ;;  %2528 = vmatmul.bf16.vlgmr.msrb.gmra.mxu2 %v1248_v20  ;;  %v7645_v17 = vld [vmem:[%s10544_s1 + $0x3d8] sm:$0xff]  ;;  %v7636_v20 = vld [vmem:[%s10544_s1 + $0x390] sm:$0xff] }
  0x6b   : > { %2572 = vmatpush.bf16.msra.mxu2 %v7609_v18  ;;  %2541 = vmatmul.bf16.vlgmr.msrb.gmra.mxu3 %v1249_v22  ;;  %v7620_v18 = vld [vmem:[%s10544_s1 + $0x310] sm:$0xff]  ;;  %v7619_v22 = vld [vmem:[%s10544_s1 + $0x308] sm:$0xff] }
  0x6c   : > { %2585 = vmatpush.bf16.msra.mxu3 %v7617_v19  ;;  %v7628_v19 = vld [vmem:[%s10544_s1 + $0x350] sm:$0xff] }
  0x6d   : > { %2547 = vmatpush.bf16.msra.mxu0 %v7592_v24  ;;  %v7635_v24 = vld [vmem:[%s10544_s1 + $0x388] sm:$0xff] }
  0x6e   : > { %2560 = vmatpush.bf16.msra.mxu1 %v7600_v25  ;;  %v7643_v25 = vld [vmem:[%s10544_s1 + $0x3c8] sm:$0xff] }
  0x6f   : > { %2573 = vmatpush.bf16.msra.mxu2 %v7608_v26  ;;  %v812_v26 = vld [vmem:[%s8234_s7 + $0x30] sm:$0xff] }
  0x70   : > { %2586 = vmatpush.bf16.msra.mxu3 %v7616_v27  ;;  %v813_v27 = vld [vmem:[%s8234_s7 + $0x38] sm:$0xff] }
  0x71   : > { %2548 = vmatpush.bf16.msra.mxu0 %v7591_v28  ;;  %v7618_v28 = vld [vmem:[%s10544_s1 + $0x300] sm:$0xff] }
  0x72   : > { %2561 = vmatpush.bf16.msra.mxu1 %v7599_v29  ;;  %v7626_v29 = vld [vmem:[%s10544_s1 + $0x340] sm:$0xff] }
  0x73   : > { %2574 = vmatpush.bf16.msra.mxu2 %v7607_v30  ;;  %v1230_v30 = vunpack.c.l.b16 %v812_v26 }
  0x74   : > { %2587 = vmatpush.bf16.msra.mxu3 %v7615_v31  ;;  %v1232_v31 = vunpack.c.l.b16 %v813_v27 }
  0x75   : > { %2549 = vmatpush.bf16.msra.mxu0 %v7590_v32  ;;  %v7634_v32 = vld [vmem:[%s10544_s1 + $0x380] sm:$0xff] }
  0x76   : > { %2562 = vmatpush.bf16.msra.mxu1 %v7598_v33  ;;  %v7642_v33 = vld [vmem:[%s10544_s1 + $0x3c0] sm:$0xff] }
  0x77   : > { %2575 = vmatpush.bf16.msra.mxu2 %v7606_v34  ;;  %v1231_v34 = vunpack.c.h.b16 %v812_v26  ;;  %v7687_v26 = vld [vmem:[%s10544_s1 + $0x528] sm:$0xff] }
  0x78   : > { %2588 = vmatpush.bf16.msra.mxu3 %v7614_v35  ;;  %v1233_v35 = vunpack.c.h.b16 %v813_v27  ;;  %v7695_v27 = vld [vmem:[%s10544_s1 + $0x568] sm:$0xff] }
  0x79   : > { %2550 = vmatpush.bf16.msra.mxu0 %v7589_v36  ;;  %v7657_v36 = vld [vmem:[%s10544_s1 + $0x438] sm:$0xff] }
  0x7a   : > { %2563 = vmatpush.bf16.msra.mxu1 %v7597_v37  ;;  %v7665_v37 = vld [vmem:[%s10544_s1 + $0x478] sm:$0xff] }
  0x7b   : > { %2576 = vmatpush.bf16.msra.mxu2 %v7605_v38  ;;  %v7673_v38 = vld [vmem:[%s10544_s1 + $0x4b8] sm:$0xff] }
  0x7c   : > { %2589 = vmatpush.bf16.msra.mxu3 %v7613_v39  ;;  %v7681_v39 = vld [vmem:[%s10544_s1 + $0x4f8] sm:$0xff] }
  0x7d   : > { %2551 = vmatpush.bf16.msra.mxu0 %v7588_v40  ;;  %v1254_v40 = vpack.c.b16 %v1230_v30, %v1230_v30 }
  0x7e   : > { %2564 = vmatpush.bf16.msra.mxu1 %v7596_v41  ;;  %v1256_v41 = vpack.c.b16 %v1232_v31, %v1232_v31  ;;  %v7686_v31 = vld [vmem:[%s10544_s1 + $0x520] sm:$0xff] }
  0x7f   : > { %2577 = vmatpush.bf16.msra.mxu2 %v7604_v42  ;;  %v1255_v42 = vpack.c.b16 %v1231_v34, %v1231_v34  ;;  %v7702_v34 = vld [vmem:[%s10544_s1 + $0x5a0] sm:$0xff] }
  0x80   : > { %2590 = vmatpush.bf16.msra.mxu3 %v7612_v43  ;;  %v1257_v43 = vpack.c.b16 %v1233_v35, %v1233_v35  ;;  %v7710_v35 = vld [vmem:[%s10544_s1 + $0x5e0] sm:$0xff] }
  0x81   : > { %2552 = vmatpush.bf16.msra.mxu0 %v7587_v44  ;;  %v7656_v44 = vld [vmem:[%s10544_s1 + $0x430] sm:$0xff] }
  0x82   : > { %2565 = vmatpush.bf16.msra.mxu1 %v7595_v45  ;;  %v7664_v45 = vld [vmem:[%s10544_s1 + $0x470] sm:$0xff] }
  0x83   : > { %2578 = vmatpush.bf16.msra.mxu2 %v7603_v46  ;;  %v7672_v46 = vld [vmem:[%s10544_s1 + $0x4b0] sm:$0xff] }
  0x84   : > { %2591 = vmatpush.bf16.msra.mxu3 %v7611_v47  ;;  %v7680_v47 = vld [vmem:[%s10544_s1 + $0x4f0] sm:$0xff] }
  0x85   : > { %2553 = vmatpush.bf16.msra.mxu0 %v7586_v50  ;;  %v7671_v50 = vld [vmem:[%s10544_s1 + $0x4a8] sm:$0xff] }
  0x86   : > { %2566 = vmatpush.bf16.msra.mxu1 %v7594_v51  ;;  %v7679_v51 = vld [vmem:[%s10544_s1 + $0x4e8] sm:$0xff] }
  0x87   : > { %2579 = vmatpush.bf16.msra.mxu2 %v7602_v54  ;;  %v7670_v54 = vld [vmem:[%s10544_s1 + $0x4a0] sm:$0xff] }
  0x88   : > { %2592 = vmatpush.bf16.msra.mxu3 %v7610_v55  ;;  %2554 = vmatmul.bf16.vlgmr.msra.gmra.mxu0 %v1250_v62  ;;  %v7678_v55 = vld [vmem:[%s10544_s1 + $0x4e0] sm:$0xff]  ;;  %v7668_v62 = vld [vmem:[%s10544_s1 + $0x490] sm:$0xff] }
  0x89   : > { %2598 = vmatpush.bf16.msrb.mxu0 %v7625_v58  ;;  %2567 = vmatmul.bf16.vlgmr.msra.gmra.mxu1 %v1251_v0  ;;  %v7669_v58 = vld [vmem:[%s10544_s1 + $0x498] sm:$0xff]  ;;  %v7651_v0 = vld [vmem:[%s10544_s1 + $0x408] sm:$0xff] }
  0x8a   : > { %2611 = vmatpush.bf16.msrb.mxu1 %v7633_v59  ;;  %2580 = vmatmul.bf16.vlgmr.msra.gmra.mxu2 %v1252_v63  ;;  %v7677_v59 = vld [vmem:[%s10544_s1 + $0x4d8] sm:$0xff]  ;;  %v7676_v63 = vld [vmem:[%s10544_s1 + $0x4d0] sm:$0xff] }
  0x8b   : > { %2624 = vmatpush.bf16.msrb.mxu2 %v7641_v60  ;;  %2593 = vmatmul.bf16.vlgmr.msra.gmra.mxu3 %v1253_v1  ;;  %v7652_v60 = vld [vmem:[%s10544_s1 + $0x410] sm:$0xff]  ;;  %v7659_v1 = vld [vmem:[%s10544_s1 + $0x448] sm:$0xff] }
  0x8c   : > { %2637 = vmatpush.bf16.msrb.mxu3 %v7649_v61  ;;  %v7660_v61 = vld [vmem:[%s10544_s1 + $0x450] sm:$0xff] }
  0x8d   : > { %2599 = vmatpush.bf16.msrb.mxu0 %v7624_v2  ;;  %v7667_v2 = vld [vmem:[%s10544_s1 + $0x488] sm:$0xff] }
  0x8e   : > { %2612 = vmatpush.bf16.msrb.mxu1 %v7632_v3  ;;  %v7675_v3 = vld [vmem:[%s10544_s1 + $0x4c8] sm:$0xff] }
  0x8f   : > { %2625 = vmatpush.bf16.msrb.mxu2 %v7640_v4  ;;  %v814_v4 = vld [vmem:[%s8234_s7 + $0x40] sm:$0xff] }
  0x90   : > { %2638 = vmatpush.bf16.msrb.mxu3 %v7648_v5  ;;  %v815_v5 = vld [vmem:[%s8234_s7 + $0x48] sm:$0xff] }
  0x91   : > { %2600 = vmatpush.bf16.msrb.mxu0 %v7623_v6  ;;  %v7650_v6 = vld [vmem:[%s10544_s1 + $0x400] sm:$0xff] }
  0x92   : > { %2613 = vmatpush.bf16.msrb.mxu1 %v7631_v7  ;;  %v7658_v7 = vld [vmem:[%s10544_s1 + $0x440] sm:$0xff] }
  0x93   : > { %2626 = vmatpush.bf16.msrb.mxu2 %v7639_v8  ;;  %v1234_v8 = vunpack.c.l.b16 %v814_v4 }
  0x94   : > { %2639 = vmatpush.bf16.msrb.mxu3 %v7647_v9  ;;  %v1236_v9 = vunpack.c.l.b16 %v815_v5 }
  0x95   : > { %2601 = vmatpush.bf16.msrb.mxu0 %v7622_v10  ;;  %v7666_v10 = vld [vmem:[%s10544_s1 + $0x480] sm:$0xff] }
  0x96   : > { %2614 = vmatpush.bf16.msrb.mxu1 %v7630_v11  ;;  %v7674_v11 = vld [vmem:[%s10544_s1 + $0x4c0] sm:$0xff] }
  0x97   : > { %2627 = vmatpush.bf16.msrb.mxu2 %v7638_v12  ;;  %v1235_v12 = vunpack.c.h.b16 %v814_v4 }
  0x98   : > { %2640 = vmatpush.bf16.msrb.mxu3 %v7646_v13  ;;  %v1237_v13 = vunpack.c.h.b16 %v815_v5 }
  0x99   : > { %2602 = vmatpush.bf16.msrb.mxu0 %v7621_v14  ;;  %v7689_v14 = vld [vmem:[%s10544_s1 + $0x538] sm:$0xff] }
  0x9a   : > { %2615 = vmatpush.bf16.msrb.mxu1 %v7629_v15  ;;  %v7697_v15 = vld [vmem:[%s10544_s1 + $0x578] sm:$0xff] }
  0x9b   : > { %2628 = vmatpush.bf16.msrb.mxu2 %v7637_v16  ;;  %v7705_v16 = vld [vmem:[%s10544_s1 + $0x5b8] sm:$0xff] }
  0x9c   : > { %2641 = vmatpush.bf16.msrb.mxu3 %v7645_v17  ;;  %v7713_v17 = vld [vmem:[%s10544_s1 + $0x5f8] sm:$0xff] }
  0x9d   : > { %2603 = vmatpush.bf16.msrb.mxu0 %v7620_v18  ;;  %v1258_v18 = vpack.c.b16 %v1234_v8, %v1234_v8 }
  0x9e   : > { %2616 = vmatpush.bf16.msrb.mxu1 %v7628_v19  ;;  %v1260_v19 = vpack.c.b16 %v1236_v9, %v1236_v9 }
  0x9f   : > { %2629 = vmatpush.bf16.msrb.mxu2 %v7636_v20  ;;  %v1259_v20 = vpack.c.b16 %v1235_v12, %v1235_v12 }
  0xa0   : > { %2642 = vmatpush.bf16.msrb.mxu3 %v7644_v21  ;;  %v1261_v21 = vpack.c.b16 %v1237_v13, %v1237_v13 }
  0xa1   : > { %2604 = vmatpush.bf16.msrb.mxu0 %v7619_v22  ;;  %v7688_v22 = vld [vmem:[%s10544_s1 + $0x530] sm:$0xff] }
  0xa2   : > { %2617 = vmatpush.bf16.msrb.mxu1 %v7627_v23  ;;  %v7696_v23 = vld [vmem:[%s10544_s1 + $0x570] sm:$0xff] }
  0xa3   : > { %2630 = vmatpush.bf16.msrb.mxu2 %v7635_v24  ;;  %v7704_v24 = vld [vmem:[%s10544_s1 + $0x5b0] sm:$0xff] }
  0xa4   : > { %2643 = vmatpush.bf16.msrb.mxu3 %v7643_v25  ;;  %v7712_v25 = vld [vmem:[%s10544_s1 + $0x5f0] sm:$0xff] }
  0xa5   : > { %2605 = vmatpush.bf16.msrb.mxu0 %v7618_v28  ;;  %v7703_v28 = vld [vmem:[%s10544_s1 + $0x5a8] sm:$0xff] }
  0xa6   : > { %2618 = vmatpush.bf16.msrb.mxu1 %v7626_v29  ;;  %v7711_v29 = vld [vmem:[%s10544_s1 + $0x5e8] sm:$0xff] }
  0xa7   : > { %2631 = vmatpush.bf16.msrb.mxu2 %v7634_v32  ;;  %v7694_v32 = vld [vmem:[%s10544_s1 + $0x560] sm:$0xff] }
  0xa8   : > { %2644 = vmatpush.bf16.msrb.mxu3 %v7642_v33  ;;  %2606 = vmatmul.bf16.vlgmr.msrb.gmra.mxu0 %v1254_v40 }
  0xa9   : > { %2650 = vmatpush.bf16.msra.mxu0 %v7657_v36  ;;  %2619 = vmatmul.bf16.vlgmr.msrb.gmra.mxu1 %v1255_v42  ;;  %v7685_v36 = vld [vmem:[%s10544_s1 + $0x518] sm:$0xff] }
  0xaa   : > { %2663 = vmatpush.bf16.msra.mxu1 %v7665_v37  ;;  %2632 = vmatmul.bf16.vlgmr.msrb.gmra.mxu2 %v1256_v41  ;;  %v7693_v37 = vld [vmem:[%s10544_s1 + $0x558] sm:$0xff] }
  0xab   : > { %2676 = vmatpush.bf16.msra.mxu2 %v7673_v38  ;;  %2645 = vmatmul.bf16.vlgmr.msrb.gmra.mxu3 %v1257_v43  ;;  %v7701_v38 = vld [vmem:[%s10544_s1 + $0x598] sm:$0xff]  ;;  %v7684_v43 = vld [vmem:[%s10544_s1 + $0x510] sm:$0xff] }
  0xac   : > { %2689 = vmatpush.bf16.msra.mxu3 %v7681_v39  ;;  %v7709_v39 = vld [vmem:[%s10544_s1 + $0x5d8] sm:$0xff] }
  0xad   : > { %2651 = vmatpush.bf16.msra.mxu0 %v7656_v44  ;;  %v7692_v44 = vld [vmem:[%s10544_s1 + $0x550] sm:$0xff] }
  0xae   : > { %2664 = vmatpush.bf16.msra.mxu1 %v7664_v45 }
  0xaf   : > { %2677 = vmatpush.bf16.msra.mxu2 %v7672_v46  ;;  %v7700_v46 = vld [vmem:[%s10544_s1 + $0x590] sm:$0xff] }
  0xb0   : > { %2690 = vmatpush.bf16.msra.mxu3 %v7680_v47  ;;  %v7708_v47 = vld [vmem:[%s10544_s1 + $0x5d0] sm:$0xff] }
  0xb1   : > { %2652 = vmatpush.bf16.msra.mxu0 %v7655_v48  ;;  %v7683_v48 = vld [vmem:[%s10544_s1 + $0x508] sm:$0xff] }
  0xb2   : > { %2665 = vmatpush.bf16.msra.mxu1 %v7663_v49  ;;  %v7691_v49 = vld [vmem:[%s10544_s1 + $0x548] sm:$0xff] }
  0xb3   : > { %2678 = vmatpush.bf16.msra.mxu2 %v7671_v50  ;;  %v816_v50 = vld [vmem:[%s8234_s7 + $0x50] sm:$0xff] }
  0xb4   : > { %2691 = vmatpush.bf16.msra.mxu3 %v7679_v51  ;;  %v7699_v51 = vld [vmem:[%s10544_s1 + $0x588] sm:$0xff] }
  0xb5   : > { %2653 = vmatpush.bf16.msra.mxu0 %v7654_v52  ;;  %v7707_v52 = vld [vmem:[%s10544_s1 + $0x5c8] sm:$0xff] }
  0xb6   : > { %2666 = vmatpush.bf16.msra.mxu1 %v7662_v53  ;;  %v817_v53 = vld [vmem:[%s8234_s7 + $0x58] sm:$0xff]  ;;  %s10510_s7 = smov 104  }
  0xb7   : > { %2679 = vmatpush.bf16.msra.mxu2 %v7670_v54 }
  0xb8   : > { %2692 = vmatpush.bf16.msra.mxu3 %v7678_v55 }
  0xb9   : > { %2654 = vmatpush.bf16.msra.mxu0 %v7653_v56  ;;  %v1238_v56 = vunpack.c.l.b16 %v816_v50 }
  0xba   : > { %2667 = vmatpush.bf16.msra.mxu1 %v7661_v57  ;;  %v1239_v57 = vunpack.c.h.b16 %v816_v50  ;;  %v779_v50 = vstv %s8762_s26  ;;  %s10494_s26 = smov 64  }
  0xbb   : > { %2680 = vmatpush.bf16.msra.mxu2 %v7669_v58  ;;  %v7682_v58 = vld [vmem:[%s10544_s1 + $0x500] sm:$0xff] }
  0xbc   : > { %2693 = vmatpush.bf16.msra.mxu3 %v7677_v59  ;;  %v7690_v59 = vld [vmem:[%s10544_s1 + $0x540] sm:$0xff] }
  0xbd   : > { %2655 = vmatpush.bf16.msra.mxu0 %v7652_v60  ;;  %v1240_v60 = vunpack.c.l.b16 %v817_v53 }
  0xbe   : > { %2668 = vmatpush.bf16.msra.mxu1 %v7660_v61  ;;  %v1241_v61 = vunpack.c.h.b16 %v817_v53  ;;  %v2760_v53 = vld [vmem:[%s10547_s28 + $0x10] sm:$0xff] }
  0xbf   : > { %2681 = vmatpush.bf16.msra.mxu2 %v7668_v62  ;;  %v7698_v62 = vld [vmem:[%s10544_s1 + $0x580] sm:$0xff] }
  0xc0   : > { %2694 = vmatpush.bf16.msra.mxu3 %v7676_v63  ;;  %v7706_v63 = vld [vmem:[%s10544_s1 + $0x5c0] sm:$0xff] }
  0xc1   : > { %2656 = vmatpush.bf16.msra.mxu0 %v7651_v0  ;;  %v1262_v0 = vpack.c.b16 %v1238_v56, %v1238_v56 }
  0xc2   : > { %2669 = vmatpush.bf16.msra.mxu1 %v7659_v1  ;;  %v1263_v1 = vpack.c.b16 %v1239_v57, %v1239_v57  ;;  %v2758_v57 = vld [vmem:[%s10547_s28] sm:$0xff] }
  0xc3   : > { %2682 = vmatpush.bf16.msra.mxu2 %v7667_v2  ;;  %v1264_v2 = vpack.c.b16 %v1240_v60, %v1240_v60 }
  0xc4   : > { %2695 = vmatpush.bf16.msra.mxu3 %v7675_v3  ;;  %v1265_v3 = vpack.c.b16 %v1241_v61, %v1241_v61 }
  0xc5   : > { %2657 = vmatpush.bf16.msra.mxu0 %v7650_v6  ;;  %v8684_v30 = vpop.f32.mrf.mxu0 }
  0xc6   : > { %2670 = vmatpush.bf16.msra.mxu1 %v7658_v7  ;;  %v8692_v33 = vpop.f32.mrf.mxu1 }
  0xc7   : > { %2683 = vmatpush.bf16.msra.mxu2 %v7666_v10 }
  0xc8   : > { %2696 = vmatpush.bf16.msra.mxu3 %v7674_v11  ;;  %2658 = vmatmul.bf16.vlgmr.msra.gmra.mxu0 %v1258_v18 }
  0xc9   : > { %2702 = vmatpush.bf16.msrb.mxu0 %v7689_v14  ;;  %2671 = vmatmul.bf16.vlgmr.msra.gmra.mxu1 %v1259_v20  ;;  %v7850_v20 = vld [vmem:[%s10546_s25] ss:$0 sm:$0xff]  ;;  %s763_s25 = scalar_lea.vmem %s10550_s18, %s10493_s6  ;;  %s10500_s18 = smov 40  }
  0xca   : > { %2715 = vmatpush.bf16.msrb.mxu1 %v7697_v15  ;;  %2684 = vmatmul.bf16.vlgmr.msra.gmra.mxu2 %v1260_v19  ;;  %s10502_s6 = smov 8  }
  0xcb   : > { %2728 = vmatpush.bf16.msrb.mxu2 %v7705_v16  ;;  %2697 = vmatmul.bf16.vlgmr.msra.gmra.mxu3 %v1261_v21  ;;  %v2452_v21 = vadd.f32 %v7850_v20, %v8684_v30  ;;  %v7851_v20 = vld [vmem:[%s10471_s10] ss:$0 sm:$0xff] }
  0xcc   : > { %2741 = vmatpush.bf16.msrb.mxu3 %v7713_v17 }
  0xcd   : > { %2703 = vmatpush.bf16.msrb.mxu0 %v7688_v22  ;;  %v8712_v40 = vpop.f32.mrf.mxu2  ;;  %v2453_v42 = vpop.f32.mrf.mxu0  ;;  %v2465_v22 = vadd.f32 %v8692_v33, %v2452_v21 }
  0xce   : > { %2716 = vmatpush.bf16.msrb.mxu1 %v7696_v23  ;;  %v8714_v41 = vpop.f32.mrf.mxu3  ;;  %v2466_v45 = vpop.f32.mrf.mxu1 }
  0xcf   : > { %2729 = vmatpush.bf16.msrb.mxu2 %v7704_v24 }
  0xd0   : > { %2742 = vmatpush.bf16.msrb.mxu3 %v7712_v25  ;;  %v2478_v25 = vadd.f32 %v8712_v40, %v2465_v22 }
  0xd1   : > { %2704 = vmatpush.bf16.msrb.mxu0 %v7687_v26 }
  0xd2   : > { %2717 = vmatpush.bf16.msrb.mxu1 %v7695_v27  ;;  %v2491_v27 = vadd.f32 %v8714_v41, %v2478_v25  ;;  %v2790_v25 = vld [vmem:[%s10474_s13] sm:$0xff] }
  0xd3   : > { %2730 = vmatpush.bf16.msrb.mxu2 %v7703_v28 }
  0xd4   : > { %2743 = vmatpush.bf16.msrb.mxu3 %v7711_v29 }
  0xd5   : > { %2705 = vmatpush.bf16.msrb.mxu0 %v7686_v31  ;;  %v2479_v54 = vpop.f32.mrf.mxu2 }
  0xd6   : > { %2718 = vmatpush.bf16.msrb.mxu1 %v7694_v32  ;;  %v2492_v55 = vpop.f32.mrf.mxu3 }
  0xd7   : > { %2731 = vmatpush.bf16.msrb.mxu2 %v7702_v34  ;;  %v2759_v55 = vld [vmem:[%s10547_s28 + $0x8] sm:$0xff] }
  0xd8   : > { %2744 = vmatpush.bf16.msrb.mxu3 %v7710_v35 }
  0xd9   : > { %2706 = vmatpush.bf16.msrb.mxu0 %v7685_v36 }
  0xda   : > { %2719 = vmatpush.bf16.msrb.mxu1 %v7693_v37 }
  0xdb   : > { %2732 = vmatpush.bf16.msrb.mxu2 %v7701_v38 }
  0xdc   : > { %2745 = vmatpush.bf16.msrb.mxu3 %v7709_v39 }
  0xdd   : > { %2707 = vmatpush.bf16.msrb.mxu0 %v7684_v43 }
  0xde   : > { %2720 = vmatpush.bf16.msrb.mxu1 %v7692_v44  ;;  %v777_v44 = vlaneseq }
  0xdf   : > { %2733 = vmatpush.bf16.msrb.mxu2 %v7700_v46 }
  0xe0   : > { %2746 = vmatpush.bf16.msrb.mxu3 %v7708_v47  ;;  %v784_v47 = vand.u32 127, %v777_v44 }
  0xe1   : > { %2708 = vmatpush.bf16.msrb.mxu0 %v7683_v48  ;;  %v2761_v48 = vld [vmem:[%s10547_s28 + $0x18] sm:$0xff] }
  0xe2   : > { %2721 = vmatpush.bf16.msrb.mxu1 %v7691_v49  ;;  %vm8768_vm0 = vcmp.lt.s32.totalorder %v784_v47, %v779_v50 }
  0xe3   : > { %2734 = vmatpush.bf16.msrb.mxu2 %v7699_v51 }
  0xe4   : > { %2747 = vmatpush.bf16.msrb.mxu3 %v7707_v52 }
  0xe5   : > { %2709 = vmatpush.bf16.msrb.mxu0 %v7682_v58  ;;  %v2503_v4 = vpop.f32.mrf.mxu0 }
  0xe6   : > { %2722 = vmatpush.bf16.msrb.mxu1 %v7690_v59  ;;  %v2516_v5 = vpop.f32.mrf.mxu1  ;;  %v2504_v32 = vadd.f32 %v2503_v4, %v2491_v27 }
  0xe7   : > { %2735 = vmatpush.bf16.msrb.mxu2 %v7698_v62 }
  0xe8   : > { %2748 = vmatpush.bf16.msrb.mxu3 %v7706_v63  ;;  %2710 = vmatmul.bf16.vlgmr.msrb.gmra.mxu0 %v1262_v0  ;;  %v2517_v35 = vadd.f32 %v2516_v5, %v2504_v32  ;;  %v8787_v5 = vshrl.u32 %v777_v44, 7  ;;  %v7993_v44 = vmov 3  }
  0xe9   : > { %2723 = vmatmul.bf16.vlgmr.msrb.gmra.mxu1 %v1263_v1  ;;  %2782 = vmatpush.msra.mxu0 %v2761_v48 }
  0xea   : > { %2736 = vmatmul.bf16.vlgmr.msrb.gmra.mxu2 %v1264_v2  ;;  %vm780_vm1 = vcmp.lt.s32.totalorder %v8787_v5, %v779_v50 }
  0xeb   : > { %2749 = vmatmul.bf16.vlgmr.msrb.gmra.mxu3 %v1265_v3  ;;  %2783 = vmatpush.msra.mxu0 %v2760_v53 }
  0xed   : > { %v2529_v6 = vpop.f32.mrf.mxu2  ;;  %v2505_v8 = vpop.f32.mrf.mxu0  ;;  %2784 = vmatpush.msra.mxu0 %v2759_v55 }
  0xee   : > { %v2542_v7 = vpop.f32.mrf.mxu3  ;;  %v2518_v9 = vpop.f32.mrf.mxu1  ;;  %v2530_v37 = vadd.f32 %v2529_v6, %v2517_v35  ;;  %v7988_v35 = vmov 2  }
  0xef   : > { %2785 = vmatpush.msra.mxu0 %v2758_v57  ;;  %7756 = vset.pattern.permute.xlu0 %v7988_v35 }
  0xf0   : > { %v2543_v38 = vadd.f32 %v2542_v7, %v2530_v37 }
  0xf5   : > { %v2531_v10 = vpop.f32.mrf.mxu2 }
  0xf6   : > { %v2544_v11 = vpop.f32.mrf.mxu3 }
  0xf7   : > { %v2754_v11 = vld [vmem:[%s763_s25] sm:$0xff]  ;;  %s10512_s25 = smov 24  }
 0x105   : > { %v2555_v12 = vpop.f32.mrf.mxu0 }
 0x106   : > { %v2568_v13 = vpop.f32.mrf.mxu1  ;;  %v2556_v30 = vadd.f32 %v2555_v12, %v2543_v38 }
 0x108   : > { %v2569_v39 = vadd.f32 %v2568_v13, %v2556_v30  ;;  %v7989_v30 = vmov 1  }
 0x10d   : > { %v2581_v14 = vpop.f32.mrf.mxu2  ;;  %v2557_v16 = vpop.f32.mrf.mxu0 }
 0x10e   : > { %v2594_v15 = vpop.f32.mrf.mxu3  ;;  %v2570_v17 = vpop.f32.mrf.mxu1  ;;  %v2582_v42 = vadd.f32 %v2581_v14, %v2569_v39  ;;  %v7979_v14 = vmov 0.0  }
 0x110   : > { %v2595_v43 = vadd.f32 %v2594_v15, %v2582_v42  ;;  %v8791_v15 = vsel %vm780_vm1, 1.0, %v7979_v14  ;;  %v7991_v42 = vmov 4  }
 0x115   : > { %v2583_v18 = vpop.f32.mrf.mxu2 }
 0x116   : > { %v2596_v19 = vpop.f32.mrf.mxu3 }
 0x125   : > { %v2607_v23 = vpop.f32.mrf.mxu0 }
 0x126   : > { %v2620_v24 = vpop.f32.mrf.mxu1  ;;  %v2608_v45 = vadd.f32 %v2607_v23, %v2595_v43  ;;  %v7992_v43 = vmov 8  }
 0x128   : > { %v2621_v54 = vadd.f32 %v2620_v24, %v2608_v45  ;;  %v2791_v24 = vld [vmem:[%s10474_s13 + $0x8] sm:$0x1]  ;;  %v7994_v45 = vmov 5  }
 0x12d   : > { %v2633_v26 = vpop.f32.mrf.mxu2  ;;  %v2609_v29 = vpop.f32.mrf.mxu0 }
 0x12e   : > { %v2646_v28 = vpop.f32.mrf.mxu3  ;;  %v2622_v31 = vpop.f32.mrf.mxu1  ;;  %v2634_v56 = vadd.f32 %v2633_v26, %v2621_v54 }
 0x130   : > { %v2647_v60 = vadd.f32 %v2646_v28, %v2634_v56 }
 0x135   : > { %v2635_v34 = vpop.f32.mrf.mxu2 }
 0x136   : > { %v2648_v36 = vpop.f32.mrf.mxu3  ;;  %v7987_v34 = vmov 0  }
 0x137   : > { %7750 = vset.pattern.permute.xlu1 %v7987_v34  ;;  %7752 = vset.pattern.permute.xlu2 %v7987_v34 }
 0x145   : > { %v2659_v33 = vpop.f32.mrf.mxu0 }
 0x146   : > { %v2672_v40 = vpop.f32.mrf.mxu1  ;;  %v2660_v61 = vadd.f32 %v2659_v33, %v2647_v60  ;;  %v7990_v33 = vmov 6  }
 0x148   : > { %v2673_v62 = vadd.f32 %v2672_v40, %v2660_v61  ;;  %v8900_v61 = vld [vmem:[%s10551_s8 + $0x8] sm:$0xff] }
 0x14d   : > { %v2685_v41 = vpop.f32.mrf.mxu2  ;;  %v2661_v49 = vpop.f32.mrf.mxu0 }
 0x14e   : > { %v2698_v46 = vpop.f32.mrf.mxu3  ;;  %v2674_v51 = vpop.f32.mrf.mxu1  ;;  %v2686_v63 = vadd.f32 %v2685_v41, %v2673_v62 }
 0x150   : > { %v2699_v0 = vadd.f32 %v2698_v46, %v2686_v63  ;;  %v7995_v46 = vmov 7   ;;  %v8906_v63 = vld [vmem:[%s10551_s8 + $0x10] sm:$0xff] }
 0x155   : > { %v2687_v58 = vpop.f32.mrf.mxu2 }
 0x156   : > { %v2700_v59 = vpop.f32.mrf.mxu3  ;;  %v8894_v58 = vld [vmem:[%s10551_s8] sm:$0xff] }
 0x165   : > { %v2711_v1 = vpop.f32.mrf.mxu0 }
 0x166   : > { %v2724_v2 = vpop.f32.mrf.mxu1  ;;  %v2712_v3 = vadd.f32 %v2711_v1, %v2699_v0 }
 0x168   : > { %v2725_v4 = vadd.f32 %v2724_v2, %v2712_v3 }
 0x16d   : > { %v2737_v6 = vpop.f32.mrf.mxu2  ;;  %v2713_v9 = vpop.f32.mrf.mxu0 }
 0x16e   : > { %v2750_v7 = vpop.f32.mrf.mxu3  ;;  %v2738_v8 = vadd.f32 %v2737_v6, %v2725_v4  ;;  %v2726_v10 = vpop.f32.mrf.mxu1  ;;  %v8920_v9 = vld [vmem:[%s10551_s8 + $0x20] sm:$0xff] }
 0x170   : > { %v2751_v12 = vadd.f32 %v2750_v7, %v2738_v8  ;;  %v8915_v8 = vld [vmem:[%s10551_s8 + $0x18] sm:$0xff] }
 0x172   : > { %v2755_v13 = vadd.f32 %v2754_v11, %v2751_v12 }
 0x174   : > { %v2756_v16 = vmul.f32 5.656854, %v2755_v13 }
 0x175   : > { %v2739_v17 = vpop.f32.mrf.mxu2 }
 0x176   : > { %v2752_v18 = vpop.f32.mrf.mxu3  ;;  %v8794_v19 = vmul.f32 %v8791_v15, %v2756_v16 }
 0x178   : > { %7286 = vmatmul.msk.f32.vlgmr.msra.gmra.mxu0 %vm2766_vm2, %v8794_v19 }
 0x1f5   : > { %v2787_v21 = vpop.f32.mrf.mxu0 }
 0x1f6   : > { %v8801_v22 = vadd.f32 %v7851_v20, %v2787_v21 }
 0x1f8   : > { %2880 = vrot.lane.b32.xlu2 %v8801_v22, %s10514_s4  ;;  %2795 = vrot.lane.b32.xlu1 %v8801_v22, %s10518_s3  ;;  %s10556_s4 = smov 72  }
 0x1f9   : > { %2824 = vrot.lane.b32.xlu0 %v8801_v22, %s10519_s5 }
 0x200   : > { %2850 = vrot.lane.b32.xlu2 %v8801_v22, %s10504_s0  ;;  %2852 = vrot.lane.b32.xlu1 %v8801_v22, %s10506_s29  ;;  %s10555_s0 = sld [smem:[#allocation19_spill]]  ;;  %s10558_s29 = smov 80  }
 0x201   : > { %2822 = vrot.lane.b32.xlu0 %v8801_v22, %s10520_s2 }
 0x209   : > { %2878 = vrot.lane.b32.xlu0 %v8801_v22, %s10510_s7  ;;  %s10559_s7 = smov 112  }
 0x252   : > { %v2881_v23 = vpop.permute.xlu2 %2880 }
 0x253   : > { %7293 = vmatpush.xpose.msk.msrb.mxu0 %vm2797_vm3, %v2881_v23 }
 0x257   : > { %7304 = vmatpush.xpose.msk.msra.mxu0 %vm2797_vm3, %v2791_v24 }
 0x25a   : > { %v2851_v31 = vpop.permute.xlu2 %2850 }
 0x25b   : > { %7305 = vmatpush.xpose.msk.msra.mxu0 %vm2797_vm3, %v2790_v25 }
 0x26a   : > { %v2796_v26 = vpop.permute.xlu1 %2795 }
 0x26b   : > { %v2825_v27 = vpop.permute.xlu0 %2824  ;;  %7287 = vmatpush.xpose.msk.msra.mxu1 %vm2797_vm3, %v2796_v26 }
 0x26c   : > { %7289 = vmatpush.xpose.msk.msra.mxu2 %vm2797_vm3, %v2825_v27 }
 0x26e   : > { %7288 = vmatmul.msk.f32.vlgmr.msra.gmra.mxu1 %vm2797_vm3, %v8801_v22 }
 0x26f   : > { %7295 = vmatpush.xpose.msk.msrb.mxu1 %vm2797_vm3, %v2791_v24 }
 0x270   : > { %7298 = vmatpush.xpose.msk.msrb.mxu2 %vm2797_vm3, %v2791_v24 }
 0x272   : > { %v2853_v28 = vpop.permute.xlu1 %2852 }
 0x273   : > { %7296 = vmatpush.xpose.msk.msrb.mxu1 %vm2797_vm3, %v2790_v25  ;;  %v2823_v29 = vpop.permute.xlu0 %2822  ;;  %7291 = vmatpush.xpose.msk.msra.mxu3 %vm2797_vm3, %v2853_v28 }
 0x274   : > { %7299 = vmatpush.xpose.msk.msrb.mxu2 %vm2797_vm3, %v2790_v25 }
 0x275   : > { %7290 = vmatmul.msk.f32.vlgmr.msra.gmra.mxu2 %vm2797_vm3, %v2823_v29 }
 0x276   : > { %7292 = vmatmul.msk.f32.vlgmr.msra.gmra.mxu3 %vm2797_vm3, %v2851_v31  ;;  %7297 = vmatmul.msk.f32.vlgmr.msrb.gmra.mxu1 %vm2797_vm3, %v8801_v22 }
 0x277   : > { %7301 = vmatpush.xpose.msk.msrb.mxu3 %vm2797_vm3, %v2791_v24  ;;  %v6514_v24 = vsel %vm8768_vm0, 1.0, %v7979_v14 }
 0x27b   : > { %7302 = vmatpush.xpose.msk.msrb.mxu3 %vm2797_vm3, %v2790_v25  ;;  %v2879_v32 = vpop.permute.xlu0 %2878  ;;  %v8933_v25 = vld [vmem:[%s10551_s8 + $0x28] sm:$0xff] }
 0x27c   : > { %7294 = vmatmul.msk.f32.vlgmr.msrb.gmra.mxu0 %vm2797_vm3, %v2879_v32 }
 0x27d   : > { %7300 = vmatmul.msk.f32.vlgmr.msrb.gmra.mxu2 %vm2797_vm3, %v2823_v29 }
 0x27e   : > { %7303 = vmatmul.msk.f32.vlgmr.msrb.gmra.mxu3 %vm2797_vm3, %v2851_v31  ;;  %v788_v31 = vmul.f32 %v6514_v24, %v8791_v15 }
 0x284   : > { %7306 = vmatmul.msk.f32.vlgmr.msra.gmra.mxu0 %vm2797_vm3, %v2879_v32 }
 0x2eb   : > { %v8848_v36 = vpop.f32.mrf.mxu1 }
 0x2f3   : > { %v2929_v37 = vpop.f32.mrf.mxu1 }
 0x2f4   : > { %2994 = vperm.xlu1 %7750, %v2929_v37  }
 0x2f8   : > { %v8857_v40 = vpop.f32.mrf.mxu2 }
 0x2f9   : > { %v8850_v38 = vpop.f32.mrf.mxu0  ;;  %v8866_v47 = vpop.f32.mrf.mxu3 }
 0x2fc   : > { %7751 = vset.pattern.permute.xlu1 %v7989_v30 }
 0x2fd   : > { %3021 = vperm.xlu1 %7751, %v2929_v37  }
 0x300   : > { %v2949_v41 = vpop.f32.mrf.mxu2 }
 0x301   : > { %v2989_v39 = vpop.f32.mrf.mxu0  ;;  %v2969_v48 = vpop.f32.mrf.mxu3 }
 0x302   : > { %3057 = vperm.xlu0 %7756, %v2989_v39   ;;  %3009 = vperm.xlu2 %7752, %v2989_v39  }
 0x305   : > { %7753 = vset.pattern.permute.xlu1 %v7988_v35 }
 0x306   : > { %3045 = vperm.xlu1 %7753, %v2929_v37  }
 0x30a   : > { %7761 = vset.pattern.permute.xlu0 %v7990_v33  ;;  %7754 = vset.pattern.permute.xlu2 %v7989_v30 }
 0x30b   : > { %3153 = vperm.xlu0 %7761, %v2989_v39   ;;  %3033 = vperm.xlu2 %7754, %v2989_v39  }
 0x30e   : > { %7757 = vset.pattern.permute.xlu1 %v7991_v42 }
 0x30f   : > { %3093 = vperm.xlu1 %7757, %v2929_v37  }
 0x313   : > { %7764 = vset.pattern.permute.xlu0 %v7992_v43  ;;  %7755 = vset.pattern.permute.xlu2 %v7993_v44 }
 0x314   : > { %3201 = vperm.xlu0 %7764, %v2989_v39   ;;  %3069 = vperm.xlu2 %7755, %v2929_v37  }
 0x317   : > { %3105 = vperm.xlu1 %7757, %v2989_v39  }
 0x31c   : > { %7767 = vset.pattern.permute.xlu0 %v7988_v35  ;;  %3081 = vperm.xlu2 %7755, %v2989_v39  }
 0x31d   : > { %3049 = vperm.xlu0 %7767, %v2949_v41  }
 0x31f   : > { %7759 = vset.pattern.permute.xlu1 %v7990_v33 }
 0x320   : > { %3141 = vperm.xlu1 %7759, %v2929_v37  }
 0x324   : > { %7758 = vset.pattern.permute.xlu2 %v7994_v45 }
 0x325   : > { %7769 = vset.pattern.permute.xlu0 %v7991_v42  ;;  %3117 = vperm.xlu2 %7758, %v2929_v37  }
 0x326   : > { %3097 = vperm.xlu0 %7769, %v2949_v41  }
 0x328   : > { %7763 = vset.pattern.permute.xlu1 %v7995_v46 }
 0x329   : > { %3177 = vperm.xlu1 %7763, %v2989_v39  }
 0x32d   : > { %3129 = vperm.xlu2 %7758, %v2989_v39  }
 0x32e   : > { %7773 = vset.pattern.permute.xlu0 %v7995_v46 }
 0x32f   : > { %3169 = vperm.xlu0 %7773, %v2949_v41  }
 0x331   : > { %7765 = vset.pattern.permute.xlu1 %v7987_v34 }
 0x332   : > { %2999 = vperm.xlu1 %7765, %v2949_v41  }
 0x335   : > { %7760 = vset.pattern.permute.xlu2 %v7995_v46 }
 0x336   : > { %3165 = vperm.xlu2 %7760, %v2929_v37  }
 0x337   : > { %7776 = vset.pattern.permute.xlu0 %v7988_v35 }
 0x338   : > { %3053 = vperm.xlu0 %7776, %v2969_v48  }
 0x33a   : > { %7770 = vset.pattern.permute.xlu1 %v7994_v45 }
 0x33b   : > { %3121 = vperm.xlu1 %7770, %v2949_v41  }
 0x33e   : > { %7762 = vset.pattern.permute.xlu2 %v7992_v43 }
 0x33f   : > { %3189 = vperm.xlu2 %7762, %v2929_v37  }
 0x340   : > { %7783 = vset.pattern.permute.xlu0 %v7987_v34 }
 0x343   : > { %7771 = vset.pattern.permute.xlu1 %v7990_v33 }
 0x344   : > { %3145 = vperm.xlu1 %7771, %v2949_v41  }
 0x347   : > { %7766 = vset.pattern.permute.xlu2 %v7989_v30 }
 0x348   : > { %3025 = vperm.xlu2 %7766, %v2949_v41  }
 0x34c   : > { %7774 = vset.pattern.permute.xlu1 %v7989_v30 }
 0x34d   : > { %3029 = vperm.xlu1 %7774, %v2969_v48  }
 0x350   : > { %7768 = vset.pattern.permute.xlu2 %v7993_v44 }
 0x351   : > { %3073 = vperm.xlu2 %7768, %v2949_v41  }
 0x355   : > { %7777 = vset.pattern.permute.xlu1 %v7993_v44 }
 0x356   : > { %3077 = vperm.xlu1 %7777, %v2969_v48  }
 0x359   : > { %7772 = vset.pattern.permute.xlu2 %v7987_v34 }
 0x35a   : > { %3004 = vperm.xlu2 %7772, %v2969_v48  }
 0x35c   : > { %v3010_v49 = vpop.permute.xlu2 %3009 }
 0x35d   : > { %v3015_v0 = vmul.f32 %v3010_v49, %v8894_v58  ;;  %v6515_v49 = vadd.f32 -1.0, %v788_v31 }
 0x35e   : > { %7778 = vset.pattern.permute.xlu1 %v7991_v42 }
 0x35f   : > { %3101 = vperm.xlu1 %7778, %v2969_v48   ;;  %v3019_v11 = vadd.f32 %v3015_v0, %v8850_v38 }
 0x362   : > { %7775 = vset.pattern.permute.xlu2 %v7992_v43 }
 0x363   : > { %3193 = vperm.xlu2 %7775, %v2949_v41  }
 0x365   : > { %v3034_v50 = vpop.permute.xlu2 %3033 }
 0x366   : > { %v2995_v51 = vpop.permute.xlu1 %2994  ;;  %v3039_v6 = vmul.f32 %v3034_v50, %v8900_v61 }
 0x367   : > { %7780 = vset.pattern.permute.xlu1 %v7990_v33  ;;  %v3012_v60 = vmul.f32 %v2995_v51, %v8894_v58 }
 0x368   : > { %3149 = vperm.xlu1 %7780, %v2969_v48   ;;  %v3043_v16 = vadd.f32 %v3039_v6, %v3019_v11 }
 0x369   : > { %v3016_v1 = vadd.f32 %v3012_v60, %v8848_v36  ;;  %v8940_v36 = vld [vmem:[%s10551_s8 + $0x30] sm:$0xff] }
 0x36b   : > { %7779 = vset.pattern.permute.xlu2 %v7994_v45 }
 0x36c   : > { %3125 = vperm.xlu2 %7779, %v2969_v48  }
 0x36e   : > { %v3070_v53 = vpop.permute.xlu2 %3069 }
 0x36f   : > { %v3022_v54 = vpop.permute.xlu1 %3021  ;;  %v3084_v17 = vmul.f32 %v3070_v53, %v8915_v8 }
 0x370   : > { %7782 = vset.pattern.permute.xlu1 %v7992_v43  ;;  %v3036_v62 = vmul.f32 %v3022_v54, %v8900_v61 }
 0x371   : > { %3197 = vperm.xlu1 %7782, %v2969_v48  }
 0x372   : > { %v3040_v7 = vadd.f32 %v3036_v62, %v3016_v1 }
 0x374   : > { %7781 = vset.pattern.permute.xlu2 %v7995_v46  ;;  %v3058_v3 = vpop.permute.xlu0 %3057 }
 0x375   : > { %3173 = vperm.xlu2 %7781, %v2969_v48   ;;  %v3063_v12 = vmul.f32 %v3058_v3, %v8906_v63  ;;  %v8947_v48 = vld [vmem:[%s10551_s8 + $0x38] sm:$0xff] }
 0x376   : > { %v3082_v55 = vpop.permute.xlu2 %3081 }
 0x377   : > { %v3067_v20 = vadd.f32 %v3063_v12, %v3043_v16  ;;  %v3087_v21 = vmul.f32 %v3082_v55, %v8915_v8  ;;  %v8954_v55 = vld [vmem:[%s10551_s8 + $0x40] sm:$0xff] }
 0x378   : > { %v3046_v56 = vpop.permute.xlu1 %3045 }
 0x379   : > { %3471 = vrot.lane.b32.xlu1 %v8801_v22, %s10494_s26  ;;  %v3060_v2 = vmul.f32 %v3046_v56, %v8906_v63  ;;  %v3091_v32 = vadd.f32 %v3087_v21, %v3067_v20  ;;  %s10508_s26 = smov 16  }
 0x37a   : > { %7785 = vset.pattern.permute.xlu1 %v7988_v35 }
 0x37b   : > { %v3064_v13 = vadd.f32 %v3060_v2, %v3040_v7 }
 0x37d   : > { %7784 = vset.pattern.permute.xlu2 %v7989_v30  ;;  %v3088_v23 = vadd.f32 %v3084_v17, %v3064_v13  ;;  %v3154_v29 = vpop.permute.xlu0 %3153 }
 0x37f   : > { %v3118_v57 = vpop.permute.xlu2 %3117 }
 0x380   : > { %v3132_v52 = vmul.f32 %v3118_v57, %v8933_v25  ;;  %v8956_v57 = vmul.f32 10000.0, %v6515_v49 }
 0x381   : > { %v3094_v59 = vpop.permute.xlu1 %3093 }
 0x382   : > { %v3108_v18 = vmul.f32 %v3094_v59, %v8920_v9  ;;  %v3159_v59 = vmul.f32 %v3154_v29, %v8940_v36 }
 0x384   : > { %v3112_v26 = vadd.f32 %v3108_v18, %v3088_v23 }
 0x386   : > { %v3136_v41 = vadd.f32 %v3132_v52, %v3112_v26  ;;  %v3202_v0 = vpop.permute.xlu0 %3201 }
 0x387   : > { %v3130_v4 = vpop.permute.xlu2 %3129  ;;  %v3207_v6 = vmul.f32 %v3202_v0, %v8954_v55 }
 0x388   : > { %v3135_v50 = vmul.f32 %v3130_v4, %v8933_v25 }
 0x389   : > { %v3106_v10 = vpop.permute.xlu1 %3105 }
 0x38a   : > { %v3111_v27 = vmul.f32 %v3106_v10, %v8920_v9 }
 0x38c   : > { %v3115_v39 = vadd.f32 %v3111_v27, %v3091_v32 }
 0x38e   : > { %v3139_v53 = vadd.f32 %v3135_v50, %v3115_v39 }
 0x38f   : > { %v3050_v20 = vpop.permute.xlu0 %3049 }
 0x390   : > { %v3166_v28 = vpop.permute.xlu2 %3165  ;;  %v3163_v3 = vadd.f32 %v3159_v59, %v3139_v53  ;;  %v3061_v27 = vmul.f32 %v3050_v20, %v8906_v63 }
 0x391   : > { %v3180_v54 = vmul.f32 %v3166_v28, %v8947_v48 }
 0x392   : > { %v3142_v37 = vpop.permute.xlu1 %3141 }
 0x393   : > { %v3156_v38 = vmul.f32 %v3142_v37, %v8940_v36 }
 0x395   : > { %v3160_v51 = vadd.f32 %v3156_v38, %v3136_v41 }
 0x397   : > { %v3184_v60 = vadd.f32 %v3180_v54, %v3160_v51 }
 0x398   : > { %v3098_v52 = vpop.permute.xlu0 %3097 }
 0x399   : > { %v3190_v56 = vpop.permute.xlu2 %3189  ;;  %v3109_v38 = vmul.f32 %v3098_v52, %v8920_v9 }
 0x39a   : > { %v3204_v62 = vmul.f32 %v3190_v56, %v8954_v55 }
 0x39b   : > { %v3178_v1 = vpop.permute.xlu1 %3177 }
 0x39c   : > { %v3208_v2 = vadd.f32 %v3204_v62, %v3184_v60  ;;  %v3183_v4 = vmul.f32 %v3178_v1, %v8947_v48 }
 0x39e   : > { %v3187_v7 = vadd.f32 %v3183_v4, %v3163_v3  ;;  %v8963_v10 = vadd.f32 %v3208_v2, %v8956_v57 }
 0x3a0   : > { %v3216_v11 = vsel %vm2797_vm3, %v8963_v10, -inf  ;;  %v3211_v12 = vadd.f32 %v3207_v6, %v3187_v7 }
 0x3a1   : > { %3217 = vmax.xlane.f32.xlu0 %v3216_v11  ;;  %v3170_v53 = vpop.permute.xlu0 %3169 }
 0x3a2   : > { %v3026_v13 = vpop.permute.xlu2 %3025  ;;  %v8968_v16 = vadd.f32 %v3211_v12, %v8956_v57  ;;  %v3181_v56 = vmul.f32 %v3170_v53, %v8947_v48 }
 0x3a3   : > { %v3037_v23 = vmul.f32 %v3026_v13, %v8900_v61 }
 0x3a4   : > { %v3000_v17 = vpop.permute.xlu1 %2999  ;;  %v3225_v18 = vsel %vm2797_vm3, %v8968_v16, -inf }
 0x3a5   : > { %v3013_v21 = vmul.f32 %v3000_v17, %v8894_v58  ;;  %3226 = vmax.xlane.f32.xlu1 %v3225_v18 }
 0x3a7   : > { %v3017_v24 = vadd.f32 %v3013_v21, %v8857_v40 }
 0x3a9   : > { %v3041_v26 = vadd.f32 %v3037_v23, %v3017_v24 }
 0x3aa   : > { %v3054_v12 = vpop.permute.xlu0 %3053 }
 0x3ab   : > { %v3074_v28 = vpop.permute.xlu2 %3073  ;;  %v3065_v29 = vadd.f32 %v3061_v27, %v3041_v26  ;;  %v3062_v18 = vmul.f32 %v3054_v12, %v8906_v63 }
 0x3ac   : > { %v3085_v31 = vmul.f32 %v3074_v28, %v8915_v8 }
 0x3ad   : > { %v3122_v32 = vpop.permute.xlu1 %3121 }
 0x3ae   : > { %v3089_v37 = vadd.f32 %v3085_v31, %v3065_v29  ;;  %v3133_v41 = vmul.f32 %v3122_v32, %v8933_v25 }
 0x3b0   : > { %v3113_v39 = vadd.f32 %v3109_v38, %v3089_v37 }
 0x3b2   : > { %v3137_v51 = vadd.f32 %v3133_v41, %v3113_v39 }
 0x3b4   : > { %v3005_v49 = vpop.permute.xlu2 %3004 }
 0x3b5   : > { %3520 = vrot.lane.b32.xlu0 %v8801_v22, %s10498_s27  ;;  %v3014_v6 = vmul.f32 %v3005_v49, %v8894_v58  ;;  %s10561_s27 = smov 64  }
 0x3b6   : > { %v3146_v40 = vpop.permute.xlu1 %3145 }
 0x3b7   : > { %v3157_v50 = vmul.f32 %v3146_v40, %v8940_v36  ;;  %v3018_v11 = vadd.f32 %v3014_v6, %v8866_v47 }
 0x3b9   : > { %v3161_v54 = vadd.f32 %v3157_v50, %v3137_v51 }
 0x3bb   : > { %v3185_v60 = vadd.f32 %v3181_v56, %v3161_v54 }
 0x3bd   : > { %v3194_v59 = vpop.permute.xlu2 %3193 }
 0x3be   : > { %v3205_v62 = vmul.f32 %v3194_v59, %v8954_v55 }
 0x3bf   : > { %v3030_v0 = vpop.permute.xlu1 %3029 }
 0x3c0   : > { %v3209_v1 = vadd.f32 %v3205_v62, %v3185_v60  ;;  %v3038_v7 = vmul.f32 %v3030_v0, %v8900_v61 }
 0x3c2   : > { %v3213_v2 = vadd.f32 %v3209_v1, %v8956_v57  ;;  %v3042_v17 = vadd.f32 %v3038_v7, %v3018_v11 }
 0x3c4   : > { %v3219_v3 = vsel %vm2797_vm3, %v3213_v2, -inf  ;;  %v3066_v23 = vadd.f32 %v3062_v18, %v3042_v17 }
 0x3c5   : > { %3220 = vmax.xlane.f32.xlu2 %v3219_v3 }
 0x3c6   : > { %v3126_v21 = vpop.permute.xlu2 %3125 }
 0x3c7   : > { %v3134_v29 = vmul.f32 %v3126_v21, %v8933_v25 }
 0x3c8   : > { %v3078_v4 = vpop.permute.xlu1 %3077 }
 0x3c9   : > { %v3086_v20 = vmul.f32 %v3078_v4, %v8915_v8 }
 0x3cb   : > { %v3090_v26 = vadd.f32 %v3086_v20, %v3066_v23 }
 0x3cf   : > { %v3174_v47 = vpop.permute.xlu2 %3173 }
 0x3d0   : > { %v3182_v37 = vmul.f32 %v3174_v47, %v8947_v48 }
 0x3d1   : > { %v3102_v13 = vpop.permute.xlu1 %3101 }
 0x3d2   : > { %v3110_v24 = vmul.f32 %v3102_v13, %v8920_v9 }
 0x3d4   : > { %v3114_v27 = vadd.f32 %v3110_v24, %v3090_v26 }
 0x3d6   : > { %v3138_v32 = vadd.f32 %v3134_v29, %v3114_v27 }
 0x3da   : > { %v3150_v28 = vpop.permute.xlu1 %3149 }
 0x3db   : > { %v3158_v31 = vmul.f32 %v3150_v28, %v8940_v36 }
 0x3dd   : > { %v3162_v52 = vadd.f32 %v3158_v31, %v3138_v32 }
 0x3df   : > { %v3186_v39 = vadd.f32 %v3182_v37, %v3162_v52 }
 0x3e3   : > { %v3198_v38 = vpop.permute.xlu1 %3197 }
 0x3e4   : > { %v3206_v41 = vmul.f32 %v3198_v38, %v8954_v55 }
 0x3e6   : > { %v3210_v49 = vadd.f32 %v3206_v41, %v3186_v39 }
 0x3e8   : > { %v3214_v40 = vadd.f32 %v3210_v49, %v8956_v57 }
 0x3ea   : > { %v3222_v50 = vsel %vm2797_vm3, %v3214_v40, -inf }
 0x3eb   : > { %v3472_v51 = vpop.permute.xlu1 %3471  ;;  %3223 = vmax.xlane.f32.xlu2 %v3222_v50 }
 0x3ec   : > { %3492 = vmatpush.msra.mxu2 %v3472_v51 }
 0x414   : > { %v3218_v53 = vpop.xlane.xlu0 %3217 }
 0x415   : > { %v3228_v54 = vsub.f32 %v8963_v10, %v3218_v53 }
 0x417   : > { %v3232_v56 = vmul.f32 1.442695, %v3228_v54 }
 0x418   : > { %v3227_v59 = vpop.xlane.xlu1 %3226 }
 0x419   : > { %7876 = vpow2.f32 %v3232_v56  ;;  %v3231_v60 = vsub.f32 %v8968_v16, %v3227_v59 }
 0x41b   : > { %v3238_v62 = vmul.f32 1.442695, %v3231_v60 }
 0x41d   : > { %7878 = vpow2.f32 %v3238_v62 }
 0x41f   : > { %v7877_v0 = vpop.eup %7876 }
 0x420   : > { %v3240_v1 = vsel %vm2797_vm3, %v7877_v0, 0.0 }
 0x421   : > { %3241 = vadd.xlane.f32.xlu0 %v3240_v1 }
 0x423   : > { %v7879_v3 = vpop.eup %7878 }
 0x424   : > { %v3249_v4 = vsel %vm2797_vm3, %v7879_v3, 0.0 }
 0x425   : > { %3250 = vadd.xlane.f32.xlu1 %v3249_v4 }
 0x427   : > { %v3521_v6 = vpop.permute.xlu0 %3520 }
 0x428   : > { %3541 = vmatpush.msrb.mxu0 %v3521_v6 }
 0x438   : > { %v3221_v7 = vpop.xlane.xlu2 %3220 }
 0x439   : > { %v3229_v11 = vsub.f32 %v3213_v2, %v3221_v7 }
 0x43b   : > { %v3234_v10 = vmul.f32 1.442695, %v3229_v11 }
 0x43d   : > { %7880 = vpow2.f32 %v3234_v10 }
 0x43e   : > { %3569 = vrot.lane.b32.xlu1 %v8801_v22, %s10496_s30  ;;  %s10562_s30 = smov 56  }
 0x443   : > { %v7881_v16 = vpop.eup %7880 }
 0x444   : > { %v3243_v12 = vsel %vm2797_vm3, %v7881_v16, 0.0 }
 0x445   : > { %3244 = vadd.xlane.f32.xlu2 %v3243_v12 }
 0x45e   : > { %v3224_v13 = vpop.xlane.xlu2 %3223 }
 0x45f   : > { %v3230_v17 = vsub.f32 %v3214_v40, %v3224_v13 }
 0x461   : > { %v3236_v18 = vmul.f32 1.442695, %v3230_v17 }
 0x463   : > { %7882 = vpow2.f32 %v3236_v18 }
 0x469   : > { %v9005_v20 = vpop.eup %7882 }
 0x46a   : > { %v3246_v21 = vsel %vm2797_vm3, %v9005_v20, 0.0 }
 0x46b   : > { %3247 = vadd.xlane.f32.xlu2 %v3246_v21 }
 0x494   : > { %v3242_v2 = vpop.xlane.xlu0 %3241 }
 0x495   : > { %7884 = vrcp.f32 %v3242_v2 }
 0x498   : > { %v3251_v23 = vpop.xlane.xlu1 %3250 }
 0x499   : > { %7886 = vrcp.f32 %v3251_v23 }
 0x49b   : > { %v7885_v24 = vpop.eup %7884 }
 0x49c   : > { %v3256_v26 = vmul.f32 %v7885_v24, %v7877_v0 }
 0x49e   : > { %7309 = vmatmul.msk.f32.vlgmr.msra.gmra.mxu2 %vm2797_vm3, %v3256_v26  ;;  %v3276_v27 = vmul.f32 %v3256_v26, %v8900_v61  ;;  %v3260_v28 = vmul.f32 %v3256_v26, %v8894_v58  ;;  %v3308_v29 = vmul.f32 %v3256_v26, %v8915_v8  ;;  %v3356_v38 = vmul.f32 %v3256_v26, %v8940_v36 }
 0x49f   : > { %v7887_v31 = vpop.eup %7886  ;;  %v3292_v39 = vmul.f32 %v3256_v26, %v8906_v63  ;;  %v3324_v53 = vmul.f32 %v3256_v26, %v8920_v9  ;;  %v3340_v62 = vmul.f32 %v3256_v26, %v8933_v25  ;;  %v3372_v18 = vmul.f32 %v3256_v26, %v8947_v48 }
 0x4a0   : > { %v3280_v32 = vsel %vm2797_vm3, %v3276_v27, 0.0  ;;  %v3264_v47 = vsel %vm2797_vm3, %v3260_v28, 0.0  ;;  %v3312_v52 = vsel %vm2797_vm3, %v3308_v29, 0.0  ;;  %v9016_v37 = vmul.f32 %v7887_v31, %v7879_v3 }
 0x4a1   : > { %3281 = vadd.xlane.f32.xlu1 %v3280_v32  ;;  %3265 = vadd.xlane.f32.xlu0 %v3264_v47  ;;  %v3360_v49 = vsel %vm2797_vm3, %v3356_v38, 0.0  ;;  %v3296_v40 = vsel %vm2797_vm3, %v3292_v39, 0.0  ;;  %v3328_v59 = vsel %vm2797_vm3, %v3324_v53, 0.0  ;;  %v3344_v3 = vsel %vm2797_vm3, %v3340_v62, 0.0 }
 0x4a2   : > { %3313 = vadd.xlane.f32.xlu2 %v3312_v52  ;;  %v3263_v41 = vmul.f32 %v9016_v37, %v8894_v58  ;;  %v3279_v51 = vmul.f32 %v9016_v37, %v8900_v61  ;;  %v3295_v60 = vmul.f32 %v9016_v37, %v8906_v63  ;;  %v3311_v4 = vmul.f32 %v9016_v37, %v8915_v8 }
 0x4a3   : > { %v3327_v6 = vmul.f32 %v9016_v37, %v8920_v9  ;;  %v3376_v21 = vsel %vm2797_vm3, %v3372_v18, 0.0  ;;  %v3388_v27 = vmul.f32 %v3256_v26, %v8954_v55  ;;  %v3359_v28 = vmul.f32 %v9016_v37, %v8940_v36 }
 0x4a4   : > { %v3273_v50 = vsel %vm2797_vm3, %v3263_v41, 0.0  ;;  %v3289_v56 = vsel %vm2797_vm3, %v3279_v51, 0.0  ;;  %v3305_v1 = vsel %vm2797_vm3, %v3295_v60, 0.0  ;;  %v3321_v10 = vsel %vm2797_vm3, %v3311_v4, 0.0 }
 0x4a5   : > { %v3337_v12 = vsel %vm2797_vm3, %v3327_v6, 0.0  ;;  %v3392_v29 = vsel %vm2797_vm3, %v3388_v27, 0.0  ;;  %v3369_v32 = vsel %vm2797_vm3, %v3359_v28, 0.0  ;;  %v3375_v26 = vmul.f32 %v9016_v37, %v8947_v48 }
 0x4a7   : > { %v3385_v39 = vsel %vm2797_vm3, %v3375_v26, 0.0 }
 0x4a9   : > { %3361 = vadd.xlane.f32.xlu1 %v3360_v49  ;;  %3297 = vadd.xlane.f32.xlu0 %v3296_v40  ;;  %v3391_v49 = vmul.f32 %v9016_v37, %v8954_v55 }
 0x4aa   : > { %3274 = vadd.xlane.f32.xlu2 %v3273_v50 }
 0x4ab   : > { %v3401_v51 = vsel %vm2797_vm3, %v3391_v49, 0.0 }
 0x4b0   : > { %v3570_v54 = vpop.permute.xlu1 %3569 }
 0x4b1   : > { %3290 = vadd.xlane.f32.xlu0 %v3289_v56  ;;  %3590 = vmatpush.msrb.mxu2 %v3570_v54 }
 0x4b2   : > { %3329 = vadd.xlane.f32.xlu2 %v3328_v59 }
 0x4b8   : > { %v3245_v0 = vpop.xlane.xlu2 %3244 }
 0x4b9   : > { %7888 = vrcp.f32 %v3245_v0  ;;  %3306 = vadd.xlane.f32.xlu0 %v3305_v1 }
 0x4ba   : > { %3345 = vadd.xlane.f32.xlu2 %v3344_v3 }
 0x4bf   : > { %v7889_v7 = vpop.eup %7888 }
 0x4c0   : > { %v9039_v11 = vmul.f32 %v7889_v7, %v7881_v16  ;;  %v3343_v16 = vmul.f32 %v9016_v37, %v8933_v25 }
 0x4c1   : > { %3322 = vadd.xlane.f32.xlu0 %v3321_v10 }
 0x4c2   : > { %3338 = vadd.xlane.f32.xlu2 %v3337_v12  ;;  %7312 = vmatmul.msk.f32.vlgmr.msrb.gmra.mxu0 %vm2797_vm3, %v9039_v11  ;;  %v3277_v13 = vmul.f32 %v9039_v11, %v8900_v61  ;;  %v3325_v2 = vmul.f32 %v9039_v11, %v8920_v9  ;;  %v3353_v23 = vsel %vm2797_vm3, %v3343_v16, 0.0  ;;  %v3373_v31 = vmul.f32 %v9039_v11, %v8947_v48 }
 0x4c3   : > { %v3261_v52 = vmul.f32 %v9039_v11, %v8894_v58  ;;  %v3309_v41 = vmul.f32 %v9039_v11, %v8915_v8  ;;  %v3389_v53 = vmul.f32 %v9039_v11, %v8954_v55  ;;  %v3293_v56 = vmul.f32 %v9039_v11, %v8906_v63 }
 0x4c4   : > { %v3283_v17 = vsel %vm2797_vm3, %v3277_v13, 0.0  ;;  %v3331_v24 = vsel %vm2797_vm3, %v3325_v2, 0.0  ;;  %v3379_v47 = vsel %vm2797_vm3, %v3373_v31, 0.0  ;;  %v3341_v4 = vmul.f32 %v9039_v11, %v8933_v25 }
 0x4c5   : > { %3284 = vadd.xlane.f32.xlu1 %v3283_v17  ;;  %v3267_v38 = vsel %vm2797_vm3, %v3261_v52, 0.0  ;;  %v3315_v50 = vsel %vm2797_vm3, %v3309_v41, 0.0  ;;  %v3395_v60 = vsel %vm2797_vm3, %v3389_v53, 0.0  ;;  %v3299_v0 = vsel %vm2797_vm3, %v3293_v56, 0.0 }
 0x4c6   : > { %v3347_v7 = vsel %vm2797_vm3, %v3341_v4, 0.0  ;;  %v3357_v12 = vmul.f32 %v9039_v11, %v8940_v36 }
 0x4c8   : > { %v3363_v13 = vsel %vm2797_vm3, %v3357_v12, 0.0 }
 0x4c9   : > { %3377 = vadd.xlane.f32.xlu0 %v3376_v21 }
 0x4ca   : > { %3354 = vadd.xlane.f32.xlu2 %v3353_v23 }
 0x4cd   : > { %3332 = vadd.xlane.f32.xlu1 %v3331_v24 }
 0x4d1   : > { %3393 = vadd.xlane.f32.xlu0 %v3392_v29 }
 0x4d2   : > { %3370 = vadd.xlane.f32.xlu2 %v3369_v32 }
 0x4d5   : > { %3380 = vadd.xlane.f32.xlu1 %v3379_v47 }
 0x4d9   : > { %3268 = vadd.xlane.f32.xlu0 %v3267_v38 }
 0x4da   : > { %3386 = vadd.xlane.f32.xlu2 %v3385_v39 }
 0x4de   : > { %v3248_v40 = vpop.xlane.xlu2 %3247 }
 0x4df   : > { %7890 = vrcp.f32 %v3248_v40 }
 0x4e1   : > { %3316 = vadd.xlane.f32.xlu0 %v3315_v50 }
 0x4e2   : > { %3402 = vadd.xlane.f32.xlu2 %v3401_v51 }
 0x4e5   : > { %v7891_v54 = vpop.eup %7890 }
 0x4e6   : > { %v3258_v59 = vmul.f32 %v7891_v54, %v9005_v20 }
 0x4e8   : > { %7315 = vmatmul.msk.f32.vlgmr.msrb.gmra.mxu2 %vm2797_vm3, %v3258_v59  ;;  %v3310_v62 = vmul.f32 %v3258_v59, %v8915_v8  ;;  %v3278_v3 = vmul.f32 %v3258_v59, %v8900_v61  ;;  %v3390_v20 = vmul.f32 %v3258_v59, %v8954_v55  ;;  %v3294_v10 = vmul.f32 %v3258_v59, %v8906_v63 }
 0x4e9   : > { %3396 = vadd.xlane.f32.xlu0 %v3395_v60  ;;  %v3342_v55 = vmul.f32 %v3258_v59, %v8933_v25  ;;  %v3262_v17 = vmul.f32 %v3258_v59, %v8894_v58  ;;  %v3326_v63 = vmul.f32 %v3258_v59, %v8920_v9  ;;  %v3358_v21 = vmul.f32 %v3258_v59, %v8940_v36  ;;  %v2793_v9 = vld [vmem:[%s10552_s14 + $0x8] sm:$0x1] }
 0x4ea   : > { %3300 = vadd.xlane.f32.xlu2 %v3299_v0  ;;  %v3318_v1 = vsel %vm2797_vm3, %v3310_v62, 0.0  ;;  %v3286_v6 = vsel %vm2797_vm3, %v3278_v3, 0.0  ;;  %v3398_v8 = vsel %vm2797_vm3, %v3390_v20, 0.0  ;;  %v3302_v61 = vsel %vm2797_vm3, %v3294_v10, 0.0  ;;  %7307 = vmatpush.msk.msra.mxu1 %vm3447_vm4, %v2793_v9 }
 0x4eb   : > { %3319 = vadd.xlane.f32.xlu1 %v3318_v1  ;;  %v3350_v18 = vsel %vm2797_vm3, %v3342_v55, 0.0  ;;  %v3270_v16 = vsel %vm2797_vm3, %v3262_v17, 0.0  ;;  %v3334_v11 = vsel %vm2797_vm3, %v3326_v63, 0.0  ;;  %v3366_v2 = vsel %vm2797_vm3, %v3358_v21, 0.0  ;;  %7310 = vmatpush.msk.msra.mxu3 %vm3447_vm4, %v2793_v9 }
 0x4ec   : > { %v3374_v58 = vmul.f32 %v3258_v59, %v8947_v48  ;;  %v2792_v48 = vld [vmem:[%s10552_s14] sm:$0xff] }
 0x4ed   : > { %3466 = vmatpush.msra.mxu1 %v2792_v48  ;;  %3515 = vmatpush.msra.mxu3 %v2792_v48 }
 0x4ee   : > { %v3382_v24 = vsel %vm2797_vm3, %v3374_v58, 0.0 }
 0x4ef   : > { %7316 = vmatpush.msk.msrb.mxu3 %vm3447_vm4, %v2793_v9  ;;  %7313 = vmatpush.msk.msrb.mxu1 %vm3447_vm4, %v2793_v9 }
 0x4f1   : > { %3287 = vadd.xlane.f32.xlu0 %v3286_v6  ;;  %3613 = vmatpush.msrb.mxu3 %v2792_v48 }
 0x4f2   : > { %3348 = vadd.xlane.f32.xlu2 %v3347_v7  ;;  %3564 = vmatpush.msrb.mxu1 %v2792_v48 }
 0x4f3   : > { %3399 = vadd.xlane.f32.xlu1 %v3398_v8 }
 0x4f9   : > { %3303 = vadd.xlane.f32.xlu0 %v3302_v61 }
 0x4fa   : > { %3364 = vadd.xlane.f32.xlu2 %v3363_v13 }
 0x501   : > { %3351 = vadd.xlane.f32.xlu0 %v3350_v18 }
 0x502   : > { %3271 = vadd.xlane.f32.xlu2 %v3270_v16 }
 0x50a   : > { %3335 = vadd.xlane.f32.xlu2 %v3334_v11 }
 0x512   : > { %3367 = vadd.xlane.f32.xlu2 %v3366_v2 }
 0x514   : > { %v3266_v23 = vpop.xlane.xlu0 %3265  ;;  %v3282_v26 = vpop.xlane.xlu1 %3281 }
 0x515   : > { %v3314_v25 = vpop.xlane.xlu2 %3313  ;;  %v3405_v38 = vsel %vm3404_vm5, %v3266_v23, %v3282_v26 }
 0x51a   : > { %3383 = vadd.xlane.f32.xlu2 %v3382_v24 }
 0x51c   : > { %v3298_v27 = vpop.xlane.xlu0 %3297  ;;  %v3362_v51 = vpop.xlane.xlu1 %3361 }
 0x51d   : > { %v3275_v28 = vpop.xlane.xlu2 %3274  ;;  %v3410_v39 = vsel %vm3409_vm6, %v3405_v38, %v3298_v27 }
 0x51e   : > { %v3415_v40 = vsel %vm3414_vm7, %v3410_v39, %v3314_v25 }
 0x524   : > { %v3291_v36 = vpop.xlane.xlu0 %3290 }
 0x525   : > { %v3330_v29 = vpop.xlane.xlu2 %3329  ;;  %v3408_v63 = vsel %vm3404_vm5, %v3275_v28, %v3291_v36 }
 0x526   : > { %v3420_v50 = vsel %vm3419_vm8, %v3415_v40, %v3330_v29 }
 0x52c   : > { %v3307_v31 = vpop.xlane.xlu0 %3306 }
 0x52d   : > { %v3346_v32 = vpop.xlane.xlu2 %3345  ;;  %v3413_v21 = vsel %vm3409_vm6, %v3408_v63, %v3307_v31  ;;  %v7852_v63 = vld [vmem:[%s10554_s12] ss:$0 sm:$0xff] }
 0x532   : > { %3618 = vrot.lane.b32.xlu2 %v8801_v22, %s10500_s18  ;;  %v3425_v22 = vsel %vm3424_vm9, %v3420_v50, %v3346_v32  ;;  %s10564_s18 = smov 8  }
 0x533   : > { %v3430_v53 = vsel %vm3429_vm10, %v3425_v22, %v3362_v51 }
 0x534   : > { %v3323_v47 = vpop.xlane.xlu0 %3322 }
 0x535   : > { %v3339_v52 = vpop.xlane.xlu2 %3338  ;;  %v3418_v23 = vsel %vm3414_vm7, %v3413_v21, %v3323_v47 }
 0x536   : > { %v3423_v25 = vsel %vm3419_vm8, %v3418_v23, %v3339_v52 }
 0x538   : > { %v3285_v3 = vpop.xlane.xlu1 %3284 }
 0x53c   : > { %v3378_v41 = vpop.xlane.xlu0 %3377 }
 0x53d   : > { %v3355_v49 = vpop.xlane.xlu2 %3354  ;;  %v3435_v54 = vsel %vm3434_vm11, %v3430_v53, %v3378_v41 }
 0x53e   : > { %v3428_v58 = vsel %vm3424_vm9, %v3423_v25, %v3355_v49  ;;  %v8003_v25 = vmov 32.0  }
 0x53f   : > { %7892 = vrcp.f32 %v8003_v25  ;;  %v3848_v25 = vld [vmem:[%s10480_s19 + $0xb0] sm:$0xff] }
 0x540   : > { %v3333_v6 = vpop.xlane.xlu1 %3332 }
 0x544   : > { %v3394_v56 = vpop.xlane.xlu0 %3393 }
 0x545   : > { %v3439_v59 = vsel %vm2797_vm3, %v3435_v54, %v3394_v56  ;;  %v3371_v60 = vpop.xlane.xlu2 %3370  ;;  %v3543_v54 = vpop.f32.mrf.mxu0 }
 0x546   : > { %7308 = vmatmul.msk.f32.vlgmr.msra.gmra.mxu1 %vm3443_vm12, %v3439_v59  ;;  %v3433_v27 = vsel %vm3429_vm10, %v3428_v58, %v3371_v60  ;;  %v3494_v60 = vpop.f32.mrf.mxu2  ;;  %v7893_v58 = vpop.eup %7892 }
 0x547   : > { %vm3703_vm15 = vweird.f32 %v7893_v58 }
 0x548   : > { %v3381_v18 = vpop.xlane.xlu1 %3380 }
 0x54c   : > { %v3269_v1 = vpop.xlane.xlu0 %3268 }
 0x54d   : > { %v3387_v62 = vpop.xlane.xlu2 %3386  ;;  %v3406_v7 = vsel %vm3404_vm5, %v3269_v1, %v3285_v3 }
 0x54e   : > { %v3438_v9 = vsel %vm3434_vm11, %v3433_v27, %v3387_v62 }
 0x554   : > { %v3317_v20 = vpop.xlane.xlu0 %3316 }
 0x555   : > { %v3403_v0 = vpop.xlane.xlu2 %3402 }
 0x556   : > { %v3442_v36 = vsel %vm2797_vm3, %v3438_v9, %v3403_v0 }
 0x55c   : > { %v3397_v13 = vpop.xlane.xlu0 %3396 }
 0x55d   : > { %v3301_v4 = vpop.xlane.xlu2 %3300 }
 0x55e   : > { %v3411_v10 = vsel %vm3409_vm6, %v3406_v7, %v3301_v4  ;;  %v3320_v32 = vpop.xlane.xlu1 %3319  ;;  %v3663_v7 = vld [vmem:[%s10553_s11 + $0x10] sm:$0xff] }
 0x55f   : > { %v3416_v12 = vsel %vm3414_vm7, %v3411_v10, %v3317_v20  ;;  %v3661_v10 = vld [vmem:[%s10553_s11] sm:$0xff] }
 0x560   : > { %v3421_v61 = vsel %vm3419_vm8, %v3416_v12, %v3333_v6 }
 0x564   : > { %v3288_v28 = vpop.xlane.xlu0 %3287 }
 0x565   : > { %v3349_v8 = vpop.xlane.xlu2 %3348 }
 0x566   : > { %v3426_v55 = vsel %vm3424_vm9, %v3421_v61, %v3349_v8  ;;  %v3400_v50 = vpop.xlane.xlu1 %3399  ;;  %v3662_v8 = vld [vmem:[%s10553_s11 + $0x8] sm:$0xff] }
 0x56b   : > { %v3592_v0 = vpop.f32.mrf.mxu2 }
 0x56c   : > { %v3304_v48 = vpop.xlane.xlu0 %3303 }
 0x56d   : > { %v3365_v17 = vpop.xlane.xlu2 %3364 }
 0x56e   : > { %v3431_v16 = vsel %vm3429_vm10, %v3426_v55, %v3365_v17 }
 0x56f   : > { %v3436_v11 = vsel %vm3434_vm11, %v3431_v16, %v3381_v18 }
 0x570   : > { %v3440_v2 = vsel %vm2797_vm3, %v3436_v11, %v3397_v13 }
 0x571   : > { %7311 = vmatmul.msk.f32.vlgmr.msra.gmra.mxu3 %vm3443_vm12, %v3440_v2 }
 0x574   : > { %v3352_v39 = vpop.xlane.xlu0 %3351 }
 0x575   : > { %v3272_v24 = vpop.xlane.xlu2 %3271 }
 0x576   : > { %v3407_v31 = vsel %vm3404_vm5, %v3272_v24, %v3288_v28  ;;  %v3699_v24 = vmul.f32 32.0, %v7893_v58 }
 0x577   : > { %v3412_v47 = vsel %vm3409_vm6, %v3407_v31, %v3304_v48 }
 0x578   : > { %v3417_v26 = vsel %vm3414_vm7, %v3412_v47, %v3320_v32  ;;  %v3700_v27 = vsub.f32 1.0, %v3699_v24  ;;  %v3740_v47 = vld [vmem:[%s10478_s17 + $0x38] sm:$0xff]  ;;  %v3831_v24 = vld [vmem:[%s10480_s19 + $0x28] sm:$0xff] }
 0x579   : > { %7317 = vmatmul.msk.f32.vlgmr.msrb.gmra.mxu3 %vm3443_vm12, %v3442_v36  ;;  %3763 = vmatpush.msra.mxu2 %v3740_v47  ;;  %v3828_v47 = vld [vmem:[%s10480_s19 + $0x10] sm:$0xff] }
 0x57a   : > { %v3701_v9 = vmul.f32 %v7893_v58, %v3700_v27  ;;  %v3847_v27 = vld [vmem:[%s10480_s19 + $0xa8] sm:$0xff] }
 0x57c   : > { %v3702_v28 = vadd.f32 %v7893_v58, %v3701_v9  ;;  %v3836_v9 = vld [vmem:[%s10480_s19 + $0x50] sm:$0xff] }
 0x57d   : > { %v3336_v29 = vpop.xlane.xlu2 %3335 }
 0x57e   : > { %v3422_v38 = vsel %vm3419_vm8, %v3417_v26, %v3336_v29  ;;  %v9182_v36 = vsel %vm3703_vm15, %v7893_v58, %v3702_v28  ;;  %v3736_v26 = vld [vmem:[%s10478_s17 + $0x18] sm:$0xff]  ;;  %v3830_v28 = vld [vmem:[%s10480_s19 + $0x20] sm:$0xff] }
 0x57f   : > { %v3427_v41 = vsel %vm3424_vm9, %v3422_v38, %v3352_v39  ;;  %v3744_v38 = vld [vmem:[%s10478_s17 + $0x58] sm:$0xff]  ;;  %v3738_v39 = vld [vmem:[%s10478_s17 + $0x28] sm:$0xff]  ;;  %3786 = vmatpush.msra.mxu3 %v3736_v26 }
 0x580   : > { %v3837_v58 = vld [vmem:[%s10480_s19 + $0x58] sm:$0xff]  ;;  %v3827_v26 = vld [vmem:[%s10480_s19 + $0x8] sm:$0xff] }
 0x585   : > { %v3368_v52 = vpop.xlane.xlu2 %3367 }
 0x586   : > { %v3432_v49 = vsel %vm3429_vm10, %v3427_v41, %v3368_v52  ;;  %v3739_v52 = vld [vmem:[%s10478_s17 + $0x30] sm:$0xff] }
 0x587   : > { %v3735_v41 = vld [vmem:[%s10478_s17 + $0x10] sm:$0xff]  ;;  %3764 = vmatpush.msra.mxu2 %v3739_v52 }
 0x588   : > { %3787 = vmatpush.msra.mxu3 %v3735_v41  ;;  %v3844_v52 = vld [vmem:[%s10480_s19 + $0x90] sm:$0xff]  ;;  %v3842_v41 = vld [vmem:[%s10480_s19 + $0x80] sm:$0xff] }
 0x589   : > { %3765 = vmatpush.msra.mxu2 %v3738_v39  ;;  %v3826_v39 = vld [vmem:[%s10480_s19] sm:$0xff] }
 0x58d   : > { %v3384_v40 = vpop.xlane.xlu2 %3383 }
 0x58e   : > { %v3437_v22 = vsel %vm3434_vm11, %v3432_v49, %v3384_v40  ;;  %v3743_v49 = vld [vmem:[%s10478_s17 + $0x50] sm:$0xff]  ;;  %v3737_v40 = vld [vmem:[%s10478_s17 + $0x20] sm:$0xff] }
 0x58f   : > { %v3441_v51 = vsel %vm2797_vm3, %v3437_v22, %v3400_v50  ;;  %v3734_v50 = vld [vmem:[%s10478_s17 + $0x8] sm:$0xff]  ;;  %3766 = vmatpush.msra.mxu2 %v3737_v40 }
 0x590   : > { %7314 = vmatmul.msk.f32.vlgmr.msrb.gmra.mxu1 %vm3443_vm12, %v3441_v51  ;;  %v3742_v22 = vld [vmem:[%s10478_s17 + $0x48] sm:$0xff]  ;;  %v3733_v51 = vld [vmem:[%s10478_s17] sm:$0xff]  ;;  %3788 = vmatpush.msra.mxu3 %v3734_v50 }
 0x592   : > { %3789 = vmatpush.msra.mxu3 %v3733_v51 }
 0x595   : > { %v3619_v53 = vpop.permute.xlu2 %3618 }
 0x596   : > { %3639 = vmatpush.msra.mxu0 %v3619_v53 }
 0x597   : > { %7318 = vmatmul.msk.f32.vlgmr.msra.gmra.mxu0 %vm2797_vm3, %v9016_v37  ;;  %v3664_v37 = vld [vmem:[%s10553_s11 + $0x18] sm:$0xff] }
 0x598   : > { %3684 = vmatpush.msra.mxu1 %v3664_v37  ;;  %3811 = vmatpush.msrb.mxu0 %v3744_v38  ;;  %v3843_v38 = vld [vmem:[%s10480_s19 + $0x88] sm:$0xff] }
 0x59a   : > { %3685 = vmatpush.msra.mxu1 %v3663_v7  ;;  %3812 = vmatpush.msrb.mxu0 %v3743_v49  ;;  %v7854_v7 = vld [vmem:[%s10477_s16] ss:$0 sm:$0xff] }
 0x59c   : > { %3686 = vmatpush.msra.mxu1 %v3662_v8  ;;  %3813 = vmatpush.msrb.mxu0 %v3742_v22  ;;  %v7855_v22 = vld [vmem:[%s10555_s0] ss:$0 sm:$0xff] }
 0x59e   : > { %3687 = vmatpush.msra.mxu1 %v3661_v10 }
 0x5c3   : > { %v3468_v62 = vpop.f32.mrf.mxu1 }
 0x5c4   : > { %v3495_v13 = vadd.f32 %v3494_v60, %v3468_v62 }
 0x5f4   : > { %v3517_v56 = vpop.f32.mrf.mxu3 }
 0x5f5   : > { %v3544_v59 = vadd.f32 %v3543_v54, %v3517_v56  ;;  %v3741_v54 = vld [vmem:[%s10478_s17 + $0x40] sm:$0xff] }
 0x5f6   : > { %3814 = vmatpush.msrb.mxu0 %v3741_v54 }
 0x5f7   : > { %3645 = vrot.lane.b32.xlu0 %v3544_v59, %s10502_s6  ;;  %s10566_s6 = smov 24  }
 0x5fc   : > { %v3615_v4 = vpop.f32.mrf.mxu3 }
 0x60d   : > { %v3566_v1 = vpop.f32.mrf.mxu1 }
 0x60e   : > { %v3593_v3 = vadd.f32 %v3592_v0, %v3566_v1 }
 0x610   : > { %3649 = vrot.lane.b32.xlu2 %v3593_v3, %s10508_s26  ;;  %s10560_s26 = smov 40  }
 0x614   : > { %v3641_v20 = vpop.f32.mrf.mxu0 }
 0x615   : > { %v3642_v6 = vadd.f32 %v3641_v20, %v3615_v4  ;;  %v7853_v20 = vld [vmem:[%s10476_s15] ss:$0 sm:$0xff] }
 0x618   : > { %3653 = vrot.lane.b32.xlu2 %v3642_v6, %s10512_s25  ;;  %s10557_s25 = smov 104  }
 0x669   : > { %v3646_v61 = vpop.permute.xlu0 %3645 }
 0x66a   : > { %v3650_v12 = vpop.permute.xlu2 %3649  ;;  %v3656_v55 = vsel %vm2797_vm3, %v3495_v13, %v3646_v61 }
 0x66b   : > { %v3658_v17 = vsel %vm10517_vm13, %v3656_v55, %v3650_v12  ;;  %vm803_vm13 = vcmp.lt.s32.totalorder %v8787_v5, 7 }
 0x66c   : > { %v9239_v13 = vsel %vm803_vm13, 1.0, %v7979_v14  ;;  %vm3853_vm13 = vcmask 523264  }
 0x672   : > { %v3654_v18 = vpop.permute.xlu2 %3653 }
 0x673   : > { %v3660_v16 = vsel %vm10516_vm14, %v3658_v17, %v3654_v18  ;;  %vm800_vm14 = vcmp.ge.s32.totalorder %v8787_v5, 1  ;;  %v3841_v5 = vld [vmem:[%s10480_s19 + $0x78] sm:$0xff] }
 0x674   : > { %7319 = vmatmul.msk.f32.vlgmr.msra.gmra.mxu1 %vm2766_vm2, %v3660_v16  ;;  %v9236_v61 = vsel %vm800_vm14, 1.0, %v7979_v14  ;;  %v3840_v14 = vld [vmem:[%s10480_s19 + $0x70] sm:$0xff] }
 0x675   : > { %3865 = vmatpush.msrb.mxu1 %v3841_v5 }
 0x677   : > { %3866 = vmatpush.msrb.mxu1 %v3840_v14 }
 0x6f1   : > { %v3689_v11 = vpop.f32.mrf.mxu1 }
 0x6f2   : > { %v3690_v21 = vadd.f32 %v7852_v63, %v3689_v11  ;;  %v3839_v63 = vld [vmem:[%s10480_s19 + $0x68] sm:$0xff]  ;;  %v3833_v11 = vld [vmem:[%s10480_s19 + $0x38] sm:$0xff] }
 0x6f3   : > { %3867 = vmatpush.msrb.mxu1 %v3839_v63  ;;  %3888 = vmatpush.msrb.mxu2 %v3833_v11  ;;  %v7329_v11 = vld [vmem:[%s10547_s28 + $0x38] sm:$0xff] }
 0x6f4   : > { %v3692_v2 = vadd.f32 %v3690_v21, %v8794_v19  ;;  %v3849_v21 = vld [vmem:[%s10480_s19 + $0xb8] sm:$0xff]  ;;  %3989 = vmatpush.msra.mxu0 %v7329_v11  ;;  %v9454_v11 = vld [vmem:[%s10551_s8 + $0x8] sm:$0xff] }
 0x6f5   : > { %3913 = vmatpush.msrb.mxu3 %v3849_v21  ;;  %v7328_v21 = vld [vmem:[%s10547_s28 + $0x30] sm:$0xff] }
 0x6f6   : > { %v3695_v23 = vsel %vm2766_vm2, %v3692_v2, 0.0  ;;  %3990 = vmatpush.msra.mxu0 %v7328_v21 }
 0x6f7   : > { %3696 = vadd.xlane.f32.xlu1 %v3695_v23  ;;  %v3832_v23 = vld [vmem:[%s10480_s19 + $0x30] sm:$0xff]  ;;  %3914 = vmatpush.msrb.mxu3 %v3848_v25 }
 0x6f8   : > { %3889 = vmatpush.msrb.mxu2 %v3832_v23 }
 0x6f9   : > { %3915 = vmatpush.msrb.mxu3 %v3847_v27 }
 0x6fa   : > { %3890 = vmatpush.msrb.mxu2 %v3831_v24 }
 0x6fc   : > { %3891 = vmatpush.msrb.mxu2 %v3830_v28 }
 0x76a   : > { %v3697_v29 = vpop.xlane.xlu1 %3696 }
 0x76b   : > { %v3705_v48 = vmul.f32 %v9182_v36, %v3697_v29  ;;  %v3846_v29 = vld [vmem:[%s10480_s19 + $0xa0] sm:$0xff] }
 0x76c   : > { %3916 = vmatpush.msrb.mxu3 %v3846_v29 }
 0x76d   : > { %v3706_v31 = vsub.f32 %v3692_v2, %v3705_v48  ;;  %v3838_v2 = vld [vmem:[%s10480_s19 + $0x60] sm:$0xff]  ;;  %v3835_v48 = vld [vmem:[%s10480_s19 + $0x48] sm:$0xff] }
 0x76e   : > { %3868 = vmatpush.msrb.mxu1 %v3838_v2  ;;  %v7326_v2 = vld [vmem:[%s10547_s28 + $0x20] sm:$0xff] }
 0x76f   : > { %v3707_v32 = vmul.f32 %v3706_v31, %v3706_v31 }
 0x770   : > { %3869 = vmatpush.msrb.mxu1 %v3837_v58 }
 0x771   : > { %v3708_v19 = vsel %vm2766_vm2, %v3707_v32, 0.0  ;;  %v3845_v32 = vld [vmem:[%s10480_s19 + $0x98] sm:$0xff] }
 0x772   : > { %3709 = vadd.xlane.f32.xlu2 %v3708_v19  ;;  %3870 = vmatpush.msrb.mxu1 %v3836_v9  ;;  %v3834_v19 = vld [vmem:[%s10480_s19 + $0x40] sm:$0xff] }
 0x773   : > { %3917 = vmatpush.msrb.mxu3 %v3845_v32 }
 0x774   : > { %3871 = vmatpush.msrb.mxu1 %v3835_v48 }
 0x775   : > { %3918 = vmatpush.msrb.mxu3 %v3844_v52 }
 0x776   : > { %3872 = vmatpush.msrb.mxu1 %v3834_v19 }
 0x777   : > { %3919 = vmatpush.msrb.mxu3 %v3843_v38  ;;  %v7859_v38 = vld [vmem:[%s10471_s10 + $0x1] ss:$0 sm:$0xff] }
 0x779   : > { %3920 = vmatpush.msrb.mxu3 %v3842_v41 }
 0x7e5   : > { %v3710_v53 = vpop.xlane.xlu2 %3709 }
 0x7e6   : > { %v3711_v56 = vmul.f32 %v3710_v53, %v9182_v36 }
 0x7e8   : > { %v3712_v59 = vadd.f32 1e-05, %v3711_v56 }
 0x7ea   : > { %7894 = vrsqrt.f32 %v3712_v59  ;;  %vm3719_vm1 = vweird.f32 %v3712_v59 }
 0x7f0   : > { %v7895_v60 = vpop.eup %7894 }
 0x7f1   : > { %v3714_v62 = vmul.f32 %v7895_v60, %v3712_v59  ;;  %vm3720_vm0 = vweird.f32 %v7895_v60 }
 0x7f2   : > { %vm3721_vm15 = vmor %vm3719_vm1, %vm3720_vm0 }
 0x7f3   : > { %v3715_v0 = vmul.f32 %v7895_v60, %v3714_v62 }
 0x7f5   : > { %v3716_v1 = vmul.f32 0.5, %v3715_v0 }
 0x7f7   : > { %v3717_v3 = vsub.f32 1.5, %v3716_v1 }
 0x7f9   : > { %v3718_v4 = vmul.f32 %v7895_v60, %v3717_v3 }
 0x7fb   : > { %v3722_v6 = vsel %vm3721_vm15, %v7895_v60, %v3718_v4  ;;  %vm10567_vm15 = vcmask 130048  }
 0x7fc   : > { %v3723_v37 = vmul.f32 %v3722_v6, %v3706_v31  ;;  %v3829_v31 = vld [vmem:[%s10480_s19 + $0x18] sm:$0xff]  ;;  %v7856_v6 = vld [vmem:[%s10481_s20] ss:$0 sm:$0xff] }
 0x7fd   : > { %3892 = vmatpush.msrb.mxu2 %v3829_v31  ;;  %v7857_v31 = vld [vmem:[%s10482_s21] ss:$0 sm:$0xff] }
 0x7fe   : > { %v3727_v8 = vmul.f32 %v7853_v20, %v3723_v37 }
 0x7ff   : > { %3893 = vmatpush.msrb.mxu2 %v3828_v47  ;;  %v7858_v47 = vld [vmem:[%s10483_s22] ss:$0 sm:$0xff] }
 0x800   : > { %v9229_v10 = vadd.f32 %v7854_v7, %v3727_v8 }
 0x801   : > { %3894 = vmatpush.msrb.mxu2 %v3827_v26 }
 0x802   : > { %v3732_v12 = vmul.f32 %v8791_v15, %v9229_v10 }
 0x803   : > { %3895 = vmatpush.msrb.mxu2 %v3826_v39 }
 0x804   : > { %7320 = vmatmul.msk.f32.vlgmr.msra.gmra.mxu2 %vm2766_vm2, %v3732_v12  ;;  %v3746_v55 = vrot.slane %v3732_v12, 7  ;;  %v3794_v17 = vrot.slane %v3732_v12, 1 }
 0x806   : > { %v3747_v18 = vmul.f32 %v9236_v61, %v3746_v55  ;;  %v3795_v16 = vmul.f32 %v9239_v13, %v3794_v17 }
 0x808   : > { %7321 = vmatmul.msk.f32.vlgmr.msra.gmra.mxu3 %vm2766_vm2, %v3747_v18  ;;  %7322 = vmatmul.msk.f32.vlgmr.msrb.gmra.mxu0 %vm2766_vm2, %v3795_v16 }
 0x885   : > { %v3816_v51 = vpop.f32.mrf.mxu0 }
 0x887   : > { %v3768_v49 = vpop.f32.mrf.mxu2 }
 0x88b   : > { %v3791_v40 = vpop.f32.mrf.mxu3 }
 0x88c   : > { %v3792_v50 = vadd.f32 %v3791_v40, %v3768_v49  ;;  %v7333_v49 = vld [vmem:[%s10474_s13 + $0x18] sm:$0x1] }
 0x88e   : > { %v3819_v53 = vadd.f32 %v3816_v51, %v3792_v50 }
 0x890   : > { %v3823_v54 = vadd.f32 %v7855_v22, %v3819_v53  ;;  %v7332_v22 = vld [vmem:[%s10474_s13 + $0x10] sm:$0xff] }
 0x892   : > { %v3824_v56 = vmax.f32 %v3823_v54, 0.0 }
 0x894   : > { %v3825_v59 = vmul.f32 %v8791_v15, %v3824_v56 }
 0x896   : > { %v3851_v60 = vrot.slane %v3825_v59, 7  ;;  %v3900_v62 = vrot.slane %v3825_v59, 1  ;;  %7323 = vmatmul.msk.f32.vlgmr.msrb.gmra.mxu1 %vm3853_vm13, %v3825_v59 }
 0x898   : > { %v3852_v0 = vmul.f32 %v9236_v61, %v3851_v60  ;;  %v3901_v1 = vmul.f32 %v9239_v13, %v3900_v62 }
 0x89a   : > { %7324 = vmatmul.msk.f32.vlgmr.msrb.gmra.mxu2 %vm3853_vm13, %v3852_v0  ;;  %7325 = vmatmul.msk.f32.vlgmr.msrb.gmra.mxu3 %vm3853_vm13, %v3901_v1 }
 0x913   : > { %v3874_v3 = vpop.f32.mrf.mxu1 }
 0x91d   : > { %v3897_v4 = vpop.f32.mrf.mxu2  ;;  %v3922_v37 = vpop.f32.mrf.mxu3 }
 0x91e   : > { %v3898_v20 = vadd.f32 %v3897_v4, %v3874_v3 }
 0x920   : > { %v3925_v7 = vadd.f32 %v3922_v37, %v3898_v20 }
 0x922   : > { %v3929_v8 = vadd.f32 %v7856_v6, %v3925_v7 }
 0x924   : > { %v3930_v12 = vmul.f32 %v8791_v15, %v3929_v8 }
 0x926   : > { %v3931_v55 = vadd.f32 %v3930_v12, %v9229_v10  ;;  %v7327_v10 = vld [vmem:[%s10547_s28 + $0x28] sm:$0xff] }
 0x927   : > { %3991 = vmatpush.msra.mxu0 %v7327_v10 }
 0x928   : > { %v3934_v17 = vsel %vm2766_vm2, %v3931_v55, 0.0 }
 0x929   : > { %3935 = vadd.xlane.f32.xlu0 %v3934_v17  ;;  %3992 = vmatpush.msra.mxu0 %v7326_v2 }
 0x99c   : > { %v3936_v18 = vpop.xlane.xlu0 %3935 }
 0x99d   : > { %v3937_v16 = vmul.f32 %v3936_v18, %v9182_v36  ;;  %v9447_v18 = vld [vmem:[%s10551_s8] sm:$0xff] }
 0x99f   : > { %v3938_v5 = vsub.f32 %v3931_v55, %v3937_v16 }
 0x9a1   : > { %v3939_v14 = vmul.f32 %v3938_v5, %v3938_v5 }
 0x9a3   : > { %v3940_v63 = vsel %vm2766_vm2, %v3939_v14, 0.0 }
 0x9a4   : > { %3941 = vadd.xlane.f32.xlu1 %v3940_v63 }
 0xa17   : > { %v3942_v23 = vpop.xlane.xlu1 %3941 }
 0xa18   : > { %v3943_v25 = vmul.f32 %v3942_v23, %v9182_v36  ;;  %v9462_v23 = vld [vmem:[%s10551_s8 + $0x10] sm:$0xff] }
 0xa1a   : > { %v3944_v58 = vadd.f32 1e-05, %v3943_v25 }
 0xa1c   : > { %7896 = vrsqrt.f32 %v3944_v58  ;;  %vm3951_vm0 = vweird.f32 %v3944_v58 }
 0xa22   : > { %v7897_v24 = vpop.eup %7896 }
 0xa23   : > { %v3946_v27 = vmul.f32 %v7897_v24, %v3944_v58  ;;  %vm3952_vm14 = vweird.f32 %v7897_v24  ;;  %v9468_v58 = vld [vmem:[%s10551_s8 + $0x18] sm:$0xff] }
 0xa24   : > { %vm3953_vm1 = vmor %vm3951_vm0, %vm3952_vm14  ;;  %vm10568_vm14 = vcmask 195584  }
 0xa25   : > { %v3947_v9 = vmul.f32 %v7897_v24, %v3946_v27 }
 0xa27   : > { %v3948_v28 = vmul.f32 0.5, %v3947_v9 }
 0xa29   : > { %v3949_v29 = vsub.f32 1.5, %v3948_v28 }
 0xa2b   : > { %v3950_v48 = vmul.f32 %v7897_v24, %v3949_v29  ;;  %v9474_v29 = vld [vmem:[%s10551_s8 + $0x20] sm:$0xff] }
 0xa2d   : > { %v3954_v32 = vsel %vm3953_vm1, %v7897_v24, %v3950_v48 }
 0xa2e   : > { %v3955_v19 = vmul.f32 %v3954_v32, %v3938_v5 }
 0xa30   : > { %v3959_v52 = vmul.f32 %v7857_v31, %v3955_v19 }
 0xa32   : > { %v9354_v26 = vadd.f32 %v7858_v47, %v3959_v52 }
 0xa34   : > { %7331 = vmatmul.msk.f32.vlgmr.msra.gmra.mxu0 %vm2766_vm2, %v9354_v26 }
 0xab1   : > { %v3994_v39 = vpop.f32.mrf.mxu0 }
 0xab2   : > { %v9361_v41 = vadd.f32 %v7859_v38, %v3994_v39  ;;  %v9482_v38 = vld [vmem:[%s10551_s8 + $0x28] sm:$0xff] }
 0xab4   : > { %4004 = vrot.lane.b32.xlu0 %v9361_v41, %s10518_s3  ;;  %4030 = vrot.lane.b32.xlu2 %v9361_v41, %s10520_s2  ;;  %s10565_s3 = smov 16   ;;  %s10569_s2 = sld [smem:[#allocation11_spill]] }
 0xab5   : > { %4032 = vrot.lane.b32.xlu1 %v9361_v41, %s10519_s5  ;;  %s10563_s5 = smov 48  }
 0xabd   : > { %4088 = vrot.lane.b32.xlu1 %v9361_v41, %s10556_s4 }
 0xac5   : > { %4086 = vrot.lane.b32.xlu1 %v9361_v41, %s10557_s25 }
 0xacd   : > { %4060 = vrot.lane.b32.xlu1 %v9361_v41, %s10558_s29 }
 0xad5   : > { %4058 = vrot.lane.b32.xlu1 %v9361_v41, %s10559_s7 }
 0xb0e   : > { %v4031_v51 = vpop.permute.xlu2 %4030 }
 0xb26   : > { %v4005_v40 = vpop.permute.xlu0 %4004 }
 0xb27   : > { %v4033_v50 = vpop.permute.xlu1 %4032  ;;  %7336 = vmatpush.xpose.msk.msrb.mxu0 %vm2797_vm3, %v4005_v40 }
 0xb28   : > { %7338 = vmatpush.xpose.msk.msra.mxu1 %vm2797_vm3, %v4033_v50 }
 0xb2a   : > { %7337 = vmatmul.msk.f32.vlgmr.msrb.gmra.mxu0 %vm2797_vm3, %v9361_v41 }
 0xb2b   : > { %7344 = vmatpush.xpose.msk.msra.mxu0 %vm2797_vm3, %v7333_v49  ;;  %7339 = vmatmul.msk.f32.vlgmr.msra.gmra.mxu1 %vm2797_vm3, %v4031_v51 }
 0xb2c   : > { %7347 = vmatpush.xpose.msk.msrb.mxu1 %vm2797_vm3, %v7333_v49 }
 0xb2f   : > { %7345 = vmatpush.xpose.msk.msra.mxu0 %vm2797_vm3, %v7332_v22  ;;  %v4089_v53 = vpop.permute.xlu1 %4088 }
 0xb30   : > { %7348 = vmatpush.xpose.msk.msrb.mxu1 %vm2797_vm3, %v7332_v22  ;;  %7342 = vmatpush.xpose.msk.msra.mxu3 %vm2797_vm3, %v4089_v53 }
 0xb32   : > { %7346 = vmatmul.msk.f32.vlgmr.msra.gmra.mxu0 %vm2797_vm3, %v9361_v41 }
 0xb33   : > { %7349 = vmatmul.msk.f32.vlgmr.msrb.gmra.mxu1 %vm2797_vm3, %v4031_v51  ;;  %v9489_v51 = vld [vmem:[%s10551_s8 + $0x30] sm:$0xff] }
 0xb34   : > { %7353 = vmatpush.xpose.msk.msrb.mxu3 %vm2797_vm3, %v7333_v49 }
 0xb37   : > { %v4087_v54 = vpop.permute.xlu1 %4086 }
 0xb38   : > { %7354 = vmatpush.xpose.msk.msrb.mxu3 %vm2797_vm3, %v7332_v22 }
 0xb39   : > { %7343 = vmatmul.msk.f32.vlgmr.msra.gmra.mxu3 %vm2797_vm3, %v4087_v54 }
 0xb3f   : > { %v4061_v56 = vpop.permute.xlu1 %4060 }
 0xb40   : > { %7340 = vmatpush.xpose.msk.msra.mxu2 %vm2797_vm3, %v4061_v56  ;;  %v9495_v56 = vld [vmem:[%s10551_s8 + $0x38] sm:$0xff] }
 0xb41   : > { %7355 = vmatmul.msk.f32.vlgmr.msrb.gmra.mxu3 %vm2797_vm3, %v4087_v54 }
 0xb44   : > { %7350 = vmatpush.xpose.msk.msrb.mxu2 %vm2797_vm3, %v7333_v49 }
 0xb47   : > { %v4059_v59 = vpop.permute.xlu1 %4058 }
 0xb48   : > { %7351 = vmatpush.xpose.msk.msrb.mxu2 %vm2797_vm3, %v7332_v22 }
 0xb49   : > { %7341 = vmatmul.msk.f32.vlgmr.msra.gmra.mxu2 %vm2797_vm3, %v4059_v59 }
 0xb51   : > { %7352 = vmatmul.msk.f32.vlgmr.msrb.gmra.mxu2 %vm2797_vm3, %v4059_v59 }
 0xba7   : > { %v9407_v62 = vpop.f32.mrf.mxu0 }
 0xba8   : > { %v9405_v60 = vpop.f32.mrf.mxu1 }
 0xbaf   : > { %v4137_v1 = vpop.f32.mrf.mxu0 }
 0xbb0   : > { %v4157_v0 = vpop.f32.mrf.mxu1 }
 0xbb1   : > { %4257 = vperm.xlu1 %7785, %v4157_v0   ;;  %4233 = vperm.xlu2 %7784, %v4157_v0  }
 0xbb2   : > { %4207 = vperm.xlu0 %7783, %v4157_v0  }
 0xbb9   : > { %7787 = vset.pattern.permute.xlu1 %v7993_v44  ;;  %7786 = vset.pattern.permute.xlu2 %v7987_v34 }
 0xbba   : > { %7788 = vset.pattern.permute.xlu0 %v7989_v30  ;;  %4281 = vperm.xlu1 %7787, %v4157_v0  }
 0xbbb   : > { %4202 = vperm.xlu2 %7786, %v4137_v1   ;;  %4229 = vperm.xlu0 %7788, %v4137_v1  }
 0xbbc   : > { %v9419_v3 = vpop.f32.mrf.mxu3 }
 0xbc2   : > { %7789 = vset.pattern.permute.xlu1 %v7991_v42 }
 0xbc3   : > { %7790 = vset.pattern.permute.xlu2 %v7988_v35  ;;  %7791 = vset.pattern.permute.xlu0 %v7994_v45 }
 0xbc4   : > { %4305 = vperm.xlu1 %7789, %v4157_v0   ;;  %4253 = vperm.xlu2 %7790, %v4137_v1   ;;  %v4197_v20 = vpop.f32.mrf.mxu3 }
 0xbc5   : > { %4329 = vperm.xlu0 %7791, %v4157_v0  }
 0xbcc   : > { %7795 = vset.pattern.permute.xlu1 %v7995_v46  ;;  %7792 = vset.pattern.permute.xlu2 %v7993_v44  ;;  %v9423_v4 = vpop.f32.mrf.mxu2 }
 0xbcd   : > { %7794 = vset.pattern.permute.xlu0 %v7991_v42  ;;  %4377 = vperm.xlu1 %7795, %v4157_v0  }
 0xbce   : > { %4277 = vperm.xlu2 %7792, %v4137_v1   ;;  %4301 = vperm.xlu0 %7794, %v4137_v1  }
 0xbd4   : > { %v4177_v6 = vpop.f32.mrf.mxu2 }
 0xbd5   : > { %7796 = vset.pattern.permute.xlu1 %v7994_v45 }
 0xbd6   : > { %7793 = vset.pattern.permute.xlu2 %v7990_v33  ;;  %7798 = vset.pattern.permute.xlu0 %v7990_v33 }
 0xbd7   : > { %4325 = vperm.xlu1 %7796, %v4137_v1   ;;  %4353 = vperm.xlu2 %7793, %v4157_v0  }
 0xbd8   : > { %4349 = vperm.xlu0 %7798, %v4137_v1  }
 0xbdf   : > { %7802 = vset.pattern.permute.xlu1 %v7989_v30  ;;  %7797 = vset.pattern.permute.xlu2 %v7992_v43 }
 0xbe0   : > { %7807 = vset.pattern.permute.xlu0 %v7991_v42  ;;  %4401 = vperm.xlu2 %7797, %v4157_v0  }
 0xbe1   : > { %4313 = vperm.xlu0 %7807, %v4197_v20   ;;  %4241 = vperm.xlu1 %7802, %v4197_v20  }
 0xbe8   : > { %7799 = vset.pattern.permute.xlu2 %v7995_v46 }
 0xbe9   : > { %7803 = vset.pattern.permute.xlu1 %v7988_v35  ;;  %4309 = vperm.xlu0 %7807, %v4177_v6  }
 0xbea   : > { %4373 = vperm.xlu2 %7799, %v4137_v1   ;;  %4265 = vperm.xlu1 %7803, %v4197_v20  }
 0xbf1   : > { %7814 = vset.pattern.permute.xlu0 %v7990_v33 }
 0xbf2   : > { %7800 = vset.pattern.permute.xlu2 %v7992_v43  ;;  %7804 = vset.pattern.permute.xlu1 %v7987_v34 }
 0xbf3   : > { %4357 = vperm.xlu0 %7814, %v4177_v6   ;;  %4397 = vperm.xlu2 %7800, %v4137_v1  }
 0xbf4   : > { %4212 = vperm.xlu1 %7804, %v4177_v6  }
 0xbfb   : > { %7801 = vset.pattern.permute.xlu2 %v7987_v34  ;;  %7816 = vset.pattern.permute.xlu0 %v7987_v34 }
 0xbfc   : > { %7808 = vset.pattern.permute.xlu1 %v7988_v35  ;;  %4217 = vperm.xlu2 %7801, %v4197_v20  }
 0xbfd   : > { %4261 = vperm.xlu1 %7808, %v4177_v6  }
 0xc04   : > { %7805 = vset.pattern.permute.xlu2 %v7993_v44 }
 0xc05   : > { %7810 = vset.pattern.permute.xlu1 %v7993_v44  ;;  %4289 = vperm.xlu2 %7805, %v4197_v20  }
 0xc06   : > { %4285 = vperm.xlu1 %7810, %v4177_v6  }
 0xc0b   : > { %v4234_v37 = vpop.permute.xlu2 %4233 }
 0xc0c   : > { %v4245_v21 = vmul.f32 %v9454_v11, %v4234_v37  ;;  %v9503_v37 = vld [vmem:[%s10551_s8 + $0x40] sm:$0xff] }
 0xc0d   : > { %7806 = vset.pattern.permute.xlu2 %v7989_v30 }
 0xc0e   : > { %7811 = vset.pattern.permute.xlu1 %v7990_v33  ;;  %4237 = vperm.xlu2 %7806, %v4177_v6  }
 0xc0f   : > { %4361 = vperm.xlu1 %7811, %v4197_v20  }
 0xc15   : > { %v4203_v7 = vpop.permute.xlu2 %4202 }
 0xc16   : > { %7809 = vset.pattern.permute.xlu2 %v7994_v45  ;;  %v4220_v32 = vmul.f32 %v9447_v18, %v4203_v7 }
 0xc17   : > { %7812 = vset.pattern.permute.xlu1 %v7995_v46  ;;  %4337 = vperm.xlu2 %7809, %v4197_v20  }
 0xc18   : > { %4385 = vperm.xlu1 %7812, %v4197_v20   ;;  %v4224_v49 = vadd.f32 %v4220_v32, %v9407_v62 }
 0xc1e   : > { %v4254_v8 = vpop.permute.xlu2 %4253 }
 0xc1f   : > { %4333 = vperm.xlu2 %7809, %v4177_v6  }
 0xc20   : > { %7813 = vset.pattern.permute.xlu1 %v7992_v43 }
 0xc21   : > { %4409 = vperm.xlu1 %7813, %v4197_v20  }
 0xc23   : > { %v4258_v12 = vpop.permute.xlu1 %4257 }
 0xc24   : > { %v4208_v55 = vpop.permute.xlu0 %4207  ;;  %v4269_v25 = vmul.f32 %v9462_v23, %v4258_v12 }
 0xc25   : > { %v4221_v16 = vmul.f32 %v9447_v18, %v4208_v55 }
 0xc27   : > { %7815 = vset.pattern.permute.xlu2 %v7995_v46  ;;  %v4225_v63 = vadd.f32 %v4221_v16, %v9405_v60  ;;  %v4268_v60 = vmul.f32 %v9462_v23, %v4254_v8 }
 0xc28   : > { %4381 = vperm.xlu2 %7815, %v4177_v6   ;;  %v4278_v17 = vpop.permute.xlu2 %4277 }
 0xc29   : > { %4405 = vperm.xlu1 %7813, %v4177_v6   ;;  %v4249_v2 = vadd.f32 %v4245_v21, %v4225_v63  ;;  %v4292_v6 = vmul.f32 %v9468_v58, %v4278_v17 }
 0xc2b   : > { %v4273_v27 = vadd.f32 %v4269_v25, %v4249_v2 }
 0xc2c   : > { %v4282_v5 = vpop.permute.xlu1 %4281 }
 0xc2d   : > { %v4230_v14 = vpop.permute.xlu0 %4229  ;;  %v4293_v24 = vmul.f32 %v9468_v58, %v4282_v5 }
 0xc2e   : > { %v4244_v52 = vmul.f32 %v9454_v11, %v4230_v14 }
 0xc2f   : > { %v4297_v31 = vadd.f32 %v4293_v24, %v4273_v27 }
 0xc30   : > { %7817 = vset.pattern.permute.xlu2 %v7989_v30  ;;  %v4248_v22 = vadd.f32 %v4244_v52, %v4224_v49 }
 0xc31   : > { %v4354_v10 = vpop.permute.xlu2 %4353  ;;  %7818 = vset.pattern.permute.xlu1 %v7988_v35 }
 0xc32   : > { %v4365_v53 = vmul.f32 %v9489_v51, %v4354_v10  ;;  %v4272_v0 = vadd.f32 %v4268_v60, %v4248_v22 }
 0xc34   : > { %v4296_v55 = vadd.f32 %v4292_v6, %v4272_v0 }
 0xc36   : > { %v4306_v9 = vpop.permute.xlu1 %4305 }
 0xc37   : > { %v4330_v28 = vpop.permute.xlu0 %4329  ;;  %v4317_v48 = vmul.f32 %v9474_v29, %v4306_v9 }
 0xc38   : > { %v4341_v39 = vmul.f32 %v9482_v38, %v4330_v28 }
 0xc39   : > { %v4321_v19 = vadd.f32 %v4317_v48, %v4297_v31 }
 0xc3a   : > { %v4402_v47 = vpop.permute.xlu2 %4401 }
 0xc3b   : > { %v4345_v40 = vadd.f32 %v4341_v39, %v4321_v19  ;;  %v4413_v7 = vmul.f32 %v9503_v37, %v4402_v47 }
 0xc3d   : > { %v4369_v62 = vadd.f32 %v4365_v53, %v4345_v40 }
 0xc3f   : > { %v4378_v50 = vpop.permute.xlu1 %4377 }
 0xc40   : > { %v4302_v54 = vpop.permute.xlu0 %4301  ;;  %v4389_v59 = vmul.f32 %v9495_v56, %v4378_v50 }
 0xc41   : > { %v4316_v12 = vmul.f32 %v9474_v29, %v4302_v54 }
 0xc42   : > { %v4393_v1 = vadd.f32 %v4389_v59, %v4369_v62 }
 0xc43   : > { %v4320_v14 = vadd.f32 %v4316_v12, %v4296_v55 }
 0xc44   : > { %v4374_v20 = vpop.permute.xlu2 %4373  ;;  %v4417_v16 = vadd.f32 %v4413_v7, %v4393_v1 }
 0xc45   : > { %v4388_v25 = vmul.f32 %v9495_v56, %v4374_v20 }
 0xc46   : > { %v9510_v17 = vadd.f32 %v4417_v16, %v8956_v57 }
 0xc48   : > { %v4427_v28 = vsel %vm2797_vm3, %v9510_v17, -inf }
 0xc49   : > { %v4326_v5 = vpop.permute.xlu1 %4325 }
 0xc4a   : > { %v4350_v8 = vpop.permute.xlu0 %4349  ;;  %v4340_v63 = vmul.f32 %v9482_v38, %v4326_v5 }
 0xc4b   : > { %v4364_v21 = vmul.f32 %v9489_v51, %v4350_v8 }
 0xc4c   : > { %v4344_v10 = vadd.f32 %v4340_v63, %v4320_v14 }
 0xc4d   : > { %v4398_v2 = vpop.permute.xlu2 %4397 }
 0xc4e   : > { %v4368_v24 = vadd.f32 %v4364_v21, %v4344_v10  ;;  %v4412_v9 = vmul.f32 %v9503_v37, %v4398_v2 }
 0xc50   : > { %v4392_v27 = vadd.f32 %v4388_v25, %v4368_v24 }
 0xc51   : > { %4428 = vmax.xlane.f32.xlu2 %v4427_v28 }
 0xc52   : > { %v4416_v48 = vadd.f32 %v4412_v9, %v4392_v27 }
 0xc53   : > { %v4242_v31 = vpop.permute.xlu1 %4241  ;;  %v4314_v54 = vpop.permute.xlu0 %4313 }
 0xc54   : > { %v9517_v32 = vadd.f32 %v4416_v48, %v8956_v57  ;;  %v4247_v0 = vmul.f32 %v9454_v11, %v4242_v31  ;;  %v4319_v2 = vmul.f32 %v9474_v29, %v4314_v54 }
 0xc56   : > { %v4424_v19 = vsel %vm2797_vm3, %v9517_v32, -inf  ;;  %v4218_v52 = vpop.permute.xlu2 %4217 }
 0xc57   : > { %4425 = vmax.xlane.f32.xlu1 %v4424_v19  ;;  %v4223_v53 = vmul.f32 %v9447_v18, %v4218_v52 }
 0xc59   : > { %v4227_v59 = vadd.f32 %v4223_v53, %v9419_v3 }
 0xc5b   : > { %v4251_v6 = vadd.f32 %v4247_v0, %v4227_v59  ;;  %v4310_v21 = vpop.permute.xlu0 %4309 }
 0xc5c   : > { %v4266_v47 = vpop.permute.xlu1 %4265  ;;  %v4318_v28 = vmul.f32 %v9474_v29, %v4310_v21 }
 0xc5d   : > { %v4271_v1 = vmul.f32 %v9462_v23, %v4266_v47 }
 0xc5f   : > { %v4290_v49 = vpop.permute.xlu2 %4289  ;;  %v4275_v7 = vadd.f32 %v4271_v1, %v4251_v6 }
 0xc60   : > { %v4295_v12 = vmul.f32 %v9468_v58, %v4290_v49 }
 0xc62   : > { %v4299_v14 = vadd.f32 %v4295_v12, %v4275_v7 }
 0xc64   : > { %v4323_v27 = vadd.f32 %v4319_v2, %v4299_v14 }
 0xc66   : > { %v4213_v39 = vpop.permute.xlu1 %4212 }
 0xc67   : > { %v4222_v20 = vmul.f32 %v9447_v18, %v4213_v39 }
 0xc68   : > { %v4238_v50 = vpop.permute.xlu2 %4237 }
 0xc69   : > { %4817 = vrot.lane.b32.xlu2 %v9361_v41, %s10560_s26  ;;  %v4226_v55 = vadd.f32 %v4222_v20, %v9423_v4  ;;  %v4246_v16 = vmul.f32 %v9454_v11, %v4238_v50  ;;  %v4358_v50 = vpop.permute.xlu0 %4357 }
 0xc6a   : > { %v4366_v59 = vmul.f32 %v9489_v51, %v4358_v50 }
 0xc6b   : > { %v4250_v3 = vadd.f32 %v4246_v16, %v4226_v55 }
 0xc6f   : > { %v4262_v40 = vpop.permute.xlu1 %4261 }
 0xc70   : > { %4670 = vrot.lane.b32.xlu1 %v9361_v41, %s10561_s27  ;;  %v4270_v5 = vmul.f32 %v9462_v23, %v4262_v40 }
 0xc71   : > { %v4338_v60 = vpop.permute.xlu2 %4337 }
 0xc72   : > { %v4274_v25 = vadd.f32 %v4270_v5, %v4250_v3  ;;  %v4343_v24 = vmul.f32 %v9482_v38, %v4338_v60 }
 0xc74   : > { %v4347_v48 = vadd.f32 %v4343_v24, %v4323_v27 }
 0xc78   : > { %v4286_v22 = vpop.permute.xlu1 %4285 }
 0xc79   : > { %v4294_v8 = vmul.f32 %v9468_v58, %v4286_v22  ;;  %v4334_v10 = vpop.permute.xlu2 %4333 }
 0xc7a   : > { %v4342_v39 = vmul.f32 %v9482_v38, %v4334_v10 }
 0xc7b   : > { %v4298_v9 = vadd.f32 %v4294_v8, %v4274_v25 }
 0xc7d   : > { %v4322_v19 = vadd.f32 %v4318_v28, %v4298_v9 }
 0xc7f   : > { %v4346_v53 = vadd.f32 %v4342_v39, %v4322_v19 }
 0xc81   : > { %v4362_v62 = vpop.permute.xlu1 %4361  ;;  %v4370_v0 = vadd.f32 %v4366_v59, %v4346_v53 }
 0xc82   : > { %v4367_v4 = vmul.f32 %v9489_v51, %v4362_v62  ;;  %v4382_v22 = vpop.permute.xlu2 %4381 }
 0xc83   : > { %v4390_v60 = vmul.f32 %v9495_v56, %v4382_v22 }
 0xc84   : > { %v4371_v47 = vadd.f32 %v4367_v4, %v4347_v48 }
 0xc85   : > { %v4394_v6 = vadd.f32 %v4390_v60, %v4370_v0 }
 0xc8a   : > { %v4386_v63 = vpop.permute.xlu1 %4385 }
 0xc8b   : > { %v4391_v31 = vmul.f32 %v9495_v56, %v4386_v63 }
 0xc8d   : > { %v4395_v49 = vadd.f32 %v4391_v31, %v4371_v47 }
 0xc93   : > { %v4410_v52 = vpop.permute.xlu1 %4409 }
 0xc94   : > { %v4415_v40 = vmul.f32 %v9503_v37, %v4410_v52 }
 0xc96   : > { %v4419_v54 = vadd.f32 %v4415_v40, %v4395_v49 }
 0xc98   : > { %v4423_v62 = vadd.f32 %v4419_v54, %v8956_v57 }
 0xc9a   : > { %v4433_v1 = vsel %vm2797_vm3, %v4423_v62, -inf }
 0xc9b   : > { %4434 = vmax.xlane.f32.xlu0 %v4433_v1  ;;  %v4406_v20 = vpop.permute.xlu1 %4405 }
 0xc9c   : > { %v4414_v7 = vmul.f32 %v9503_v37, %v4406_v20 }
 0xc9e   : > { %v4418_v12 = vadd.f32 %v4414_v7, %v4394_v6 }
 0xca0   : > { %v4422_v55 = vadd.f32 %v4418_v12, %v8956_v57 }
 0xca2   : > { %v4430_v16 = vsel %vm2797_vm3, %v4422_v55, -inf }
 0xca3   : > { %4431 = vmax.xlane.f32.xlu2 %v4430_v16 }
 0xcaf   : > { %4719 = vrot.lane.b32.xlu0 %v9361_v41, %s10562_s30 }
 0xcc4   : > { %v4429_v5 = vpop.xlane.xlu2 %4428 }
 0xcc5   : > { %v4437_v14 = vsub.f32 %v9510_v17, %v4429_v5 }
 0xcc7   : > { %v4442_v3 = vmul.f32 1.442695, %v4437_v14 }
 0xcc9   : > { %7898 = vpow2.f32 %v4442_v3 }
 0xcca   : > { %v4426_v8 = vpop.xlane.xlu1 %4425 }
 0xccb   : > { %v4436_v63 = vsub.f32 %v9517_v32, %v4426_v8 }
 0xccc   : > { %v4818_v9 = vpop.permute.xlu2 %4817 }
 0xccd   : > { %v4440_v21 = vmul.f32 1.442695, %v4436_v63 }
 0xccf   : > { %v7899_v10 = vpop.eup %7898  ;;  %7900 = vpow2.f32 %v4440_v21 }
 0xcd0   : > { %v4451_v2 = vsel %vm2797_vm3, %v7899_v10, 0.0 }
 0xcd1   : > { %4452 = vadd.xlane.f32.xlu1 %v4451_v2 }
 0xcd5   : > { %v7901_v25 = vpop.eup %7900 }
 0xcd6   : > { %v4448_v24 = vsel %vm2797_vm3, %v7901_v25, 0.0 }
 0xcd7   : > { %4449 = vadd.xlane.f32.xlu2 %v4448_v24 }
 0xce2   : > { %v4671_v27 = vpop.permute.xlu1 %4670 }
 0xce3   : > { %4691 = vmatpush.msra.mxu1 %v4671_v27 }
 0xd0e   : > { %v4435_v4 = vpop.xlane.xlu0 %4434 }
 0xd0f   : > { %v4439_v17 = vsub.f32 %v4423_v62, %v4435_v4 }
 0xd11   : > { %v4446_v28 = vmul.f32 1.442695, %v4439_v17 }
 0xd13   : > { %7902 = vpow2.f32 %v4446_v28 }
 0xd16   : > { %v4432_v48 = vpop.xlane.xlu2 %4431 }
 0xd17   : > { %v4438_v31 = vsub.f32 %v4422_v55, %v4432_v48 }
 0xd19   : > { %v9555_v32 = vpop.eup %7902  ;;  %v4444_v19 = vmul.f32 1.442695, %v4438_v31 }
 0xd1a   : > { %v4457_v47 = vsel %vm2797_vm3, %v9555_v32, 0.0 }
 0xd1b   : > { %7904 = vpow2.f32 %v4444_v19  ;;  %4458 = vadd.xlane.f32.xlu0 %v4457_v47 }
 0xd21   : > { %v9559_v52 = vpop.eup %7904  ;;  %v4720_v39 = vpop.permute.xlu0 %4719 }
 0xd22   : > { %4740 = vmatpush.msra.mxu3 %v4720_v39  ;;  %v4454_v49 = vsel %vm2797_vm3, %v9559_v52, 0.0 }
 0xd23   : > { %4455 = vadd.xlane.f32.xlu1 %v4454_v49 }
 0xd24   : > { %4838 = vmatpush.msrb.mxu3 %v4818_v9 }
 0xd44   : > { %v4453_v40 = vpop.xlane.xlu1 %4452 }
 0xd45   : > { %7906 = vrcp.f32 %v4453_v40 }
 0xd4a   : > { %v4450_v50 = vpop.xlane.xlu2 %4449 }
 0xd4b   : > { %v7907_v22 = vpop.eup %7906  ;;  %7908 = vrcp.f32 %v4450_v50 }
 0xd4c   : > { %v4465_v53 = vmul.f32 %v7907_v22, %v7899_v10 }
 0xd4e   : > { %7361 = vmatmul.msk.f32.vlgmr.msra.gmra.mxu3 %vm2797_vm3, %v4465_v53  ;;  %v4501_v54 = vmul.f32 %v9462_v23, %v4465_v53  ;;  %v4485_v59 = vmul.f32 %v9454_v11, %v4465_v53  ;;  %v4469_v60 = vmul.f32 %v9447_v18, %v4465_v53  ;;  %v4549_v7 = vmul.f32 %v9482_v38, %v4465_v53 }
 0xd4f   : > { %v4533_v12 = vmul.f32 %v9474_v29, %v4465_v53  ;;  %v4517_v55 = vmul.f32 %v9468_v58, %v4465_v53  ;;  %v4565_v3 = vmul.f32 %v9489_v51, %v4465_v53  ;;  %v4581_v24 = vmul.f32 %v9495_v56, %v4465_v53 }
 0xd50   : > { %v4507_v62 = vsel %vm2797_vm3, %v4501_v54, 0.0  ;;  %v4491_v0 = vsel %vm2797_vm3, %v4485_v59, 0.0  ;;  %v4475_v1 = vsel %vm2797_vm3, %v4469_v60, 0.0  ;;  %v4555_v16 = vsel %vm2797_vm3, %v4549_v7, 0.0 }
 0xd51   : > { %v7909_v20 = vpop.eup %7908  ;;  %4508 = vadd.xlane.f32.xlu1 %v4507_v62  ;;  %4492 = vadd.xlane.f32.xlu0 %v4491_v0  ;;  %v4539_v5 = vsel %vm2797_vm3, %v4533_v12, 0.0  ;;  %v4523_v14 = vsel %vm2797_vm3, %v4517_v55, 0.0  ;;  %v4571_v21 = vsel %vm2797_vm3, %v4565_v3, 0.0  ;;  %v4587_v4 = vsel %vm2797_vm3, %v4581_v24, 0.0 }
 0xd52   : > { %v4464_v6 = vmul.f32 %v7909_v20, %v7901_v25  ;;  %4476 = vadd.xlane.f32.xlu2 %v4475_v1  ;;  %v4597_v48 = vmul.f32 %v9503_v37, %v4465_v53 }
 0xd54   : > { %7358 = vmatmul.msk.f32.vlgmr.msra.gmra.mxu1 %vm2797_vm3, %v4464_v6  ;;  %v4484_v8 = vmul.f32 %v9454_v11, %v4464_v6  ;;  %v4468_v63 = vmul.f32 %v9447_v18, %v4464_v6  ;;  %v4516_v25 = vmul.f32 %v9468_v58, %v4464_v6  ;;  %v4500_v27 = vmul.f32 %v9462_v23, %v4464_v6 }
 0xd55   : > { %v4580_v28 = vmul.f32 %v9495_v56, %v4464_v6  ;;  %v4603_v19 = vsel %vm2797_vm3, %v4597_v48, 0.0  ;;  %v4596_v47 = vmul.f32 %v9503_v37, %v4464_v6  ;;  %v4532_v39 = vmul.f32 %v9474_v29, %v4464_v6 }
 0xd56   : > { %v4488_v10 = vsel %vm2797_vm3, %v4484_v8, 0.0  ;;  %v4472_v2 = vsel %vm2797_vm3, %v4468_v63, 0.0  ;;  %v4520_v9 = vsel %vm2797_vm3, %v4516_v25, 0.0  ;;  %v4504_v17 = vsel %vm2797_vm3, %v4500_v27, 0.0 }
 0xd57   : > { %v4584_v31 = vsel %vm2797_vm3, %v4580_v28, 0.0  ;;  %v4600_v49 = vsel %vm2797_vm3, %v4596_v47, 0.0  ;;  %v4536_v40 = vsel %vm2797_vm3, %v4532_v39, 0.0  ;;  %v4548_v50 = vmul.f32 %v9482_v38, %v4464_v6 }
 0xd58   : > { %v4564_v53 = vmul.f32 %v9489_v51, %v4464_v6 }
 0xd59   : > { %4556 = vadd.xlane.f32.xlu1 %v4555_v16  ;;  %4540 = vadd.xlane.f32.xlu0 %v4539_v5  ;;  %v4552_v22 = vsel %vm2797_vm3, %v4548_v50, 0.0 }
 0xd5a   : > { %4524 = vadd.xlane.f32.xlu2 %v4523_v14  ;;  %v4568_v54 = vsel %vm2797_vm3, %v4564_v53, 0.0 }
 0xd61   : > { %4572 = vadd.xlane.f32.xlu1 %v4571_v21  ;;  %4489 = vadd.xlane.f32.xlu0 %v4488_v10 }
 0xd62   : > { %4473 = vadd.xlane.f32.xlu2 %v4472_v2 }
 0xd69   : > { %4521 = vadd.xlane.f32.xlu1 %v4520_v9  ;;  %4588 = vadd.xlane.f32.xlu0 %v4587_v4 }
 0xd6a   : > { %4505 = vadd.xlane.f32.xlu2 %v4504_v17 }
 0xd71   : > { %4585 = vadd.xlane.f32.xlu1 %v4584_v31 }
 0xd72   : > { %4604 = vadd.xlane.f32.xlu2 %v4603_v19 }
 0xd79   : > { %4601 = vadd.xlane.f32.xlu1 %v4600_v49 }
 0xd7a   : > { %4537 = vadd.xlane.f32.xlu2 %v4536_v40 }
 0xd82   : > { %4553 = vadd.xlane.f32.xlu2 %v4552_v22  ;;  %v7334_v22 = vld [vmem:[%s10552_s14 + $0x10] sm:$0xff] }
 0xd8a   : > { %4569 = vadd.xlane.f32.xlu2 %v4568_v54 }
 0xd8e   : > { %v4459_v59 = vpop.xlane.xlu0 %4458 }
 0xd8f   : > { %7910 = vrcp.f32 %v4459_v59 }
 0xd95   : > { %v7911_v60 = vpop.eup %7910 }
 0xd96   : > { %v4467_v62 = vmul.f32 %v7911_v60, %v9555_v32  ;;  %v4456_v0 = vpop.xlane.xlu1 %4455 }
 0xd97   : > { %7912 = vrcp.f32 %v4456_v0 }
 0xd98   : > { %7367 = vmatmul.msk.f32.vlgmr.msrb.gmra.mxu3 %vm2797_vm3, %v4467_v62  ;;  %v4487_v1 = vmul.f32 %v9454_v11, %v4467_v62  ;;  %v4471_v20 = vmul.f32 %v9447_v18, %v4467_v62  ;;  %v4551_v7 = vmul.f32 %v9482_v38, %v4467_v62  ;;  %v4503_v5 = vmul.f32 %v9462_v23, %v4467_v62 }
 0xd99   : > { %v4535_v14 = vmul.f32 %v9474_v29, %v4467_v62  ;;  %v4519_v10 = vmul.f32 %v9468_v58, %v4467_v62  ;;  %v4567_v2 = vmul.f32 %v9489_v51, %v4467_v62  ;;  %v4599_v39 = vmul.f32 %v9503_v37, %v4467_v62 }
 0xd9a   : > { %v4497_v6 = vsel %vm2797_vm3, %v4487_v1, 0.0  ;;  %v4481_v12 = vsel %vm2797_vm3, %v4471_v20, 0.0  ;;  %v4561_v55 = vsel %vm2797_vm3, %v4551_v7, 0.0  ;;  %v4513_v8 = vsel %vm2797_vm3, %v4503_v5, 0.0 }
 0xd9b   : > { %4498 = vadd.xlane.f32.xlu1 %v4497_v6  ;;  %4482 = vadd.xlane.f32.xlu0 %v4481_v12  ;;  %v4545_v63 = vsel %vm2797_vm3, %v4535_v14, 0.0  ;;  %v4529_v25 = vsel %vm2797_vm3, %v4519_v10, 0.0  ;;  %v4577_v24 = vsel %vm2797_vm3, %v4567_v2, 0.0  ;;  %v4609_v49 = vsel %vm2797_vm3, %v4599_v39, 0.0 }
 0xd9c   : > { %4562 = vadd.xlane.f32.xlu2 %v4561_v55 }
 0xd9d   : > { %v7913_v32 = vpop.eup %7912 }
 0xd9e   : > { %v9610_v16 = vmul.f32 %v7913_v32, %v9559_v52 }
 0xda0   : > { %v4470_v3 = vmul.f32 %v9447_v18, %v9610_v16  ;;  %v4518_v52 = vmul.f32 %v9468_v58, %v9610_v16  ;;  %v4534_v27 = vmul.f32 %v9474_v29, %v9610_v16  ;;  %v4486_v9 = vmul.f32 %v9454_v11, %v9610_v16 }
 0xda1   : > { %v4502_v58 = vmul.f32 %v9462_v23, %v9610_v16  ;;  %v4566_v48 = vmul.f32 %v9489_v51, %v9610_v16  ;;  %v4550_v29 = vmul.f32 %v9482_v38, %v9610_v16  ;;  %v4583_v11 = vmul.f32 %v9495_v56, %v4467_v62  ;;  %v7335_v38 = vld [vmem:[%s10552_s14 + $0x18] sm:$0x1]  ;;  %s10572_s14 = sld [smem:[#allocation13_spill]] }
 0xda2   : > { %v4478_v21 = vsel %vm2797_vm3, %v4470_v3, 0.0  ;;  %v4526_v18 = vsel %vm2797_vm3, %v4518_v52, 0.0  ;;  %v4542_v4 = vsel %vm2797_vm3, %v4534_v27, 0.0  ;;  %v4494_v17 = vsel %vm2797_vm3, %v4486_v9, 0.0  ;;  %7359 = vmatpush.msk.msra.mxu2 %vm3447_vm4, %v7335_v38  ;;  %7356 = vmatpush.msk.msrb.mxu0 %vm3447_vm4, %v7335_v38 }
 0xda3   : > { %4514 = vadd.xlane.f32.xlu1 %v4513_v8  ;;  %4546 = vadd.xlane.f32.xlu0 %v4545_v63  ;;  %v4510_v28 = vsel %vm2797_vm3, %v4502_v58, 0.0  ;;  %v4574_v31 = vsel %vm2797_vm3, %v4566_v48, 0.0  ;;  %v4558_v23 = vsel %vm2797_vm3, %v4550_v29, 0.0  ;;  %v4593_v19 = vsel %vm2797_vm3, %v4583_v11, 0.0 }
 0xda4   : > { %4479 = vadd.xlane.f32.xlu2 %v4478_v21  ;;  %v4582_v47 = vmul.f32 %v9495_v56, %v9610_v16  ;;  %v4598_v56 = vmul.f32 %v9503_v37, %v9610_v16  ;;  %4714 = vmatpush.msra.mxu2 %v7334_v22 }
 0xda5   : > { %4665 = vmatpush.msrb.mxu0 %v7334_v22 }
 0xda6   : > { %v4590_v51 = vsel %vm2797_vm3, %v4582_v47, 0.0  ;;  %7365 = vmatpush.msk.msrb.mxu2 %vm3447_vm4, %v7335_v38  ;;  %v4606_v53 = vsel %vm2797_vm3, %v4598_v56, 0.0 }
 0xda7   : > { %7362 = vmatpush.msk.msra.mxu0 %vm3447_vm4, %v7335_v38 }
 0xda8   : > { %4812 = vmatpush.msrb.mxu2 %v7334_v22 }
 0xda9   : > { %4763 = vmatpush.msra.mxu0 %v7334_v22 }
 0xdab   : > { %4530 = vadd.xlane.f32.xlu1 %v4529_v25  ;;  %4527 = vadd.xlane.f32.xlu0 %v4526_v18 }
 0xdac   : > { %4578 = vadd.xlane.f32.xlu2 %v4577_v24 }
 0xdb3   : > { %4543 = vadd.xlane.f32.xlu0 %v4542_v4  ;;  %4495 = vadd.xlane.f32.xlu1 %v4494_v17 }
 0xdb4   : > { %4511 = vadd.xlane.f32.xlu2 %v4510_v28 }
 0xdbb   : > { %4575 = vadd.xlane.f32.xlu0 %v4574_v31  ;;  %4559 = vadd.xlane.f32.xlu1 %v4558_v23 }
 0xdbc   : > { %4594 = vadd.xlane.f32.xlu2 %v4593_v19 }
 0xdc3   : > { %4591 = vadd.xlane.f32.xlu0 %v4590_v51 }
 0xdc4   : > { %4610 = vadd.xlane.f32.xlu2 %v4609_v49  ;;  %v4493_v40 = vpop.xlane.xlu0 %4492  ;;  %v4509_v54 = vpop.xlane.xlu1 %4508 }
 0xdc5   : > { %v4477_v50 = vpop.xlane.xlu2 %4476 }
 0xdc6   : > { %v4613_v1 = vsel %vm3404_vm5, %v4477_v50, %v4493_v40 }
 0xdc7   : > { %v4617_v20 = vsel %vm3409_vm6, %v4613_v1, %v4509_v54 }
 0xdcb   : > { %4607 = vadd.xlane.f32.xlu0 %v4606_v53 }
 0xdcc   : > { %v4541_v60 = vpop.xlane.xlu0 %4540  ;;  %v4557_v37 = vpop.xlane.xlu1 %4556 }
 0xdcd   : > { %v4525_v59 = vpop.xlane.xlu2 %4524 }
 0xdce   : > { %v4621_v7 = vsel %vm3414_vm7, %v4617_v20, %v4525_v59 }
 0xdcf   : > { %v4625_v12 = vsel %vm3419_vm8, %v4621_v7, %v4541_v60 }
 0xdd0   : > { %v4629_v5 = vsel %vm3424_vm9, %v4625_v12, %v4557_v37 }
 0xdd4   : > { %v4490_v0 = vpop.xlane.xlu0 %4489  ;;  %v4573_v55 = vpop.xlane.xlu1 %4572 }
 0xdd5   : > { %v4474_v62 = vpop.xlane.xlu2 %4473  ;;  %v4633_v14 = vsel %vm3429_vm10, %v4629_v5, %v4573_v55 }
 0xdd6   : > { %v4612_v2 = vsel %vm3404_vm5, %v4474_v62, %v4490_v0 }
 0xddc   : > { %4768 = vrot.lane.b32.xlu2 %v9361_v41, %s10563_s5  ;;  %v4589_v32 = vpop.xlane.xlu0 %4588  ;;  %v4522_v21 = vpop.xlane.xlu1 %4521  ;;  %s771_s5 = scalar_lea.vmem %s10569_s2, %s8198_s9  ;;  %s8004_s2 = smov 32  }
 0xddd   : > { %v4506_v6 = vpop.xlane.xlu2 %4505  ;;  %v4637_v3 = vsel %vm3434_vm11, %v4633_v14, %v4589_v32 }
 0xdde   : > { %v4616_v25 = vsel %vm3409_vm6, %v4612_v2, %v4506_v6  ;;  %v4693_v2 = vpop.f32.mrf.mxu1 }
 0xddf   : > { %v4620_v18 = vsel %vm3414_vm7, %v4616_v25, %v4522_v21 }
 0xde4   : > { %v4586_v10 = vpop.xlane.xlu1 %4585 }
 0xde5   : > { %v4605_v8 = vpop.xlane.xlu2 %4604 }
 0xde6   : > { %v4641_v63 = vsel %vm2797_vm3, %v4637_v3, %v4605_v8 }
 0xde7   : > { %7360 = vmatmul.msk.f32.vlgmr.msra.gmra.mxu2 %vm3443_vm12, %v4641_v63 }
 0xdec   : > { %v4602_v4 = vpop.xlane.xlu1 %4601 }
 0xded   : > { %v4538_v41 = vpop.xlane.xlu2 %4537 }
 0xdee   : > { %v4624_v24 = vsel %vm3419_vm8, %v4620_v18, %v4538_v41  ;;  %v4742_v41 = vpop.f32.mrf.mxu3 }
 0xdf5   : > { %v4554_v52 = vpop.xlane.xlu2 %4553 }
 0xdf6   : > { %v4628_v27 = vsel %vm3424_vm9, %v4624_v24, %v4554_v52 }
 0xdfd   : > { %v4570_v9 = vpop.xlane.xlu2 %4569 }
 0xdfe   : > { %v4632_v58 = vsel %vm3429_vm10, %v4628_v27, %v4570_v9 }
 0xdff   : > { %v4636_v17 = vsel %vm3434_vm11, %v4632_v58, %v4586_v10 }
 0xe00   : > { %v4640_v28 = vsel %vm2797_vm3, %v4636_v17, %v4602_v4 }
 0xe01   : > { %7357 = vmatmul.msk.f32.vlgmr.msrb.gmra.mxu0 %vm3443_vm12, %v4640_v28  ;;  %v7370_v28 = vld [vmem:[%s10553_s11 + $0x30] sm:$0xff] }
 0xe0e   : > { %v4483_v48 = vpop.xlane.xlu0 %4482  ;;  %v4499_v11 = vpop.xlane.xlu1 %4498 }
 0xe0f   : > { %v4563_v29 = vpop.xlane.xlu2 %4562  ;;  %v4615_v40 = vsel %vm3404_vm5, %v4483_v48, %v4499_v11  ;;  %v7369_v48 = vld [vmem:[%s10553_s11 + $0x28] sm:$0xff] }
 0xe16   : > { %v4547_v31 = vpop.xlane.xlu0 %4546  ;;  %v4515_v19 = vpop.xlane.xlu1 %4514 }
 0xe17   : > { %v4480_v23 = vpop.xlane.xlu2 %4479  ;;  %v4619_v50 = vsel %vm3409_vm6, %v4615_v40, %v4515_v19 }
 0xe1b   : > { %v4840_v4 = vpop.f32.mrf.mxu3 }
 0xe1e   : > { %v4528_v47 = vpop.xlane.xlu0 %4527  ;;  %v4531_v38 = vpop.xlane.xlu1 %4530 }
 0xe1f   : > { %v4579_v39 = vpop.xlane.xlu2 %4578  ;;  %v4623_v56 = vsel %vm3414_vm7, %v4619_v50, %v4531_v38  ;;  %v7860_v38 = vld [vmem:[%s10554_s12 + $0x1] ss:$0 sm:$0xff]  ;;  %s10573_s12 = smov 120  }
 0xe20   : > { %v4627_v59 = vsel %vm3419_vm8, %v4623_v56, %v4547_v31 }
 0xe21   : > { %v4631_v37 = vsel %vm3424_vm9, %v4627_v59, %v4563_v29  ;;  %v7368_v29 = vld [vmem:[%s10553_s11 + $0x20] sm:$0xff] }
 0xe22   : > { %v4635_v0 = vsel %vm3429_vm10, %v4631_v37, %v4579_v39  ;;  %v7381_v37 = vld [vmem:[%s10478_s17 + $0x88] sm:$0xff] }
 0xe26   : > { %v4544_v51 = vpop.xlane.xlu0 %4543  ;;  %v4496_v22 = vpop.xlane.xlu1 %4495 }
 0xe27   : > { %v4512_v49 = vpop.xlane.xlu2 %4511  ;;  %v4614_v60 = vsel %vm3404_vm5, %v4480_v23, %v4496_v22 }
 0xe28   : > { %v4618_v62 = vsel %vm3409_vm6, %v4614_v60, %v4512_v49  ;;  %v7383_v60 = vld [vmem:[%s10478_s17 + $0x98] sm:$0xff] }
 0xe29   : > { %v4622_v1 = vsel %vm3414_vm7, %v4618_v62, %v4528_v47  ;;  %v7379_v62 = vld [vmem:[%s10478_s17 + $0x78] sm:$0xff] }
 0xe2a   : > { %v4626_v32 = vsel %vm3419_vm8, %v4622_v1, %v4544_v51  ;;  %4982 = vmatpush.msra.mxu2 %v7379_v62  ;;  %v7378_v1 = vld [vmem:[%s10478_s17 + $0x70] sm:$0xff]  ;;  %v7393_v62 = vld [vmem:[%s10480_s19 + $0xc8] sm:$0xff] }
 0xe2c   : > { %4983 = vmatpush.msra.mxu2 %v7378_v1  ;;  %v7408_v1 = vld [vmem:[%s10480_s19 + $0x140] sm:$0xff] }
 0xe2e   : > { %v4576_v53 = vpop.xlane.xlu0 %4575  ;;  %v4560_v6 = vpop.xlane.xlu1 %4559 }
 0xe2f   : > { %v4595_v54 = vpop.xlane.xlu2 %4594  ;;  %v4630_v5 = vsel %vm3424_vm9, %v4626_v32, %v4560_v6  ;;  %v7377_v6 = vld [vmem:[%s10478_s17 + $0x68] sm:$0xff] }
 0xe30   : > { %v4639_v7 = vsel %vm3434_vm11, %v4635_v0, %v4595_v54  ;;  %v4634_v14 = vsel %vm3429_vm10, %v4630_v5, %v4576_v53  ;;  %v7387_v0 = vld [vmem:[%s10478_s17 + $0xb8] sm:$0xff]  ;;  %4984 = vmatpush.msra.mxu2 %v7377_v6  ;;  %v7384_v5 = vld [vmem:[%s10478_s17 + $0xa0] sm:$0xff] }
 0xe31   : > { %5007 = vmatpush.msra.mxu3 %v7387_v0  ;;  %v7392_v0 = vld [vmem:[%s10480_s19 + $0xc0] sm:$0xff] }
 0xe36   : > { %v4592_v20 = vpop.xlane.xlu0 %4591 }
 0xe37   : > { %v4611_v12 = vpop.xlane.xlu2 %4610  ;;  %v4638_v3 = vsel %vm3434_vm11, %v4634_v14, %v4592_v20  ;;  %v7386_v20 = vld [vmem:[%s10478_s17 + $0xb0] sm:$0xff] }
 0xe38   : > { %v4643_v55 = vsel %vm2797_vm3, %v4639_v7, %v4611_v12  ;;  %v7380_v7 = vld [vmem:[%s10478_s17 + $0x80] sm:$0xff]  ;;  %5008 = vmatpush.msra.mxu3 %v7386_v20  ;;  %v7385_v12 = vld [vmem:[%s10478_s17 + $0xa8] sm:$0xff] }
 0xe39   : > { %7366 = vmatmul.msk.f32.vlgmr.msrb.gmra.mxu2 %vm3443_vm12, %v4643_v55  ;;  %v7376_v55 = vld [vmem:[%s10478_s17 + $0x60] sm:$0xff] }
 0xe3a   : > { %5009 = vmatpush.msra.mxu3 %v7385_v12  ;;  %4985 = vmatpush.msra.mxu2 %v7376_v55  ;;  %v7863_v12 = vld [vmem:[%s10555_s0 + $0x1] ss:$0 sm:$0xff] }
 0xe3c   : > { %5010 = vmatpush.msra.mxu3 %v7384_v5 }
 0xe3e   : > { %v4608_v8 = vpop.xlane.xlu0 %4607 }
 0xe3f   : > { %v4642_v63 = vsel %vm2797_vm3, %v4638_v3, %v4608_v8  ;;  %v4769_v21 = vpop.permute.xlu2 %4768 }
 0xe40   : > { %4789 = vmatpush.msrb.mxu1 %v4769_v21  ;;  %7363 = vmatmul.msk.f32.vlgmr.msra.gmra.mxu0 %vm3443_vm12, %v4642_v63 }
 0xe41   : > { %7364 = vmatmul.msk.f32.vlgmr.msrb.gmra.mxu1 %vm2797_vm3, %v9610_v16  ;;  %v7371_v16 = vld [vmem:[%s10553_s11 + $0x38] sm:$0xff] }
 0xe42   : > { %4883 = vmatpush.msrb.mxu0 %v7371_v16  ;;  %4959 = vmatpush.msra.mxu1 %v7383_v60  ;;  %v7394_v60 = vld [vmem:[%s10480_s19 + $0xd0] sm:$0xff] }
 0xe44   : > { %4884 = vmatpush.msrb.mxu0 %v7370_v28 }
 0xe46   : > { %4885 = vmatpush.msrb.mxu0 %v7369_v48  ;;  %v7407_v48 = vld [vmem:[%s10480_s19 + $0x138] sm:$0xff] }
 0xe48   : > { %4886 = vmatpush.msrb.mxu0 %v7368_v29  ;;  %v7406_v29 = vld [vmem:[%s10480_s19 + $0x130] sm:$0xff] }
 0xe4a   : > { %5062 = vmatpush.msra.mxu0 %v7407_v48  ;;  %v5163_v48 = vld [vmem:[%s771_s5] sm:$0x1]  ;;  %s10586_s5 = sshll.u32 %s8198_s9, 3 }
 0xe4c   : > { %5063 = vmatpush.msra.mxu0 %v7406_v29 }
 0xe6a   : > { %v4716_v10 = vpop.f32.mrf.mxu2 }
 0xe6b   : > { %v4743_v52 = vadd.f32 %v4742_v41, %v4716_v10 }
 0xe6d   : > { %4844 = vrot.lane.b32.xlu0 %v4743_v52, %s10564_s18  ;;  %s10576_s18 = sld [smem:[#allocation18_spill]] }
 0xe7e   : > { %v4667_v25 = vpop.f32.mrf.mxu0 }
 0xe7f   : > { %v4694_v18 = vadd.f32 %v4693_v2, %v4667_v25  ;;  %v7861_v2 = vld [vmem:[%s10476_s15 + $0x1] ss:$0 sm:$0xff] }
 0xebc   : > { %v4814_v58 = vpop.f32.mrf.mxu2 }
 0xebd   : > { %v4765_v24 = vpop.f32.mrf.mxu0  ;;  %v4841_v17 = vadd.f32 %v4840_v4, %v4814_v58 }
 0xebe   : > { %v4791_v27 = vpop.f32.mrf.mxu1 }
 0xebf   : > { %v4792_v9 = vadd.f32 %v4791_v27, %v4765_v24 }
 0xec1   : > { %4848 = vrot.lane.b32.xlu2 %v4792_v9, %s10565_s3 }
 0xec9   : > { %4852 = vrot.lane.b32.xlu2 %v4841_v17, %s10566_s6 }
 0xedf   : > { %v4845_v31 = vpop.permute.xlu0 %4844 }
 0xee0   : > { %v4855_v23 = vsel %vm2797_vm3, %v4694_v18, %v4845_v31  ;;  %v7862_v18 = vld [vmem:[%s10477_s16 + $0x1] ss:$0 sm:$0xff]  ;;  %v7399_v31 = vld [vmem:[%s10480_s19 + $0xf8] sm:$0xff] }
 0xf1b   : > { %v4849_v11 = vpop.permute.xlu2 %4848 }
 0xf1c   : > { %v4856_v19 = vsel %vm10567_vm15, %v4855_v23, %v4849_v11  ;;  %v7405_v11 = vld [vmem:[%s10480_s19 + $0x128] sm:$0xff]  ;;  %v7415_v23 = vld [vmem:[%s10480_s19 + $0x178] sm:$0xff] }
 0xf1d   : > { %5064 = vmatpush.msra.mxu0 %v7405_v11  ;;  %5110 = vmatpush.msrb.mxu2 %v7415_v23 }
 0xf23   : > { %v4853_v47 = vpop.permute.xlu2 %4852 }
 0xf24   : > { %v4857_v39 = vsel %vm10568_vm14, %v4856_v19, %v4853_v47  ;;  %v7404_v19 = vld [vmem:[%s10480_s19 + $0x120] sm:$0xff]  ;;  %v7398_v47 = vld [vmem:[%s10480_s19 + $0xf0] sm:$0xff]  ;;  %vm10571_vm14 = vcmask 130048  }
 0xf25   : > { %7373 = vmatmul.msk.f32.vlgmr.msrb.gmra.mxu0 %vm2766_vm2, %v4857_v39  ;;  %v7414_v39 = vld [vmem:[%s10480_s19 + $0x170] sm:$0xff] }
 0xf26   : > { %5065 = vmatpush.msra.mxu0 %v7404_v19  ;;  %5111 = vmatpush.msrb.mxu2 %v7414_v39  ;;  %v7426_v19 = vld [vmem:[%s10547_s28 + $0x58] sm:$0xff]  ;;  %v7424_v39 = vld [vmem:[%s10547_s28 + $0x48] sm:$0xff] }
 0xfa2   : > { %v4888_v51 = vpop.f32.mrf.mxu0 }
 0xfa3   : > { %v4889_v49 = vadd.f32 %v7860_v38, %v4888_v51  ;;  %v7403_v38 = vld [vmem:[%s10480_s19 + $0x118] sm:$0xff]  ;;  %v7397_v51 = vld [vmem:[%s10480_s19 + $0xe8] sm:$0xff] }
 0xfa4   : > { %5066 = vmatpush.msra.mxu0 %v7403_v38 }
 0xfa5   : > { %v4891_v40 = vadd.f32 %v4889_v49, %v9354_v26  ;;  %v7382_v26 = vld [vmem:[%s10478_s17 + $0x90] sm:$0xff]  ;;  %v7413_v49 = vld [vmem:[%s10480_s19 + $0x168] sm:$0xff] }
 0xfa6   : > { %4960 = vmatpush.msra.mxu1 %v7382_v26  ;;  %5112 = vmatpush.msrb.mxu2 %v7413_v49  ;;  %v7410_v26 = vld [vmem:[%s10480_s19 + $0x150] sm:$0xff] }
 0xfa7   : > { %v4896_v50 = vsel %vm2766_vm2, %v4891_v40, 0.0 }
 0xfa8   : > { %4897 = vadd.xlane.f32.xlu1 %v4896_v50  ;;  %4961 = vmatpush.msra.mxu1 %v7381_v37  ;;  %v7396_v50 = vld [vmem:[%s10480_s19 + $0xe0] sm:$0xff]  ;;  %v7409_v37 = vld [vmem:[%s10480_s19 + $0x148] sm:$0xff] }
 0xfaa   : > { %4962 = vmatpush.msra.mxu1 %v7380_v7 }
 0xfac   : > { %5085 = vmatpush.msrb.mxu1 %v7399_v31 }
 0xfae   : > { %5086 = vmatpush.msrb.mxu1 %v7398_v47  ;;  %v7425_v47 = vld [vmem:[%s10547_s28 + $0x50] sm:$0xff] }
 0xfb0   : > { %5087 = vmatpush.msrb.mxu1 %v7397_v51  ;;  %v7423_v51 = vld [vmem:[%s10547_s28 + $0x40] sm:$0xff] }
 0xfb2   : > { %5088 = vmatpush.msrb.mxu1 %v7396_v50 }
0x101b   : > { %v4898_v56 = vpop.xlane.xlu1 %4897 }
0x101c   : > { %v4899_v22 = vmul.f32 %v4898_v56, %v9182_v36  ;;  %v7412_v56 = vld [vmem:[%s10480_s19 + $0x160] sm:$0xff] }
0x101d   : > { %5113 = vmatpush.msrb.mxu2 %v7412_v56 }
0x101e   : > { %v4900_v53 = vsub.f32 %v4891_v40, %v4899_v22  ;;  %v7402_v40 = vld [vmem:[%s10480_s19 + $0x110] sm:$0xff]  ;;  %v7401_v22 = vld [vmem:[%s10480_s19 + $0x108] sm:$0xff] }
0x101f   : > { %5067 = vmatpush.msra.mxu0 %v7402_v40 }
0x1020   : > { %v4901_v54 = vmul.f32 %v4900_v53, %v4900_v53 }
0x1021   : > { %5068 = vmatpush.msra.mxu0 %v7401_v22 }
0x1022   : > { %v4902_v59 = vsel %vm2766_vm2, %v4901_v54, 0.0  ;;  %v7411_v54 = vld [vmem:[%s10480_s19 + $0x158] sm:$0xff] }
0x1023   : > { %4903 = vadd.xlane.f32.xlu2 %v4902_v59  ;;  %5114 = vmatpush.msrb.mxu2 %v7411_v54  ;;  %v7400_v59 = vld [vmem:[%s10480_s19 + $0x100] sm:$0xff] }
0x1024   : > { %5069 = vmatpush.msra.mxu0 %v7400_v59  ;;  %v5166_v59 = vld [vmem:[%s10572_s14] sm:$0x1]  ;;  %s10575_s14 = smov 96  }
0x1025   : > { %5115 = vmatpush.msrb.mxu2 %v7410_v26 }
0x1027   : > { %5116 = vmatpush.msrb.mxu2 %v7409_v37 }
0x1029   : > { %5117 = vmatpush.msrb.mxu2 %v7408_v1 }
0x1096   : > { %v4904_v32 = vpop.xlane.xlu2 %4903 }
0x1097   : > { %v4905_v14 = vmul.f32 %v4904_v32, %v9182_v36 }
0x1099   : > { %v4906_v3 = vadd.f32 1e-05, %v4905_v14 }
0x109b   : > { %7914 = vrsqrt.f32 %v4906_v3  ;;  %vm4913_vm1 = vweird.f32 %v4906_v3 }
0x10a1   : > { %v7915_v8 = vpop.eup %7914 }
0x10a2   : > { %v4908_v63 = vmul.f32 %v7915_v8, %v4906_v3  ;;  %vm4914_vm0 = vweird.f32 %v7915_v8 }
0x10a3   : > { %vm4915_vm15 = vmor %vm4913_vm1, %vm4914_vm0 }
0x10a4   : > { %v4909_v21 = vmul.f32 %v7915_v8, %v4908_v63 }
0x10a6   : > { %v4910_v41 = vmul.f32 0.5, %v4909_v21 }
0x10a8   : > { %v4911_v10 = vsub.f32 1.5, %v4910_v41 }
0x10aa   : > { %v4912_v52 = vmul.f32 %v7915_v8, %v4911_v10 }
0x10ac   : > { %v4916_v25 = vsel %vm4915_vm15, %v7915_v8, %v4912_v52 }
0x10ad   : > { %v4917_v24 = vmul.f32 %v4916_v25, %v4900_v53  ;;  %v7395_v53 = vld [vmem:[%s10480_s19 + $0xd8] sm:$0xff]  ;;  %v7864_v25 = vld [vmem:[%s10481_s20 + $0x1] ss:$0 sm:$0xff] }
0x10ae   : > { %5089 = vmatpush.msrb.mxu1 %v7395_v53 }
0x10af   : > { %v4921_v27 = vmul.f32 %v7861_v2, %v4917_v24 }
0x10b0   : > { %5090 = vmatpush.msrb.mxu1 %v7394_v60 }
0x10b1   : > { %v9770_v9 = vadd.f32 %v7862_v18, %v4921_v27 }
0x10b2   : > { %5091 = vmatpush.msrb.mxu1 %v7393_v62  ;;  %v7865_v62 = vld [vmem:[%s10482_s21 + $0x1] ss:$0 sm:$0xff] }
0x10b3   : > { %v4926_v58 = vmul.f32 %v8791_v15, %v9770_v9 }
0x10b4   : > { %5092 = vmatpush.msrb.mxu1 %v7392_v0 }
0x10b5   : > { %7389 = vmatmul.msk.f32.vlgmr.msra.gmra.mxu1 %vm2766_vm2, %v4926_v58  ;;  %v4942_v4 = vrot.slane %v4926_v58, 7  ;;  %v4990_v17 = vrot.slane %v4926_v58, 1 }
0x10b7   : > { %v4943_v16 = vmul.f32 %v9236_v61, %v4942_v4  ;;  %v4991_v28 = vmul.f32 %v9239_v13, %v4990_v17 }
0x10b9   : > { %7390 = vmatmul.msk.f32.vlgmr.msra.gmra.mxu2 %vm2766_vm2, %v4943_v16  ;;  %7391 = vmatmul.msk.f32.vlgmr.msra.gmra.mxu3 %vm2766_vm2, %v4991_v28  ;;  %v5165_v16 = vld [vmem:[%s10570_s23 + $0x8] sm:$0xff]  ;;  %v5164_v28 = vld [vmem:[%s10570_s23] sm:$0xff] }
0x10ba   : > { %5184 = vmatpush.msrb.mxu3 %v5165_v16 }
0x10bc   : > { %5185 = vmatpush.msrb.mxu3 %v5164_v28 }
0x10be   : > { %5218 = vmatpush.msra.mxu3 %v7426_v19 }
0x10c0   : > { %5219 = vmatpush.msra.mxu3 %v7425_v47 }
0x10c1   : > { %7422 = vmatmul.msk.f32.vlgmr.msrb.gmra.mxu3 %vm10571_vm14, %v5163_v48 }
0x10c2   : > { %5220 = vmatpush.msra.mxu3 %v7424_v39 }
0x10c4   : > { %5221 = vmatpush.msra.mxu3 %v7423_v51 }
0x1132   : > { %v4964_v20 = vpop.f32.mrf.mxu1 }
0x113c   : > { %v4987_v7 = vpop.f32.mrf.mxu2  ;;  %v5012_v55 = vpop.f32.mrf.mxu3 }
0x113d   : > { %v4988_v6 = vadd.f32 %v4987_v7, %v4964_v20  ;;  %v7866_v20 = vld [vmem:[%s10483_s22 + $0x1] ss:$0 sm:$0xff] }
0x113f   : > { %v5015_v32 = vadd.f32 %v5012_v55, %v4988_v6 }
0x1141   : > { %v5019_v5 = vadd.f32 %v7863_v12, %v5015_v32 }
0x1143   : > { %v5020_v14 = vmax.f32 %v5019_v5, 0.0  ;;  %v7867_v5 = vld [vmem:[%s10471_s10 + $0x2] ss:$0 sm:$0xff] }
0x1144   : > { %v5187_v60 = vpop.f32.mrf.mxu3 }
0x1145   : > { %v5021_v3 = vmul.f32 %v8791_v15, %v5020_v14  ;;  %v5188_v37 = vadd.f32 %v5187_v60, %v5166_v59 }
0x1147   : > { %v5049_v8 = vrot.slane %v5021_v3, 7  ;;  %v5097_v63 = vrot.slane %v5021_v3, 1  ;;  %7417 = vmatmul.msk.f32.vlgmr.msra.gmra.mxu0 %vm3853_vm13, %v5021_v3  ;;  %v5190_v6 = vperm.slane %v5188_v37, 0 }
0x1149   : > { %v5050_v21 = vmul.f32 %v9236_v61, %v5049_v8  ;;  %v5098_v41 = vmul.f32 %v9239_v13, %v5097_v63  ;;  %v7430_v8 = vld [vmem:[%s10474_s13 + $0x28] sm:$0x1] }
0x114b   : > { %7418 = vmatmul.msk.f32.vlgmr.msrb.gmra.mxu1 %vm3853_vm13, %v5050_v21  ;;  %7419 = vmatmul.msk.f32.vlgmr.msrb.gmra.mxu2 %vm3853_vm13, %v5098_v41  ;;  %v7429_v41 = vld [vmem:[%s10474_s13 + $0x20] sm:$0xff] }
0x11c4   : > { %v5071_v52 = vpop.f32.mrf.mxu0 }
0x11c8   : > { %v5094_v10 = vpop.f32.mrf.mxu1 }
0x11c9   : > { %v5095_v2 = vadd.f32 %v5094_v10, %v5071_v52 }
0x11ce   : > { %v5119_v18 = vpop.f32.mrf.mxu2 }
0x11cf   : > { %v5122_v24 = vadd.f32 %v5119_v18, %v5095_v2 }
0x11d1   : > { %v5126_v27 = vadd.f32 %v7864_v25, %v5122_v24 }
0x11d3   : > { %v5127_v58 = vmul.f32 %v8791_v15, %v5126_v27 }
0x11d5   : > { %v5128_v4 = vadd.f32 %v5127_v58, %v9770_v9 }
0x11d7   : > { %v5133_v17 = vsel %vm2766_vm2, %v5128_v4, 0.0 }
0x11d8   : > { %5134 = vadd.xlane.f32.xlu0 %v5133_v17 }
0x124b   : > { %v5135_v9 = vpop.xlane.xlu0 %5134 }
0x124c   : > { %v5136_v29 = vmul.f32 %v5135_v9, %v9182_v36 }
0x124e   : > { %v5137_v11 = vsub.f32 %v5128_v4, %v5136_v29 }
0x1250   : > { %v5138_v31 = vmul.f32 %v5137_v11, %v5137_v11 }
0x1252   : > { %v5139_v23 = vsel %vm2766_vm2, %v5138_v31, 0.0 }
0x1253   : > { %5140 = vadd.xlane.f32.xlu1 %v5139_v23  ;;  %v10004_v23 = vld [vmem:[%s10551_s8 + $0x8] sm:$0xff] }
0x12c6   : > { %v5141_v38 = vpop.xlane.xlu1 %5140 }
0x12c7   : > { %v5142_v49 = vmul.f32 %v5141_v38, %v9182_v36  ;;  %v10010_v38 = vld [vmem:[%s10551_s8 + $0x10] sm:$0xff] }
0x12c9   : > { %v5143_v40 = vadd.f32 1e-05, %v5142_v49  ;;  %v10016_v49 = vld [vmem:[%s10551_s8 + $0x18] sm:$0xff] }
0x12cb   : > { %7916 = vrsqrt.f32 %v5143_v40  ;;  %vm5150_vm1 = vweird.f32 %v5143_v40 }
0x12d1   : > { %v7917_v50 = vpop.eup %7916 }
0x12d2   : > { %v5145_v56 = vmul.f32 %v7917_v50, %v5143_v40  ;;  %vm5151_vm0 = vweird.f32 %v7917_v50 }
0x12d3   : > { %vm5152_vm15 = vmor %vm5150_vm1, %vm5151_vm0 }
0x12d4   : > { %v5146_v22 = vmul.f32 %v7917_v50, %v5145_v56  ;;  %v10022_v56 = vld [vmem:[%s10551_s8 + $0x20] sm:$0xff] }
0x12d6   : > { %v5147_v53 = vmul.f32 0.5, %v5146_v22 }
0x12d8   : > { %v5148_v54 = vsub.f32 1.5, %v5147_v53 }
0x12da   : > { %v5149_v26 = vmul.f32 %v7917_v50, %v5148_v54 }
0x12dc   : > { %v5153_v0 = vsel %vm5152_vm15, %v7917_v50, %v5149_v26  ;;  %v10030_v26 = vld [vmem:[%s10551_s8 + $0x28] sm:$0xff] }
0x12dd   : > { %v5154_v1 = vmul.f32 %v5153_v0, %v5137_v11  ;;  %v9997_v11 = vld [vmem:[%s10551_s8] sm:$0xff] }
0x12df   : > { %v5158_v7 = vmul.f32 %v7865_v62, %v5154_v1 }
0x12e1   : > { %v5162_v12 = vadd.f32 %v7866_v20, %v5158_v7 }
0x12e3   : > { %v5191_v55 = vadd.f32 %v5190_v6, %v5162_v12  ;;  %v10037_v12 = vld [vmem:[%s10551_s8 + $0x30] sm:$0xff] }
0x12e5   : > { %v9902_v32 = vmul.f32 %v8791_v15, %v5191_v55 }
0x12e7   : > { %7428 = vmatmul.msk.f32.vlgmr.msra.gmra.mxu3 %vm2766_vm2, %v9902_v32 }
0x136a   : > { %v5223_v14 = vpop.f32.mrf.mxu3 }
0x136b   : > { %v9909_v3 = vadd.f32 %v7867_v5, %v5223_v14 }
0x136d   : > { %5315 = vrot.lane.b32.xlu0 %v9909_v3, %s10557_s25  ;;  %5259 = vrot.lane.b32.xlu2 %v9909_v3, %s10573_s12  ;;  %s10577_s12 = smov 48  }
0x136e   : > { %5261 = vrot.lane.b32.xlu1 %v9909_v3, %s10574_s24  ;;  %s10578_s24 = smov 8  }
0x1375   : > { %5948 = vrot.lane.b32.xlu0 %v9909_v3, %s10562_s30 }
0x1376   : > { %5317 = vrot.lane.b32.xlu1 %v9909_v3, %s10556_s4  ;;  %s10580_s4 = sld [smem:[#allocation16_spill]] }
0x137e   : > { %5233 = vrot.lane.b32.xlu1 %v9909_v3, %s10575_s14  ;;  %s10579_s14 = smov 16  }
0x1386   : > { %5289 = vrot.lane.b32.xlu1 %v9909_v3, %s10558_s29 }
0x138e   : > { %5287 = vrot.lane.b32.xlu1 %v9909_v3, %s10559_s7  ;;  %s10585_s7 = sld [smem:[#allocation21_spill]] }
0x13c7   : > { %v5260_v21 = vpop.permute.xlu2 %5259 }
0x13df   : > { %v5316_v10 = vpop.permute.xlu0 %5315 }
0x13e0   : > { %v5262_v63 = vpop.permute.xlu1 %5261 }
0x13e1   : > { %7435 = vmatpush.xpose.msk.msra.mxu1 %vm2797_vm3, %v5262_v63 }
0x13e4   : > { %7436 = vmatmul.msk.f32.vlgmr.msra.gmra.mxu1 %vm2797_vm3, %v5260_v21 }
0x13e5   : > { %7444 = vmatpush.xpose.msk.msrb.mxu1 %vm2797_vm3, %v7430_v8 }
0x13e7   : > { %v5949_v2 = vpop.permute.xlu0 %5948 }
0x13e8   : > { %v5318_v52 = vpop.permute.xlu1 %5317 }
0x13e9   : > { %7445 = vmatpush.xpose.msk.msrb.mxu1 %vm2797_vm3, %v7429_v41  ;;  %7439 = vmatpush.xpose.msk.msrb.mxu3 %vm2797_vm3, %v5318_v52 }
0x13ec   : > { %7440 = vmatmul.msk.f32.vlgmr.msrb.gmra.mxu3 %vm2797_vm3, %v5316_v10  ;;  %7446 = vmatmul.msk.f32.vlgmr.msrb.gmra.mxu1 %vm2797_vm3, %v5260_v21  ;;  %v10044_v21 = vld [vmem:[%s10551_s8 + $0x38] sm:$0xff] }
0x13ed   : > { %7450 = vmatpush.xpose.msk.msra.mxu3 %vm2797_vm3, %v7430_v8 }
0x13f0   : > { %v5234_v25 = vpop.permute.xlu1 %5233 }
0x13f1   : > { %7451 = vmatpush.xpose.msk.msra.mxu3 %vm2797_vm3, %v7429_v41  ;;  %7433 = vmatpush.xpose.msk.msrb.mxu0 %vm2797_vm3, %v5234_v25 }
0x13f4   : > { %7434 = vmatmul.msk.f32.vlgmr.msrb.gmra.mxu0 %vm2797_vm3, %v9909_v3  ;;  %7452 = vmatmul.msk.f32.vlgmr.msra.gmra.mxu3 %vm2797_vm3, %v5316_v10 }
0x13f5   : > { %5969 = vmatpush.msrb.mxu3 %v5949_v2  ;;  %7441 = vmatpush.xpose.msk.msra.mxu0 %vm2797_vm3, %v7430_v8 }
0x13f8   : > { %v5290_v18 = vpop.permute.xlu1 %5289 }
0x13f9   : > { %7442 = vmatpush.xpose.msk.msra.mxu0 %vm2797_vm3, %v7429_v41  ;;  %7437 = vmatpush.xpose.msk.msra.mxu2 %vm2797_vm3, %v5290_v18 }
0x13fc   : > { %7443 = vmatmul.msk.f32.vlgmr.msra.gmra.mxu0 %vm2797_vm3, %v9909_v3 }
0x13fd   : > { %7447 = vmatpush.xpose.msk.msrb.mxu2 %vm2797_vm3, %v7430_v8 }
0x1400   : > { %v5288_v24 = vpop.permute.xlu1 %5287 }
0x1401   : > { %7448 = vmatpush.xpose.msk.msrb.mxu2 %vm2797_vm3, %v7429_v41 }
0x1402   : > { %7438 = vmatmul.msk.f32.vlgmr.msra.gmra.mxu2 %vm2797_vm3, %v5288_v24 }
0x140a   : > { %7449 = vmatmul.msk.f32.vlgmr.msrb.gmra.mxu2 %vm2797_vm3, %v5288_v24 }
0x1461   : > { %v9955_v27 = vpop.f32.mrf.mxu1 }
0x1469   : > { %v5386_v58 = vpop.f32.mrf.mxu1 }
0x146a   : > { %5486 = vperm.xlu1 %7818, %v5386_v58   ;;  %5462 = vperm.xlu2 %7817, %v5386_v58  }
0x146b   : > { %5436 = vperm.xlu0 %7816, %v5386_v58  }
0x146f   : > { %v9968_v16 = vpop.f32.mrf.mxu3 }
0x1471   : > { %v9957_v4 = vpop.f32.mrf.mxu0 }
0x1472   : > { %7820 = vset.pattern.permute.xlu1 %v7993_v44  ;;  %7819 = vset.pattern.permute.xlu2 %v7987_v34 }
0x1473   : > { %5510 = vperm.xlu1 %7820, %v5386_v58   ;;  %7821 = vset.pattern.permute.xlu0 %v7989_v30 }
0x1477   : > { %v5426_v28 = vpop.f32.mrf.mxu3 }
0x1479   : > { %v5366_v17 = vpop.f32.mrf.mxu0 }
0x147a   : > { %5458 = vperm.xlu0 %7821, %v5366_v17   ;;  %5431 = vperm.xlu2 %7819, %v5366_v17  }
0x147b   : > { %7822 = vset.pattern.permute.xlu1 %v7991_v42 }
0x147c   : > { %5534 = vperm.xlu1 %7822, %v5386_v58  }
0x1482   : > { %7824 = vset.pattern.permute.xlu0 %v7994_v45  ;;  %7823 = vset.pattern.permute.xlu2 %v7988_v35 }
0x1483   : > { %5558 = vperm.xlu0 %7824, %v5386_v58   ;;  %5482 = vperm.xlu2 %7823, %v5366_v17  }
0x1484   : > { %7828 = vset.pattern.permute.xlu1 %v7995_v46 }
0x1485   : > { %5606 = vperm.xlu1 %7828, %v5386_v58   ;;  %v9974_v48 = vpop.f32.mrf.mxu2 }
0x148b   : > { %7827 = vset.pattern.permute.xlu0 %v7991_v42  ;;  %7825 = vset.pattern.permute.xlu2 %v7993_v44 }
0x148c   : > { %5530 = vperm.xlu0 %7827, %v5366_v17   ;;  %5506 = vperm.xlu2 %7825, %v5366_v17  }
0x148d   : > { %7829 = vset.pattern.permute.xlu1 %v7994_v45  ;;  %v5406_v9 = vpop.f32.mrf.mxu2 }
0x148e   : > { %5554 = vperm.xlu1 %7829, %v5366_v17  }
0x1494   : > { %7831 = vset.pattern.permute.xlu0 %v7990_v33  ;;  %7826 = vset.pattern.permute.xlu2 %v7990_v33 }
0x1495   : > { %5578 = vperm.xlu0 %7831, %v5366_v17   ;;  %5582 = vperm.xlu2 %7826, %v5386_v58  }
0x1496   : > { %7835 = vset.pattern.permute.xlu1 %v7989_v30 }
0x1497   : > { %5470 = vperm.xlu1 %7835, %v5426_v28  }
0x149d   : > { %7840 = vset.pattern.permute.xlu0 %v7991_v42  ;;  %7830 = vset.pattern.permute.xlu2 %v7992_v43 }
0x149e   : > { %5542 = vperm.xlu0 %7840, %v5426_v28   ;;  %5630 = vperm.xlu2 %7830, %v5386_v58  }
0x149f   : > { %7836 = vset.pattern.permute.xlu1 %v7988_v35 }
0x14a0   : > { %5494 = vperm.xlu1 %7836, %v5426_v28  }
0x14a6   : > { %7832 = vset.pattern.permute.xlu2 %v7995_v46  ;;  %5538 = vperm.xlu0 %7840, %v5406_v9  }
0x14a7   : > { %5602 = vperm.xlu2 %7832, %v5366_v17  }
0x14a8   : > { %7837 = vset.pattern.permute.xlu1 %v7987_v34 }
0x14a9   : > { %5441 = vperm.xlu1 %7837, %v5406_v9  }
0x14ae   : > { %7847 = vset.pattern.permute.xlu0 %v7990_v33 }
0x14af   : > { %7833 = vset.pattern.permute.xlu2 %v7992_v43  ;;  %5586 = vperm.xlu0 %7847, %v5406_v9  }
0x14b0   : > { %5626 = vperm.xlu2 %7833, %v5366_v17  }
0x14b1   : > { %7841 = vset.pattern.permute.xlu1 %v7988_v35 }
0x14b2   : > { %5490 = vperm.xlu1 %7841, %v5406_v9  }
0x14b7   : > { %7849 = vset.pattern.permute.xlu0 %v7992_v43 }
0x14b8   : > { %7834 = vset.pattern.permute.xlu2 %v7987_v34 }
0x14b9   : > { %5446 = vperm.xlu2 %7834, %v5426_v28  }
0x14ba   : > { %7843 = vset.pattern.permute.xlu1 %v7993_v44 }
0x14bb   : > { %5514 = vperm.xlu1 %7843, %v5406_v9  }
0x14c1   : > { %7838 = vset.pattern.permute.xlu2 %v7993_v44 }
0x14c2   : > { %5518 = vperm.xlu2 %7838, %v5426_v28  }
0x14c3   : > { %7844 = vset.pattern.permute.xlu1 %v7990_v33 }
0x14c4   : > { %5590 = vperm.xlu1 %7844, %v5426_v28   ;;  %v5463_v42 = vpop.permute.xlu2 %5462 }
0x14ca   : > { %7839 = vset.pattern.permute.xlu2 %v7989_v30 }
0x14cb   : > { %5466 = vperm.xlu2 %7839, %v5406_v9  }
0x14cc   : > { %7845 = vset.pattern.permute.xlu1 %v7995_v46 }
0x14cd   : > { %5614 = vperm.xlu1 %7845, %v5426_v28  }
0x14d3   : > { %7842 = vset.pattern.permute.xlu2 %v7994_v45 }
0x14d4   : > { %v5432_v34 = vpop.permute.xlu2 %5431  ;;  %5566 = vperm.xlu2 %7842, %v5426_v28  }
0x14d5   : > { %7846 = vset.pattern.permute.xlu1 %v7992_v43  ;;  %v5449_v53 = vmul.f32 %v9997_v11, %v5432_v34 }
0x14d6   : > { %5638 = vperm.xlu1 %7846, %v5426_v28  }
0x14d7   : > { %v5453_v1 = vadd.f32 %v5449_v53, %v9957_v4 }
0x14dc   : > { %5562 = vperm.xlu2 %7842, %v5406_v9   ;;  %v5487_v35 = vpop.permute.xlu1 %5486 }
0x14dd   : > { %v5483_v44 = vpop.permute.xlu2 %5482  ;;  %v5437_v33 = vpop.permute.xlu0 %5436  ;;  %v5498_v51 = vmul.f32 %v10010_v38, %v5487_v35 }
0x14de   : > { %5634 = vperm.xlu1 %7846, %v5406_v9   ;;  %v5450_v45 = vmul.f32 %v9997_v11, %v5437_v33  ;;  %v5497_v5 = vmul.f32 %v10010_v38, %v5483_v44 }
0x14e0   : > { %v5454_v43 = vadd.f32 %v5450_v45, %v9955_v27  ;;  %v10052_v27 = vld [vmem:[%s10551_s8 + $0x40] sm:$0xff] }
0x14e4   : > { %7848 = vset.pattern.permute.xlu2 %v7995_v46  ;;  %v5474_v46 = vmul.f32 %v10004_v23, %v5463_v42 }
0x14e5   : > { %5610 = vperm.xlu2 %7848, %v5406_v9   ;;  %v5511_v30 = vpop.permute.xlu1 %5510 }
0x14e6   : > { %v5507_v29 = vpop.permute.xlu2 %5506  ;;  %v5478_v47 = vadd.f32 %v5474_v46, %v5454_v43  ;;  %v5522_v40 = vmul.f32 %v10016_v49, %v5511_v30 }
0x14e7   : > { %v5521_v10 = vmul.f32 %v10016_v49, %v5507_v29 }
0x14e8   : > { %v5502_v50 = vadd.f32 %v5498_v51, %v5478_v47 }
0x14ea   : > { %v5526_v54 = vadd.f32 %v5522_v40, %v5502_v50 }
0x14ec   : > { %v5459_v31 = vpop.permute.xlu0 %5458 }
0x14ed   : > { %v5473_v60 = vmul.f32 %v10004_v23, %v5459_v31 }
0x14ee   : > { %v5535_v19 = vpop.permute.xlu1 %5534 }
0x14ef   : > { %v5583_v39 = vpop.permute.xlu2 %5582  ;;  %v5546_v22 = vmul.f32 %v10022_v56, %v5535_v19  ;;  %v5477_v6 = vadd.f32 %v5473_v60, %v5453_v1 }
0x14f0   : > { %v5594_v55 = vmul.f32 %v10037_v12, %v5583_v39 }
0x14f1   : > { %v5550_v37 = vadd.f32 %v5546_v22, %v5526_v54  ;;  %v5501_v8 = vadd.f32 %v5497_v5, %v5477_v6 }
0x14f3   : > { %v5525_v24 = vadd.f32 %v5521_v10, %v5501_v8 }
0x14f5   : > { %v5559_v59 = vpop.permute.xlu0 %5558 }
0x14f6   : > { %v5570_v62 = vmul.f32 %v10030_v26, %v5559_v59 }
0x14f7   : > { %v5607_v0 = vpop.permute.xlu1 %5606 }
0x14f8   : > { %v5631_v20 = vpop.permute.xlu2 %5630  ;;  %v5574_v7 = vadd.f32 %v5570_v62, %v5550_v37  ;;  %v5618_v41 = vmul.f32 %v10044_v21, %v5607_v0 }
0x14f9   : > { %v5642_v58 = vmul.f32 %v10052_v27, %v5631_v20 }
0x14fa   : > { %v5598_v14 = vadd.f32 %v5594_v55, %v5574_v7 }
0x14fc   : > { %v5622_v25 = vadd.f32 %v5618_v41, %v5598_v14 }
0x14fe   : > { %v5531_v63 = vpop.permute.xlu0 %5530  ;;  %v5646_v28 = vadd.f32 %v5642_v58, %v5622_v25 }
0x14ff   : > { %v5545_v52 = vmul.f32 %v10022_v56, %v5531_v63 }
0x1500   : > { %v5555_v2 = vpop.permute.xlu1 %5554  ;;  %v10058_v44 = vadd.f32 %v5646_v28, %v8956_v57 }
0x1501   : > { %v5603_v18 = vpop.permute.xlu2 %5602  ;;  %v5549_v4 = vadd.f32 %v5545_v52, %v5525_v24  ;;  %v5569_v17 = vmul.f32 %v10030_v26, %v5555_v2 }
0x1502   : > { %v5617_v33 = vmul.f32 %v10044_v21, %v5603_v18  ;;  %v5656_v31 = vsel %vm2797_vm3, %v10058_v44, -inf }
0x1503   : > { %v5573_v42 = vadd.f32 %v5569_v17, %v5549_v4 }
0x1507   : > { %v5579_v9 = vpop.permute.xlu0 %5578 }
0x1508   : > { %v5593_v34 = vmul.f32 %v10037_v12, %v5579_v9 }
0x1509   : > { %v5471_v35 = vpop.permute.xlu1 %5470 }
0x150a   : > { %v5597_v30 = vadd.f32 %v5593_v34, %v5573_v42  ;;  %v5627_v29 = vpop.permute.xlu2 %5626  ;;  %v5476_v1 = vmul.f32 %v10004_v23, %v5471_v35 }
0x150b   : > { %v5641_v45 = vmul.f32 %v10052_v27, %v5627_v29 }
0x150c   : > { %v5621_v43 = vadd.f32 %v5617_v33, %v5597_v30 }
0x150e   : > { %v5645_v46 = vadd.f32 %v5641_v45, %v5621_v43  ;;  %5657 = vmax.xlane.f32.xlu2 %v5656_v31 }
0x1510   : > { %v10065_v19 = vadd.f32 %v5645_v46, %v8956_v57  ;;  %v5543_v60 = vpop.permute.xlu0 %5542 }
0x1511   : > { %v5548_v2 = vmul.f32 %v10022_v56, %v5543_v60 }
0x1512   : > { %v5495_v47 = vpop.permute.xlu1 %5494  ;;  %v5653_v39 = vsel %vm2797_vm3, %v10065_v19, -inf }
0x1513   : > { %5654 = vmax.xlane.f32.xlu1 %v5653_v39  ;;  %v5447_v51 = vpop.permute.xlu2 %5446  ;;  %v5500_v6 = vmul.f32 %v10010_v38, %v5495_v47 }
0x1514   : > { %v5452_v59 = vmul.f32 %v9997_v11, %v5447_v51 }
0x1516   : > { %v5456_v62 = vadd.f32 %v5452_v59, %v9968_v16 }
0x1518   : > { %v5480_v20 = vadd.f32 %v5476_v1, %v5456_v62  ;;  %v5539_v16 = vpop.permute.xlu0 %5538 }
0x1519   : > { %v5547_v42 = vmul.f32 %v10022_v56, %v5539_v16 }
0x151a   : > { %v5504_v8 = vadd.f32 %v5500_v6, %v5480_v20 }
0x151b   : > { %v5442_v40 = vpop.permute.xlu1 %5441 }
0x151c   : > { %v5519_v50 = vpop.permute.xlu2 %5518  ;;  %v5451_v7 = vmul.f32 %v9997_v11, %v5442_v40 }
0x151d   : > { %v5524_v55 = vmul.f32 %v10016_v49, %v5519_v50 }
0x151e   : > { %v5455_v14 = vadd.f32 %v5451_v7, %v9974_v48 }
0x151f   : > { %v5528_v63 = vadd.f32 %v5524_v55, %v5504_v8 }
0x1521   : > { %v5552_v4 = vadd.f32 %v5548_v2, %v5528_v63  ;;  %v5587_v43 = vpop.permute.xlu0 %5586 }
0x1522   : > { %v5595_v39 = vmul.f32 %v10037_v12, %v5587_v43 }
0x1524   : > { %v5491_v22 = vpop.permute.xlu1 %5490 }
0x1525   : > { %v5467_v53 = vpop.permute.xlu2 %5466  ;;  %v5499_v25 = vmul.f32 %v10010_v38, %v5491_v22 }
0x1526   : > { %v5475_v5 = vmul.f32 %v10004_v23, %v5467_v53 }
0x1528   : > { %v5479_v41 = vadd.f32 %v5475_v5, %v5455_v14 }
0x152a   : > { %v5503_v58 = vadd.f32 %v5499_v25, %v5479_v41 }
0x152c   : > { %5899 = vrot.lane.b32.xlu1 %v9909_v3, %s10561_s27 }
0x152d   : > { %v5515_v54 = vpop.permute.xlu1 %5514 }
0x152e   : > { %v5567_v37 = vpop.permute.xlu2 %5566  ;;  %v5523_v18 = vmul.f32 %v10016_v49, %v5515_v54 }
0x152f   : > { %v5572_v24 = vmul.f32 %v10030_v26, %v5567_v37 }
0x1530   : > { %v5527_v28 = vadd.f32 %v5523_v18, %v5503_v58 }
0x1531   : > { %v5576_v48 = vadd.f32 %v5572_v24, %v5552_v4 }
0x1532   : > { %v5551_v30 = vadd.f32 %v5547_v42, %v5527_v28 }
0x1536   : > { %v5591_v0 = vpop.permute.xlu1 %5590  ;;  %v5563_v52 = vpop.permute.xlu2 %5562 }
0x1537   : > { %v5596_v17 = vmul.f32 %v10037_v12, %v5591_v0  ;;  %v5571_v34 = vmul.f32 %v10030_v26, %v5563_v52 }
0x1539   : > { %v5600_v35 = vadd.f32 %v5596_v17, %v5576_v48  ;;  %v5575_v46 = vadd.f32 %v5571_v34, %v5551_v30 }
0x153b   : > { %v5599_v50 = vadd.f32 %v5595_v39, %v5575_v46 }
0x153f   : > { %v5615_v10 = vpop.permute.xlu1 %5614  ;;  %v5611_v31 = vpop.permute.xlu2 %5610 }
0x1540   : > { %v5620_v9 = vmul.f32 %v10044_v21, %v5615_v10  ;;  %v5619_v51 = vmul.f32 %v10044_v21, %v5611_v31 }
0x1542   : > { %v5624_v29 = vadd.f32 %v5620_v9, %v5600_v35  ;;  %v5623_v54 = vadd.f32 %v5619_v51, %v5599_v50 }
0x1548   : > { %v5639_v33 = vpop.permute.xlu1 %5638 }
0x1549   : > { %v5644_v45 = vmul.f32 %v10052_v27, %v5639_v33 }
0x154b   : > { %v5648_v47 = vadd.f32 %v5644_v45, %v5624_v29 }
0x154d   : > { %v5652_v40 = vadd.f32 %v5648_v47, %v8956_v57 }
0x154f   : > { %v5662_v22 = vsel %vm2797_vm3, %v5652_v40, -inf }
0x1550   : > { %5663 = vmax.xlane.f32.xlu0 %v5662_v22  ;;  %v5635_v53 = vpop.permute.xlu1 %5634 }
0x1551   : > { %v5643_v59 = vmul.f32 %v10052_v27, %v5635_v53 }
0x1553   : > { %v5647_v60 = vadd.f32 %v5643_v59, %v5623_v54 }
0x1555   : > { %v5651_v62 = vadd.f32 %v5647_v60, %v8956_v57 }
0x1557   : > { %v5659_v37 = vsel %vm2797_vm3, %v5651_v62, -inf }
0x1558   : > { %5660 = vmax.xlane.f32.xlu2 %v5659_v37 }
0x1581   : > { %v5658_v0 = vpop.xlane.xlu2 %5657 }
0x1582   : > { %v5666_v1 = vsub.f32 %v10058_v44, %v5658_v0 }
0x1584   : > { %v5671_v20 = vmul.f32 1.442695, %v5666_v1 }
0x1586   : > { %7918 = vpow2.f32 %v5671_v20  ;;  %v5655_v7 = vpop.xlane.xlu1 %5654 }
0x1587   : > { %v5665_v6 = vsub.f32 %v10065_v19, %v5655_v7 }
0x1589   : > { %v5669_v55 = vmul.f32 1.442695, %v5665_v6 }
0x158b   : > { %7920 = vpow2.f32 %v5669_v55 }
0x158c   : > { %v7919_v5 = vpop.eup %7918 }
0x158d   : > { %v5680_v14 = vsel %vm2797_vm3, %v7919_v5, 0.0 }
0x158e   : > { %5681 = vadd.xlane.f32.xlu1 %v5680_v14 }
0x1591   : > { %v7921_v8 = vpop.eup %7920 }
0x1592   : > { %v5677_v57 = vsel %vm2797_vm3, %v7921_v8, 0.0 }
0x1593   : > { %5678 = vadd.xlane.f32.xlu2 %v5677_v57 }
0x159e   : > { %v5900_v63 = vpop.permute.xlu1 %5899 }
0x159f   : > { %5920 = vmatpush.msra.mxu1 %v5900_v63 }
0x15c3   : > { %v5664_v41 = vpop.xlane.xlu0 %5663 }
0x15c4   : > { %v5668_v10 = vsub.f32 %v5652_v40, %v5664_v41 }
0x15c6   : > { %v5675_v44 = vmul.f32 1.442695, %v5668_v10 }
0x15c8   : > { %7922 = vpow2.f32 %v5675_v44 }
0x15cb   : > { %v5661_v16 = vpop.xlane.xlu2 %5660 }
0x15cc   : > { %v5667_v52 = vsub.f32 %v5651_v62, %v5661_v16 }
0x15ce   : > { %v10099_v2 = vpop.eup %7922  ;;  %v5673_v19 = vmul.f32 1.442695, %v5667_v52 }
0x15cf   : > { %v5686_v25 = vsel %vm2797_vm3, %v10099_v2, 0.0 }
0x15d0   : > { %7924 = vpow2.f32 %v5673_v19  ;;  %5687 = vadd.xlane.f32.xlu0 %v5686_v25 }
0x15d6   : > { %v10103_v18 = vpop.eup %7924 }
0x15d7   : > { %v5683_v24 = vsel %vm2797_vm3, %v10103_v18, 0.0 }
0x15d8   : > { %5684 = vadd.xlane.f32.xlu1 %v5683_v24 }
0x1601   : > { %v5682_v58 = vpop.xlane.xlu1 %5681 }
0x1602   : > { %7926 = vrcp.f32 %v5682_v58 }
0x1606   : > { %v5679_v4 = vpop.xlane.xlu2 %5678 }
0x1607   : > { %7928 = vrcp.f32 %v5679_v4 }
0x1608   : > { %v7927_v17 = vpop.eup %7926 }
0x1609   : > { %v5694_v28 = vmul.f32 %v7927_v17, %v7919_v5 }
0x160b   : > { %7458 = vmatmul.msk.f32.vlgmr.msrb.gmra.mxu3 %vm2797_vm3, %v5694_v28  ;;  %v5730_v48 = vmul.f32 %v10010_v38, %v5694_v28  ;;  %v5714_v9 = vmul.f32 %v10004_v23, %v5694_v28  ;;  %v5698_v42 = vmul.f32 %v9997_v11, %v5694_v28  ;;  %v5778_v45 = vmul.f32 %v10030_v26, %v5694_v28 }
0x160c   : > { %v5762_v43 = vmul.f32 %v10022_v56, %v5694_v28  ;;  %v5746_v31 = vmul.f32 %v10016_v49, %v5694_v28  ;;  %v5794_v51 = vmul.f32 %v10037_v12, %v5694_v28  ;;  %v5810_v60 = vmul.f32 %v10044_v21, %v5694_v28 }
0x160d   : > { %v7929_v34 = vpop.eup %7928  ;;  %v5736_v35 = vsel %vm2797_vm3, %v5730_v48, 0.0  ;;  %v5720_v33 = vsel %vm2797_vm3, %v5714_v9, 0.0  ;;  %v5704_v30 = vsel %vm2797_vm3, %v5698_v42, 0.0  ;;  %v5784_v46 = vsel %vm2797_vm3, %v5778_v45, 0.0 }
0x160e   : > { %v5693_v29 = vmul.f32 %v7929_v34, %v7921_v8  ;;  %5737 = vadd.xlane.f32.xlu1 %v5736_v35  ;;  %5721 = vadd.xlane.f32.xlu0 %v5720_v33  ;;  %v5768_v47 = vsel %vm2797_vm3, %v5762_v43, 0.0  ;;  %v5752_v39 = vsel %vm2797_vm3, %v5746_v31, 0.0  ;;  %v5800_v22 = vsel %vm2797_vm3, %v5794_v51, 0.0 }
0x160f   : > { %5705 = vadd.xlane.f32.xlu2 %v5704_v30  ;;  %v5816_v0 = vsel %vm2797_vm3, %v5810_v60, 0.0  ;;  %v5826_v6 = vmul.f32 %v10052_v27, %v5694_v28 }
0x1610   : > { %7455 = vmatmul.msk.f32.vlgmr.msra.gmra.mxu1 %vm2797_vm3, %v5693_v29  ;;  %v5713_v40 = vmul.f32 %v10004_v23, %v5693_v29  ;;  %v5697_v50 = vmul.f32 %v9997_v11, %v5693_v29  ;;  %v5745_v59 = vmul.f32 %v10016_v49, %v5693_v29  ;;  %v5729_v62 = vmul.f32 %v10010_v38, %v5693_v29 }
0x1611   : > { %v5825_v20 = vmul.f32 %v10052_v27, %v5693_v29  ;;  %v5809_v7 = vmul.f32 %v10044_v21, %v5693_v29  ;;  %v5832_v14 = vsel %vm2797_vm3, %v5826_v6, 0.0  ;;  %v5761_v8 = vmul.f32 %v10022_v56, %v5693_v29 }
0x1612   : > { %v5717_v53 = vsel %vm2797_vm3, %v5713_v40, 0.0  ;;  %v5701_v54 = vsel %vm2797_vm3, %v5697_v50, 0.0  ;;  %v5749_v37 = vsel %vm2797_vm3, %v5745_v59, 0.0  ;;  %v5733_v1 = vsel %vm2797_vm3, %v5729_v62, 0.0  ;;  %v7432_v59 = vld [vmem:[%s10576_s18 + $0x28] sm:$0x1] }
0x1613   : > { %v5829_v55 = vsel %vm2797_vm3, %v5825_v20, 0.0  ;;  %v5813_v5 = vsel %vm2797_vm3, %v5809_v7, 0.0  ;;  %v5765_v57 = vsel %vm2797_vm3, %v5761_v8, 0.0  ;;  %v5777_v63 = vmul.f32 %v10030_v26, %v5693_v29  ;;  %7456 = vmatpush.msk.msra.mxu2 %vm3447_vm4, %v7432_v59  ;;  %7453 = vmatpush.msk.msrb.mxu0 %vm3447_vm4, %v7432_v59 }
0x1614   : > { %v5793_v10 = vmul.f32 %v10037_v12, %v5693_v29 }
0x1615   : > { %v5781_v41 = vsel %vm2797_vm3, %v5777_v63, 0.0 }
0x1616   : > { %5785 = vadd.xlane.f32.xlu1 %v5784_v46  ;;  %5769 = vadd.xlane.f32.xlu0 %v5768_v47  ;;  %v5797_v16 = vsel %vm2797_vm3, %v5793_v10, 0.0 }
0x1617   : > { %5753 = vadd.xlane.f32.xlu2 %v5752_v39 }
0x161e   : > { %5801 = vadd.xlane.f32.xlu1 %v5800_v22  ;;  %5718 = vadd.xlane.f32.xlu0 %v5717_v53 }
0x161f   : > { %5702 = vadd.xlane.f32.xlu2 %v5701_v54 }
0x1626   : > { %5750 = vadd.xlane.f32.xlu1 %v5749_v37  ;;  %5817 = vadd.xlane.f32.xlu0 %v5816_v0  ;;  %v7431_v37 = vld [vmem:[%s10576_s18 + $0x20] sm:$0xff]  ;;  %s10583_s18 = sld [smem:[#allocation17_spill]] }
0x1627   : > { %5734 = vadd.xlane.f32.xlu2 %v5733_v1  ;;  %5943 = vmatpush.msra.mxu2 %v7431_v37 }
0x1628   : > { %5894 = vmatpush.msrb.mxu0 %v7431_v37 }
0x1629   : > { %7462 = vmatpush.msk.msrb.mxu2 %vm3447_vm4, %v7432_v59 }
0x162a   : > { %7459 = vmatpush.msk.msra.mxu0 %vm3447_vm4, %v7432_v59  ;;  %vm10581_vm4 = vmmov %vm10571_vm14 }
0x162b   : > { %6041 = vmatpush.msrb.mxu2 %v7431_v37 }
0x162c   : > { %5992 = vmatpush.msra.mxu0 %v7431_v37 }
0x162e   : > { %5830 = vadd.xlane.f32.xlu1 %v5829_v55  ;;  %5814 = vadd.xlane.f32.xlu0 %v5813_v5 }
0x162f   : > { %5833 = vadd.xlane.f32.xlu2 %v5832_v14 }
0x1637   : > { %5766 = vadd.xlane.f32.xlu2 %v5765_v57 }
0x163f   : > { %5782 = vadd.xlane.f32.xlu2 %v5781_v41 }
0x1643   : > { %v5688_v44 = vpop.xlane.xlu0 %5687 }
0x1644   : > { %7930 = vrcp.f32 %v5688_v44 }
0x1647   : > { %5798 = vadd.xlane.f32.xlu2 %v5797_v16 }
0x164a   : > { %v7931_v52 = vpop.eup %7930 }
0x164b   : > { %v10146_v19 = vmul.f32 %v7931_v52, %v10099_v2  ;;  %v5685_v25 = vpop.xlane.xlu1 %5684 }
0x164c   : > { %7932 = vrcp.f32 %v5685_v25 }
0x164d   : > { %v5716_v24 = vmul.f32 %v10004_v23, %v10146_v19  ;;  %v5700_v58 = vmul.f32 %v9997_v11, %v10146_v19  ;;  %v5780_v4 = vmul.f32 %v10030_v26, %v10146_v19  ;;  %v5732_v42 = vmul.f32 %v10010_v38, %v10146_v19 }
0x164e   : > { %v5796_v45 = vmul.f32 %v10037_v12, %v10146_v19  ;;  %v5764_v31 = vmul.f32 %v10022_v56, %v10146_v19  ;;  %v5812_v51 = vmul.f32 %v10044_v21, %v10146_v19  ;;  %v5828_v22 = vmul.f32 %v10052_v27, %v10146_v19 }
0x164f   : > { %v5726_v17 = vsel %vm2797_vm3, %v5716_v24, 0.0  ;;  %v5710_v28 = vsel %vm2797_vm3, %v5700_v58, 0.0  ;;  %v5790_v48 = vsel %vm2797_vm3, %v5780_v4, 0.0  ;;  %v5742_v33 = vsel %vm2797_vm3, %v5732_v42, 0.0 }
0x1650   : > { %5727 = vadd.xlane.f32.xlu1 %v5726_v17  ;;  %5711 = vadd.xlane.f32.xlu0 %v5710_v28  ;;  %v5774_v47 = vsel %vm2797_vm3, %v5764_v31, 0.0  ;;  %v5838_v53 = vsel %vm2797_vm3, %v5828_v22, 0.0 }
0x1651   : > { %5791 = vadd.xlane.f32.xlu2 %v5790_v48 }
0x1652   : > { %v7933_v2 = vpop.eup %7932 }
0x1653   : > { %v10158_v9 = vmul.f32 %v7933_v2, %v10103_v18  ;;  %v5748_v18 = vmul.f32 %v10016_v49, %v10146_v19 }
0x1655   : > { %v5747_v34 = vmul.f32 %v10016_v49, %v10158_v9  ;;  %v5699_v35 = vmul.f32 %v9997_v11, %v10158_v9  ;;  %v5758_v43 = vsel %vm2797_vm3, %v5748_v18, 0.0  ;;  %v5806_v11 = vsel %vm2797_vm3, %v5796_v45, 0.0 }
0x1656   : > { %v5731_v46 = vmul.f32 %v10010_v38, %v10158_v9  ;;  %v5715_v39 = vmul.f32 %v10004_v23, %v10158_v9  ;;  %v5822_v38 = vsel %vm2797_vm3, %v5812_v51, 0.0  ;;  %v5763_v50 = vmul.f32 %v10022_v56, %v10158_v9 }
0x1657   : > { %v5755_v30 = vsel %vm2797_vm3, %v5747_v34, 0.0  ;;  %v5707_v29 = vsel %vm2797_vm3, %v5699_v35, 0.0  ;;  %v5779_v54 = vmul.f32 %v10030_v26, %v10158_v9  ;;  %v5795_v26 = vmul.f32 %v10037_v12, %v10158_v9 }
0x1658   : > { %5743 = vadd.xlane.f32.xlu1 %v5742_v33  ;;  %5756 = vadd.xlane.f32.xlu0 %v5755_v30  ;;  %v5739_v49 = vsel %vm2797_vm3, %v5731_v46, 0.0  ;;  %v5723_v40 = vsel %vm2797_vm3, %v5715_v39, 0.0  ;;  %v5771_v23 = vsel %vm2797_vm3, %v5763_v50, 0.0  ;;  %v5811_v6 = vmul.f32 %v10044_v21, %v10158_v9 }
0x1659   : > { %5708 = vadd.xlane.f32.xlu2 %v5707_v29  ;;  %v5787_v56 = vsel %vm2797_vm3, %v5779_v54, 0.0  ;;  %v5803_v0 = vsel %vm2797_vm3, %v5795_v26, 0.0  ;;  %v5827_v12 = vmul.f32 %v10052_v27, %v10158_v9 }
0x165a   : > { %v5819_v55 = vsel %vm2797_vm3, %v5811_v6, 0.0 }
0x165b   : > { %v5835_v57 = vsel %vm2797_vm3, %v5827_v12, 0.0 }
0x1660   : > { %5759 = vadd.xlane.f32.xlu1 %v5758_v43 }
0x1661   : > { %5807 = vadd.xlane.f32.xlu2 %v5806_v11 }
0x1668   : > { %5775 = vadd.xlane.f32.xlu1 %v5774_v47 }
0x1669   : > { %5740 = vadd.xlane.f32.xlu2 %v5739_v49 }
0x166c   : > { %6046 = vrot.lane.b32.xlu0 %v9909_v3, %s10560_s26 }
0x1670   : > { %5724 = vadd.xlane.f32.xlu1 %v5723_v40 }
0x1671   : > { %5823 = vadd.xlane.f32.xlu2 %v5822_v38 }
0x1678   : > { %5772 = vadd.xlane.f32.xlu1 %v5771_v23 }
0x1679   : > { %5839 = vadd.xlane.f32.xlu2 %v5838_v53 }
0x1681   : > { %5788 = vadd.xlane.f32.xlu2 %v5787_v56  ;;  %v5722_v60 = vpop.xlane.xlu0 %5721  ;;  %v5738_v1 = vpop.xlane.xlu1 %5737 }
0x1682   : > { %v5706_v62 = vpop.xlane.xlu2 %5705 }
0x1683   : > { %v5842_v63 = vsel %vm3404_vm5, %v5706_v62, %v5722_v60 }
0x1684   : > { %v5846_v41 = vsel %vm3409_vm6, %v5842_v63, %v5738_v1 }
0x1689   : > { %5804 = vadd.xlane.f32.xlu2 %v5803_v0  ;;  %v5770_v7 = vpop.xlane.xlu0 %5769  ;;  %v5786_v14 = vpop.xlane.xlu1 %5785 }
0x168a   : > { %v5754_v20 = vpop.xlane.xlu2 %5753 }
0x168b   : > { %v5850_v10 = vsel %vm3414_vm7, %v5846_v41, %v5754_v20 }
0x168c   : > { %v5854_v21 = vsel %vm3419_vm8, %v5850_v10, %v5770_v7 }
0x168d   : > { %v5858_v25 = vsel %vm3424_vm9, %v5854_v21, %v5786_v14 }
0x168e   : > { %v5971_v21 = vpop.f32.mrf.mxu3 }
0x1691   : > { %5820 = vadd.xlane.f32.xlu2 %v5819_v55  ;;  %v5719_v8 = vpop.xlane.xlu0 %5718  ;;  %v5802_v16 = vpop.xlane.xlu1 %5801 }
0x1692   : > { %v5703_v5 = vpop.xlane.xlu2 %5702  ;;  %v5862_v27 = vsel %vm3429_vm10, %v5858_v25, %v5802_v16  ;;  %v5922_v25 = vpop.f32.mrf.mxu1 }
0x1693   : > { %v5841_v2 = vsel %vm3404_vm5, %v5703_v5, %v5719_v8 }
0x1696   : > { %5836 = vadd.xlane.f32.xlu0 %v5835_v57 }
0x1699   : > { %v5818_v52 = vpop.xlane.xlu0 %5817  ;;  %v5751_v28 = vpop.xlane.xlu1 %5750 }
0x169a   : > { %v5735_v44 = vpop.xlane.xlu2 %5734  ;;  %v5866_v24 = vsel %vm3434_vm11, %v5862_v27, %v5818_v52 }
0x169b   : > { %v5845_v42 = vsel %vm3409_vm6, %v5841_v2, %v5735_v44  ;;  %v7467_v2 = vld [vmem:[%s10580_s4 + $0x50] sm:$0xff] }
0x169c   : > { %v5849_v34 = vsel %vm3414_vm7, %v5845_v42, %v5751_v28  ;;  %v7466_v42 = vld [vmem:[%s10580_s4 + $0x48] sm:$0xff] }
0x16a1   : > { %v5815_v29 = vpop.xlane.xlu0 %5814  ;;  %v5831_v45 = vpop.xlane.xlu1 %5830 }
0x16a2   : > { %v5834_v58 = vpop.xlane.xlu2 %5833 }
0x16a3   : > { %v5870_v4 = vsel %vm2797_vm3, %v5866_v24, %v5834_v58 }
0x16a4   : > { %7457 = vmatmul.msk.f32.vlgmr.msra.gmra.mxu2 %vm3443_vm12, %v5870_v4 }
0x16a9   : > { %5997 = vrot.lane.b32.xlu2 %v9909_v3, %s10577_s12 }
0x16aa   : > { %v5767_v17 = vpop.xlane.xlu2 %5766 }
0x16ab   : > { %v5853_v35 = vsel %vm3419_vm8, %v5849_v34, %v5767_v17  ;;  %v7465_v34 = vld [vmem:[%s10580_s4 + $0x40] sm:$0xff] }
0x16b2   : > { %v5783_v48 = vpop.xlane.xlu2 %5782 }
0x16b3   : > { %v5857_v33 = vsel %vm3424_vm9, %v5853_v35, %v5783_v48 }
0x16ba   : > { %v5799_v30 = vpop.xlane.xlu2 %5798 }
0x16bb   : > { %v5861_v18 = vsel %vm3429_vm10, %v5857_v33, %v5799_v30 }
0x16bc   : > { %v5865_v3 = vsel %vm3434_vm11, %v5861_v18, %v5815_v29 }
0x16bd   : > { %v5869_v43 = vsel %vm2797_vm3, %v5865_v3, %v5831_v45 }
0x16be   : > { %7454 = vmatmul.msk.f32.vlgmr.msrb.gmra.mxu0 %vm3443_vm12, %v5869_v43  ;;  %v7868_v43 = vld [vmem:[%s10583_s18 + $0x2] ss:$0 sm:$0xff]  ;;  %s10587_s18 = sld [smem:[#allocation22_spill]] }
0x16c3   : > { %v5728_v31 = vpop.xlane.xlu1 %5727  ;;  %v5712_v46 = vpop.xlane.xlu0 %5711 }
0x16c4   : > { %v5792_v11 = vpop.xlane.xlu2 %5791  ;;  %v5844_v22 = vsel %vm3404_vm5, %v5712_v46, %v5728_v31  ;;  %s775_s3 = scalar_lea.vmem %s10587_s18, %s10586_s5 }
0x16cb   : > { %v5744_v49 = vpop.xlane.xlu1 %5743  ;;  %v5757_v51 = vpop.xlane.xlu0 %5756 }
0x16cc   : > { %v5709_v47 = vpop.xlane.xlu2 %5708  ;;  %v5848_v53 = vsel %vm3409_vm6, %v5844_v22, %v5744_v49  ;;  %v7478_v22 = vld [vmem:[%s10478_s17 + $0xe8] sm:$0xff] }
0x16d3   : > { %v5760_v40 = vpop.xlane.xlu1 %5759 }
0x16d4   : > { %v5808_v39 = vpop.xlane.xlu2 %5807  ;;  %v5852_v54 = vsel %vm3414_vm7, %v5848_v53, %v5760_v40  ;;  %v7484_v53 = vld [vmem:[%s10478_s17 + $0x118] sm:$0xff] }
0x16db   : > { %v5776_v23 = vpop.xlane.xlu1 %5775 }
0x16dc   : > { %v5741_v38 = vpop.xlane.xlu2 %5740  ;;  %v5856_v56 = vsel %vm3419_vm8, %v5852_v54, %v5776_v23  ;;  %v7476_v23 = vld [vmem:[%s10478_s17 + $0xd8] sm:$0xff]  ;;  %v7477_v54 = vld [vmem:[%s10478_s17 + $0xe0] sm:$0xff] }
0x16dd   : > { %v5860_v60 = vsel %vm3424_vm9, %v5856_v56, %v5792_v11  ;;  %6211 = vmatpush.msra.mxu2 %v7476_v23  ;;  %v7483_v56 = vld [vmem:[%s10478_s17 + $0x110] sm:$0xff] }
0x16de   : > { %v6047_v50 = vpop.permute.xlu0 %6046  ;;  %v5864_v62 = vsel %vm3429_vm10, %v5860_v60, %v5808_v39  ;;  %v7474_v60 = vld [vmem:[%s10478_s17 + $0xc8] sm:$0xff] }
0x16df   : > { %6067 = vmatpush.msra.mxu3 %v6047_v50  ;;  %v7480_v50 = vld [vmem:[%s10478_s17 + $0xf8] sm:$0xff] }
0x16e0   : > { %7464 = vmatmul.msk.f32.vlgmr.msra.gmra.mxu3 %vm2797_vm3, %v10146_v19 }
0x16e1   : > { %6236 = vmatpush.msrb.mxu3 %v7484_v53 }
0x16e3   : > { %v5725_v1 = vpop.xlane.xlu1 %5724  ;;  %6237 = vmatpush.msrb.mxu3 %v7483_v56 }
0x16e4   : > { %v5824_v59 = vpop.xlane.xlu2 %5823  ;;  %v5843_v7 = vsel %vm3404_vm5, %v5709_v47, %v5725_v1  ;;  %vm10582_vm5 = vcmask 195584  }
0x16e5   : > { %v5868_v37 = vsel %vm3434_vm11, %v5864_v62, %v5824_v59  ;;  %v5847_v6 = vsel %vm3409_vm6, %v5843_v7, %v5741_v38  ;;  %v7475_v59 = vld [vmem:[%s10478_s17 + $0xd0] sm:$0xff]  ;;  %v7482_v62 = vld [vmem:[%s10478_s17 + $0x108] sm:$0xff] }
0x16e6   : > { %v5851_v5 = vsel %vm3414_vm7, %v5847_v6, %v5757_v51  ;;  %6212 = vmatpush.msra.mxu2 %v7475_v59  ;;  %6238 = vmatpush.msrb.mxu3 %v7482_v62 }
0x16e8   : > { %6213 = vmatpush.msra.mxu2 %v7474_v60 }
0x16eb   : > { %v5773_v55 = vpop.xlane.xlu1 %5772 }
0x16ec   : > { %v5840_v26 = vpop.xlane.xlu2 %5839  ;;  %v5855_v14 = vsel %vm3419_vm8, %v5851_v5, %v5773_v55 }
0x16ed   : > { %v5872_v0 = vsel %vm2797_vm3, %v5868_v37, %v5840_v26 }
0x16ee   : > { %7463 = vmatmul.msk.f32.vlgmr.msrb.gmra.mxu2 %vm3443_vm12, %v5872_v0  ;;  %v7473_v0 = vld [vmem:[%s10478_s17 + $0xc0] sm:$0xff] }
0x16ef   : > { %6214 = vmatpush.msra.mxu2 %v7473_v0  ;;  %v7872_v0 = vld [vmem:[%s10481_s20 + $0x2] ss:$0 sm:$0xff] }
0x16f4   : > { %v5789_v19 = vpop.xlane.xlu2 %5788 }
0x16f5   : > { %v5859_v8 = vsel %vm3424_vm9, %v5855_v14, %v5789_v19  ;;  %v7481_v19 = vld [vmem:[%s10478_s17 + $0x100] sm:$0xff] }
0x16f6   : > { %6239 = vmatpush.msrb.mxu3 %v7481_v19  ;;  %v7869_v14 = vld [vmem:[%s10476_s15 + $0x2] ss:$0 sm:$0xff] }
0x16fc   : > { %v5805_v20 = vpop.xlane.xlu2 %5804 }
0x16fd   : > { %v5863_v57 = vsel %vm3429_vm10, %v5859_v8, %v5805_v20 }
0x1704   : > { %v5821_v12 = vpop.xlane.xlu2 %5820 }
0x1705   : > { %v5867_v63 = vsel %vm3434_vm11, %v5863_v57, %v5821_v12  ;;  %v7870_v57 = vld [vmem:[%s10477_s16 + $0x2] ss:$0 sm:$0xff] }
0x1709   : > { %v5837_v41 = vpop.xlane.xlu0 %5836 }
0x170a   : > { %v5871_v10 = vsel %vm2797_vm3, %v5867_v63, %v5837_v41 }
0x170b   : > { %7460 = vmatmul.msk.f32.vlgmr.msra.gmra.mxu0 %vm3443_vm12, %v5871_v10 }
0x170c   : > { %v5998_v44 = vpop.permute.xlu2 %5997 }
0x170d   : > { %6018 = vmatpush.msrb.mxu1 %v5998_v44 }
0x170e   : > { %7461 = vmatmul.msk.f32.vlgmr.msrb.gmra.mxu1 %vm2797_vm3, %v10158_v9  ;;  %v7468_v9 = vld [vmem:[%s10580_s4 + $0x58] sm:$0xff] }
0x170f   : > { %6112 = vmatpush.msrb.mxu0 %v7468_v9  ;;  %6188 = vmatpush.msra.mxu1 %v7480_v50  ;;  %v7511_v9 = vld [vmem:[%s10480_s19 + $0x230] sm:$0xff] }
0x1711   : > { %6113 = vmatpush.msrb.mxu0 %v7467_v2  ;;  %v7500_v2 = vld [vmem:[%s10480_s19 + $0x1d8] sm:$0xff] }
0x1713   : > { %6114 = vmatpush.msrb.mxu0 %v7466_v42  ;;  %v7494_v42 = vld [vmem:[%s10480_s19 + $0x1a8] sm:$0xff] }
0x1715   : > { %6115 = vmatpush.msrb.mxu0 %v7465_v34  ;;  %v7510_v34 = vld [vmem:[%s10480_s19 + $0x228] sm:$0xff] }
0x1727   : > { %v5945_v16 = vpop.f32.mrf.mxu2 }
0x1728   : > { %v5972_v52 = vadd.f32 %v5971_v21, %v5945_v16 }
0x172a   : > { %6073 = vrot.lane.b32.xlu1 %v5972_v52, %s10578_s24 }
0x173b   : > { %v5896_v27 = vpop.f32.mrf.mxu0 }
0x173c   : > { %v5923_v30 = vadd.f32 %v5922_v25, %v5896_v27  ;;  %v7504_v27 = vld [vmem:[%s10480_s19 + $0x1f8] sm:$0xff] }
0x173d   : > { %6291 = vmatpush.msra.mxu0 %v7504_v27 }
0x1763   : > { %v6069_v28 = vpop.f32.mrf.mxu3 }
0x1771   : > { %v6043_v17 = vpop.f32.mrf.mxu2 }
0x1772   : > { %v6070_v48 = vadd.f32 %v6069_v28, %v6043_v17  ;;  %v7512_v17 = vld [vmem:[%s10480_s19 + $0x238] sm:$0xff]  ;;  %v7501_v28 = vld [vmem:[%s10480_s19 + $0x1e0] sm:$0xff] }
0x1773   : > { %6339 = vmatpush.msrb.mxu2 %v7512_v17 }
0x1775   : > { %6340 = vmatpush.msrb.mxu2 %v7511_v9 }
0x1777   : > { %6341 = vmatpush.msrb.mxu2 %v7510_v34 }
0x1788   : > { %v5994_v24 = vpop.f32.mrf.mxu0 }
0x178b   : > { %v6020_v58 = vpop.f32.mrf.mxu1 }
0x178c   : > { %v6021_v4 = vadd.f32 %v6020_v58, %v5994_v24  ;;  %v7503_v24 = vld [vmem:[%s10480_s19 + $0x1f0] sm:$0xff]  ;;  %v7502_v58 = vld [vmem:[%s10480_s19 + $0x1e8] sm:$0xff] }
0x178d   : > { %6292 = vmatpush.msra.mxu0 %v7503_v24 }
0x178e   : > { %6077 = vrot.lane.b32.xlu2 %v6021_v4, %s10579_s14  ;;  %v7496_v4 = vld [vmem:[%s10480_s19 + $0x1b8] sm:$0xff] }
0x178f   : > { %6293 = vmatpush.msra.mxu0 %v7502_v58 }
0x1791   : > { %6294 = vmatpush.msra.mxu0 %v7501_v28 }
0x1793   : > { %6295 = vmatpush.msra.mxu0 %v7500_v2 }
0x1796   : > { %6081 = vrot.lane.b32.xlu2 %v6070_v48, %s10566_s6  ;;  %v7495_v48 = vld [vmem:[%s10480_s19 + $0x1b0] sm:$0xff]  ;;  %s10584_s6 = sld [smem:[#allocation20_spill]] }
0x179c   : > { %v6074_v33 = vpop.permute.xlu1 %6073 }
0x179d   : > { %v6084_v29 = vsel %vm2797_vm3, %v5923_v30, %v6074_v33  ;;  %v7493_v33 = vld [vmem:[%s10480_s19 + $0x1a0] sm:$0xff] }
0x179e   : > { %v7509_v30 = vld [vmem:[%s10480_s19 + $0x220] sm:$0xff] }
0x179f   : > { %6342 = vmatpush.msrb.mxu2 %v7509_v30 }
0x17e8   : > { %v6078_v35 = vpop.permute.xlu2 %6077 }
0x17e9   : > { %v6085_v18 = vsel %vm10581_vm4, %v6084_v29, %v6078_v35  ;;  %v7499_v35 = vld [vmem:[%s10480_s19 + $0x1d0] sm:$0xff]  ;;  %v7498_v29 = vld [vmem:[%s10480_s19 + $0x1c8] sm:$0xff] }
0x17ea   : > { %6296 = vmatpush.msra.mxu0 %v7499_v35 }
0x17ec   : > { %6297 = vmatpush.msra.mxu0 %v7498_v29 }
0x17f0   : > { %v6082_v45 = vpop.permute.xlu2 %6081 }
0x17f1   : > { %v6086_v3 = vsel %vm10582_vm5, %v6085_v18, %v6082_v45  ;;  %v7492_v18 = vld [vmem:[%s10480_s19 + $0x198] sm:$0xff] }
0x17f2   : > { %7470 = vmatmul.msk.f32.vlgmr.msrb.gmra.mxu0 %vm2766_vm2, %v6086_v3  ;;  %v7508_v45 = vld [vmem:[%s10480_s19 + $0x218] sm:$0xff]  ;;  %v7497_v3 = vld [vmem:[%s10480_s19 + $0x1c0] sm:$0xff] }
0x17f3   : > { %6343 = vmatpush.msrb.mxu2 %v7508_v45  ;;  %6298 = vmatpush.msra.mxu0 %v7497_v3 }
0x186f   : > { %v6117_v11 = vpop.f32.mrf.mxu0 }
0x1870   : > { %v6118_v31 = vadd.f32 %v7868_v43, %v6117_v11  ;;  %v7491_v43 = vld [vmem:[%s10480_s19 + $0x190] sm:$0xff] }
0x1871   : > { %v7507_v11 = vld [vmem:[%s10480_s19 + $0x210] sm:$0xff] }
0x1872   : > { %v6120_v46 = vadd.f32 %v6118_v31, %v9902_v32  ;;  %v7479_v32 = vld [vmem:[%s10478_s17 + $0xf0] sm:$0xff]  ;;  %v7490_v31 = vld [vmem:[%s10480_s19 + $0x188] sm:$0xff]  ;;  %6344 = vmatpush.msrb.mxu2 %v7507_v11 }
0x1873   : > { %6189 = vmatpush.msra.mxu1 %v7479_v32 }
0x1874   : > { %v6125_v47 = vsel %vm2766_vm2, %v6120_v46, 0.0 }
0x1875   : > { %6126 = vadd.xlane.f32.xlu0 %v6125_v47  ;;  %6190 = vmatpush.msra.mxu1 %v7478_v22  ;;  %v7489_v47 = vld [vmem:[%s10480_s19 + $0x180] sm:$0xff] }
0x1877   : > { %6191 = vmatpush.msra.mxu1 %v7477_v54 }
0x1879   : > { %6314 = vmatpush.msrb.mxu1 %v7496_v4  ;;  %v7873_v4 = vld [vmem:[%s10482_s21 + $0x2] ss:$0 sm:$0xff] }
0x187b   : > { %6315 = vmatpush.msrb.mxu1 %v7495_v48 }
0x187d   : > { %6316 = vmatpush.msrb.mxu1 %v7494_v42  ;;  %v7875_v42 = vld [vmem:[%s10585_s7] ss:$0 sm:$0xff] }
0x187f   : > { %6317 = vmatpush.msrb.mxu1 %v7493_v33 }
0x1881   : > { %6318 = vmatpush.msrb.mxu1 %v7492_v18 }
0x1883   : > { %6319 = vmatpush.msrb.mxu1 %v7491_v43 }
0x1885   : > { %6320 = vmatpush.msrb.mxu1 %v7490_v31 }
0x1887   : > { %6321 = vmatpush.msrb.mxu1 %v7489_v47 }
0x18e8   : > { %v6127_v49 = vpop.xlane.xlu0 %6126 }
0x18e9   : > { %v6128_v39 = vmul.f32 %v6127_v49, %v9182_v36  ;;  %v7505_v49 = vld [vmem:[%s10480_s19 + $0x200] sm:$0xff] }
0x18eb   : > { %v6129_v51 = vsub.f32 %v6120_v46, %v6128_v39  ;;  %v7506_v46 = vld [vmem:[%s10480_s19 + $0x208] sm:$0xff] }
0x18ec   : > { %6345 = vmatpush.msrb.mxu2 %v7506_v46 }
0x18ed   : > { %v6130_v40 = vmul.f32 %v6129_v51, %v6129_v51 }
0x18ee   : > { %6346 = vmatpush.msrb.mxu2 %v7505_v49 }
0x18ef   : > { %v6131_v38 = vsel %vm2766_vm2, %v6130_v40, 0.0 }
0x18f0   : > { %6132 = vadd.xlane.f32.xlu1 %v6131_v38  ;;  %v7871_v38 = vld [vmem:[%s10555_s0 + $0x2] ss:$0 sm:$0xff] }
0x1963   : > { %v6133_v37 = vpop.xlane.xlu1 %6132 }
0x1964   : > { %v6134_v26 = vmul.f32 %v6133_v37, %v9182_v36 }
0x1966   : > { %v6135_v1 = vadd.f32 1e-05, %v6134_v26 }
0x1968   : > { %7934 = vrsqrt.f32 %v6135_v1  ;;  %vm6142_vm6 = vweird.f32 %v6135_v1 }
0x196e   : > { %v7935_v20 = vpop.eup %7934 }
0x196f   : > { %v6137_v7 = vmul.f32 %v7935_v20, %v6135_v1  ;;  %vm6143_vm3 = vweird.f32 %v7935_v20 }
0x1970   : > { %vm6144_vm7 = vmor %vm6142_vm6, %vm6143_vm3 }
0x1971   : > { %v6138_v6 = vmul.f32 %v7935_v20, %v6137_v7 }
0x1973   : > { %v6139_v55 = vmul.f32 0.5, %v6138_v6 }
0x1975   : > { %v6140_v12 = vsub.f32 1.5, %v6139_v55 }
0x1977   : > { %v6141_v5 = vmul.f32 %v7935_v20, %v6140_v12 }
0x1979   : > { %v6145_v8 = vsel %vm6144_vm7, %v7935_v20, %v6141_v5 }
0x197a   : > { %v6146_v63 = vmul.f32 %v6145_v8, %v6129_v51  ;;  %v6396_v8 = vld [vmem:[%s10584_s6 + $0x18] sm:$0xff] }
0x197b   : > { %6416 = vmatpush.msra.mxu3 %v6396_v8 }
0x197c   : > { %v6150_v41 = vmul.f32 %v7869_v14, %v6146_v63  ;;  %v6394_v63 = vld [vmem:[%s10584_s6 + $0x8] sm:$0xff] }
0x197e   : > { %v10328_v10 = vadd.f32 %v7870_v57, %v6150_v41  ;;  %v6395_v57 = vld [vmem:[%s10584_s6 + $0x10] sm:$0xff]  ;;  %v6393_v41 = vld [vmem:[%s10584_s6] sm:$0xff] }
0x197f   : > { %6417 = vmatpush.msra.mxu3 %v6395_v57 }
0x1980   : > { %v6155_v44 = vmul.f32 %v8791_v15, %v10328_v10 }
0x1981   : > { %6418 = vmatpush.msra.mxu3 %v6394_v63 }
0x1982   : > { %7486 = vmatmul.msk.f32.vlgmr.msra.gmra.mxu1 %vm2766_vm2, %v6155_v44  ;;  %v6171_v21 = vrot.slane %v6155_v44, 7  ;;  %v6219_v16 = vrot.slane %v6155_v44, 1 }
0x1983   : > { %6419 = vmatpush.msra.mxu3 %v6393_v41 }
0x1984   : > { %v6172_v52 = vmul.f32 %v9236_v61, %v6171_v21  ;;  %v6220_v25 = vmul.f32 %v9239_v13, %v6219_v16 }
0x1986   : > { %7487 = vmatmul.msk.f32.vlgmr.msra.gmra.mxu2 %vm2766_vm2, %v6172_v52  ;;  %7488 = vmatmul.msk.f32.vlgmr.msrb.gmra.mxu3 %vm2766_vm2, %v6220_v25 }
0x19ff   : > { %v6193_v39 = vpop.f32.mrf.mxu1 }
0x1a09   : > { %v6216_v51 = vpop.f32.mrf.mxu2  ;;  %v6241_v50 = vpop.f32.mrf.mxu3 }
0x1a0a   : > { %v6217_v40 = vadd.f32 %v6216_v51, %v6193_v39 }
0x1a0c   : > { %v6244_v32 = vadd.f32 %v6241_v50, %v6217_v40 }
0x1a0e   : > { %v6248_v22 = vadd.f32 %v7871_v38, %v6244_v32 }
0x1a10   : > { %v6249_v23 = vmax.f32 %v6248_v22, 0.0 }
0x1a12   : > { %v6250_v53 = vmul.f32 %v8791_v15, %v6249_v23 }
0x1a14   : > { %v6278_v54 = vrot.slane %v6250_v53, 7  ;;  %v6326_v59 = vrot.slane %v6250_v53, 1  ;;  %7514 = vmatmul.msk.f32.vlgmr.msra.gmra.mxu0 %vm3853_vm13, %v6250_v53 }
0x1a16   : > { %v6279_v56 = vmul.f32 %v9236_v61, %v6278_v54  ;;  %v6327_v60 = vmul.f32 %v9239_v13, %v6326_v59 }
0x1a18   : > { %7515 = vmatmul.msk.f32.vlgmr.msrb.gmra.mxu1 %vm3853_vm13, %v6279_v56  ;;  %7516 = vmatmul.msk.f32.vlgmr.msrb.gmra.mxu2 %vm3853_vm13, %v6327_v60 }
0x1a91   : > { %v6300_v37 = vpop.f32.mrf.mxu0 }
0x1a95   : > { %v6323_v62 = vpop.f32.mrf.mxu1 }
0x1a96   : > { %v6324_v26 = vadd.f32 %v6323_v62, %v6300_v37 }
0x1a9b   : > { %v6348_v19 = vpop.f32.mrf.mxu2 }
0x1a9c   : > { %v6351_v1 = vadd.f32 %v6348_v19, %v6324_v26 }
0x1a9e   : > { %v6355_v20 = vadd.f32 %v7872_v0, %v6351_v1 }
0x1aa0   : > { %v6356_v7 = vmul.f32 %v8791_v15, %v6355_v20 }
0x1aa2   : > { %v6357_v61 = vadd.f32 %v6356_v7, %v10328_v10 }
0x1aa4   : > { %v6362_v13 = vsel %vm2766_vm2, %v6357_v61, 0.0 }
0x1aa5   : > { %6363 = vadd.xlane.f32.xlu2 %v6362_v13 }
0x1b18   : > { %v6364_v6 = vpop.xlane.xlu2 %6363 }
0x1b19   : > { %v6365_v55 = vmul.f32 %v6364_v6, %v9182_v36 }
0x1b1b   : > { %v6366_v12 = vsub.f32 %v6357_v61, %v6365_v55 }
0x1b1d   : > { %v6367_v5 = vmul.f32 %v6366_v12, %v6366_v12 }
0x1b1f   : > { %v6368_v14 = vsel %vm2766_vm2, %v6367_v5, 0.0 }
0x1b20   : > { %6369 = vadd.xlane.f32.xlu0 %v6368_v14 }
0x1b93   : > { %v6370_v10 = vpop.xlane.xlu0 %6369 }
0x1b94   : > { %v6371_v44 = vmul.f32 %v6370_v10, %v9182_v36  ;;  %v7874_v36 = vld [vmem:[%s10483_s22 + $0x2] ss:$0 sm:$0xff] }
0x1b96   : > { %v6372_v21 = vadd.f32 1e-05, %v6371_v44 }
0x1b98   : > { %7936 = vrsqrt.f32 %v6372_v21  ;;  %vm6379_vm9 = vweird.f32 %v6372_v21 }
0x1b9e   : > { %v7937_v16 = vpop.eup %7936 }
0x1b9f   : > { %v6374_v52 = vmul.f32 %v7937_v16, %v6372_v21  ;;  %vm6380_vm8 = vweird.f32 %v7937_v16 }
0x1ba0   : > { %vm6381_vm10 = vmor %vm6379_vm9, %vm6380_vm8 }
0x1ba1   : > { %v6375_v25 = vmul.f32 %v7937_v16, %v6374_v52 }
0x1ba3   : > { %v6376_v27 = vmul.f32 0.5, %v6375_v25 }
0x1ba5   : > { %v6377_v24 = vsub.f32 1.5, %v6376_v27 }
0x1ba7   : > { %v6378_v58 = vmul.f32 %v7937_v16, %v6377_v24 }
0x1ba9   : > { %v6382_v17 = vsel %vm6381_vm10, %v7937_v16, %v6378_v58 }
0x1baa   : > { %v6383_v28 = vmul.f32 %v6382_v17, %v6366_v12 }
0x1bac   : > { %v6387_v48 = vmul.f32 %v7873_v4, %v6383_v28 }
0x1bae   : > { %v6391_v9 = vadd.f32 %v7874_v36, %v6387_v48 }
0x1bb0   : > { %v6392_v2 = vmul.f32 %v8791_v15, %v6391_v9 }
0x1bb2   : > { %7519 = vmatmul.msk.f32.vlgmr.msra.gmra.mxu3 %vm2766_vm2, %v6392_v2 }
0x1c35   : > { %v6421_v34 = vpop.f32.mrf.mxu3 }
0x1c36   : > { %v6422_v35 = vadd.f32 %v7875_v42, %v6421_v34 }
0x1c38   : > { %v6424_v33 = vmul.f32 %v8791_v15, %v6422_v35 }
0x1c3a   : > { %6426 = vrot.lane.b32.xlu0 %v6424_v33, %s8004_s2 }
0x1cac   : > { %v6427_v30 = vpop.permute.xlu0 %6426 }
0x1cad   : > { %v6429_v29 = vsel %vm2766_vm2, %v6392_v2, %v6427_v30 }
0x1cae   : > { %6430 = vst.msk [vmem:[%s775_s3] sm:$0xff] %vm3853_vm13, %v6429_v29 }
0x1caf PF: > { %s10588_s11 = sld [smem:[#allocation5_spill]] }
0x1cb5   : > { %s43_s7 = sadd.s32 1, %s10588_s11  }
0x1cb6   : > { %p40_p4 = scmp.ge.s32.totalorder %s43_s7, 4  }
0x1cb8   :  { %42 = sbr.rel (!%p40_p4) target bundleno = 30 (0x1e), region = 180 }

</bundles_post_ra>
